<compile_context>
chip_gen: v5e
topology: v5e:2x2
jax: 0.10.0
libtpu: 0.0.40
codegen_flags: <defaults>
</compile_context>

<pallas_src>
import math
from functools import lru_cache, partial

import jax
import jax.numpy as jnp
from jax.experimental import pallas as pl
from jax.experimental.pallas import tpu as pltpu


# ---------------------------------------------------------------------------
# Hardware query (defensive): number of TensorCores per chip
# ---------------------------------------------------------------------------
@lru_cache(maxsize=None)
def _num_tensorcores():
    # v7x has 2 TensorCores per chip; v5e/v6e have 1.  Query defensively so a
    # missing attribute can never break compilation; fall back to 1 (which is
    # the right choice for single-TC chips anyway).
    try:
        info = pltpu.get_tpu_info()
        for attr in ("num_cores", "num_tensorcores", "tensorcore_count",
                     "cores_per_chip", "num_cores_per_chip"):
            v = getattr(info, attr, None)
            if isinstance(v, int) and v > 0:
                return v
    except Exception:
        pass
    try:
        v = getattr(jax.devices()[0], "num_cores", None)
        if isinstance(v, int) and v > 0:
            return v
    except Exception:
        pass
    return 1


# ---------------------------------------------------------------------------
# Conv-layer kernel: matmul (bf16 MXU feed, f32 accumulate) + bias + ReLU
# ---------------------------------------------------------------------------
def _mm_bias_relu_kernel(x_ref, w_ref, b_ref, o_ref):
    acc = jnp.dot(x_ref[...], w_ref[...], preferred_element_type=jnp.float32)
    acc = jnp.maximum(acc + b_ref[...], 0.0)
    o_ref[...] = acc.astype(o_ref.dtype)


def matmul_bias_relu(x, w, b):
    """relu(x @ w + b).  x:[M,K] bf16, w:[K,N] bf16, b:[1,N] f32 -> [M,N] bf16.

    Full-array blocks (no padding / tail slices).  The M axis is split across
    TensorCores only when the chip has more than one and the split keeps the
    block sublane-aligned (v7x conv1); otherwise a single big block is used.
    """
    M, K = x.shape
    _, N = w.shape
    ncores = _num_tensorcores()
    nblk = ncores if (ncores > 1 and M >= 512 and M % (8 * ncores) == 0) else 1
    TM = M // nblk

    return pl.pallas_call(
        _mm_bias_relu_kernel,
        out_shape=jax.ShapeDtypeStruct((M, N), jnp.bfloat16),
        grid=(nblk,),
        in_specs=[
            pl.BlockSpec((TM, K), lambda i: (i, 0)),
            pl.BlockSpec((K, N), lambda i: (0, 0)),
            pl.BlockSpec((1, N), lambda i: (0, 0)),
        ],
        out_specs=pl.BlockSpec((TM, N), lambda i: (i, 0)),
        compiler_params=pltpu.CompilerParams(
            dimension_semantics=("parallel",)),
    )(x, w, b)


# ---------------------------------------------------------------------------
# Fused head kernel: fc + inverse model + forward model + one_hot + concats
# ---------------------------------------------------------------------------
def _head_kernel(flat_ref, act_ref, wfc_ref, bfc_ref,
                 wi1s_ref, wi1n_ref, bi1_ref, wi2_ref, bi2_ref,
                 wf1s_ref, wf1a_ref, bf1_ref, wf2_ref, bf2_ref,
                 state_ref, nstate_ref, pa_ref, pns_ref,
                 *, batch, action_dim):
    # fc: relu(flat @ Wfc + bfc)   -- flat rows: [state batch ; next_state batch]
    feats = jnp.dot(flat_ref[...], wfc_ref[...],
                    preferred_element_type=jnp.float32)
    feats = jnp.maximum(feats + bfc_ref[...], 0.0)          # [2B, F] f32

    state_ = feats[:batch]                                   # [B, F]
    nstate_ = feats[batch:]
    state_ref[...] = state_
    nstate_ref[...] = nstate_

    sb = state_.astype(jnp.bfloat16)
    nb = nstate_.astype(jnp.bfloat16)

    # inverse model: Linear(2F,256)+ReLU -> Linear(256,A).  The feature
    # concat is folded into two matmuls over the pre-split weight halves.
    h = (jnp.dot(sb, wi1s_ref[...], preferred_element_type=jnp.float32)
         + jnp.dot(nb, wi1n_ref[...], preferred_element_type=jnp.float32)
         + bi1_ref[...])
    h = jnp.maximum(h, 0.0)
    pa = (jnp.dot(h.astype(jnp.bfloat16), wi2_ref[...],
                  preferred_element_type=jnp.float32) + bi2_ref[...])
    pa_ref[...] = pa

    # forward model: one_hot(action) built in-kernel; concat folded likewise.
    onehot = (jax.lax.broadcasted_iota(jnp.int32, (batch, action_dim), 1)
              == act_ref[...]).astype(jnp.bfloat16)          # [B, A]
    h2 = (jnp.dot(sb, wf1s_ref[...], preferred_element_type=jnp.float32)
          + jnp.dot(onehot, wf1a_ref[...], preferred_element_type=jnp.float32)
          + bf1_ref[...])
    h2 = jnp.maximum(h2, 0.0)
    pns = (jnp.dot(h2.astype(jnp.bfloat16), wf2_ref[...],
                   preferred_element_type=jnp.float32) + bf2_ref[...])
    pns_ref[...] = pns


def fused_head(prep, flat, action, batch, action_dim):
    wfc, bfc = prep["fc"]
    wi1s, wi1n, bi1 = prep["inv1"]
    wi2, bi2 = prep["inv2"]
    wf1s, wf1a, bf1 = prep["fwd1"]
    wf2, bf2 = prep["fwd2"]
    feature_dim = wfc.shape[1]

    act = action.reshape(batch, 1).astype(jnp.int32)
    inputs = (flat, act, wfc, bfc, wi1s, wi1n, bi1, wi2, bi2,
              wf1s, wf1a, bf1, wf2, bf2)

    in_specs = [pl.BlockSpec(a.shape, lambda i: (0, 0)) for a in inputs]
    out_shape = (
        jax.ShapeDtypeStruct((batch, feature_dim), jnp.float32),
        jax.ShapeDtypeStruct((batch, feature_dim), jnp.float32),
        jax.ShapeDtypeStruct((batch, action_dim), jnp.float32),
        jax.ShapeDtypeStruct((batch, feature_dim), jnp.float32),
    )
    out_specs = [pl.BlockSpec(s.shape, lambda i: (0, 0)) for s in out_shape]

    return pl.pallas_call(
        partial(_head_kernel, batch=batch, action_dim=action_dim),
        out_shape=out_shape,
        grid=(1,),
        in_specs=in_specs,
        out_specs=out_specs,
        compiler_params=pltpu.CompilerParams(
            dimension_semantics=("arbitrary",)),
    )(*inputs)


# ---------------------------------------------------------------------------
# im2col (XLA side, fuses into one copy): NHWC -> patch rows, columns (kh,kw,C)
# ---------------------------------------------------------------------------
def _im2col_nhwc(x, kh, kw, stride):
    B, H, W, C = x.shape
    OH = (H - kh) // stride + 1
    OW = (W - kw) // stride + 1
    cols = []
    for i in range(kh):
        for j in range(kw):
            cols.append(
                x[:, i:i + stride * OH:stride, j:j + stride * OW:stride, :])
    p = jnp.stack(cols, axis=3)                        # [B, OH, OW, kh*kw, C]
    return p.reshape(B * OH * OW, kh * kw * C), OH, OW


# ---------------------------------------------------------------------------
# Deterministic parameter init (PyTorch-style) + one-time kernel-layout prep
# ---------------------------------------------------------------------------
def _uniform(key, shape, bound):
    return jax.random.uniform(key, shape, jnp.float32, -bound, bound)


def init_params(key, c, action_dim, feature_dim):
    def conv_init(k, oc, ic, kh, kw):
        k1, k2 = jax.random.split(k)
        bound = 1.0 / math.sqrt(ic * kh * kw)
        return _uniform(k1, (oc, ic, kh, kw), bound), _uniform(k2, (oc,), bound)

    def linear_init(k, in_f, out_f):
        k1, k2 = jax.random.split(k)
        bound = 1.0 / math.sqrt(in_f)
        # stored as [in, out] (== PyTorch weight.T), applied as x @ W + b
        return _uniform(k1, (in_f, out_f), bound), _uniform(k2, (out_f,), bound)

    keys = jax.random.split(key, 8)
    return {
        "conv1": conv_init(keys[0], 32, c, 8, 8),
        "conv2": conv_init(keys[1], 64, 32, 4, 4),
        "conv3": conv_init(keys[2], 64, 64, 3, 3),
        "fc":    linear_init(keys[3], 7 * 7 * 64, feature_dim),
        "inv1":  linear_init(keys[4], 2 * feature_dim, 256),
        "inv2":  linear_init(keys[5], 256, action_dim),
        "fwd1":  linear_init(keys[6], feature_dim + action_dim, 256),
        "fwd2":  linear_init(keys[7], 256, feature_dim),
    }


def prepare_params(params):
    """One-time prep: reorder / split / cast weights for the fused kernels."""
    prep = {}
    # conv OIHW -> (kh,kw,c)-ordered im2col weight, bf16 MXU feed, f32 bias.
    for name, stride in (("conv1", 4), ("conv2", 2), ("conv3", 1)):
        w, b = params[name]
        oc, ic, kh, kw = w.shape
        wm = jnp.transpose(w, (2, 3, 1, 0)).reshape(kh * kw * ic, oc)
        prep[name] = ((wm.astype(jnp.bfloat16),
                       b.reshape(1, oc).astype(jnp.float32), oc),
                      (kh, kw, stride))

    # fc: permute rows from PyTorch (C,H,W) flatten order to (H,W,C) so the
    # NHWC conv3 output feeds it with a free contiguous reshape.
    w, b = params["fc"]
    feature_dim = w.shape[1]
    w = (w.reshape(64, 7, 7, feature_dim)
          .transpose(1, 2, 0, 3)
          .reshape(7 * 7 * 64, feature_dim))
    prep["fc"] = (w.astype(jnp.bfloat16),
                  b.reshape(1, feature_dim).astype(jnp.float32))

    # inverse model layer 1: split rows so the feature concat becomes 2 dots.
    w, b = params["inv1"]
    prep["inv1"] = (w[:feature_dim].astype(jnp.bfloat16),
                    w[feature_dim:].astype(jnp.bfloat16),
                    b.reshape(1, -1).astype(jnp.float32))
    w, b = params["inv2"]
    prep["inv2"] = (w.astype(jnp.bfloat16), b.reshape(1, -1).astype(jnp.float32))

    # forward model layer 1: split rows into feature part and one-hot part.
    w, b = params["fwd1"]
    prep["fwd1"] = (w[:feature_dim].astype(jnp.bfloat16),
                    w[feature_dim:].astype(jnp.bfloat16),
                    b.reshape(1, -1).astype(jnp.float32))
    w, b = params["fwd2"]
    prep["fwd2"] = (w.astype(jnp.bfloat16), b.reshape(1, -1).astype(jnp.float32))
    return prep


# ---------------------------------------------------------------------------
# ICMneural.forward
# ---------------------------------------------------------------------------
def icm_forward(prep, state, next_state, action, action_dim):
    B = state.shape[0]
    # Both observations through the conv stack in one batched pass, NHWC bf16.
    x = jnp.concatenate([state, next_state], axis=0)           # [2B, C, H, W]
    x = jnp.transpose(x, (0, 2, 3, 1)).astype(jnp.bfloat16)    # [2B, H, W, C]

    for name in ("conv1", "conv2", "conv3"):
        (w, b, oc), (kh, kw, stride) = prep[name]
        nb = x.shape[0]
        patches, oh, ow = _im2col_nhwc(x, kh, kw, stride)
        y = matmul_bias_relu(patches, w, b)                    # [nb*oh*ow, oc]
        x = y.reshape(nb, oh, ow, oc)                          # stays NHWC

    # Free contiguous reshape into (H,W,C)-ordered flat features; fc weight
    # rows were permuted to match at prepare_params time.
    flat = x.reshape(2 * B, -1)                                # [2B, 7*7*64]

    # Single fused kernel: fc + inverse model + forward model (+ one_hot).
    return fused_head(prep, flat, action, B, action_dim)


if __name__ == "__main__":
    # 84x84 spatial input is required by the module's 7*7*64 flatten Linear.
    B, C, H, W = 2, 4, 84, 84
    action_dim = 4
    feature_dim = 256

    key = jax.random.PRNGKey(0)
    k_params, k_s, k_ns, k_a = jax.random.split(key, 4)
    params = init_params(k_params, C, action_dim, feature_dim)
    prep = prepare_params(params)   # one-time weight reorder / split / cast

    state = jax.random.uniform(k_s, (B, C, H, W), jnp.float32)
    next_state = jax.random.uniform(k_ns, (B, C, H, W), jnp.float32)
    action = jax.random.randint(k_a, (B,), 0, action_dim)

    # Close over prep so its static layout metadata stays Python-level.
    fwd = jax.jit(lambda s, ns, a: icm_forward(prep, s, ns, a, action_dim))

    outs = jax.block_until_ready(fwd(state, next_state, action))
    s_, ns_, pa, pns = outs
    assert s_.shape == (B, feature_dim)
    assert ns_.shape == (B, feature_dim)
    assert pa.shape == (B, action_dim)
    assert pns.shape == (B, feature_dim)
    print("KERNEL_OK")
</pallas_src>

<mosaic_0001>
module attributes {stable_mosaic.version = 11 : i64} {
  func.func @_mm_bias_relu_kernel(%arg0: i32, %arg1: memref<1600x256xbf16, #tpu.memory_space<vmem>>, %arg2: memref<256x32xbf16, #tpu.memory_space<vmem>>, %arg3: memref<1x32xf32, #tpu.memory_space<vmem>>, %arg4: memref<1600x32xbf16, #tpu.memory_space<vmem>>) attributes {dimension_semantics = [#tpu.dimension_semantics<parallel>], iteration_bounds = array<i64: 1>, scalar_prefetch = 0 : i64, scratch_operands = 0 : i64, tpu.core_type = #tpu.core_type<tc>, window_params = [{transform_indices = @transform_0, window_bounds = array<i64: 1600, 256>}, {pipeline_mode = #tpu.pipeline_mode<synchronous>, transform_indices = @transform_1, window_bounds = array<i64: 256, 32>}, {pipeline_mode = #tpu.pipeline_mode<synchronous>, transform_indices = @transform_2, window_bounds = array<i64: 1, 32>}, {transform_indices = @transform_3, window_bounds = array<i64: 1600, 32>}]} {
    %c0 = arith.constant 0 : index
    %c0_0 = arith.constant 0 : index
    %0 = vector.load %arg1[%c0, %c0_0] : memref<1600x256xbf16, #tpu.memory_space<vmem>>, vector<1600x256xbf16>
    %c0_1 = arith.constant 0 : index
    %c0_2 = arith.constant 0 : index
    %1 = vector.load %arg2[%c0_1, %c0_2] : memref<256x32xbf16, #tpu.memory_space<vmem>>, vector<256x32xbf16>
    %cst = arith.constant dense<0.000000e+00> : vector<1600x32xf32>
    %2 = tpu.matmul %0, %1, %cst {dimension_numbers = #tpu.dot_dimension_numbers<[1], [0], [0], [1], [0, 0, 1, 1], [], []>} : vector<1600x256xbf16>, vector<256x32xbf16>, vector<1600x32xf32> -> vector<1600x32xf32>
    %c0_3 = arith.constant 0 : index
    %c0_4 = arith.constant 0 : index
    %3 = vector.load %arg3[%c0_3, %c0_4] : memref<1x32xf32, #tpu.memory_space<vmem>>, vector<1x32xf32>
    %4 = vector.broadcast %3 : vector<1x32xf32> to vector<1600x32xf32>
    %5 = arith.addf %2, %4 : vector<1600x32xf32>
    %cst_5 = arith.constant 0.000000e+00 : f32
    %6 = vector.broadcast %cst_5 : f32 to vector<1600x32xf32>
    %7 = arith.maximumf %5, %6 : vector<1600x32xf32>
    %8 = arith.truncf %7 : vector<1600x32xf32> to vector<1600x32xbf16>
    %c0_6 = arith.constant 0 : index
    %c0_7 = arith.constant 0 : index
    %9 = vector.load %arg4[%c0_6, %c0_7] : memref<1600x32xbf16, #tpu.memory_space<vmem>>, vector<1600x32xbf16>
    tpu.vector_store %arg4[%c0_6, %c0_7], %8 {strides = array<i32>} : memref<1600x32xbf16, #tpu.memory_space<vmem>>, vector<1600x32xbf16>,
    return
  }
  func.func @transform_0(%arg0: i32) -> (i32, i32) {
    %c0_i32 = arith.constant 0 : i32
    %c0_i32_0 = arith.constant 0 : i32
    return %arg0, %c0_i32 : i32, i32
  }
  func.func @transform_1(%arg0: i32) -> (i32, i32) {
    %c0_i32 = arith.constant 0 : i32
    %c0_i32_0 = arith.constant 0 : i32
    %c0_i32_1 = arith.constant 0 : i32
    return %c0_i32, %c0_i32_0 : i32, i32
  }
  func.func @transform_2(%arg0: i32) -> (i32, i32) {
    %c0_i32 = arith.constant 0 : i32
    %c0_i32_0 = arith.constant 0 : i32
    %c0_i32_1 = arith.constant 0 : i32
    return %c0_i32, %c0_i32_0 : i32, i32
  }
  func.func @transform_3(%arg0: i32) -> (i32, i32) {
    %c0_i32 = arith.constant 0 : i32
    %c0_i32_0 = arith.constant 0 : i32
    return %arg0, %c0_i32 : i32, i32
  }
}

module attributes {stable_mosaic.version = 11 : i64} {
  func.func @_mm_bias_relu_kernel(%arg0: i32, %arg1: memref<324x512xbf16, #tpu.memory_space<vmem>>, %arg2: memref<512x64xbf16, #tpu.memory_space<vmem>>, %arg3: memref<1x64xf32, #tpu.memory_space<vmem>>, %arg4: memref<324x64xbf16, #tpu.memory_space<vmem>>) attributes {dimension_semantics = [#tpu.dimension_semantics<parallel>], iteration_bounds = array<i64: 1>, scalar_prefetch = 0 : i64, scratch_operands = 0 : i64, tpu.core_type = #tpu.core_type<tc>, window_params = [{transform_indices = @transform_0, window_bounds = array<i64: 324, 512>}, {pipeline_mode = #tpu.pipeline_mode<synchronous>, transform_indices = @transform_1, window_bounds = array<i64: 512, 64>}, {pipeline_mode = #tpu.pipeline_mode<synchronous>, transform_indices = @transform_2, window_bounds = array<i64: 1, 64>}, {transform_indices = @transform_3, window_bounds = array<i64: 324, 64>}]} {
    %c0 = arith.constant 0 : index
    %c0_0 = arith.constant 0 : index
    %0 = vector.load %arg1[%c0, %c0_0] : memref<324x512xbf16, #tpu.memory_space<vmem>>, vector<324x512xbf16>
    %c0_1 = arith.constant 0 : index
    %c0_2 = arith.constant 0 : index
    %1 = vector.load %arg2[%c0_1, %c0_2] : memref<512x64xbf16, #tpu.memory_space<vmem>>, vector<512x64xbf16>
    %cst = arith.constant dense<0.000000e+00> : vector<324x64xf32>
    %2 = tpu.matmul %0, %1, %cst {dimension_numbers = #tpu.dot_dimension_numbers<[1], [0], [0], [1], [0, 0, 1, 1], [], []>} : vector<324x512xbf16>, vector<512x64xbf16>, vector<324x64xf32> -> vector<324x64xf32>
    %c0_3 = arith.constant 0 : index
    %c0_4 = arith.constant 0 : index
    %3 = vector.load %arg3[%c0_3, %c0_4] : memref<1x64xf32, #tpu.memory_space<vmem>>, vector<1x64xf32>
    %4 = vector.broadcast %3 : vector<1x64xf32> to vector<324x64xf32>
    %5 = arith.addf %2, %4 : vector<324x64xf32>
    %cst_5 = arith.constant 0.000000e+00 : f32
    %6 = vector.broadcast %cst_5 : f32 to vector<324x64xf32>
    %7 = arith.maximumf %5, %6 : vector<324x64xf32>
    %8 = arith.truncf %7 : vector<324x64xf32> to vector<324x64xbf16>
    %c0_6 = arith.constant 0 : index
    %c0_7 = arith.constant 0 : index
    %9 = vector.load %arg4[%c0_6, %c0_7] : memref<324x64xbf16, #tpu.memory_space<vmem>>, vector<324x64xbf16>
    tpu.vector_store %arg4[%c0_6, %c0_7], %8 {strides = array<i32>} : memref<324x64xbf16, #tpu.memory_space<vmem>>, vector<324x64xbf16>,
    return
  }
  func.func @transform_0(%arg0: i32) -> (i32, i32) {
    %c0_i32 = arith.constant 0 : i32
    %c0_i32_0 = arith.constant 0 : i32
    return %arg0, %c0_i32 : i32, i32
  }
  func.func @transform_1(%arg0: i32) -> (i32, i32) {
    %c0_i32 = arith.constant 0 : i32
    %c0_i32_0 = arith.constant 0 : i32
    %c0_i32_1 = arith.constant 0 : i32
    return %c0_i32, %c0_i32_0 : i32, i32
  }
  func.func @transform_2(%arg0: i32) -> (i32, i32) {
    %c0_i32 = arith.constant 0 : i32
    %c0_i32_0 = arith.constant 0 : i32
    %c0_i32_1 = arith.constant 0 : i32
    return %c0_i32, %c0_i32_0 : i32, i32
  }
  func.func @transform_3(%arg0: i32) -> (i32, i32) {
    %c0_i32 = arith.constant 0 : i32
    %c0_i32_0 = arith.constant 0 : i32
    return %arg0, %c0_i32 : i32, i32
  }
}

module attributes {stable_mosaic.version = 11 : i64} {
  func.func @_mm_bias_relu_kernel(%arg0: i32, %arg1: memref<196x576xbf16, #tpu.memory_space<vmem>>, %arg2: memref<576x64xbf16, #tpu.memory_space<vmem>>, %arg3: memref<1x64xf32, #tpu.memory_space<vmem>>, %arg4: memref<196x64xbf16, #tpu.memory_space<vmem>>) attributes {dimension_semantics = [#tpu.dimension_semantics<parallel>], iteration_bounds = array<i64: 1>, scalar_prefetch = 0 : i64, scratch_operands = 0 : i64, tpu.core_type = #tpu.core_type<tc>, window_params = [{transform_indices = @transform_0, window_bounds = array<i64: 196, 576>}, {pipeline_mode = #tpu.pipeline_mode<synchronous>, transform_indices = @transform_1, window_bounds = array<i64: 576, 64>}, {pipeline_mode = #tpu.pipeline_mode<synchronous>, transform_indices = @transform_2, window_bounds = array<i64: 1, 64>}, {transform_indices = @transform_3, window_bounds = array<i64: 196, 64>}]} {
    %c0 = arith.constant 0 : index
    %c0_0 = arith.constant 0 : index
    %0 = vector.load %arg1[%c0, %c0_0] : memref<196x576xbf16, #tpu.memory_space<vmem>>, vector<196x576xbf16>
    %c0_1 = arith.constant 0 : index
    %c0_2 = arith.constant 0 : index
    %1 = vector.load %arg2[%c0_1, %c0_2] : memref<576x64xbf16, #tpu.memory_space<vmem>>, vector<576x64xbf16>
    %cst = arith.constant dense<0.000000e+00> : vector<196x64xf32>
    %2 = tpu.matmul %0, %1, %cst {dimension_numbers = #tpu.dot_dimension_numbers<[1], [0], [0], [1], [0, 0, 1, 1], [], []>} : vector<196x576xbf16>, vector<576x64xbf16>, vector<196x64xf32> -> vector<196x64xf32>
    %c0_3 = arith.constant 0 : index
    %c0_4 = arith.constant 0 : index
    %3 = vector.load %arg3[%c0_3, %c0_4] : memref<1x64xf32, #tpu.memory_space<vmem>>, vector<1x64xf32>
    %4 = vector.broadcast %3 : vector<1x64xf32> to vector<196x64xf32>
    %5 = arith.addf %2, %4 : vector<196x64xf32>
    %cst_5 = arith.constant 0.000000e+00 : f32
    %6 = vector.broadcast %cst_5 : f32 to vector<196x64xf32>
    %7 = arith.maximumf %5, %6 : vector<196x64xf32>
    %8 = arith.truncf %7 : vector<196x64xf32> to vector<196x64xbf16>
    %c0_6 = arith.constant 0 : index
    %c0_7 = arith.constant 0 : index
    %9 = vector.load %arg4[%c0_6, %c0_7] : memref<196x64xbf16, #tpu.memory_space<vmem>>, vector<196x64xbf16>
    tpu.vector_store %arg4[%c0_6, %c0_7], %8 {strides = array<i32>} : memref<196x64xbf16, #tpu.memory_space<vmem>>, vector<196x64xbf16>,
    return
  }
  func.func @transform_0(%arg0: i32) -> (i32, i32) {
    %c0_i32 = arith.constant 0 : i32
    %c0_i32_0 = arith.constant 0 : i32
    return %arg0, %c0_i32 : i32, i32
  }
  func.func @transform_1(%arg0: i32) -> (i32, i32) {
    %c0_i32 = arith.constant 0 : i32
    %c0_i32_0 = arith.constant 0 : i32
    %c0_i32_1 = arith.constant 0 : i32
    return %c0_i32, %c0_i32_0 : i32, i32
  }
  func.func @transform_2(%arg0: i32) -> (i32, i32) {
    %c0_i32 = arith.constant 0 : i32
    %c0_i32_0 = arith.constant 0 : i32
    %c0_i32_1 = arith.constant 0 : i32
    return %c0_i32, %c0_i32_0 : i32, i32
  }
  func.func @transform_3(%arg0: i32) -> (i32, i32) {
    %c0_i32 = arith.constant 0 : i32
    %c0_i32_0 = arith.constant 0 : i32
    return %arg0, %c0_i32 : i32, i32
  }
}

module attributes {stable_mosaic.version = 11 : i64} {
  func.func @_head_kernel(%arg0: i32, %arg1: memref<4x3136xbf16, #tpu.memory_space<vmem>>, %arg2: memref<2x1xi32, #tpu.memory_space<vmem>>, %arg3: memref<3136x256xbf16, #tpu.memory_space<vmem>>, %arg4: memref<1x256xf32, #tpu.memory_space<vmem>>, %arg5: memref<256x256xbf16, #tpu.memory_space<vmem>>, %arg6: memref<256x256xbf16, #tpu.memory_space<vmem>>, %arg7: memref<1x256xf32, #tpu.memory_space<vmem>>, %arg8: memref<256x4xbf16, #tpu.memory_space<vmem>>, %arg9: memref<1x4xf32, #tpu.memory_space<vmem>>, %arg10: memref<256x256xbf16, #tpu.memory_space<vmem>>, %arg11: memref<4x256xbf16, #tpu.memory_space<vmem>>, %arg12: memref<1x256xf32, #tpu.memory_space<vmem>>, %arg13: memref<256x256xbf16, #tpu.memory_space<vmem>>, %arg14: memref<1x256xf32, #tpu.memory_space<vmem>>, %arg15: memref<2x256xf32, #tpu.memory_space<vmem>>, %arg16: memref<2x256xf32, #tpu.memory_space<vmem>>, %arg17: memref<2x4xf32, #tpu.memory_space<vmem>>, %arg18: memref<2x256xf32, #tpu.memory_space<vmem>>) attributes {dimension_semantics = [#tpu.dimension_semantics<arbitrary>], iteration_bounds = array<i64: 1>, scalar_prefetch = 0 : i64, scratch_operands = 0 : i64, tpu.core_type = #tpu.core_type<tc>, window_params = [{pipeline_mode = #tpu.pipeline_mode<synchronous>, transform_indices = @transform_0, window_bounds = array<i64: 4, 3136>}, {pipeline_mode = #tpu.pipeline_mode<synchronous>, transform_indices = @transform_1, window_bounds = array<i64: 2, 1>}, {pipeline_mode = #tpu.pipeline_mode<synchronous>, transform_indices = @transform_2, window_bounds = array<i64: 3136, 256>}, {pipeline_mode = #tpu.pipeline_mode<synchronous>, transform_indices = @transform_3, window_bounds = array<i64: 1, 256>}, {pipeline_mode = #tpu.pipeline_mode<synchronous>, transform_indices = @transform_4, window_bounds = array<i64: 256, 256>}, {pipeline_mode = #tpu.pipeline_mode<synchronous>, transform_indices = @transform_5, window_bounds = array<i64: 256, 256>}, {pipeline_mode = #tpu.pipeline_mode<synchronous>, transform_indices = @transform_6, window_bounds = array<i64: 1, 256>}, {pipeline_mode = #tpu.pipeline_mode<synchronous>, transform_indices = @transform_7, window_bounds = array<i64: 256, 4>}, {pipeline_mode = #tpu.pipeline_mode<synchronous>, transform_indices = @transform_8, window_bounds = array<i64: 1, 4>}, {pipeline_mode = #tpu.pipeline_mode<synchronous>, transform_indices = @transform_9, window_bounds = array<i64: 256, 256>}, {pipeline_mode = #tpu.pipeline_mode<synchronous>, transform_indices = @transform_10, window_bounds = array<i64: 4, 256>}, {pipeline_mode = #tpu.pipeline_mode<synchronous>, transform_indices = @transform_11, window_bounds = array<i64: 1, 256>}, {pipeline_mode = #tpu.pipeline_mode<synchronous>, transform_indices = @transform_12, window_bounds = array<i64: 256, 256>}, {pipeline_mode = #tpu.pipeline_mode<synchronous>, transform_indices = @transform_13, window_bounds = array<i64: 1, 256>}, {pipeline_mode = #tpu.pipeline_mode<synchronous>, transform_indices = @transform_14, window_bounds = array<i64: 2, 256>}, {pipeline_mode = #tpu.pipeline_mode<synchronous>, transform_indices = @transform_15, window_bounds = array<i64: 2, 256>}, {pipeline_mode = #tpu.pipeline_mode<synchronous>, transform_indices = @transform_16, window_bounds = array<i64: 2, 4>}, {pipeline_mode = #tpu.pipeline_mode<synchronous>, transform_indices = @transform_17, window_bounds = array<i64: 2, 256>}]} {
    %c0 = arith.constant 0 : index
    %c0_0 = arith.constant 0 : index
    %0 = vector.load %arg1[%c0, %c0_0] : memref<4x3136xbf16, #tpu.memory_space<vmem>>, vector<4x3136xbf16>
    %c0_1 = arith.constant 0 : index
    %c0_2 = arith.constant 0 : index
    %1 = vector.load %arg3[%c0_1, %c0_2] : memref<3136x256xbf16, #tpu.memory_space<vmem>>, vector<3136x256xbf16>
    %cst = arith.constant dense<0.000000e+00> : vector<4x256xf32>
    %2 = tpu.matmul %0, %1, %cst {dimension_numbers = #tpu.dot_dimension_numbers<[1], [0], [0], [1], [0, 0, 1, 1], [], []>} : vector<4x3136xbf16>, vector<3136x256xbf16>, vector<4x256xf32> -> vector<4x256xf32>
    %c0_3 = arith.constant 0 : index
    %c0_4 = arith.constant 0 : index
    %3 = vector.load %arg4[%c0_3, %c0_4] : memref<1x256xf32, #tpu.memory_space<vmem>>, vector<1x256xf32>
    %4 = vector.broadcast %3 : vector<1x256xf32> to vector<4x256xf32>
    %5 = arith.addf %2, %4 : vector<4x256xf32>
    %cst_5 = arith.constant 0.000000e+00 : f32
    %6 = vector.broadcast %cst_5 : f32 to vector<4x256xf32>
    %7 = arith.maximumf %5, %6 : vector<4x256xf32>
    %8 = vector.extract_strided_slice %7 {offsets = [0, 0], sizes = [2, 256], strides = [1, 1]} : vector<4x256xf32> to vector<2x256xf32>
    %9 = vector.extract_strided_slice %7 {offsets = [2, 0], sizes = [2, 256], strides = [1, 1]} : vector<4x256xf32> to vector<2x256xf32>
    %c0_6 = arith.constant 0 : index
    %c0_7 = arith.constant 0 : index
    %10 = vector.load %arg15[%c0_6, %c0_7] : memref<2x256xf32, #tpu.memory_space<vmem>>, vector<2x256xf32>
    tpu.vector_store %arg15[%c0_6, %c0_7], %8 {strides = array<i32>} : memref<2x256xf32, #tpu.memory_space<vmem>>, vector<2x256xf32>,
    %c0_8 = arith.constant 0 : index
    %c0_9 = arith.constant 0 : index
    %11 = vector.load %arg16[%c0_8, %c0_9] : memref<2x256xf32, #tpu.memory_space<vmem>>, vector<2x256xf32>
    tpu.vector_store %arg16[%c0_8, %c0_9], %9 {strides = array<i32>} : memref<2x256xf32, #tpu.memory_space<vmem>>, vector<2x256xf32>,
    %12 = arith.truncf %8 : vector<2x256xf32> to vector<2x256xbf16>
    %13 = arith.truncf %9 : vector<2x256xf32> to vector<2x256xbf16>
    %c0_10 = arith.constant 0 : index
    %c0_11 = arith.constant 0 : index
    %14 = vector.load %arg5[%c0_10, %c0_11] : memref<256x256xbf16, #tpu.memory_space<vmem>>, vector<256x256xbf16>
    %cst_12 = arith.constant dense<0.000000e+00> : vector<2x256xf32>
    %15 = tpu.matmul %12, %14, %cst_12 {dimension_numbers = #tpu.dot_dimension_numbers<[1], [0], [0], [1], [0, 0, 1, 1], [], []>} : vector<2x256xbf16>, vector<256x256xbf16>, vector<2x256xf32> -> vector<2x256xf32>
    %c0_13 = arith.constant 0 : index
    %c0_14 = arith.constant 0 : index
    %16 = vector.load %arg6[%c0_13, %c0_14] : memref<256x256xbf16, #tpu.memory_space<vmem>>, vector<256x256xbf16>
    %cst_15 = arith.constant dense<0.000000e+00> : vector<2x256xf32>
    %17 = tpu.matmul %13, %16, %cst_15 {dimension_numbers = #tpu.dot_dimension_numbers<[1], [0], [0], [1], [0, 0, 1, 1], [], []>} : vector<2x256xbf16>, vector<256x256xbf16>, vector<2x256xf32> -> vector<2x256xf32>
    %18 = arith.addf %15, %17 : vector<2x256xf32>
    %c0_16 = arith.constant 0 : index
    %c0_17 = arith.constant 0 : index
    %19 = vector.load %arg7[%c0_16, %c0_17] : memref<1x256xf32, #tpu.memory_space<vmem>>, vector<1x256xf32>
    %20 = vector.broadcast %19 : vector<1x256xf32> to vector<2x256xf32>
    %21 = arith.addf %18, %20 : vector<2x256xf32>
    %cst_18 = arith.constant 0.000000e+00 : f32
    %22 = vector.broadcast %cst_18 : f32 to vector<2x256xf32>
    %23 = arith.maximumf %21, %22 : vector<2x256xf32>
    %24 = arith.truncf %23 : vector<2x256xf32> to vector<2x256xbf16>
    %c0_19 = arith.constant 0 : index
    %c0_20 = arith.constant 0 : index
    %25 = vector.load %arg8[%c0_19, %c0_20] : memref<256x4xbf16, #tpu.memory_space<vmem>>, vector<256x4xbf16>
    %cst_21 = arith.constant dense<0.000000e+00> : vector<2x4xf32>
    %26 = tpu.matmul %24, %25, %cst_21 {dimension_numbers = #tpu.dot_dimension_numbers<[1], [0], [0], [1], [0, 0, 1, 1], [], []>} : vector<2x256xbf16>, vector<256x4xbf16>, vector<2x4xf32> -> vector<2x4xf32>
    %c0_22 = arith.constant 0 : index
    %c0_23 = arith.constant 0 : index
    %27 = vector.load %arg9[%c0_22, %c0_23] : memref<1x4xf32, #tpu.memory_space<vmem>>, vector<1x4xf32>
    %28 = vector.broadcast %27 : vector<1x4xf32> to vector<2x4xf32>
    %29 = arith.addf %26, %28 : vector<2x4xf32>
    %c0_24 = arith.constant 0 : index
    %c0_25 = arith.constant 0 : index
    %30 = vector.load %arg17[%c0_24, %c0_25] : memref<2x4xf32, #tpu.memory_space<vmem>>, vector<2x4xf32>
    tpu.vector_store %arg17[%c0_24, %c0_25], %29 {strides = array<i32>} : memref<2x4xf32, #tpu.memory_space<vmem>>, vector<2x4xf32>,
    %31 = tpu.iota {dimensions = array<i32: 1>} : vector<2x4xi32>
    %c0_26 = arith.constant 0 : index
    %c0_27 = arith.constant 0 : index
    %32 = vector.load %arg2[%c0_26, %c0_27] : memref<2x1xi32, #tpu.memory_space<vmem>>, vector<2x1xi32>
    %33 = vector.broadcast %32 : vector<2x1xi32> to vector<2x4xi32>
    %34 = arith.cmpi eq, %31, %33 : vector<2x4xi32>
    %35 = arith.extui %34 : vector<2x4xi1> to vector<2x4xi32>
    %36 = arith.sitofp %35 : vector<2x4xi32> to vector<2x4xf32>
    %37 = arith.truncf %36 : vector<2x4xf32> to vector<2x4xbf16>
    %c0_28 = arith.constant 0 : index
    %c0_29 = arith.constant 0 : index
    %38 = vector.load %arg10[%c0_28, %c0_29] : memref<256x256xbf16, #tpu.memory_space<vmem>>, vector<256x256xbf16>
    %cst_30 = arith.constant dense<0.000000e+00> : vector<2x256xf32>
    %39 = tpu.matmul %12, %38, %cst_30 {dimension_numbers = #tpu.dot_dimension_numbers<[1], [0], [0], [1], [0, 0, 1, 1], [], []>} : vector<2x256xbf16>, vector<256x256xbf16>, vector<2x256xf32> -> vector<2x256xf32>
    %c0_31 = arith.constant 0 : index
    %c0_32 = arith.constant 0 : index
    %40 = vector.load %arg11[%c0_31, %c0_32] : memref<4x256xbf16, #tpu.memory_space<vmem>>, vector<4x256xbf16>
    %cst_33 = arith.constant dense<0.000000e+00> : vector<2x256xf32>
    %41 = tpu.matmul %37, %40, %cst_33 {dimension_numbers = #tpu.dot_dimension_numbers<[1], [0], [0], [1], [0, 0, 1, 1], [], []>} : vector<2x4xbf16>, vector<4x256xbf16>, vector<2x256xf32> -> vector<2x256xf32>
    %42 = arith.addf %39, %41 : vector<2x256xf32>
    %c0_34 = arith.constant 0 : index
    %c0_35 = arith.constant 0 : index
    %43 = vector.load %arg12[%c0_34, %c0_35] : memref<1x256xf32, #tpu.memory_space<vmem>>, vector<1x256xf32>
    %44 = vector.broadcast %43 : vector<1x256xf32> to vector<2x256xf32>
    %45 = arith.addf %42, %44 : vector<2x256xf32>
    %cst_36 = arith.constant 0.000000e+00 : f32
    %46 = vector.broadcast %cst_36 : f32 to vector<2x256xf32>
    %47 = arith.maximumf %45, %46 : vector<2x256xf32>
    %48 = arith.truncf %47 : vector<2x256xf32> to vector<2x256xbf16>
    %c0_37 = arith.constant 0 : index
    %c0_38 = arith.constant 0 : index
    %49 = vector.load %arg13[%c0_37, %c0_38] : memref<256x256xbf16, #tpu.memory_space<vmem>>, vector<256x256xbf16>
    %cst_39 = arith.constant dense<0.000000e+00> : vector<2x256xf32>
    %50 = tpu.matmul %48, %49, %cst_39 {dimension_numbers = #tpu.dot_dimension_numbers<[1], [0], [0], [1], [0, 0, 1, 1], [], []>} : vector<2x256xbf16>, vector<256x256xbf16>, vector<2x256xf32> -> vector<2x256xf32>
    %c0_40 = arith.constant 0 : index
    %c0_41 = arith.constant 0 : index
    %51 = vector.load %arg14[%c0_40, %c0_41] : memref<1x256xf32, #tpu.memory_space<vmem>>, vector<1x256xf32>
    %52 = vector.broadcast %51 : vector<1x256xf32> to vector<2x256xf32>
    %53 = arith.addf %50, %52 : vector<2x256xf32>
    %c0_42 = arith.constant 0 : index
    %c0_43 = arith.constant 0 : index
    %54 = vector.load %arg18[%c0_42, %c0_43] : memref<2x256xf32, #tpu.memory_space<vmem>>, vector<2x256xf32>
    tpu.vector_store %arg18[%c0_42, %c0_43], %53 {strides = array<i32>} : memref<2x256xf32, #tpu.memory_space<vmem>>, vector<2x256xf32>,
    return
  }
  func.func @transform_0(%arg0: i32) -> (i32, i32) {
    %c0_i32 = arith.constant 0 : i32
    %c0_i32_0 = arith.constant 0 : i32
    %c0_i32_1 = arith.constant 0 : i32
    return %c0_i32, %c0_i32_0 : i32, i32
  }
  func.func @transform_1(%arg0: i32) -> (i32, i32) {
    %c0_i32 = arith.constant 0 : i32
    %c0_i32_0 = arith.constant 0 : i32
    %c0_i32_1 = arith.constant 0 : i32
    return %c0_i32, %c0_i32_0 : i32, i32
  }
  func.func @transform_2(%arg0: i32) -> (i32, i32) {
    %c0_i32 = arith.constant 0 : i32
    %c0_i32_0 = arith.constant 0 : i32
    %c0_i32_1 = arith.constant 0 : i32
    return %c0_i32, %c0_i32_0 : i32, i32
  }
  func.func @transform_3(%arg0: i32) -> (i32, i32) {
    %c0_i32 = arith.constant 0 : i32
    %c0_i32_0 = arith.constant 0 : i32
    %c0_i32_1 = arith.constant 0 : i32
    return %c0_i32, %c0_i32_0 : i32, i32
  }
  func.func @transform_4(%arg0: i32) -> (i32, i32) {
    %c0_i32 = arith.constant 0 : i32
    %c0_i32_0 = arith.constant 0 : i32
    %c0_i32_1 = arith.constant 0 : i32
    return %c0_i32, %c0_i32_0 : i32, i32
  }
  func.func @transform_5(%arg0: i32) -> (i32, i32) {
    %c0_i32 = arith.constant 0 : i32
    %c0_i32_0 = arith.constant 0 : i32
    %c0_i32_1 = arith.constant 0 : i32
    return %c0_i32, %c0_i32_0 : i32, i32
  }
  func.func @transform_6(%arg0: i32) -> (i32, i32) {
    %c0_i32 = arith.constant 0 : i32
    %c0_i32_0 = arith.constant 0 : i32
    %c0_i32_1 = arith.constant 0 : i32
    return %c0_i32, %c0_i32_0 : i32, i32
  }
  func.func @transform_7(%arg0: i32) -> (i32, i32) {
    %c0_i32 = arith.constant 0 : i32
    %c0_i32_0 = arith.constant 0 : i32
    %c0_i32_1 = arith.constant 0 : i32
    return %c0_i32, %c0_i32_0 : i32, i32
  }
  func.func @transform_8(%arg0: i32) -> (i32, i32) {
    %c0_i32 = arith.constant 0 : i32
    %c0_i32_0 = arith.constant 0 : i32
    %c0_i32_1 = arith.constant 0 : i32
    return %c0_i32, %c0_i32_0 : i32, i32
  }
  func.func @transform_9(%arg0: i32) -> (i32, i32) {
    %c0_i32 = arith.constant 0 : i32
    %c0_i32_0 = arith.constant 0 : i32
    %c0_i32_1 = arith.constant 0 : i32
    return %c0_i32, %c0_i32_0 : i32, i32
  }
  func.func @transform_10(%arg0: i32) -> (i32, i32) {
    %c0_i32 = arith.constant 0 : i32
    %c0_i32_0 = arith.constant 0 : i32
    %c0_i32_1 = arith.constant 0 : i32
    return %c0_i32, %c0_i32_0 : i32, i32
  }
  func.func @transform_11(%arg0: i32) -> (i32, i32) {
    %c0_i32 = arith.constant 0 : i32
    %c0_i32_0 = arith.constant 0 : i32
    %c0_i32_1 = arith.constant 0 : i32
    return %c0_i32, %c0_i32_0 : i32, i32
  }
  func.func @transform_12(%arg0: i32) -> (i32, i32) {
    %c0_i32 = arith.constant 0 : i32
    %c0_i32_0 = arith.constant 0 : i32
    %c0_i32_1 = arith.constant 0 : i32
    return %c0_i32, %c0_i32_0 : i32, i32
  }
  func.func @transform_13(%arg0: i32) -> (i32, i32) {
    %c0_i32 = arith.constant 0 : i32
    %c0_i32_0 = arith.constant 0 : i32
    %c0_i32_1 = arith.constant 0 : i32
    return %c0_i32, %c0_i32_0 : i32, i32
  }
  func.func @transform_14(%arg0: i32) -> (i32, i32) {
    %c0_i32 = arith.constant 0 : i32
    %c0_i32_0 = arith.constant 0 : i32
    %c0_i32_1 = arith.constant 0 : i32
    return %c0_i32, %c0_i32_0 : i32, i32
  }
  func.func @transform_15(%arg0: i32) -> (i32, i32) {
    %c0_i32 = arith.constant 0 : i32
    %c0_i32_0 = arith.constant 0 : i32
    %c0_i32_1 = arith.constant 0 : i32
    return %c0_i32, %c0_i32_0 : i32, i32
  }
  func.func @transform_16(%arg0: i32) -> (i32, i32) {
    %c0_i32 = arith.constant 0 : i32
    %c0_i32_0 = arith.constant 0 : i32
    %c0_i32_1 = arith.constant 0 : i32
    return %c0_i32, %c0_i32_0 : i32, i32
  }
  func.func @transform_17(%arg0: i32) -> (i32, i32) {
    %c0_i32 = arith.constant 0 : i32
    %c0_i32_0 = arith.constant 0 : i32
    %c0_i32_1 = arith.constant 0 : i32
    return %c0_i32, %c0_i32_0 : i32, i32
  }
}

</mosaic_0001>

<bundles_post_ra>
// kernel: _lambda_.4
= control target key start
LH: loop header
LB: loop body
LE: loop exit
PB: predicated region body
PF: predicated region fallthrough
CT: control target
= control target key end

     0   :  { %vm2764_vm0 = vcmask 257024   ;;  %s6360_s1 = inlined_call_operand.vmem [shape: bf16[256,32], index: 1, kind: input, shape index: {}]   ;;  %s6361_s2 = inlined_call_operand.vmem [shape: f32[1,32], index: 2, kind: input, shape index: {}]   ;;  %s6362_s0 = inlined_call_operand.vmem [shape: bf16[1600,256], index: 0, kind: input, shape index: {}]   ;;  %s6363_s3 = inlined_call_operand.vmem [shape: bf16[1600,32], index: 3, kind: output, shape index: {}]  }
   0x1   :  { %v4040_v0 = vld [vmem:[%s6360_s1 + $0x38] sm:$0xff]  ;;  %v4039_v2 = vld [vmem:[%s6360_s1 + $0x30] sm:$0xff]  ;;  %v4038_v4 = vld [vmem:[%s6360_s1 + $0x28] sm:$0xff] }
   0x2   :  { %v4048_v1 = vld [vmem:[%s6360_s1 + $0x78] sm:$0xff]  ;;  %1346 = vmatpush.bf16.msra.mxu0 %v4040_v0  ;;  %4049 = vmatpush.bf16.msra.mxu2 %v4040_v0  ;;  %v4047_v3 = vld [vmem:[%s6360_s1 + $0x70] sm:$0xff]  ;;  %v4046_v5 = vld [vmem:[%s6360_s1 + $0x68] sm:$0xff] }
   0x3   :  { %1855 = vmatpush.bf16.msra.mxu1 %v4048_v1  ;;  %4057 = vmatpush.bf16.msra.mxu3 %v4048_v1  ;;  %v4037_v6 = vld [vmem:[%s6360_s1 + $0x20] sm:$0xff]  ;;  %v4036_v8 = vld [vmem:[%s6360_s1 + $0x18] sm:$0xff]  ;;  %v4035_v10 = vld [vmem:[%s6360_s1 + $0x10] sm:$0xff] }
   0x4   :  { %v4045_v7 = vld [vmem:[%s6360_s1 + $0x60] sm:$0xff]  ;;  %v4044_v9 = vld [vmem:[%s6360_s1 + $0x58] sm:$0xff]  ;;  %v4043_v11 = vld [vmem:[%s6360_s1 + $0x50] sm:$0xff] }
   0x5   :  { %v4034_v12 = vld [vmem:[%s6360_s1 + $0x8] sm:$0xff]  ;;  %v4033_v14 = vld [vmem:[%s6360_s1] sm:$0xff]  ;;  %v2979_v28 = vld [vmem:[%s6362_s0 + $0x10] sm:$0xf] }
   0x6   :  { %1347 = vmatpush.bf16.msra.mxu0 %v4039_v2  ;;  %4050 = vmatpush.bf16.msra.mxu2 %v4039_v2  ;;  %v4042_v13 = vld [vmem:[%s6360_s1 + $0x48] sm:$0xff]  ;;  %v4041_v15 = vld [vmem:[%s6360_s1 + $0x40] sm:$0xff]  ;;  %v3836_v29 = vld [vmem:[%s6362_s0 + $0x14] sm:$0xf0] }
   0x7   :  { %1856 = vmatpush.bf16.msra.mxu1 %v4047_v3  ;;  %4058 = vmatpush.bf16.msra.mxu3 %v4047_v3  ;;  %v2971_v16 = vld [vmem:[%s6362_s0] sm:$0xf]  ;;  %v3834_v17 = vld [vmem:[%s6362_s0 + $0x4] sm:$0xf0]  ;;  %v3833_v20 = vld [vmem:[%s6362_s0 + $0x4] sm:$0xf]  ;;  %v2980_v36 = vor.u32 %v3836_v29, %v2979_v28 }
   0x8   :  { %v3371_v18 = vld [vmem:[%s6362_s0 + $0x320] sm:$0xf]  ;;  %v3934_v19 = vld [vmem:[%s6362_s0 + $0x324] sm:$0xf0]  ;;  %v2973_v21 = vld [vmem:[%s6362_s0 + $0x8] sm:$0xf0]  ;;  %v2972_v24 = vor.u32 %v3834_v17, %v2971_v16 }
   0x9   :  { %v3933_v22 = vld [vmem:[%s6362_s0 + $0x324] sm:$0xf]  ;;  %v3373_v23 = vld [vmem:[%s6362_s0 + $0x328] sm:$0xf0]  ;;  %v3372_v25 = vor.u32 %v3934_v19, %v3371_v18  ;;  %v2976_v26 = vor.u32 %v3833_v20, %v2973_v21  ;;  %v3379_v30 = vld [vmem:[%s6362_s0 + $0x330] sm:$0xf] }
   0xa   :  { %1348 = vmatpush.bf16.msra.mxu0 %v4038_v4  ;;  %4051 = vmatpush.bf16.msra.mxu2 %v4038_v4  ;;  %v3376_v27 = vor.u32 %v3933_v22, %v3373_v23  ;;  %v3936_v31 = vld [vmem:[%s6362_s0 + $0x334] sm:$0xf0]  ;;  %v3835_v32 = vld [vmem:[%s6362_s0 + $0x14] sm:$0xf]  ;;  %v2981_v33 = vld [vmem:[%s6362_s0 + $0x18] sm:$0xf0] }
   0xb   :  { %1857 = vmatpush.bf16.msra.mxu1 %v4046_v5  ;;  %4059 = vmatpush.bf16.msra.mxu3 %v4046_v5  ;;  %v3935_v34 = vld [vmem:[%s6362_s0 + $0x334] sm:$0xf]  ;;  %v3381_v35 = vld [vmem:[%s6362_s0 + $0x338] sm:$0xf0]  ;;  %v3380_v37 = vor.u32 %v3936_v31, %v3379_v30  ;;  %v2984_v38 = vor.u32 %v3835_v32, %v2981_v33  ;;  %v2987_v40 = vld [vmem:[%s6362_s0 + $0x20] sm:$0xf] }
   0xc   :  { %v3384_v39 = vor.u32 %v3935_v34, %v3381_v35  ;;  %v3838_v41 = vld [vmem:[%s6362_s0 + $0x24] sm:$0xf0]  ;;  %v3387_v42 = vld [vmem:[%s6362_s0 + $0x340] sm:$0xf]  ;;  %v3837_v44 = vld [vmem:[%s6362_s0 + $0x24] sm:$0xf] }
   0xd   :  { %v3938_v43 = vld [vmem:[%s6362_s0 + $0x344] sm:$0xf0]  ;;  %v2989_v45 = vld [vmem:[%s6362_s0 + $0x28] sm:$0xf0]  ;;  %v3937_v46 = vld [vmem:[%s6362_s0 + $0x344] sm:$0xf]  ;;  %v2988_v48 = vor.u32 %v3838_v41, %v2987_v40 }
   0xe   :  { %1349 = vmatpush.bf16.msra.mxu0 %v4037_v6  ;;  %4052 = vmatpush.bf16.msra.mxu2 %v4037_v6  ;;  %v3389_v47 = vld [vmem:[%s6362_s0 + $0x348] sm:$0xf0]  ;;  %v3388_v49 = vor.u32 %v3938_v43, %v3387_v42  ;;  %v2992_v50 = vor.u32 %v3837_v44, %v2989_v45  ;;  %v2995_v52 = vld [vmem:[%s6362_s0 + $0x30] sm:$0xf]  ;;  %v3840_v53 = vld [vmem:[%s6362_s0 + $0x34] sm:$0xf0] }
   0xf   :  { %1858 = vmatpush.bf16.msra.mxu1 %v4045_v7  ;;  %4060 = vmatpush.bf16.msra.mxu3 %v4045_v7  ;;  %v3392_v51 = vor.u32 %v3937_v46, %v3389_v47  ;;  %v3395_v54 = vld [vmem:[%s6362_s0 + $0x350] sm:$0xf]  ;;  %v3940_v55 = vld [vmem:[%s6362_s0 + $0x354] sm:$0xf0]  ;;  %v3839_v56 = vld [vmem:[%s6362_s0 + $0x34] sm:$0xf]  ;;  %v2996_v60 = vor.u32 %v3840_v53, %v2995_v52 }
  0x10   :  { %v2997_v57 = vld [vmem:[%s6362_s0 + $0x38] sm:$0xf0]  ;;  %v3939_v58 = vld [vmem:[%s6362_s0 + $0x354] sm:$0xf]  ;;  %v3396_v61 = vor.u32 %v3940_v55, %v3395_v54  ;;  %v3003_v0 = vld [vmem:[%s6362_s0 + $0x40] sm:$0xf] }
  0x11   :  { %v3397_v59 = vld [vmem:[%s6362_s0 + $0x358] sm:$0xf0]  ;;  %v3000_v62 = vor.u32 %v3839_v56, %v2997_v57  ;;  %v3842_v1 = vld [vmem:[%s6362_s0 + $0x44] sm:$0xf0]  ;;  %v3403_v2 = vld [vmem:[%s6362_s0 + $0x360] sm:$0xf] }
  0x12   :  { %1350 = vmatpush.bf16.msra.mxu0 %v4036_v8  ;;  %4053 = vmatpush.bf16.msra.mxu2 %v4036_v8  ;;  %v3400_v63 = vor.u32 %v3939_v58, %v3397_v59  ;;  %v3942_v3 = vld [vmem:[%s6362_s0 + $0x364] sm:$0xf0]  ;;  %v3841_v4 = vld [vmem:[%s6362_s0 + $0x44] sm:$0xf]  ;;  %v3005_v5 = vld [vmem:[%s6362_s0 + $0x48] sm:$0xf0]  ;;  %v3004_v8 = vor.u32 %v3842_v1, %v3003_v0 }
  0x13   :  { %1859 = vmatpush.bf16.msra.mxu1 %v4044_v9  ;;  %4061 = vmatpush.bf16.msra.mxu3 %v4044_v9  ;;  %v3941_v6 = vld [vmem:[%s6362_s0 + $0x364] sm:$0xf]  ;;  %v3405_v7 = vld [vmem:[%s6362_s0 + $0x368] sm:$0xf0]  ;;  %v3404_v9 = vor.u32 %v3942_v3, %v3403_v2  ;;  %v3843_v16 = vld [vmem:[%s6362_s0 + $0x54] sm:$0xf] }
  0x14   :  { %v3013_v17 = vld [vmem:[%s6362_s0 + $0x58] sm:$0xf0]  ;;  %v3943_v18 = vld [vmem:[%s6362_s0 + $0x374] sm:$0xf]  ;;  %v3845_v28 = vld [vmem:[%s6362_s0 + $0x64] sm:$0xf] }
  0x15   :  { %v3413_v19 = vld [vmem:[%s6362_s0 + $0x378] sm:$0xf0]  ;;  %v3016_v22 = vor.u32 %v3843_v16, %v3013_v17  ;;  %v3021_v29 = vld [vmem:[%s6362_s0 + $0x68] sm:$0xf0]  ;;  %v3945_v30 = vld [vmem:[%s6362_s0 + $0x384] sm:$0xf] }
  0x16   :  { %1351 = vmatpush.bf16.msra.mxu0 %v4035_v10  ;;  %4054 = vmatpush.bf16.msra.mxu2 %v4035_v10  ;;  %v3008_v10 = vor.u32 %v3841_v4, %v3005_v5  ;;  %v3416_v23 = vor.u32 %v3943_v18, %v3413_v19  ;;  %v3421_v31 = vld [vmem:[%s6362_s0 + $0x388] sm:$0xf0]  ;;  %v3024_v34 = vor.u32 %v3845_v28, %v3021_v29  ;;  %v3847_v40 = vld [vmem:[%s6362_s0 + $0x74] sm:$0xf]  ;;  %v3029_v41 = vld [vmem:[%s6362_s0 + $0x78] sm:$0xf0] }
  0x17   :  { %1860 = vmatpush.bf16.msra.mxu1 %v4043_v11  ;;  %4062 = vmatpush.bf16.msra.mxu3 %v4043_v11  ;;  %v3408_v11 = vor.u32 %v3941_v6, %v3405_v7  ;;  %v3424_v35 = vor.u32 %v3945_v30, %v3421_v31  ;;  %v3947_v42 = vld [vmem:[%s6362_s0 + $0x394] sm:$0xf]  ;;  %v3429_v43 = vld [vmem:[%s6362_s0 + $0x398] sm:$0xf0]  ;;  %v3032_v46 = vor.u32 %v3847_v40, %v3029_v41  ;;  %v3950_v52 = vld [vmem:[%s6362_s0 + $0x3a4] sm:$0xf0] }
  0x18   :  { %v3432_v47 = vor.u32 %v3947_v42, %v3429_v43  ;;  %v3849_v53 = vld [vmem:[%s6362_s0 + $0x84] sm:$0xf]  ;;  %v3037_v54 = vld [vmem:[%s6362_s0 + $0x88] sm:$0xf0]  ;;  %v3851_v16 = vld [vmem:[%s6362_s0 + $0x94] sm:$0xf] }
  0x19   :  { %v3949_v55 = vld [vmem:[%s6362_s0 + $0x3a4] sm:$0xf]  ;;  %v3437_v56 = vld [vmem:[%s6362_s0 + $0x3a8] sm:$0xf0]  ;;  %v3045_v17 = vld [vmem:[%s6362_s0 + $0x98] sm:$0xf0] }
  0x1a   :  { %1352 = vmatpush.bf16.msra.mxu0 %v4034_v12  ;;  %4055 = vmatpush.bf16.msra.mxu2 %v4034_v12  ;;  %v3011_v12 = vld [vmem:[%s6362_s0 + $0x50] sm:$0xf]  ;;  %v3048_v29 = vor.u32 %v3851_v16, %v3045_v17 }
  0x1b   :  { %1861 = vmatpush.bf16.msra.mxu1 %v4042_v13  ;;  %4063 = vmatpush.bf16.msra.mxu3 %v4042_v13  ;;  %v3844_v13 = vld [vmem:[%s6362_s0 + $0x54] sm:$0xf0] }
  0x1c   :  { %v3012_v20 = vor.u32 %v3844_v13, %v3011_v12  ;;  %v3852_v13 = vld [vmem:[%s6362_s0 + $0x94] sm:$0xf0] }
  0x1e   :  { %1353 = vmatpush.bf16.msra.mxu0 %v4033_v14  ;;  %4056 = vmatpush.bf16.msra.mxu2 %v4033_v14  ;;  %v3411_v14 = vld [vmem:[%s6362_s0 + $0x370] sm:$0xf] }
  0x1f   :  { %1862 = vmatpush.bf16.msra.mxu1 %v4041_v15  ;;  %4064 = vmatpush.bf16.msra.mxu3 %v4041_v15  ;;  %v3944_v15 = vld [vmem:[%s6362_s0 + $0x374] sm:$0xf0] }
  0x20   :  { %v3412_v21 = vor.u32 %v3944_v15, %v3411_v14  ;;  %v3443_v14 = vld [vmem:[%s6362_s0 + $0x3b0] sm:$0xf]  ;;  %v3952_v15 = vld [vmem:[%s6362_s0 + $0x3b4] sm:$0xf0] }
  0x21   :  { %1354 = vmatmul.bf16.vlgmr.msra.gmra.mxu0 %v2972_v24  ;;  %1604 = vmatmul.bf16.vlgmr.msra.gmra.mxu2 %v3372_v25  ;;  %v3019_v24 = vld [vmem:[%s6362_s0 + $0x60] sm:$0xf]  ;;  %v3846_v25 = vld [vmem:[%s6362_s0 + $0x64] sm:$0xf0] }
  0x22   :  { %1863 = vmatmul.bf16.vlgmr.msra.gmra.mxu1 %v2976_v26  ;;  %2113 = vmatmul.bf16.vlgmr.msra.gmra.mxu3 %v3376_v27  ;;  %v3419_v26 = vld [vmem:[%s6362_s0 + $0x380] sm:$0xf]  ;;  %v3946_v27 = vld [vmem:[%s6362_s0 + $0x384] sm:$0xf0]  ;;  %v3020_v32 = vor.u32 %v3846_v25, %v3019_v24 }
  0x23   :  { %v3420_v33 = vor.u32 %v3946_v27, %v3419_v26  ;;  %v3444_v27 = vor.u32 %v3952_v15, %v3443_v14 }
  0x31   :  { %1359 = vmatmul.bf16.gmra.mxu0 %v2980_v36  ;;  %1609 = vmatmul.bf16.gmra.mxu2 %v3380_v37  ;;  %v3027_v36 = vld [vmem:[%s6362_s0 + $0x70] sm:$0xf]  ;;  %v3848_v37 = vld [vmem:[%s6362_s0 + $0x74] sm:$0xf0] }
  0x32   :  { %1868 = vmatmul.bf16.gmra.mxu1 %v2984_v38  ;;  %2118 = vmatmul.bf16.gmra.mxu3 %v3384_v39  ;;  %v3427_v38 = vld [vmem:[%s6362_s0 + $0x390] sm:$0xf]  ;;  %v3948_v39 = vld [vmem:[%s6362_s0 + $0x394] sm:$0xf0]  ;;  %v3028_v44 = vor.u32 %v3848_v37, %v3027_v36 }
  0x33   :  { %v3428_v45 = vor.u32 %v3948_v39, %v3427_v38 }
  0x41   :  { %1364 = vmatmul.bf16.gmra.mxu0 %v2988_v48  ;;  %1614 = vmatmul.bf16.gmra.mxu2 %v3388_v49  ;;  %v4333_v48 = vld [vmem:[%s6361_s2] ss:$0 sm:$0xff] }
  0x42   :  { %1873 = vmatmul.bf16.gmra.mxu1 %v2992_v50  ;;  %2123 = vmatmul.bf16.gmra.mxu3 %v3392_v51  ;;  %v3035_v49 = vld [vmem:[%s6362_s0 + $0x80] sm:$0xf]  ;;  %v3850_v50 = vld [vmem:[%s6362_s0 + $0x84] sm:$0xf0] }
  0x43   :  { %v3435_v51 = vld [vmem:[%s6362_s0 + $0x3a0] sm:$0xf]  ;;  %v3036_v57 = vor.u32 %v3850_v50, %v3035_v49  ;;  %v3854_v50 = vld [vmem:[%s6362_s0 + $0xa4] sm:$0xf0] }
  0x44   :  { %v3436_v58 = vor.u32 %v3950_v52, %v3435_v51  ;;  %v3451_v51 = vld [vmem:[%s6362_s0 + $0x3c0] sm:$0xf]  ;;  %v3954_v52 = vld [vmem:[%s6362_s0 + $0x3c4] sm:$0xf0] }
  0x51   :  { %1369 = vmatmul.bf16.gmra.mxu0 %v2996_v60  ;;  %1619 = vmatmul.bf16.gmra.mxu2 %v3396_v61  ;;  %v3040_v60 = vor.u32 %v3849_v53, %v3037_v54  ;;  %v3440_v61 = vor.u32 %v3949_v55, %v3437_v56  ;;  %v3853_v53 = vld [vmem:[%s6362_s0 + $0xa4] sm:$0xf]  ;;  %v3053_v54 = vld [vmem:[%s6362_s0 + $0xa8] sm:$0xf0] }
  0x52   :  { %1878 = vmatmul.bf16.gmra.mxu1 %v3000_v62  ;;  %2128 = vmatmul.bf16.gmra.mxu3 %v3400_v63 }
  0x61   :  { %1374 = vmatmul.bf16.gmra.mxu0 %v3004_v8  ;;  %1624 = vmatmul.bf16.gmra.mxu2 %v3404_v9 }
  0x62   :  { %1883 = vmatmul.bf16.gmra.mxu1 %v3008_v10  ;;  %2133 = vmatmul.bf16.gmra.mxu3 %v3408_v11  ;;  %v3043_v10 = vld [vmem:[%s6362_s0 + $0x90] sm:$0xf] }
  0x63   :  { %v3044_v26 = vor.u32 %v3852_v13, %v3043_v10 }
  0x71   :  { %1379 = vmatmul.bf16.gmra.mxu0 %v3012_v20  ;;  %1629 = vmatmul.bf16.gmra.mxu2 %v3412_v21  ;;  %v3951_v20 = vld [vmem:[%s6362_s0 + $0x3b4] sm:$0xf]  ;;  %v3445_v21 = vld [vmem:[%s6362_s0 + $0x3b8] sm:$0xf0] }
  0x72   :  { %1888 = vmatmul.bf16.gmra.mxu1 %v3016_v22  ;;  %2138 = vmatmul.bf16.gmra.mxu3 %v3416_v23  ;;  %v3448_v30 = vor.u32 %v3951_v20, %v3445_v21 }
  0x81   :  { %1384 = vmatmul.bf16.gmra.mxu0 %v3020_v32  ;;  %1634 = vmatmul.bf16.gmra.mxu2 %v3420_v33 }
  0x82   :  { %1893 = vmatmul.bf16.gmra.mxu1 %v3024_v34  ;;  %2143 = vmatmul.bf16.gmra.mxu3 %v3424_v35 }
  0x91   :  { %1389 = vmatmul.bf16.gmra.mxu0 %v3028_v44  ;;  %1639 = vmatmul.bf16.gmra.mxu2 %v3428_v45 }
  0x92   :  { %1898 = vmatmul.bf16.gmra.mxu1 %v3032_v46  ;;  %2148 = vmatmul.bf16.gmra.mxu3 %v3432_v47  ;;  %v3051_v46 = vld [vmem:[%s6362_s0 + $0xa0] sm:$0xf] }
  0x9e   :  { %v1355_v59 = vpop.f32.mrf.mxu0 }
  0x9f   :  { %v1356_v62 = vadd.f32 %v4333_v48, %v1355_v59  ;;  %v1864_v63 = vpop.f32.mrf.mxu1 }
  0xa1   :  { %v1865_v0 = vadd.f32 %v1864_v63, %v1356_v62  ;;  %1394 = vmatmul.bf16.gmra.mxu0 %v3036_v57  ;;  %1644 = vmatmul.bf16.gmra.mxu2 %v3436_v58  ;;  %v3953_v57 = vld [vmem:[%s6362_s0 + $0x3c4] sm:$0xf]  ;;  %v3453_v58 = vld [vmem:[%s6362_s0 + $0x3c8] sm:$0xf0]  ;;  %v3052_v63 = vor.u32 %v3854_v50, %v3051_v46 }
  0xa2   :  { %1903 = vmatmul.bf16.gmra.mxu1 %v3040_v60  ;;  %2153 = vmatmul.bf16.gmra.mxu3 %v3440_v61 }
  0xa3   :  { %v2364_v1 = vmax.f32 %v1865_v0, 0.0  ;;  %v3452_v0 = vor.u32 %v3954_v52, %v3451_v51 }
  0xa4   :  { %v1605_v2 = vpop.f32.mrf.mxu2 }
  0xa5   :  { %v2564_v3 = vpack.c.bf16 %v2364_v1, %v2364_v1  ;;  %v1606_v4 = vadd.f32 %v4333_v48, %v1605_v2  ;;  %v2114_v5 = vpop.f32.mrf.mxu3  ;;  %v3056_v2 = vor.u32 %v3853_v53, %v3053_v54 }
  0xa6   :  { %v1357_v6 = vpop.f32.mrf.mxu0 }
  0xa7   :  { %2765 = vst.msk [vmem:[%s6363_s3] sm:$0xf] %vm2764_vm0, %v2564_v3  ;;  %v2115_v7 = vadd.f32 %v2114_v5, %v1606_v4  ;;  %v1358_v8 = vadd.f32 %v4333_v48, %v1357_v6  ;;  %v1866_v9 = vpop.f32.mrf.mxu1  ;;  %v3456_v3 = vor.u32 %v3953_v57, %v3453_v58 }
  0xa9   :  { %v2464_v11 = vmax.f32 %v2115_v7, 0.0  ;;  %v1867_v12 = vadd.f32 %v1866_v9, %v1358_v8 }
  0xab   :  { %v2664_v18 = vpack.c.bf16 %v2464_v11, %v2464_v11  ;;  %v2365_v19 = vmax.f32 %v1867_v12, 0.0 }
  0xac   :  { %v1607_v22 = vpop.f32.mrf.mxu2 }
  0xad   :  { %2865 = vst.msk [vmem:[%s6363_s3 + $0x190] sm:$0xf] %vm2764_vm0, %v2664_v18  ;;  %v2565_v23 = vpack.c.bf16 %v2365_v19, %v2365_v19  ;;  %v1608_v24 = vadd.f32 %v4333_v48, %v1607_v22  ;;  %v2116_v25 = vpop.f32.mrf.mxu3  ;;  %v3059_v19 = vld [vmem:[%s6362_s0 + $0xb0] sm:$0xf]  ;;  %v3856_v22 = vld [vmem:[%s6362_s0 + $0xb4] sm:$0xf0] }
  0xae   :  { %v1360_v28 = vpop.f32.mrf.mxu0 }
  0xaf   :  { %2766 = vst.msk [vmem:[%s6363_s3 + $0x4] sm:$0xf] %vm2764_vm0, %v2565_v23  ;;  %v2117_v31 = vadd.f32 %v2116_v25, %v1608_v24  ;;  %v1361_v32 = vadd.f32 %v4333_v48, %v1360_v28  ;;  %v1869_v33 = vpop.f32.mrf.mxu1  ;;  %v3459_v23 = vld [vmem:[%s6362_s0 + $0x3d0] sm:$0xf]  ;;  %v3956_v24 = vld [vmem:[%s6362_s0 + $0x3d4] sm:$0xf0] }
  0xb0   :  { %v3855_v25 = vld [vmem:[%s6362_s0 + $0xb4] sm:$0xf] }
  0xb1   :  { %v2465_v34 = vmax.f32 %v2117_v31, 0.0  ;;  %v1870_v35 = vadd.f32 %v1869_v33, %v1361_v32  ;;  %1399 = vmatmul.bf16.gmra.mxu0 %v3044_v26  ;;  %1649 = vmatmul.bf16.gmra.mxu2 %v3444_v27  ;;  %v3061_v26 = vld [vmem:[%s6362_s0 + $0xb8] sm:$0xf0] }
  0xb2   :  { %1908 = vmatmul.bf16.gmra.mxu1 %v3048_v29  ;;  %2158 = vmatmul.bf16.gmra.mxu3 %v3448_v30  ;;  %v3955_v29 = vld [vmem:[%s6362_s0 + $0x3d4] sm:$0xf]  ;;  %v3461_v30 = vld [vmem:[%s6362_s0 + $0x3d8] sm:$0xf0] }
  0xb3   :  { %v2665_v36 = vpack.c.bf16 %v2465_v34, %v2465_v34  ;;  %v2366_v37 = vmax.f32 %v1870_v35, 0.0  ;;  %v3060_v35 = vor.u32 %v3856_v22, %v3059_v19 }
  0xb4   :  { %v1610_v38 = vpop.f32.mrf.mxu2 }
  0xb5   :  { %2866 = vst.msk [vmem:[%s6363_s3 + $0x194] sm:$0xf] %vm2764_vm0, %v2665_v36  ;;  %v2566_v39 = vpack.c.bf16 %v2366_v37, %v2366_v37  ;;  %v1611_v40 = vadd.f32 %v4333_v48, %v1610_v38  ;;  %v2119_v41 = vpop.f32.mrf.mxu3  ;;  %v3460_v36 = vor.u32 %v3956_v24, %v3459_v23  ;;  %v3064_v38 = vor.u32 %v3855_v25, %v3061_v26 }
  0xb6   :  { %v1362_v42 = vpop.f32.mrf.mxu0 }
  0xb7   :  { %2767 = vst.msk [vmem:[%s6363_s3 + $0x8] sm:$0xf] %vm2764_vm0, %v2566_v39  ;;  %v2120_v43 = vadd.f32 %v2119_v41, %v1611_v40  ;;  %v1363_v44 = vadd.f32 %v4333_v48, %v1362_v42  ;;  %v1871_v45 = vpop.f32.mrf.mxu1  ;;  %v3464_v39 = vor.u32 %v3955_v29, %v3461_v30 }
  0xb9   :  { %v2466_v47 = vmax.f32 %v2120_v43, 0.0  ;;  %v1872_v49 = vadd.f32 %v1871_v45, %v1363_v44 }
  0xbb   :  { %v2666_v55 = vpack.c.bf16 %v2466_v47, %v2466_v47  ;;  %v2367_v56 = vmax.f32 %v1872_v49, 0.0 }
  0xbc   :  { %v1612_v59 = vpop.f32.mrf.mxu2 }
  0xbd   :  { %2867 = vst.msk [vmem:[%s6363_s3 + $0x198] sm:$0xf] %vm2764_vm0, %v2666_v55  ;;  %v2567_v60 = vpack.c.bf16 %v2367_v56, %v2367_v56  ;;  %v1613_v61 = vadd.f32 %v4333_v48, %v1612_v59  ;;  %v2121_v62 = vpop.f32.mrf.mxu3  ;;  %v3067_v56 = vld [vmem:[%s6362_s0 + $0xc0] sm:$0xf]  ;;  %v3858_v59 = vld [vmem:[%s6362_s0 + $0xc4] sm:$0xf0] }
  0xbe   :  { %v1365_v1 = vpop.f32.mrf.mxu0 }
  0xbf   :  { %2768 = vst.msk [vmem:[%s6363_s3 + $0xc] sm:$0xf] %vm2764_vm0, %v2567_v60  ;;  %v2122_v4 = vadd.f32 %v2121_v62, %v1613_v61  ;;  %v1366_v5 = vadd.f32 %v4333_v48, %v1365_v1  ;;  %v1874_v6 = vpop.f32.mrf.mxu1  ;;  %v3467_v60 = vld [vmem:[%s6362_s0 + $0x3e0] sm:$0xf]  ;;  %v3958_v61 = vld [vmem:[%s6362_s0 + $0x3e4] sm:$0xf0] }
  0xc0   :  { %v3857_v62 = vld [vmem:[%s6362_s0 + $0xc4] sm:$0xf] }
  0xc1   :  { %v2467_v7 = vmax.f32 %v2122_v4, 0.0  ;;  %v1875_v8 = vadd.f32 %v1874_v6, %v1366_v5  ;;  %1404 = vmatmul.bf16.gmra.mxu0 %v3052_v63  ;;  %1654 = vmatmul.bf16.gmra.mxu2 %v3452_v0  ;;  %v3069_v63 = vld [vmem:[%s6362_s0 + $0xc8] sm:$0xf0] }
  0xc2   :  { %1913 = vmatmul.bf16.gmra.mxu1 %v3056_v2  ;;  %2163 = vmatmul.bf16.gmra.mxu3 %v3456_v3  ;;  %v3957_v2 = vld [vmem:[%s6362_s0 + $0x3e4] sm:$0xf]  ;;  %v3469_v3 = vld [vmem:[%s6362_s0 + $0x3e8] sm:$0xf0] }
  0xc3   :  { %v2667_v9 = vpack.c.bf16 %v2467_v7, %v2467_v7  ;;  %v2368_v10 = vmax.f32 %v1875_v8, 0.0  ;;  %v3068_v8 = vor.u32 %v3858_v59, %v3067_v56 }
  0xc4   :  { %v1615_v11 = vpop.f32.mrf.mxu2 }
  0xc5   :  { %2868 = vst.msk [vmem:[%s6363_s3 + $0x19c] sm:$0xf] %vm2764_vm0, %v2667_v9  ;;  %v2568_v12 = vpack.c.bf16 %v2368_v10, %v2368_v10  ;;  %v1616_v13 = vadd.f32 %v4333_v48, %v1615_v11  ;;  %v2124_v14 = vpop.f32.mrf.mxu3  ;;  %v3468_v9 = vor.u32 %v3958_v61, %v3467_v60  ;;  %v3072_v11 = vor.u32 %v3857_v62, %v3069_v63 }
  0xc6   :  { %v1367_v15 = vpop.f32.mrf.mxu0 }
  0xc7   :  { %2769 = vst.msk [vmem:[%s6363_s3 + $0x10] sm:$0xf] %vm2764_vm0, %v2568_v12  ;;  %v2125_v16 = vadd.f32 %v2124_v14, %v1616_v13  ;;  %v1368_v17 = vadd.f32 %v4333_v48, %v1367_v15  ;;  %v1876_v18 = vpop.f32.mrf.mxu1  ;;  %v3472_v12 = vor.u32 %v3957_v2, %v3469_v3 }
  0xc9   :  { %v2468_v20 = vmax.f32 %v2125_v16, 0.0  ;;  %v1877_v21 = vadd.f32 %v1876_v18, %v1368_v17 }
  0xcb   :  { %v2668_v27 = vpack.c.bf16 %v2468_v20, %v2468_v20  ;;  %v2369_v28 = vmax.f32 %v1877_v21, 0.0 }
  0xcc   :  { %v1617_v31 = vpop.f32.mrf.mxu2 }
  0xcd   :  { %2869 = vst.msk [vmem:[%s6363_s3 + $0x1a0] sm:$0xf] %vm2764_vm0, %v2668_v27  ;;  %v2569_v32 = vpack.c.bf16 %v2369_v28, %v2369_v28  ;;  %v1618_v33 = vadd.f32 %v4333_v48, %v1617_v31  ;;  %v2126_v34 = vpop.f32.mrf.mxu3  ;;  %v3075_v28 = vld [vmem:[%s6362_s0 + $0xd0] sm:$0xf]  ;;  %v3860_v31 = vld [vmem:[%s6362_s0 + $0xd4] sm:$0xf0] }
  0xce   :  { %v1370_v37 = vpop.f32.mrf.mxu0 }
  0xcf   :  { %2770 = vst.msk [vmem:[%s6363_s3 + $0x14] sm:$0xf] %vm2764_vm0, %v2569_v32  ;;  %v2127_v40 = vadd.f32 %v2126_v34, %v1618_v33  ;;  %v1371_v41 = vadd.f32 %v4333_v48, %v1370_v37  ;;  %v1879_v42 = vpop.f32.mrf.mxu1  ;;  %v3475_v32 = vld [vmem:[%s6362_s0 + $0x3f0] sm:$0xf]  ;;  %v3960_v33 = vld [vmem:[%s6362_s0 + $0x3f4] sm:$0xf0] }
  0xd0   :  { %v3859_v34 = vld [vmem:[%s6362_s0 + $0xd4] sm:$0xf] }
  0xd1   :  { %v2469_v43 = vmax.f32 %v2127_v40, 0.0  ;;  %v1880_v44 = vadd.f32 %v1879_v42, %v1371_v41  ;;  %1409 = vmatmul.bf16.gmra.mxu0 %v3060_v35  ;;  %1659 = vmatmul.bf16.gmra.mxu2 %v3460_v36  ;;  %v3077_v35 = vld [vmem:[%s6362_s0 + $0xd8] sm:$0xf0] }
  0xd2   :  { %1918 = vmatmul.bf16.gmra.mxu1 %v3064_v38  ;;  %2168 = vmatmul.bf16.gmra.mxu3 %v3464_v39  ;;  %v3959_v38 = vld [vmem:[%s6362_s0 + $0x3f4] sm:$0xf]  ;;  %v3477_v39 = vld [vmem:[%s6362_s0 + $0x3f8] sm:$0xf0] }
  0xd3   :  { %v2669_v45 = vpack.c.bf16 %v2469_v43, %v2469_v43  ;;  %v2370_v46 = vmax.f32 %v1880_v44, 0.0  ;;  %v3076_v44 = vor.u32 %v3860_v31, %v3075_v28 }
  0xd4   :  { %v1620_v47 = vpop.f32.mrf.mxu2 }
  0xd5   :  { %2870 = vst.msk [vmem:[%s6363_s3 + $0x1a4] sm:$0xf] %vm2764_vm0, %v2669_v45  ;;  %v2570_v49 = vpack.c.bf16 %v2370_v46, %v2370_v46  ;;  %v1621_v50 = vadd.f32 %v4333_v48, %v1620_v47  ;;  %v2129_v51 = vpop.f32.mrf.mxu3  ;;  %v3476_v45 = vor.u32 %v3960_v33, %v3475_v32  ;;  %v3080_v47 = vor.u32 %v3859_v34, %v3077_v35 }
  0xd6   :  { %v1372_v52 = vpop.f32.mrf.mxu0 }
  0xd7   :  { %2771 = vst.msk [vmem:[%s6363_s3 + $0x18] sm:$0xf] %vm2764_vm0, %v2570_v49  ;;  %v2130_v53 = vadd.f32 %v2129_v51, %v1621_v50  ;;  %v1373_v54 = vadd.f32 %v4333_v48, %v1372_v52  ;;  %v1881_v55 = vpop.f32.mrf.mxu1  ;;  %v3480_v49 = vor.u32 %v3959_v38, %v3477_v39 }
  0xd9   :  { %v2470_v57 = vmax.f32 %v2130_v53, 0.0  ;;  %v1882_v58 = vadd.f32 %v1881_v55, %v1373_v54 }
  0xdb   :  { %v2670_v0 = vpack.c.bf16 %v2470_v57, %v2470_v57  ;;  %v2371_v1 = vmax.f32 %v1882_v58, 0.0 }
  0xdc   :  { %v1622_v4 = vpop.f32.mrf.mxu2 }
  0xdd   :  { %2871 = vst.msk [vmem:[%s6363_s3 + $0x1a8] sm:$0xf] %vm2764_vm0, %v2670_v0  ;;  %v2571_v5 = vpack.c.bf16 %v2371_v1, %v2371_v1  ;;  %v1623_v6 = vadd.f32 %v4333_v48, %v1622_v4  ;;  %v2131_v7 = vpop.f32.mrf.mxu3  ;;  %v3083_v1 = vld [vmem:[%s6362_s0 + $0xe0] sm:$0xf]  ;;  %v3862_v4 = vld [vmem:[%s6362_s0 + $0xe4] sm:$0xf0] }
  0xde   :  { %v1375_v10 = vpop.f32.mrf.mxu0 }
  0xdf   :  { %2772 = vst.msk [vmem:[%s6363_s3 + $0x1c] sm:$0xf] %vm2764_vm0, %v2571_v5  ;;  %v2132_v13 = vadd.f32 %v2131_v7, %v1623_v6  ;;  %v1376_v14 = vadd.f32 %v4333_v48, %v1375_v10  ;;  %v1884_v15 = vpop.f32.mrf.mxu1  ;;  %v3483_v5 = vld [vmem:[%s6362_s0 + $0x400] sm:$0xf]  ;;  %v3962_v6 = vld [vmem:[%s6362_s0 + $0x404] sm:$0xf0] }
  0xe0   :  { %v3861_v7 = vld [vmem:[%s6362_s0 + $0xe4] sm:$0xf] }
  0xe1   :  { %v2471_v16 = vmax.f32 %v2132_v13, 0.0  ;;  %v1885_v17 = vadd.f32 %v1884_v15, %v1376_v14  ;;  %1414 = vmatmul.bf16.gmra.mxu0 %v3068_v8  ;;  %1664 = vmatmul.bf16.gmra.mxu2 %v3468_v9  ;;  %v3085_v8 = vld [vmem:[%s6362_s0 + $0xe8] sm:$0xf0] }
  0xe2   :  { %1923 = vmatmul.bf16.gmra.mxu1 %v3072_v11  ;;  %2173 = vmatmul.bf16.gmra.mxu3 %v3472_v12  ;;  %v3961_v11 = vld [vmem:[%s6362_s0 + $0x404] sm:$0xf]  ;;  %v3485_v12 = vld [vmem:[%s6362_s0 + $0x408] sm:$0xf0] }
  0xe3   :  { %v2671_v18 = vpack.c.bf16 %v2471_v16, %v2471_v16  ;;  %v2372_v19 = vmax.f32 %v1885_v17, 0.0  ;;  %v3084_v17 = vor.u32 %v3862_v4, %v3083_v1 }
  0xe4   :  { %v1625_v20 = vpop.f32.mrf.mxu2 }
  0xe5   :  { %2872 = vst.msk [vmem:[%s6363_s3 + $0x1ac] sm:$0xf] %vm2764_vm0, %v2671_v18  ;;  %v2572_v21 = vpack.c.bf16 %v2372_v19, %v2372_v19  ;;  %v1626_v22 = vadd.f32 %v4333_v48, %v1625_v20  ;;  %v2134_v23 = vpop.f32.mrf.mxu3  ;;  %v3484_v18 = vor.u32 %v3962_v6, %v3483_v5  ;;  %v3088_v20 = vor.u32 %v3861_v7, %v3085_v8 }
  0xe6   :  { %v1377_v24 = vpop.f32.mrf.mxu0 }
  0xe7   :  { %2773 = vst.msk [vmem:[%s6363_s3 + $0x20] sm:$0xf] %vm2764_vm0, %v2572_v21  ;;  %v2135_v25 = vadd.f32 %v2134_v23, %v1626_v22  ;;  %v1378_v26 = vadd.f32 %v4333_v48, %v1377_v24  ;;  %v1886_v27 = vpop.f32.mrf.mxu1  ;;  %v3488_v21 = vor.u32 %v3961_v11, %v3485_v12 }
  0xe9   :  { %v2472_v29 = vmax.f32 %v2135_v25, 0.0  ;;  %v1887_v30 = vadd.f32 %v1886_v27, %v1378_v26 }
  0xeb   :  { %v2672_v36 = vpack.c.bf16 %v2472_v29, %v2472_v29  ;;  %v2373_v37 = vmax.f32 %v1887_v30, 0.0 }
  0xec   :  { %v1627_v40 = vpop.f32.mrf.mxu2 }
  0xed   :  { %2873 = vst.msk [vmem:[%s6363_s3 + $0x1b0] sm:$0xf] %vm2764_vm0, %v2672_v36  ;;  %v2573_v41 = vpack.c.bf16 %v2373_v37, %v2373_v37  ;;  %v1628_v42 = vadd.f32 %v4333_v48, %v1627_v40  ;;  %v2136_v43 = vpop.f32.mrf.mxu3  ;;  %v3091_v37 = vld [vmem:[%s6362_s0 + $0xf0] sm:$0xf]  ;;  %v3864_v40 = vld [vmem:[%s6362_s0 + $0xf4] sm:$0xf0] }
  0xee   :  { %v1380_v46 = vpop.f32.mrf.mxu0 }
  0xef   :  { %2774 = vst.msk [vmem:[%s6363_s3 + $0x24] sm:$0xf] %vm2764_vm0, %v2573_v41  ;;  %v2137_v50 = vadd.f32 %v2136_v43, %v1628_v42  ;;  %v1381_v51 = vadd.f32 %v4333_v48, %v1380_v46  ;;  %v1889_v52 = vpop.f32.mrf.mxu1  ;;  %v3491_v41 = vld [vmem:[%s6362_s0 + $0x410] sm:$0xf]  ;;  %v3964_v42 = vld [vmem:[%s6362_s0 + $0x414] sm:$0xf0] }
  0xf0   :  { %v3863_v43 = vld [vmem:[%s6362_s0 + $0xf4] sm:$0xf] }
  0xf1   :  { %v2473_v53 = vmax.f32 %v2137_v50, 0.0  ;;  %v1890_v54 = vadd.f32 %v1889_v52, %v1381_v51  ;;  %1419 = vmatmul.bf16.gmra.mxu0 %v3076_v44  ;;  %1669 = vmatmul.bf16.gmra.mxu2 %v3476_v45  ;;  %v3093_v44 = vld [vmem:[%s6362_s0 + $0xf8] sm:$0xf0] }
  0xf2   :  { %1928 = vmatmul.bf16.gmra.mxu1 %v3080_v47  ;;  %2178 = vmatmul.bf16.gmra.mxu3 %v3480_v49  ;;  %v3963_v47 = vld [vmem:[%s6362_s0 + $0x414] sm:$0xf]  ;;  %v3493_v49 = vld [vmem:[%s6362_s0 + $0x418] sm:$0xf0] }
  0xf3   :  { %v2673_v55 = vpack.c.bf16 %v2473_v53, %v2473_v53  ;;  %v2374_v56 = vmax.f32 %v1890_v54, 0.0  ;;  %v3092_v54 = vor.u32 %v3864_v40, %v3091_v37 }
  0xf4   :  { %v1630_v57 = vpop.f32.mrf.mxu2 }
  0xf5   :  { %2874 = vst.msk [vmem:[%s6363_s3 + $0x1b4] sm:$0xf] %vm2764_vm0, %v2673_v55  ;;  %v2574_v58 = vpack.c.bf16 %v2374_v56, %v2374_v56  ;;  %v1631_v59 = vadd.f32 %v4333_v48, %v1630_v57  ;;  %v2139_v60 = vpop.f32.mrf.mxu3  ;;  %v3492_v55 = vor.u32 %v3964_v42, %v3491_v41  ;;  %v3096_v57 = vor.u32 %v3863_v43, %v3093_v44 }
  0xf6   :  { %v1382_v61 = vpop.f32.mrf.mxu0 }
  0xf7   :  { %2775 = vst.msk [vmem:[%s6363_s3 + $0x28] sm:$0xf] %vm2764_vm0, %v2574_v58  ;;  %v2140_v62 = vadd.f32 %v2139_v60, %v1631_v59  ;;  %v1383_v63 = vadd.f32 %v4333_v48, %v1382_v61  ;;  %v1891_v0 = vpop.f32.mrf.mxu1  ;;  %v3496_v58 = vor.u32 %v3963_v47, %v3493_v49 }
  0xf9   :  { %v2474_v2 = vmax.f32 %v2140_v62, 0.0  ;;  %v1892_v3 = vadd.f32 %v1891_v0, %v1383_v63 }
  0xfb   :  { %v2674_v9 = vpack.c.bf16 %v2474_v2, %v2474_v2  ;;  %v2375_v10 = vmax.f32 %v1892_v3, 0.0 }
  0xfc   :  { %v1632_v13 = vpop.f32.mrf.mxu2 }
  0xfd   :  { %2875 = vst.msk [vmem:[%s6363_s3 + $0x1b8] sm:$0xf] %vm2764_vm0, %v2674_v9  ;;  %v2575_v14 = vpack.c.bf16 %v2375_v10, %v2375_v10  ;;  %v1633_v15 = vadd.f32 %v4333_v48, %v1632_v13  ;;  %v2141_v16 = vpop.f32.mrf.mxu3  ;;  %v3099_v10 = vld [vmem:[%s6362_s0 + $0x100] sm:$0xf]  ;;  %v3866_v13 = vld [vmem:[%s6362_s0 + $0x104] sm:$0xf0] }
  0xfe   :  { %v1385_v19 = vpop.f32.mrf.mxu0 }
  0xff   :  { %2776 = vst.msk [vmem:[%s6363_s3 + $0x2c] sm:$0xf] %vm2764_vm0, %v2575_v14  ;;  %v2142_v22 = vadd.f32 %v2141_v16, %v1633_v15  ;;  %v1386_v23 = vadd.f32 %v4333_v48, %v1385_v19  ;;  %v1894_v24 = vpop.f32.mrf.mxu1  ;;  %v3499_v14 = vld [vmem:[%s6362_s0 + $0x420] sm:$0xf]  ;;  %v3966_v15 = vld [vmem:[%s6362_s0 + $0x424] sm:$0xf0] }
 0x100   :  { %v3865_v16 = vld [vmem:[%s6362_s0 + $0x104] sm:$0xf] }
 0x101   :  { %v2475_v25 = vmax.f32 %v2142_v22, 0.0  ;;  %v1895_v26 = vadd.f32 %v1894_v24, %v1386_v23  ;;  %1424 = vmatmul.bf16.gmra.mxu0 %v3084_v17  ;;  %1674 = vmatmul.bf16.gmra.mxu2 %v3484_v18  ;;  %v3101_v17 = vld [vmem:[%s6362_s0 + $0x108] sm:$0xf0] }
 0x102   :  { %1933 = vmatmul.bf16.gmra.mxu1 %v3088_v20  ;;  %2183 = vmatmul.bf16.gmra.mxu3 %v3488_v21  ;;  %v3965_v20 = vld [vmem:[%s6362_s0 + $0x424] sm:$0xf]  ;;  %v3501_v21 = vld [vmem:[%s6362_s0 + $0x428] sm:$0xf0] }
 0x103   :  { %v2675_v27 = vpack.c.bf16 %v2475_v25, %v2475_v25  ;;  %v2376_v28 = vmax.f32 %v1895_v26, 0.0  ;;  %v3100_v26 = vor.u32 %v3866_v13, %v3099_v10 }
 0x104   :  { %v1635_v29 = vpop.f32.mrf.mxu2 }
 0x105   :  { %2876 = vst.msk [vmem:[%s6363_s3 + $0x1bc] sm:$0xf] %vm2764_vm0, %v2675_v27  ;;  %v2576_v30 = vpack.c.bf16 %v2376_v28, %v2376_v28  ;;  %v1636_v31 = vadd.f32 %v4333_v48, %v1635_v29  ;;  %v2144_v32 = vpop.f32.mrf.mxu3  ;;  %v3500_v27 = vor.u32 %v3966_v15, %v3499_v14  ;;  %v3104_v29 = vor.u32 %v3865_v16, %v3101_v17 }
 0x106   :  { %v1387_v33 = vpop.f32.mrf.mxu0 }
 0x107   :  { %2777 = vst.msk [vmem:[%s6363_s3 + $0x30] sm:$0xf] %vm2764_vm0, %v2576_v30  ;;  %v2145_v34 = vadd.f32 %v2144_v32, %v1636_v31  ;;  %v1388_v35 = vadd.f32 %v4333_v48, %v1387_v33  ;;  %v1896_v36 = vpop.f32.mrf.mxu1  ;;  %v3504_v30 = vor.u32 %v3965_v20, %v3501_v21 }
 0x109   :  { %v2476_v38 = vmax.f32 %v2145_v34, 0.0  ;;  %v1897_v39 = vadd.f32 %v1896_v36, %v1388_v35 }
 0x10b   :  { %v2676_v45 = vpack.c.bf16 %v2476_v38, %v2476_v38  ;;  %v2377_v46 = vmax.f32 %v1897_v39, 0.0 }
 0x10c   :  { %v1637_v50 = vpop.f32.mrf.mxu2 }
 0x10d   :  { %2877 = vst.msk [vmem:[%s6363_s3 + $0x1c0] sm:$0xf] %vm2764_vm0, %v2676_v45  ;;  %v2577_v51 = vpack.c.bf16 %v2377_v46, %v2377_v46  ;;  %v1638_v52 = vadd.f32 %v4333_v48, %v1637_v50  ;;  %v2146_v53 = vpop.f32.mrf.mxu3  ;;  %v3107_v46 = vld [vmem:[%s6362_s0 + $0x110] sm:$0xf]  ;;  %v3868_v50 = vld [vmem:[%s6362_s0 + $0x114] sm:$0xf0] }
 0x10e   :  { %v1390_v56 = vpop.f32.mrf.mxu0 }
 0x10f   :  { %2778 = vst.msk [vmem:[%s6363_s3 + $0x34] sm:$0xf] %vm2764_vm0, %v2577_v51  ;;  %v2147_v59 = vadd.f32 %v2146_v53, %v1638_v52  ;;  %v1391_v60 = vadd.f32 %v4333_v48, %v1390_v56  ;;  %v1899_v61 = vpop.f32.mrf.mxu1  ;;  %v3507_v51 = vld [vmem:[%s6362_s0 + $0x430] sm:$0xf]  ;;  %v3968_v52 = vld [vmem:[%s6362_s0 + $0x434] sm:$0xf0] }
 0x110   :  { %v3867_v53 = vld [vmem:[%s6362_s0 + $0x114] sm:$0xf] }
 0x111   :  { %v2477_v62 = vmax.f32 %v2147_v59, 0.0  ;;  %v1900_v63 = vadd.f32 %v1899_v61, %v1391_v60  ;;  %1429 = vmatmul.bf16.gmra.mxu0 %v3092_v54  ;;  %1679 = vmatmul.bf16.gmra.mxu2 %v3492_v55  ;;  %v3109_v54 = vld [vmem:[%s6362_s0 + $0x118] sm:$0xf0] }
 0x112   :  { %1938 = vmatmul.bf16.gmra.mxu1 %v3096_v57  ;;  %2188 = vmatmul.bf16.gmra.mxu3 %v3496_v58  ;;  %v3967_v57 = vld [vmem:[%s6362_s0 + $0x434] sm:$0xf]  ;;  %v3509_v58 = vld [vmem:[%s6362_s0 + $0x438] sm:$0xf0] }
 0x113   :  { %v2677_v0 = vpack.c.bf16 %v2477_v62, %v2477_v62  ;;  %v2378_v1 = vmax.f32 %v1900_v63, 0.0  ;;  %v3108_v63 = vor.u32 %v3868_v50, %v3107_v46 }
 0x114   :  { %v1640_v2 = vpop.f32.mrf.mxu2 }
 0x115   :  { %2878 = vst.msk [vmem:[%s6363_s3 + $0x1c4] sm:$0xf] %vm2764_vm0, %v2677_v0  ;;  %v2578_v3 = vpack.c.bf16 %v2378_v1, %v2378_v1  ;;  %v1641_v4 = vadd.f32 %v4333_v48, %v1640_v2  ;;  %v2149_v5 = vpop.f32.mrf.mxu3  ;;  %v3508_v0 = vor.u32 %v3968_v52, %v3507_v51  ;;  %v3112_v2 = vor.u32 %v3867_v53, %v3109_v54 }
 0x116   :  { %v1392_v6 = vpop.f32.mrf.mxu0 }
 0x117   :  { %2779 = vst.msk [vmem:[%s6363_s3 + $0x38] sm:$0xf] %vm2764_vm0, %v2578_v3  ;;  %v2150_v7 = vadd.f32 %v2149_v5, %v1641_v4  ;;  %v1393_v8 = vadd.f32 %v4333_v48, %v1392_v6  ;;  %v1901_v9 = vpop.f32.mrf.mxu1  ;;  %v3512_v3 = vor.u32 %v3967_v57, %v3509_v58 }
 0x119   :  { %v2478_v11 = vmax.f32 %v2150_v7, 0.0  ;;  %v1902_v12 = vadd.f32 %v1901_v9, %v1393_v8 }
 0x11b   :  { %v2678_v18 = vpack.c.bf16 %v2478_v11, %v2478_v11  ;;  %v2379_v19 = vmax.f32 %v1902_v12, 0.0 }
 0x11c   :  { %v1642_v22 = vpop.f32.mrf.mxu2 }
 0x11d   :  { %2879 = vst.msk [vmem:[%s6363_s3 + $0x1c8] sm:$0xf] %vm2764_vm0, %v2678_v18  ;;  %v2579_v23 = vpack.c.bf16 %v2379_v19, %v2379_v19  ;;  %v1643_v24 = vadd.f32 %v4333_v48, %v1642_v22  ;;  %v2151_v25 = vpop.f32.mrf.mxu3  ;;  %v3115_v19 = vld [vmem:[%s6362_s0 + $0x120] sm:$0xf]  ;;  %v3870_v22 = vld [vmem:[%s6362_s0 + $0x124] sm:$0xf0] }
 0x11e   :  { %v1395_v28 = vpop.f32.mrf.mxu0 }
 0x11f   :  { %2780 = vst.msk [vmem:[%s6363_s3 + $0x3c] sm:$0xf] %vm2764_vm0, %v2579_v23  ;;  %v2152_v31 = vadd.f32 %v2151_v25, %v1643_v24  ;;  %v1396_v32 = vadd.f32 %v4333_v48, %v1395_v28  ;;  %v1904_v33 = vpop.f32.mrf.mxu1  ;;  %v3515_v23 = vld [vmem:[%s6362_s0 + $0x440] sm:$0xf]  ;;  %v3970_v24 = vld [vmem:[%s6362_s0 + $0x444] sm:$0xf0] }
 0x120   :  { %v3869_v25 = vld [vmem:[%s6362_s0 + $0x124] sm:$0xf] }
 0x121   :  { %v2479_v34 = vmax.f32 %v2152_v31, 0.0  ;;  %v1905_v35 = vadd.f32 %v1904_v33, %v1396_v32  ;;  %1434 = vmatmul.bf16.gmra.mxu0 %v3100_v26  ;;  %1684 = vmatmul.bf16.gmra.mxu2 %v3500_v27  ;;  %v3117_v26 = vld [vmem:[%s6362_s0 + $0x128] sm:$0xf0] }
 0x122   :  { %1943 = vmatmul.bf16.gmra.mxu1 %v3104_v29  ;;  %2193 = vmatmul.bf16.gmra.mxu3 %v3504_v30  ;;  %v3969_v29 = vld [vmem:[%s6362_s0 + $0x444] sm:$0xf]  ;;  %v3517_v30 = vld [vmem:[%s6362_s0 + $0x448] sm:$0xf0] }
 0x123   :  { %v2679_v36 = vpack.c.bf16 %v2479_v34, %v2479_v34  ;;  %v2380_v37 = vmax.f32 %v1905_v35, 0.0  ;;  %v3116_v35 = vor.u32 %v3870_v22, %v3115_v19 }
 0x124   :  { %v1645_v38 = vpop.f32.mrf.mxu2 }
 0x125   :  { %2880 = vst.msk [vmem:[%s6363_s3 + $0x1cc] sm:$0xf] %vm2764_vm0, %v2679_v36  ;;  %v2580_v39 = vpack.c.bf16 %v2380_v37, %v2380_v37  ;;  %v1646_v40 = vadd.f32 %v4333_v48, %v1645_v38  ;;  %v2154_v41 = vpop.f32.mrf.mxu3  ;;  %v3516_v36 = vor.u32 %v3970_v24, %v3515_v23  ;;  %v3120_v38 = vor.u32 %v3869_v25, %v3117_v26  ;;  %v4852_v26 = vld [vmem:[%s6361_s2] ss:$0 sm:$0xff] }
 0x126   :  { %v1397_v42 = vpop.f32.mrf.mxu0 }
 0x127   :  { %2781 = vst.msk [vmem:[%s6363_s3 + $0x40] sm:$0xf] %vm2764_vm0, %v2580_v39  ;;  %v2155_v43 = vadd.f32 %v2154_v41, %v1646_v40  ;;  %v1398_v44 = vadd.f32 %v4333_v48, %v1397_v42  ;;  %v1906_v45 = vpop.f32.mrf.mxu1  ;;  %v3520_v39 = vor.u32 %v3969_v29, %v3517_v30 }
 0x129   :  { %v2480_v47 = vmax.f32 %v2155_v43, 0.0  ;;  %v1907_v49 = vadd.f32 %v1906_v45, %v1398_v44 }
 0x12b   :  { %v2680_v55 = vpack.c.bf16 %v2480_v47, %v2480_v47  ;;  %v2381_v56 = vmax.f32 %v1907_v49, 0.0 }
 0x12c   :  { %v1647_v59 = vpop.f32.mrf.mxu2 }
 0x12d   :  { %2881 = vst.msk [vmem:[%s6363_s3 + $0x1d0] sm:$0xf] %vm2764_vm0, %v2680_v55  ;;  %v2581_v60 = vpack.c.bf16 %v2381_v56, %v2381_v56  ;;  %v1648_v61 = vadd.f32 %v4333_v48, %v1647_v59  ;;  %v2156_v62 = vpop.f32.mrf.mxu3  ;;  %v3123_v56 = vld [vmem:[%s6362_s0 + $0x130] sm:$0xf]  ;;  %v3872_v59 = vld [vmem:[%s6362_s0 + $0x134] sm:$0xf0] }
 0x12e   :  { %v1400_v1 = vpop.f32.mrf.mxu0 }
 0x12f   :  { %2782 = vst.msk [vmem:[%s6363_s3 + $0x44] sm:$0xf] %vm2764_vm0, %v2581_v60  ;;  %v2157_v4 = vadd.f32 %v2156_v62, %v1648_v61  ;;  %v1401_v5 = vadd.f32 %v4333_v48, %v1400_v1  ;;  %v1909_v6 = vpop.f32.mrf.mxu1  ;;  %v3523_v60 = vld [vmem:[%s6362_s0 + $0x450] sm:$0xf]  ;;  %v3972_v61 = vld [vmem:[%s6362_s0 + $0x454] sm:$0xf0] }
 0x130   :  { %v3871_v62 = vld [vmem:[%s6362_s0 + $0x134] sm:$0xf] }
 0x131   :  { %v2481_v7 = vmax.f32 %v2157_v4, 0.0  ;;  %v1910_v8 = vadd.f32 %v1909_v6, %v1401_v5  ;;  %1439 = vmatmul.bf16.gmra.mxu0 %v3108_v63  ;;  %1689 = vmatmul.bf16.gmra.mxu2 %v3508_v0  ;;  %v3125_v63 = vld [vmem:[%s6362_s0 + $0x138] sm:$0xf0] }
 0x132   :  { %1948 = vmatmul.bf16.gmra.mxu1 %v3112_v2  ;;  %2198 = vmatmul.bf16.gmra.mxu3 %v3512_v3  ;;  %v3971_v2 = vld [vmem:[%s6362_s0 + $0x454] sm:$0xf]  ;;  %v3525_v3 = vld [vmem:[%s6362_s0 + $0x458] sm:$0xf0] }
 0x133   :  { %v2681_v9 = vpack.c.bf16 %v2481_v7, %v2481_v7  ;;  %v2382_v10 = vmax.f32 %v1910_v8, 0.0  ;;  %v3124_v8 = vor.u32 %v3872_v59, %v3123_v56 }
 0x134   :  { %v1650_v11 = vpop.f32.mrf.mxu2 }
 0x135   :  { %2882 = vst.msk [vmem:[%s6363_s3 + $0x1d4] sm:$0xf] %vm2764_vm0, %v2681_v9  ;;  %v2582_v12 = vpack.c.bf16 %v2382_v10, %v2382_v10  ;;  %v1651_v13 = vadd.f32 %v4333_v48, %v1650_v11  ;;  %v2159_v14 = vpop.f32.mrf.mxu3  ;;  %v3524_v9 = vor.u32 %v3972_v61, %v3523_v60  ;;  %v3128_v11 = vor.u32 %v3871_v62, %v3125_v63 }
 0x136   :  { %v1402_v15 = vpop.f32.mrf.mxu0 }
 0x137   :  { %2783 = vst.msk [vmem:[%s6363_s3 + $0x48] sm:$0xf] %vm2764_vm0, %v2582_v12  ;;  %v2160_v16 = vadd.f32 %v2159_v14, %v1651_v13  ;;  %v1403_v17 = vadd.f32 %v4333_v48, %v1402_v15  ;;  %v1911_v18 = vpop.f32.mrf.mxu1  ;;  %v3528_v12 = vor.u32 %v3971_v2, %v3525_v3 }
 0x139   :  { %v2482_v20 = vmax.f32 %v2160_v16, 0.0  ;;  %v1912_v21 = vadd.f32 %v1911_v18, %v1403_v17 }
 0x13b   :  { %v2682_v27 = vpack.c.bf16 %v2482_v20, %v2482_v20  ;;  %v2383_v28 = vmax.f32 %v1912_v21, 0.0 }
 0x13c   :  { %v1652_v31 = vpop.f32.mrf.mxu2 }
 0x13d   :  { %2883 = vst.msk [vmem:[%s6363_s3 + $0x1d8] sm:$0xf] %vm2764_vm0, %v2682_v27  ;;  %v2583_v32 = vpack.c.bf16 %v2383_v28, %v2383_v28  ;;  %v1653_v33 = vadd.f32 %v4333_v48, %v1652_v31  ;;  %v2161_v34 = vpop.f32.mrf.mxu3  ;;  %v3874_v31 = vld [vmem:[%s6362_s0 + $0x144] sm:$0xf0] }
 0x13e   :  { %v1405_v37 = vpop.f32.mrf.mxu0 }
 0x13f   :  { %2784 = vst.msk [vmem:[%s6363_s3 + $0x4c] sm:$0xf] %vm2764_vm0, %v2583_v32  ;;  %v2162_v40 = vadd.f32 %v2161_v34, %v1653_v33  ;;  %v1406_v41 = vadd.f32 %v4333_v48, %v1405_v37  ;;  %v1914_v42 = vpop.f32.mrf.mxu1  ;;  %v3531_v32 = vld [vmem:[%s6362_s0 + $0x460] sm:$0xf]  ;;  %v3974_v33 = vld [vmem:[%s6362_s0 + $0x464] sm:$0xf0] }
 0x140   :  { %v3873_v34 = vld [vmem:[%s6362_s0 + $0x144] sm:$0xf] }
 0x141   :  { %v2483_v43 = vmax.f32 %v2162_v40, 0.0  ;;  %v1915_v44 = vadd.f32 %v1914_v42, %v1406_v41  ;;  %1444 = vmatmul.bf16.gmra.mxu0 %v3116_v35  ;;  %1694 = vmatmul.bf16.gmra.mxu2 %v3516_v36  ;;  %v3133_v35 = vld [vmem:[%s6362_s0 + $0x148] sm:$0xf0] }
 0x142   :  { %1953 = vmatmul.bf16.gmra.mxu1 %v3120_v38  ;;  %2203 = vmatmul.bf16.gmra.mxu3 %v3520_v39  ;;  %v3973_v38 = vld [vmem:[%s6362_s0 + $0x464] sm:$0xf]  ;;  %v3533_v39 = vld [vmem:[%s6362_s0 + $0x468] sm:$0xf0] }
 0x143   :  { %v2683_v45 = vpack.c.bf16 %v2483_v43, %v2483_v43  ;;  %v2384_v46 = vmax.f32 %v1915_v44, 0.0 }
 0x144   :  { %v1655_v47 = vpop.f32.mrf.mxu2 }
 0x145   :  { %2884 = vst.msk [vmem:[%s6363_s3 + $0x1dc] sm:$0xf] %vm2764_vm0, %v2683_v45  ;;  %v2584_v49 = vpack.c.bf16 %v2384_v46, %v2384_v46  ;;  %v1656_v50 = vadd.f32 %v4333_v48, %v1655_v47  ;;  %v2164_v51 = vpop.f32.mrf.mxu3  ;;  %v3532_v45 = vor.u32 %v3974_v33, %v3531_v32  ;;  %v3136_v47 = vor.u32 %v3873_v34, %v3133_v35 }
 0x146   :  { %v1407_v52 = vpop.f32.mrf.mxu0 }
 0x147   :  { %2785 = vst.msk [vmem:[%s6363_s3 + $0x50] sm:$0xf] %vm2764_vm0, %v2584_v49  ;;  %v2165_v53 = vadd.f32 %v2164_v51, %v1656_v50  ;;  %v1408_v54 = vadd.f32 %v4333_v48, %v1407_v52  ;;  %v1916_v55 = vpop.f32.mrf.mxu1  ;;  %v3536_v49 = vor.u32 %v3973_v38, %v3533_v39 }
 0x149   :  { %v2484_v57 = vmax.f32 %v2165_v53, 0.0  ;;  %v1917_v58 = vadd.f32 %v1916_v55, %v1408_v54 }
 0x14b   :  { %v2684_v0 = vpack.c.bf16 %v2484_v57, %v2484_v57  ;;  %v2385_v1 = vmax.f32 %v1917_v58, 0.0 }
 0x14c   :  { %v1657_v4 = vpop.f32.mrf.mxu2 }
 0x14d   :  { %2885 = vst.msk [vmem:[%s6363_s3 + $0x1e0] sm:$0xf] %vm2764_vm0, %v2684_v0  ;;  %v2585_v5 = vpack.c.bf16 %v2385_v1, %v2385_v1  ;;  %v1658_v6 = vadd.f32 %v4333_v48, %v1657_v4  ;;  %v2166_v7 = vpop.f32.mrf.mxu3  ;;  %v3139_v1 = vld [vmem:[%s6362_s0 + $0x150] sm:$0xf]  ;;  %v3876_v4 = vld [vmem:[%s6362_s0 + $0x154] sm:$0xf0] }
 0x14e   :  { %v1410_v10 = vpop.f32.mrf.mxu0 }
 0x14f   :  { %2786 = vst.msk [vmem:[%s6363_s3 + $0x54] sm:$0xf] %vm2764_vm0, %v2585_v5  ;;  %v2167_v13 = vadd.f32 %v2166_v7, %v1658_v6  ;;  %v1411_v14 = vadd.f32 %v4333_v48, %v1410_v10  ;;  %v1919_v15 = vpop.f32.mrf.mxu1  ;;  %v3539_v5 = vld [vmem:[%s6362_s0 + $0x470] sm:$0xf]  ;;  %v3976_v6 = vld [vmem:[%s6362_s0 + $0x474] sm:$0xf0] }
 0x150   :  { %v3875_v7 = vld [vmem:[%s6362_s0 + $0x154] sm:$0xf] }
 0x151   :  { %v2485_v16 = vmax.f32 %v2167_v13, 0.0  ;;  %v1920_v17 = vadd.f32 %v1919_v15, %v1411_v14  ;;  %1449 = vmatmul.bf16.gmra.mxu0 %v3124_v8  ;;  %1699 = vmatmul.bf16.gmra.mxu2 %v3524_v9  ;;  %v3141_v8 = vld [vmem:[%s6362_s0 + $0x158] sm:$0xf0] }
 0x152   :  { %1958 = vmatmul.bf16.gmra.mxu1 %v3128_v11  ;;  %2208 = vmatmul.bf16.gmra.mxu3 %v3528_v12  ;;  %v3975_v11 = vld [vmem:[%s6362_s0 + $0x474] sm:$0xf]  ;;  %v3541_v12 = vld [vmem:[%s6362_s0 + $0x478] sm:$0xf0] }
 0x153   :  { %v2685_v18 = vpack.c.bf16 %v2485_v16, %v2485_v16  ;;  %v2386_v19 = vmax.f32 %v1920_v17, 0.0  ;;  %v3140_v17 = vor.u32 %v3876_v4, %v3139_v1 }
 0x154   :  { %v1660_v20 = vpop.f32.mrf.mxu2 }
 0x155   :  { %2886 = vst.msk [vmem:[%s6363_s3 + $0x1e4] sm:$0xf] %vm2764_vm0, %v2685_v18  ;;  %v2586_v21 = vpack.c.bf16 %v2386_v19, %v2386_v19  ;;  %v1661_v22 = vadd.f32 %v4333_v48, %v1660_v20  ;;  %v2169_v23 = vpop.f32.mrf.mxu3  ;;  %v3131_v48 = vld [vmem:[%s6362_s0 + $0x140] sm:$0xf]  ;;  %v3540_v18 = vor.u32 %v3976_v6, %v3539_v5  ;;  %v3144_v20 = vor.u32 %v3875_v7, %v3141_v8 }
 0x156   :  { %v1412_v24 = vpop.f32.mrf.mxu0  ;;  %v3132_v44 = vor.u32 %v3874_v31, %v3131_v48 }
 0x157   :  { %2787 = vst.msk [vmem:[%s6363_s3 + $0x58] sm:$0xf] %vm2764_vm0, %v2586_v21  ;;  %v2170_v25 = vadd.f32 %v2169_v23, %v1661_v22  ;;  %v1413_v27 = vadd.f32 %v4852_v26, %v1412_v24  ;;  %v1921_v28 = vpop.f32.mrf.mxu1  ;;  %v3544_v21 = vor.u32 %v3975_v11, %v3541_v12 }
 0x159   :  { %v2486_v29 = vmax.f32 %v2170_v25, 0.0  ;;  %v1922_v30 = vadd.f32 %v1921_v28, %v1413_v27 }
 0x15b   :  { %v2686_v36 = vpack.c.bf16 %v2486_v29, %v2486_v29  ;;  %v2387_v37 = vmax.f32 %v1922_v30, 0.0 }
 0x15c   :  { %v1662_v40 = vpop.f32.mrf.mxu2 }
 0x15d   :  { %2887 = vst.msk [vmem:[%s6363_s3 + $0x1e8] sm:$0xf] %vm2764_vm0, %v2686_v36  ;;  %v2587_v41 = vpack.c.bf16 %v2387_v37, %v2387_v37  ;;  %v1663_v42 = vadd.f32 %v4852_v26, %v1662_v40  ;;  %v2171_v43 = vpop.f32.mrf.mxu3  ;;  %v3147_v37 = vld [vmem:[%s6362_s0 + $0x160] sm:$0xf]  ;;  %v3878_v40 = vld [vmem:[%s6362_s0 + $0x164] sm:$0xf0] }
 0x15e   :  { %v1415_v46 = vpop.f32.mrf.mxu0 }
 0x15f   :  { %2788 = vst.msk [vmem:[%s6363_s3 + $0x5c] sm:$0xf] %vm2764_vm0, %v2587_v41  ;;  %v2172_v50 = vadd.f32 %v2171_v43, %v1663_v42  ;;  %v1416_v51 = vadd.f32 %v4852_v26, %v1415_v46  ;;  %v1924_v52 = vpop.f32.mrf.mxu1  ;;  %v3547_v41 = vld [vmem:[%s6362_s0 + $0x480] sm:$0xf]  ;;  %v3978_v42 = vld [vmem:[%s6362_s0 + $0x484] sm:$0xf0] }
 0x160   :  { %v3877_v43 = vld [vmem:[%s6362_s0 + $0x164] sm:$0xf] }
 0x161   :  { %v2487_v53 = vmax.f32 %v2172_v50, 0.0  ;;  %v1925_v54 = vadd.f32 %v1924_v52, %v1416_v51  ;;  %1454 = vmatmul.bf16.gmra.mxu0 %v3132_v44  ;;  %1704 = vmatmul.bf16.gmra.mxu2 %v3532_v45  ;;  %v3149_v44 = vld [vmem:[%s6362_s0 + $0x168] sm:$0xf0] }
 0x162   :  { %1963 = vmatmul.bf16.gmra.mxu1 %v3136_v47  ;;  %2213 = vmatmul.bf16.gmra.mxu3 %v3536_v49  ;;  %v3977_v47 = vld [vmem:[%s6362_s0 + $0x484] sm:$0xf]  ;;  %v3549_v49 = vld [vmem:[%s6362_s0 + $0x488] sm:$0xf0] }
 0x163   :  { %v2687_v55 = vpack.c.bf16 %v2487_v53, %v2487_v53  ;;  %v2388_v56 = vmax.f32 %v1925_v54, 0.0  ;;  %v3148_v54 = vor.u32 %v3878_v40, %v3147_v37 }
 0x164   :  { %v1665_v57 = vpop.f32.mrf.mxu2 }
 0x165   :  { %2888 = vst.msk [vmem:[%s6363_s3 + $0x1ec] sm:$0xf] %vm2764_vm0, %v2687_v55  ;;  %v2588_v58 = vpack.c.bf16 %v2388_v56, %v2388_v56  ;;  %v1666_v59 = vadd.f32 %v4852_v26, %v1665_v57  ;;  %v2174_v60 = vpop.f32.mrf.mxu3  ;;  %v3548_v55 = vor.u32 %v3978_v42, %v3547_v41  ;;  %v3152_v57 = vor.u32 %v3877_v43, %v3149_v44 }
 0x166   :  { %v1417_v61 = vpop.f32.mrf.mxu0 }
 0x167   :  { %2789 = vst.msk [vmem:[%s6363_s3 + $0x60] sm:$0xf] %vm2764_vm0, %v2588_v58  ;;  %v2175_v62 = vadd.f32 %v2174_v60, %v1666_v59  ;;  %v1418_v63 = vadd.f32 %v4852_v26, %v1417_v61  ;;  %v1926_v0 = vpop.f32.mrf.mxu1  ;;  %v3552_v58 = vor.u32 %v3977_v47, %v3549_v49 }
 0x169   :  { %v2488_v2 = vmax.f32 %v2175_v62, 0.0  ;;  %v1927_v3 = vadd.f32 %v1926_v0, %v1418_v63 }
 0x16b   :  { %v2688_v9 = vpack.c.bf16 %v2488_v2, %v2488_v2  ;;  %v2389_v10 = vmax.f32 %v1927_v3, 0.0 }
 0x16c   :  { %v1667_v13 = vpop.f32.mrf.mxu2 }
 0x16d   :  { %2889 = vst.msk [vmem:[%s6363_s3 + $0x1f0] sm:$0xf] %vm2764_vm0, %v2688_v9  ;;  %v2589_v14 = vpack.c.bf16 %v2389_v10, %v2389_v10  ;;  %v1668_v15 = vadd.f32 %v4852_v26, %v1667_v13  ;;  %v2176_v16 = vpop.f32.mrf.mxu3  ;;  %v3155_v10 = vld [vmem:[%s6362_s0 + $0x170] sm:$0xf]  ;;  %v3880_v13 = vld [vmem:[%s6362_s0 + $0x174] sm:$0xf0] }
 0x16e   :  { %v1420_v19 = vpop.f32.mrf.mxu0 }
 0x16f   :  { %2790 = vst.msk [vmem:[%s6363_s3 + $0x64] sm:$0xf] %vm2764_vm0, %v2589_v14  ;;  %v2177_v22 = vadd.f32 %v2176_v16, %v1668_v15  ;;  %v1421_v23 = vadd.f32 %v4852_v26, %v1420_v19  ;;  %v1929_v24 = vpop.f32.mrf.mxu1  ;;  %v3555_v14 = vld [vmem:[%s6362_s0 + $0x490] sm:$0xf]  ;;  %v3980_v15 = vld [vmem:[%s6362_s0 + $0x494] sm:$0xf0] }
 0x170   :  { %v3879_v16 = vld [vmem:[%s6362_s0 + $0x174] sm:$0xf] }
 0x171   :  { %v2489_v25 = vmax.f32 %v2177_v22, 0.0  ;;  %v1930_v27 = vadd.f32 %v1929_v24, %v1421_v23  ;;  %1459 = vmatmul.bf16.gmra.mxu0 %v3140_v17  ;;  %1709 = vmatmul.bf16.gmra.mxu2 %v3540_v18  ;;  %v3157_v17 = vld [vmem:[%s6362_s0 + $0x178] sm:$0xf0] }
 0x172   :  { %1968 = vmatmul.bf16.gmra.mxu1 %v3144_v20  ;;  %2218 = vmatmul.bf16.gmra.mxu3 %v3544_v21  ;;  %v3979_v20 = vld [vmem:[%s6362_s0 + $0x494] sm:$0xf]  ;;  %v3557_v21 = vld [vmem:[%s6362_s0 + $0x498] sm:$0xf0] }
 0x173   :  { %v2689_v28 = vpack.c.bf16 %v2489_v25, %v2489_v25  ;;  %v2390_v48 = vmax.f32 %v1930_v27, 0.0  ;;  %v3156_v27 = vor.u32 %v3880_v13, %v3155_v10 }
 0x174   :  { %v1670_v29 = vpop.f32.mrf.mxu2 }
 0x175   :  { %2890 = vst.msk [vmem:[%s6363_s3 + $0x1f4] sm:$0xf] %vm2764_vm0, %v2689_v28  ;;  %v2590_v30 = vpack.c.bf16 %v2390_v48, %v2390_v48  ;;  %v1671_v31 = vadd.f32 %v4852_v26, %v1670_v29  ;;  %v2179_v32 = vpop.f32.mrf.mxu3  ;;  %v3556_v28 = vor.u32 %v3980_v15, %v3555_v14  ;;  %v3160_v29 = vor.u32 %v3879_v16, %v3157_v17 }
 0x176   :  { %v1422_v33 = vpop.f32.mrf.mxu0 }
 0x177   :  { %2791 = vst.msk [vmem:[%s6363_s3 + $0x68] sm:$0xf] %vm2764_vm0, %v2590_v30  ;;  %v2180_v34 = vadd.f32 %v2179_v32, %v1671_v31  ;;  %v1423_v35 = vadd.f32 %v4852_v26, %v1422_v33  ;;  %v1931_v36 = vpop.f32.mrf.mxu1  ;;  %v3560_v30 = vor.u32 %v3979_v20, %v3557_v21 }
 0x179   :  { %v2490_v38 = vmax.f32 %v2180_v34, 0.0  ;;  %v1932_v39 = vadd.f32 %v1931_v36, %v1423_v35 }
 0x17b   :  { %v2690_v45 = vpack.c.bf16 %v2490_v38, %v2490_v38  ;;  %v2391_v46 = vmax.f32 %v1932_v39, 0.0 }
 0x17c   :  { %v1672_v50 = vpop.f32.mrf.mxu2 }
 0x17d   :  { %2891 = vst.msk [vmem:[%s6363_s3 + $0x1f8] sm:$0xf] %vm2764_vm0, %v2690_v45  ;;  %v2591_v51 = vpack.c.bf16 %v2391_v46, %v2391_v46  ;;  %v1673_v52 = vadd.f32 %v4852_v26, %v1672_v50  ;;  %v2181_v53 = vpop.f32.mrf.mxu3  ;;  %v3163_v46 = vld [vmem:[%s6362_s0 + $0x180] sm:$0xf]  ;;  %v3882_v50 = vld [vmem:[%s6362_s0 + $0x184] sm:$0xf0] }
 0x17e   :  { %v1425_v56 = vpop.f32.mrf.mxu0 }
 0x17f   :  { %2792 = vst.msk [vmem:[%s6363_s3 + $0x6c] sm:$0xf] %vm2764_vm0, %v2591_v51  ;;  %v2182_v59 = vadd.f32 %v2181_v53, %v1673_v52  ;;  %v1426_v60 = vadd.f32 %v4852_v26, %v1425_v56  ;;  %v1934_v61 = vpop.f32.mrf.mxu1  ;;  %v3563_v51 = vld [vmem:[%s6362_s0 + $0x4a0] sm:$0xf]  ;;  %v3982_v52 = vld [vmem:[%s6362_s0 + $0x4a4] sm:$0xf0] }
 0x180   :  { %v3881_v53 = vld [vmem:[%s6362_s0 + $0x184] sm:$0xf] }
 0x181   :  { %v2491_v62 = vmax.f32 %v2182_v59, 0.0  ;;  %v1935_v63 = vadd.f32 %v1934_v61, %v1426_v60  ;;  %1464 = vmatmul.bf16.gmra.mxu0 %v3148_v54  ;;  %1714 = vmatmul.bf16.gmra.mxu2 %v3548_v55  ;;  %v3165_v54 = vld [vmem:[%s6362_s0 + $0x188] sm:$0xf0] }
 0x182   :  { %1973 = vmatmul.bf16.gmra.mxu1 %v3152_v57  ;;  %2223 = vmatmul.bf16.gmra.mxu3 %v3552_v58  ;;  %v3981_v57 = vld [vmem:[%s6362_s0 + $0x4a4] sm:$0xf]  ;;  %v3565_v58 = vld [vmem:[%s6362_s0 + $0x4a8] sm:$0xf0] }
 0x183   :  { %v2691_v0 = vpack.c.bf16 %v2491_v62, %v2491_v62  ;;  %v2392_v1 = vmax.f32 %v1935_v63, 0.0  ;;  %v3164_v63 = vor.u32 %v3882_v50, %v3163_v46 }
 0x184   :  { %v1675_v2 = vpop.f32.mrf.mxu2 }
 0x185   :  { %2892 = vst.msk [vmem:[%s6363_s3 + $0x1fc] sm:$0xf] %vm2764_vm0, %v2691_v0  ;;  %v2592_v3 = vpack.c.bf16 %v2392_v1, %v2392_v1  ;;  %v1676_v4 = vadd.f32 %v4852_v26, %v1675_v2  ;;  %v2184_v5 = vpop.f32.mrf.mxu3  ;;  %v3564_v0 = vor.u32 %v3982_v52, %v3563_v51  ;;  %v3168_v2 = vor.u32 %v3881_v53, %v3165_v54 }
 0x186   :  { %v1427_v6 = vpop.f32.mrf.mxu0 }
 0x187   :  { %2793 = vst.msk [vmem:[%s6363_s3 + $0x70] sm:$0xf] %vm2764_vm0, %v2592_v3  ;;  %v2185_v7 = vadd.f32 %v2184_v5, %v1676_v4  ;;  %v1428_v8 = vadd.f32 %v4852_v26, %v1427_v6  ;;  %v1936_v9 = vpop.f32.mrf.mxu1  ;;  %v3568_v3 = vor.u32 %v3981_v57, %v3565_v58 }
 0x189   :  { %v2492_v11 = vmax.f32 %v2185_v7, 0.0  ;;  %v1937_v12 = vadd.f32 %v1936_v9, %v1428_v8 }
 0x18b   :  { %v2692_v18 = vpack.c.bf16 %v2492_v11, %v2492_v11  ;;  %v2393_v19 = vmax.f32 %v1937_v12, 0.0 }
 0x18c   :  { %v1677_v22 = vpop.f32.mrf.mxu2 }
 0x18d   :  { %2893 = vst.msk [vmem:[%s6363_s3 + $0x200] sm:$0xf] %vm2764_vm0, %v2692_v18  ;;  %v2593_v23 = vpack.c.bf16 %v2393_v19, %v2393_v19  ;;  %v1678_v24 = vadd.f32 %v4852_v26, %v1677_v22  ;;  %v2186_v25 = vpop.f32.mrf.mxu3  ;;  %v3171_v19 = vld [vmem:[%s6362_s0 + $0x190] sm:$0xf]  ;;  %v3884_v22 = vld [vmem:[%s6362_s0 + $0x194] sm:$0xf0] }
 0x18e   :  { %v1430_v48 = vpop.f32.mrf.mxu0 }
 0x18f   :  { %2794 = vst.msk [vmem:[%s6363_s3 + $0x74] sm:$0xf] %vm2764_vm0, %v2593_v23  ;;  %v2187_v31 = vadd.f32 %v2186_v25, %v1678_v24  ;;  %v1431_v32 = vadd.f32 %v4852_v26, %v1430_v48  ;;  %v1939_v33 = vpop.f32.mrf.mxu1  ;;  %v3571_v23 = vld [vmem:[%s6362_s0 + $0x4b0] sm:$0xf]  ;;  %v3984_v24 = vld [vmem:[%s6362_s0 + $0x4b4] sm:$0xf0] }
 0x190   :  { %v3883_v25 = vld [vmem:[%s6362_s0 + $0x194] sm:$0xf] }
 0x191   :  { %v2493_v34 = vmax.f32 %v2187_v31, 0.0  ;;  %v1940_v35 = vadd.f32 %v1939_v33, %v1431_v32  ;;  %1469 = vmatmul.bf16.gmra.mxu0 %v3156_v27  ;;  %1719 = vmatmul.bf16.gmra.mxu2 %v3556_v28  ;;  %v3173_v27 = vld [vmem:[%s6362_s0 + $0x198] sm:$0xf0] }
 0x192   :  { %1978 = vmatmul.bf16.gmra.mxu1 %v3160_v29  ;;  %2228 = vmatmul.bf16.gmra.mxu3 %v3560_v30  ;;  %v3983_v29 = vld [vmem:[%s6362_s0 + $0x4b4] sm:$0xf]  ;;  %v3573_v30 = vld [vmem:[%s6362_s0 + $0x4b8] sm:$0xf0] }
 0x193   :  { %v2693_v36 = vpack.c.bf16 %v2493_v34, %v2493_v34  ;;  %v2394_v37 = vmax.f32 %v1940_v35, 0.0  ;;  %v3172_v35 = vor.u32 %v3884_v22, %v3171_v19 }
 0x194   :  { %v1680_v38 = vpop.f32.mrf.mxu2 }
 0x195   :  { %2894 = vst.msk [vmem:[%s6363_s3 + $0x204] sm:$0xf] %vm2764_vm0, %v2693_v36  ;;  %v2594_v39 = vpack.c.bf16 %v2394_v37, %v2394_v37  ;;  %v1681_v40 = vadd.f32 %v4852_v26, %v1680_v38  ;;  %v2189_v41 = vpop.f32.mrf.mxu3  ;;  %v3572_v36 = vor.u32 %v3984_v24, %v3571_v23  ;;  %v3176_v38 = vor.u32 %v3883_v25, %v3173_v27 }
 0x196   :  { %v1432_v42 = vpop.f32.mrf.mxu0 }
 0x197   :  { %2795 = vst.msk [vmem:[%s6363_s3 + $0x78] sm:$0xf] %vm2764_vm0, %v2594_v39  ;;  %v2190_v43 = vadd.f32 %v2189_v41, %v1681_v40  ;;  %v1433_v44 = vadd.f32 %v4852_v26, %v1432_v42  ;;  %v1941_v45 = vpop.f32.mrf.mxu1  ;;  %v3576_v39 = vor.u32 %v3983_v29, %v3573_v30 }
 0x199   :  { %v2494_v47 = vmax.f32 %v2190_v43, 0.0  ;;  %v1942_v49 = vadd.f32 %v1941_v45, %v1433_v44 }
 0x19b   :  { %v2694_v55 = vpack.c.bf16 %v2494_v47, %v2494_v47  ;;  %v2395_v56 = vmax.f32 %v1942_v49, 0.0 }
 0x19c   :  { %v1682_v59 = vpop.f32.mrf.mxu2 }
 0x19d   :  { %2895 = vst.msk [vmem:[%s6363_s3 + $0x208] sm:$0xf] %vm2764_vm0, %v2694_v55  ;;  %v2595_v60 = vpack.c.bf16 %v2395_v56, %v2395_v56  ;;  %v1683_v61 = vadd.f32 %v4852_v26, %v1682_v59  ;;  %v2191_v62 = vpop.f32.mrf.mxu3  ;;  %v3179_v56 = vld [vmem:[%s6362_s0 + $0x1a0] sm:$0xf]  ;;  %v3886_v59 = vld [vmem:[%s6362_s0 + $0x1a4] sm:$0xf0] }
 0x19e   :  { %v1435_v1 = vpop.f32.mrf.mxu0 }
 0x19f   :  { %2796 = vst.msk [vmem:[%s6363_s3 + $0x7c] sm:$0xf] %vm2764_vm0, %v2595_v60  ;;  %v2192_v4 = vadd.f32 %v2191_v62, %v1683_v61  ;;  %v1436_v5 = vadd.f32 %v4852_v26, %v1435_v1  ;;  %v1944_v6 = vpop.f32.mrf.mxu1  ;;  %v3579_v60 = vld [vmem:[%s6362_s0 + $0x4c0] sm:$0xf]  ;;  %v3986_v61 = vld [vmem:[%s6362_s0 + $0x4c4] sm:$0xf0] }
 0x1a0   :  { %v3885_v62 = vld [vmem:[%s6362_s0 + $0x1a4] sm:$0xf] }
 0x1a1   :  { %v2495_v7 = vmax.f32 %v2192_v4, 0.0  ;;  %v1945_v8 = vadd.f32 %v1944_v6, %v1436_v5  ;;  %1474 = vmatmul.bf16.gmra.mxu0 %v3164_v63  ;;  %1724 = vmatmul.bf16.gmra.mxu2 %v3564_v0  ;;  %v3181_v63 = vld [vmem:[%s6362_s0 + $0x1a8] sm:$0xf0] }
 0x1a2   :  { %1983 = vmatmul.bf16.gmra.mxu1 %v3168_v2  ;;  %2233 = vmatmul.bf16.gmra.mxu3 %v3568_v3  ;;  %v3985_v2 = vld [vmem:[%s6362_s0 + $0x4c4] sm:$0xf]  ;;  %v3581_v3 = vld [vmem:[%s6362_s0 + $0x4c8] sm:$0xf0] }
 0x1a3   :  { %v2695_v9 = vpack.c.bf16 %v2495_v7, %v2495_v7  ;;  %v2396_v10 = vmax.f32 %v1945_v8, 0.0  ;;  %v3180_v8 = vor.u32 %v3886_v59, %v3179_v56 }
 0x1a4   :  { %v1685_v11 = vpop.f32.mrf.mxu2 }
 0x1a5   :  { %2896 = vst.msk [vmem:[%s6363_s3 + $0x20c] sm:$0xf] %vm2764_vm0, %v2695_v9  ;;  %v2596_v12 = vpack.c.bf16 %v2396_v10, %v2396_v10  ;;  %v1686_v13 = vadd.f32 %v4852_v26, %v1685_v11  ;;  %v2194_v14 = vpop.f32.mrf.mxu3  ;;  %v3580_v9 = vor.u32 %v3986_v61, %v3579_v60  ;;  %v3184_v11 = vor.u32 %v3885_v62, %v3181_v63 }
 0x1a6   :  { %v1437_v15 = vpop.f32.mrf.mxu0 }
 0x1a7   :  { %2797 = vst.msk [vmem:[%s6363_s3 + $0x80] sm:$0xf] %vm2764_vm0, %v2596_v12  ;;  %v2195_v16 = vadd.f32 %v2194_v14, %v1686_v13  ;;  %v1438_v17 = vadd.f32 %v4852_v26, %v1437_v15  ;;  %v1946_v18 = vpop.f32.mrf.mxu1  ;;  %v3584_v12 = vor.u32 %v3985_v2, %v3581_v3 }
 0x1a9   :  { %v2496_v20 = vmax.f32 %v2195_v16, 0.0  ;;  %v1947_v21 = vadd.f32 %v1946_v18, %v1438_v17 }
 0x1ab   :  { %v2696_v28 = vpack.c.bf16 %v2496_v20, %v2496_v20  ;;  %v2397_v48 = vmax.f32 %v1947_v21, 0.0 }
 0x1ac   :  { %v1687_v31 = vpop.f32.mrf.mxu2 }
 0x1ad   :  { %2897 = vst.msk [vmem:[%s6363_s3 + $0x210] sm:$0xf] %vm2764_vm0, %v2696_v28  ;;  %v2597_v32 = vpack.c.bf16 %v2397_v48, %v2397_v48  ;;  %v1688_v33 = vadd.f32 %v4852_v26, %v1687_v31  ;;  %v2196_v34 = vpop.f32.mrf.mxu3  ;;  %v3187_v48 = vld [vmem:[%s6362_s0 + $0x1b0] sm:$0xf]  ;;  %v3888_v31 = vld [vmem:[%s6362_s0 + $0x1b4] sm:$0xf0] }
 0x1ae   :  { %v1440_v37 = vpop.f32.mrf.mxu0 }
 0x1af   :  { %2798 = vst.msk [vmem:[%s6363_s3 + $0x84] sm:$0xf] %vm2764_vm0, %v2597_v32  ;;  %v2197_v40 = vadd.f32 %v2196_v34, %v1688_v33  ;;  %v1441_v41 = vadd.f32 %v4852_v26, %v1440_v37  ;;  %v1949_v42 = vpop.f32.mrf.mxu1  ;;  %v3587_v32 = vld [vmem:[%s6362_s0 + $0x4d0] sm:$0xf]  ;;  %v3988_v33 = vld [vmem:[%s6362_s0 + $0x4d4] sm:$0xf0] }
 0x1b0   :  { %v3887_v34 = vld [vmem:[%s6362_s0 + $0x1b4] sm:$0xf] }
 0x1b1   :  { %v2497_v43 = vmax.f32 %v2197_v40, 0.0  ;;  %v1950_v44 = vadd.f32 %v1949_v42, %v1441_v41  ;;  %1479 = vmatmul.bf16.gmra.mxu0 %v3172_v35  ;;  %1729 = vmatmul.bf16.gmra.mxu2 %v3572_v36  ;;  %v3189_v35 = vld [vmem:[%s6362_s0 + $0x1b8] sm:$0xf0] }
 0x1b2   :  { %1988 = vmatmul.bf16.gmra.mxu1 %v3176_v38  ;;  %2238 = vmatmul.bf16.gmra.mxu3 %v3576_v39  ;;  %v3987_v38 = vld [vmem:[%s6362_s0 + $0x4d4] sm:$0xf]  ;;  %v3589_v39 = vld [vmem:[%s6362_s0 + $0x4d8] sm:$0xf0] }
 0x1b3   :  { %v2697_v45 = vpack.c.bf16 %v2497_v43, %v2497_v43  ;;  %v2398_v46 = vmax.f32 %v1950_v44, 0.0  ;;  %v3188_v44 = vor.u32 %v3888_v31, %v3187_v48 }
 0x1b4   :  { %v1690_v47 = vpop.f32.mrf.mxu2 }
 0x1b5   :  { %2898 = vst.msk [vmem:[%s6363_s3 + $0x214] sm:$0xf] %vm2764_vm0, %v2697_v45  ;;  %v2598_v49 = vpack.c.bf16 %v2398_v46, %v2398_v46  ;;  %v1691_v50 = vadd.f32 %v4852_v26, %v1690_v47  ;;  %v2199_v51 = vpop.f32.mrf.mxu3  ;;  %v3588_v45 = vor.u32 %v3988_v33, %v3587_v32  ;;  %v3192_v47 = vor.u32 %v3887_v34, %v3189_v35 }
 0x1b6   :  { %v1442_v52 = vpop.f32.mrf.mxu0 }
 0x1b7   :  { %2799 = vst.msk [vmem:[%s6363_s3 + $0x88] sm:$0xf] %vm2764_vm0, %v2598_v49  ;;  %v2200_v53 = vadd.f32 %v2199_v51, %v1691_v50  ;;  %v1443_v54 = vadd.f32 %v4852_v26, %v1442_v52  ;;  %v1951_v55 = vpop.f32.mrf.mxu1  ;;  %v3592_v49 = vor.u32 %v3987_v38, %v3589_v39 }
 0x1b9   :  { %v2498_v57 = vmax.f32 %v2200_v53, 0.0  ;;  %v1952_v58 = vadd.f32 %v1951_v55, %v1443_v54 }
 0x1bb   :  { %v2698_v0 = vpack.c.bf16 %v2498_v57, %v2498_v57  ;;  %v2399_v1 = vmax.f32 %v1952_v58, 0.0 }
 0x1bc   :  { %v1692_v4 = vpop.f32.mrf.mxu2 }
 0x1bd   :  { %2899 = vst.msk [vmem:[%s6363_s3 + $0x218] sm:$0xf] %vm2764_vm0, %v2698_v0  ;;  %v2599_v5 = vpack.c.bf16 %v2399_v1, %v2399_v1  ;;  %v1693_v6 = vadd.f32 %v4852_v26, %v1692_v4  ;;  %v2201_v7 = vpop.f32.mrf.mxu3  ;;  %v3195_v1 = vld [vmem:[%s6362_s0 + $0x1c0] sm:$0xf]  ;;  %v3890_v4 = vld [vmem:[%s6362_s0 + $0x1c4] sm:$0xf0] }
 0x1be   :  { %v1445_v10 = vpop.f32.mrf.mxu0 }
 0x1bf   :  { %2800 = vst.msk [vmem:[%s6363_s3 + $0x8c] sm:$0xf] %vm2764_vm0, %v2599_v5  ;;  %v2202_v13 = vadd.f32 %v2201_v7, %v1693_v6  ;;  %v1446_v14 = vadd.f32 %v4852_v26, %v1445_v10  ;;  %v1954_v15 = vpop.f32.mrf.mxu1  ;;  %v3595_v5 = vld [vmem:[%s6362_s0 + $0x4e0] sm:$0xf]  ;;  %v3990_v6 = vld [vmem:[%s6362_s0 + $0x4e4] sm:$0xf0] }
 0x1c0   :  { %v3889_v7 = vld [vmem:[%s6362_s0 + $0x1c4] sm:$0xf] }
 0x1c1   :  { %v2499_v16 = vmax.f32 %v2202_v13, 0.0  ;;  %v1955_v17 = vadd.f32 %v1954_v15, %v1446_v14  ;;  %1484 = vmatmul.bf16.gmra.mxu0 %v3180_v8  ;;  %1734 = vmatmul.bf16.gmra.mxu2 %v3580_v9  ;;  %v3197_v8 = vld [vmem:[%s6362_s0 + $0x1c8] sm:$0xf0] }
 0x1c2   :  { %1993 = vmatmul.bf16.gmra.mxu1 %v3184_v11  ;;  %2243 = vmatmul.bf16.gmra.mxu3 %v3584_v12  ;;  %v3989_v11 = vld [vmem:[%s6362_s0 + $0x4e4] sm:$0xf]  ;;  %v3597_v12 = vld [vmem:[%s6362_s0 + $0x4e8] sm:$0xf0] }
 0x1c3   :  { %v2699_v18 = vpack.c.bf16 %v2499_v16, %v2499_v16  ;;  %v2400_v19 = vmax.f32 %v1955_v17, 0.0  ;;  %v3196_v17 = vor.u32 %v3890_v4, %v3195_v1 }
 0x1c4   :  { %v1695_v20 = vpop.f32.mrf.mxu2 }
 0x1c5   :  { %2900 = vst.msk [vmem:[%s6363_s3 + $0x21c] sm:$0xf] %vm2764_vm0, %v2699_v18  ;;  %v2600_v21 = vpack.c.bf16 %v2400_v19, %v2400_v19  ;;  %v1696_v22 = vadd.f32 %v4852_v26, %v1695_v20  ;;  %v2204_v23 = vpop.f32.mrf.mxu3  ;;  %v3596_v18 = vor.u32 %v3990_v6, %v3595_v5  ;;  %v3200_v20 = vor.u32 %v3889_v7, %v3197_v8 }
 0x1c6   :  { %v1447_v24 = vpop.f32.mrf.mxu0 }
 0x1c7   :  { %2801 = vst.msk [vmem:[%s6363_s3 + $0x90] sm:$0xf] %vm2764_vm0, %v2600_v21  ;;  %v2205_v25 = vadd.f32 %v2204_v23, %v1696_v22  ;;  %v1448_v27 = vadd.f32 %v4852_v26, %v1447_v24  ;;  %v1956_v28 = vpop.f32.mrf.mxu1  ;;  %v3600_v21 = vor.u32 %v3989_v11, %v3597_v12 }
 0x1c9   :  { %v2500_v29 = vmax.f32 %v2205_v25, 0.0  ;;  %v1957_v30 = vadd.f32 %v1956_v28, %v1448_v27 }
 0x1cb   :  { %v2700_v36 = vpack.c.bf16 %v2500_v29, %v2500_v29  ;;  %v2401_v37 = vmax.f32 %v1957_v30, 0.0 }
 0x1cc   :  { %v1697_v40 = vpop.f32.mrf.mxu2 }
 0x1cd   :  { %2901 = vst.msk [vmem:[%s6363_s3 + $0x220] sm:$0xf] %vm2764_vm0, %v2700_v36  ;;  %v2601_v41 = vpack.c.bf16 %v2401_v37, %v2401_v37  ;;  %v1698_v42 = vadd.f32 %v4852_v26, %v1697_v40  ;;  %v2206_v43 = vpop.f32.mrf.mxu3  ;;  %v3203_v37 = vld [vmem:[%s6362_s0 + $0x1d0] sm:$0xf]  ;;  %v3892_v40 = vld [vmem:[%s6362_s0 + $0x1d4] sm:$0xf0] }
 0x1ce   :  { %v1450_v46 = vpop.f32.mrf.mxu0 }
 0x1cf   :  { %2802 = vst.msk [vmem:[%s6363_s3 + $0x94] sm:$0xf] %vm2764_vm0, %v2601_v41  ;;  %v2207_v50 = vadd.f32 %v2206_v43, %v1698_v42  ;;  %v1451_v51 = vadd.f32 %v4852_v26, %v1450_v46  ;;  %v1959_v52 = vpop.f32.mrf.mxu1  ;;  %v3603_v41 = vld [vmem:[%s6362_s0 + $0x4f0] sm:$0xf]  ;;  %v3992_v42 = vld [vmem:[%s6362_s0 + $0x4f4] sm:$0xf0] }
 0x1d0   :  { %v3891_v43 = vld [vmem:[%s6362_s0 + $0x1d4] sm:$0xf] }
 0x1d1   :  { %v2501_v53 = vmax.f32 %v2207_v50, 0.0  ;;  %v1960_v54 = vadd.f32 %v1959_v52, %v1451_v51  ;;  %1489 = vmatmul.bf16.gmra.mxu0 %v3188_v44  ;;  %1739 = vmatmul.bf16.gmra.mxu2 %v3588_v45  ;;  %v3205_v44 = vld [vmem:[%s6362_s0 + $0x1d8] sm:$0xf0] }
 0x1d2   :  { %1998 = vmatmul.bf16.gmra.mxu1 %v3192_v47  ;;  %2248 = vmatmul.bf16.gmra.mxu3 %v3592_v49  ;;  %v3991_v47 = vld [vmem:[%s6362_s0 + $0x4f4] sm:$0xf]  ;;  %v3605_v49 = vld [vmem:[%s6362_s0 + $0x4f8] sm:$0xf0] }
 0x1d3   :  { %v2701_v55 = vpack.c.bf16 %v2501_v53, %v2501_v53  ;;  %v2402_v56 = vmax.f32 %v1960_v54, 0.0  ;;  %v3204_v54 = vor.u32 %v3892_v40, %v3203_v37 }
 0x1d4   :  { %v1700_v57 = vpop.f32.mrf.mxu2 }
 0x1d5   :  { %2902 = vst.msk [vmem:[%s6363_s3 + $0x224] sm:$0xf] %vm2764_vm0, %v2701_v55  ;;  %v2602_v58 = vpack.c.bf16 %v2402_v56, %v2402_v56  ;;  %v1701_v59 = vadd.f32 %v4852_v26, %v1700_v57  ;;  %v2209_v60 = vpop.f32.mrf.mxu3  ;;  %v3604_v55 = vor.u32 %v3992_v42, %v3603_v41  ;;  %v3208_v57 = vor.u32 %v3891_v43, %v3205_v44 }
 0x1d6   :  { %v1452_v61 = vpop.f32.mrf.mxu0 }
 0x1d7   :  { %2803 = vst.msk [vmem:[%s6363_s3 + $0x98] sm:$0xf] %vm2764_vm0, %v2602_v58  ;;  %v2210_v62 = vadd.f32 %v2209_v60, %v1701_v59  ;;  %v1453_v63 = vadd.f32 %v4852_v26, %v1452_v61  ;;  %v1961_v0 = vpop.f32.mrf.mxu1  ;;  %v3608_v58 = vor.u32 %v3991_v47, %v3605_v49 }
 0x1d9   :  { %v2502_v2 = vmax.f32 %v2210_v62, 0.0  ;;  %v1962_v3 = vadd.f32 %v1961_v0, %v1453_v63 }
 0x1db   :  { %v2702_v9 = vpack.c.bf16 %v2502_v2, %v2502_v2  ;;  %v2403_v10 = vmax.f32 %v1962_v3, 0.0 }
 0x1dc   :  { %v1702_v13 = vpop.f32.mrf.mxu2 }
 0x1dd   :  { %2903 = vst.msk [vmem:[%s6363_s3 + $0x228] sm:$0xf] %vm2764_vm0, %v2702_v9  ;;  %v2603_v14 = vpack.c.bf16 %v2403_v10, %v2403_v10  ;;  %v1703_v15 = vadd.f32 %v4852_v26, %v1702_v13  ;;  %v2211_v16 = vpop.f32.mrf.mxu3  ;;  %v3211_v10 = vld [vmem:[%s6362_s0 + $0x1e0] sm:$0xf]  ;;  %v3894_v13 = vld [vmem:[%s6362_s0 + $0x1e4] sm:$0xf0] }
 0x1de   :  { %v1455_v19 = vpop.f32.mrf.mxu0 }
 0x1df   :  { %2804 = vst.msk [vmem:[%s6363_s3 + $0x9c] sm:$0xf] %vm2764_vm0, %v2603_v14  ;;  %v2212_v22 = vadd.f32 %v2211_v16, %v1703_v15  ;;  %v1456_v23 = vadd.f32 %v4852_v26, %v1455_v19  ;;  %v1964_v24 = vpop.f32.mrf.mxu1  ;;  %v3611_v14 = vld [vmem:[%s6362_s0 + $0x500] sm:$0xf]  ;;  %v3994_v15 = vld [vmem:[%s6362_s0 + $0x504] sm:$0xf0] }
 0x1e0   :  { %v3893_v16 = vld [vmem:[%s6362_s0 + $0x1e4] sm:$0xf] }
 0x1e1   :  { %v2503_v25 = vmax.f32 %v2212_v22, 0.0  ;;  %v1965_v27 = vadd.f32 %v1964_v24, %v1456_v23  ;;  %1494 = vmatmul.bf16.gmra.mxu0 %v3196_v17  ;;  %1744 = vmatmul.bf16.gmra.mxu2 %v3596_v18  ;;  %v3213_v17 = vld [vmem:[%s6362_s0 + $0x1e8] sm:$0xf0] }
 0x1e2   :  { %2003 = vmatmul.bf16.gmra.mxu1 %v3200_v20  ;;  %2253 = vmatmul.bf16.gmra.mxu3 %v3600_v21  ;;  %v3993_v20 = vld [vmem:[%s6362_s0 + $0x504] sm:$0xf]  ;;  %v3613_v21 = vld [vmem:[%s6362_s0 + $0x508] sm:$0xf0] }
 0x1e3   :  { %v2703_v28 = vpack.c.bf16 %v2503_v25, %v2503_v25  ;;  %v2404_v48 = vmax.f32 %v1965_v27, 0.0  ;;  %v3212_v27 = vor.u32 %v3894_v13, %v3211_v10 }
 0x1e4   :  { %v1705_v29 = vpop.f32.mrf.mxu2 }
 0x1e5   :  { %2904 = vst.msk [vmem:[%s6363_s3 + $0x22c] sm:$0xf] %vm2764_vm0, %v2703_v28  ;;  %v2604_v30 = vpack.c.bf16 %v2404_v48, %v2404_v48  ;;  %v1706_v31 = vadd.f32 %v4852_v26, %v1705_v29  ;;  %v2214_v32 = vpop.f32.mrf.mxu3  ;;  %v3612_v28 = vor.u32 %v3994_v15, %v3611_v14  ;;  %v3216_v29 = vor.u32 %v3893_v16, %v3213_v17 }
 0x1e6   :  { %v1457_v33 = vpop.f32.mrf.mxu0 }
 0x1e7   :  { %2805 = vst.msk [vmem:[%s6363_s3 + $0xa0] sm:$0xf] %vm2764_vm0, %v2604_v30  ;;  %v2215_v34 = vadd.f32 %v2214_v32, %v1706_v31  ;;  %v1458_v35 = vadd.f32 %v4852_v26, %v1457_v33  ;;  %v1966_v36 = vpop.f32.mrf.mxu1  ;;  %v3616_v30 = vor.u32 %v3993_v20, %v3613_v21 }
 0x1e9   :  { %v2504_v38 = vmax.f32 %v2215_v34, 0.0  ;;  %v1967_v39 = vadd.f32 %v1966_v36, %v1458_v35 }
 0x1eb   :  { %v2704_v45 = vpack.c.bf16 %v2504_v38, %v2504_v38  ;;  %v2405_v46 = vmax.f32 %v1967_v39, 0.0 }
 0x1ec   :  { %v1707_v50 = vpop.f32.mrf.mxu2 }
 0x1ed   :  { %2905 = vst.msk [vmem:[%s6363_s3 + $0x230] sm:$0xf] %vm2764_vm0, %v2704_v45  ;;  %v2605_v51 = vpack.c.bf16 %v2405_v46, %v2405_v46  ;;  %v1708_v52 = vadd.f32 %v4852_v26, %v1707_v50  ;;  %v2216_v53 = vpop.f32.mrf.mxu3  ;;  %v3219_v46 = vld [vmem:[%s6362_s0 + $0x1f0] sm:$0xf]  ;;  %v3896_v50 = vld [vmem:[%s6362_s0 + $0x1f4] sm:$0xf0] }
 0x1ee   :  { %v1460_v56 = vpop.f32.mrf.mxu0 }
 0x1ef   :  { %2806 = vst.msk [vmem:[%s6363_s3 + $0xa4] sm:$0xf] %vm2764_vm0, %v2605_v51  ;;  %v2217_v59 = vadd.f32 %v2216_v53, %v1708_v52  ;;  %v1461_v60 = vadd.f32 %v4852_v26, %v1460_v56  ;;  %v1969_v61 = vpop.f32.mrf.mxu1  ;;  %v3619_v51 = vld [vmem:[%s6362_s0 + $0x510] sm:$0xf]  ;;  %v3996_v52 = vld [vmem:[%s6362_s0 + $0x514] sm:$0xf0] }
 0x1f0   :  { %v3895_v53 = vld [vmem:[%s6362_s0 + $0x1f4] sm:$0xf] }
 0x1f1   :  { %v2505_v62 = vmax.f32 %v2217_v59, 0.0  ;;  %v1970_v63 = vadd.f32 %v1969_v61, %v1461_v60  ;;  %1499 = vmatmul.bf16.gmra.mxu0 %v3204_v54  ;;  %1749 = vmatmul.bf16.gmra.mxu2 %v3604_v55  ;;  %v3221_v54 = vld [vmem:[%s6362_s0 + $0x1f8] sm:$0xf0] }
 0x1f2   :  { %2008 = vmatmul.bf16.gmra.mxu1 %v3208_v57  ;;  %2258 = vmatmul.bf16.gmra.mxu3 %v3608_v58  ;;  %v3995_v57 = vld [vmem:[%s6362_s0 + $0x514] sm:$0xf]  ;;  %v3621_v58 = vld [vmem:[%s6362_s0 + $0x518] sm:$0xf0] }
 0x1f3   :  { %v2705_v0 = vpack.c.bf16 %v2505_v62, %v2505_v62  ;;  %v2406_v1 = vmax.f32 %v1970_v63, 0.0  ;;  %v3220_v63 = vor.u32 %v3896_v50, %v3219_v46 }
 0x1f4   :  { %v1710_v2 = vpop.f32.mrf.mxu2 }
 0x1f5   :  { %2906 = vst.msk [vmem:[%s6363_s3 + $0x234] sm:$0xf] %vm2764_vm0, %v2705_v0  ;;  %v2606_v3 = vpack.c.bf16 %v2406_v1, %v2406_v1  ;;  %v1711_v4 = vadd.f32 %v4852_v26, %v1710_v2  ;;  %v2219_v5 = vpop.f32.mrf.mxu3  ;;  %v3620_v0 = vor.u32 %v3996_v52, %v3619_v51  ;;  %v3224_v2 = vor.u32 %v3895_v53, %v3221_v54 }
 0x1f6   :  { %v1462_v6 = vpop.f32.mrf.mxu0 }
 0x1f7   :  { %2807 = vst.msk [vmem:[%s6363_s3 + $0xa8] sm:$0xf] %vm2764_vm0, %v2606_v3  ;;  %v2220_v7 = vadd.f32 %v2219_v5, %v1711_v4  ;;  %v1463_v8 = vadd.f32 %v4852_v26, %v1462_v6  ;;  %v1971_v9 = vpop.f32.mrf.mxu1  ;;  %v3624_v3 = vor.u32 %v3995_v57, %v3621_v58 }
 0x1f9   :  { %v2506_v11 = vmax.f32 %v2220_v7, 0.0  ;;  %v1972_v12 = vadd.f32 %v1971_v9, %v1463_v8 }
 0x1fb   :  { %v2706_v18 = vpack.c.bf16 %v2506_v11, %v2506_v11  ;;  %v2407_v19 = vmax.f32 %v1972_v12, 0.0 }
 0x1fc   :  { %v1712_v22 = vpop.f32.mrf.mxu2 }
 0x1fd   :  { %2907 = vst.msk [vmem:[%s6363_s3 + $0x238] sm:$0xf] %vm2764_vm0, %v2706_v18  ;;  %v2607_v23 = vpack.c.bf16 %v2407_v19, %v2407_v19  ;;  %v1713_v24 = vadd.f32 %v4852_v26, %v1712_v22  ;;  %v2221_v25 = vpop.f32.mrf.mxu3  ;;  %v3227_v19 = vld [vmem:[%s6362_s0 + $0x200] sm:$0xf]  ;;  %v3898_v22 = vld [vmem:[%s6362_s0 + $0x204] sm:$0xf0] }
 0x1fe   :  { %v1465_v48 = vpop.f32.mrf.mxu0 }
 0x1ff   :  { %2808 = vst.msk [vmem:[%s6363_s3 + $0xac] sm:$0xf] %vm2764_vm0, %v2607_v23  ;;  %v2222_v31 = vadd.f32 %v2221_v25, %v1713_v24  ;;  %v1466_v32 = vadd.f32 %v4852_v26, %v1465_v48  ;;  %v1974_v33 = vpop.f32.mrf.mxu1  ;;  %v3627_v23 = vld [vmem:[%s6362_s0 + $0x520] sm:$0xf]  ;;  %v3998_v24 = vld [vmem:[%s6362_s0 + $0x524] sm:$0xf0] }
 0x200   :  { %v3897_v25 = vld [vmem:[%s6362_s0 + $0x204] sm:$0xf] }
 0x201   :  { %v2507_v34 = vmax.f32 %v2222_v31, 0.0  ;;  %v1975_v35 = vadd.f32 %v1974_v33, %v1466_v32  ;;  %1504 = vmatmul.bf16.gmra.mxu0 %v3212_v27  ;;  %1754 = vmatmul.bf16.gmra.mxu2 %v3612_v28  ;;  %v3229_v27 = vld [vmem:[%s6362_s0 + $0x208] sm:$0xf0] }
 0x202   :  { %2013 = vmatmul.bf16.gmra.mxu1 %v3216_v29  ;;  %2263 = vmatmul.bf16.gmra.mxu3 %v3616_v30  ;;  %v3997_v29 = vld [vmem:[%s6362_s0 + $0x524] sm:$0xf]  ;;  %v3629_v30 = vld [vmem:[%s6362_s0 + $0x528] sm:$0xf0] }
 0x203   :  { %v2707_v36 = vpack.c.bf16 %v2507_v34, %v2507_v34  ;;  %v2408_v37 = vmax.f32 %v1975_v35, 0.0  ;;  %v3228_v35 = vor.u32 %v3898_v22, %v3227_v19 }
 0x204   :  { %v1715_v38 = vpop.f32.mrf.mxu2 }
 0x205   :  { %2908 = vst.msk [vmem:[%s6363_s3 + $0x23c] sm:$0xf] %vm2764_vm0, %v2707_v36  ;;  %v2608_v39 = vpack.c.bf16 %v2408_v37, %v2408_v37  ;;  %v1716_v40 = vadd.f32 %v4852_v26, %v1715_v38  ;;  %v2224_v41 = vpop.f32.mrf.mxu3  ;;  %v3628_v36 = vor.u32 %v3998_v24, %v3627_v23  ;;  %v3232_v38 = vor.u32 %v3897_v25, %v3229_v27 }
 0x206   :  { %v1467_v42 = vpop.f32.mrf.mxu0 }
 0x207   :  { %2809 = vst.msk [vmem:[%s6363_s3 + $0xb0] sm:$0xf] %vm2764_vm0, %v2608_v39  ;;  %v2225_v43 = vadd.f32 %v2224_v41, %v1716_v40  ;;  %v1468_v44 = vadd.f32 %v4852_v26, %v1467_v42  ;;  %v1976_v45 = vpop.f32.mrf.mxu1  ;;  %v3632_v39 = vor.u32 %v3997_v29, %v3629_v30 }
 0x209   :  { %v2508_v47 = vmax.f32 %v2225_v43, 0.0  ;;  %v1977_v49 = vadd.f32 %v1976_v45, %v1468_v44 }
 0x20b   :  { %v2708_v55 = vpack.c.bf16 %v2508_v47, %v2508_v47  ;;  %v2409_v56 = vmax.f32 %v1977_v49, 0.0 }
 0x20c   :  { %v1717_v59 = vpop.f32.mrf.mxu2 }
 0x20d   :  { %2909 = vst.msk [vmem:[%s6363_s3 + $0x240] sm:$0xf] %vm2764_vm0, %v2708_v55  ;;  %v2609_v60 = vpack.c.bf16 %v2409_v56, %v2409_v56  ;;  %v1718_v61 = vadd.f32 %v4852_v26, %v1717_v59  ;;  %v2226_v62 = vpop.f32.mrf.mxu3  ;;  %v3235_v56 = vld [vmem:[%s6362_s0 + $0x210] sm:$0xf]  ;;  %v3900_v59 = vld [vmem:[%s6362_s0 + $0x214] sm:$0xf0] }
 0x20e   :  { %v1470_v1 = vpop.f32.mrf.mxu0 }
 0x20f   :  { %2810 = vst.msk [vmem:[%s6363_s3 + $0xb4] sm:$0xf] %vm2764_vm0, %v2609_v60  ;;  %v2227_v4 = vadd.f32 %v2226_v62, %v1718_v61  ;;  %v1471_v5 = vadd.f32 %v4852_v26, %v1470_v1  ;;  %v1979_v6 = vpop.f32.mrf.mxu1  ;;  %v5380_v26 = vld [vmem:[%s6361_s2] ss:$0 sm:$0xff]  ;;  %v3635_v60 = vld [vmem:[%s6362_s0 + $0x530] sm:$0xf] }
 0x210   :  { %v4000_v61 = vld [vmem:[%s6362_s0 + $0x534] sm:$0xf0]  ;;  %v3899_v62 = vld [vmem:[%s6362_s0 + $0x214] sm:$0xf] }
 0x211   :  { %v2509_v7 = vmax.f32 %v2227_v4, 0.0  ;;  %v1980_v8 = vadd.f32 %v1979_v6, %v1471_v5  ;;  %1509 = vmatmul.bf16.gmra.mxu0 %v3220_v63  ;;  %1759 = vmatmul.bf16.gmra.mxu2 %v3620_v0  ;;  %v3237_v63 = vld [vmem:[%s6362_s0 + $0x218] sm:$0xf0] }
 0x212   :  { %2018 = vmatmul.bf16.gmra.mxu1 %v3224_v2  ;;  %2268 = vmatmul.bf16.gmra.mxu3 %v3624_v3  ;;  %v3999_v2 = vld [vmem:[%s6362_s0 + $0x534] sm:$0xf]  ;;  %v3637_v3 = vld [vmem:[%s6362_s0 + $0x538] sm:$0xf0] }
 0x213   :  { %v2709_v9 = vpack.c.bf16 %v2509_v7, %v2509_v7  ;;  %v2410_v10 = vmax.f32 %v1980_v8, 0.0  ;;  %v3236_v8 = vor.u32 %v3900_v59, %v3235_v56 }
 0x214   :  { %v1720_v11 = vpop.f32.mrf.mxu2 }
 0x215   :  { %2910 = vst.msk [vmem:[%s6363_s3 + $0x244] sm:$0xf] %vm2764_vm0, %v2709_v9  ;;  %v2610_v12 = vpack.c.bf16 %v2410_v10, %v2410_v10  ;;  %v1721_v13 = vadd.f32 %v5380_v26, %v1720_v11  ;;  %v2229_v14 = vpop.f32.mrf.mxu3  ;;  %v3636_v9 = vor.u32 %v4000_v61, %v3635_v60  ;;  %v3240_v11 = vor.u32 %v3899_v62, %v3237_v63 }
 0x216   :  { %v1472_v15 = vpop.f32.mrf.mxu0 }
 0x217   :  { %2811 = vst.msk [vmem:[%s6363_s3 + $0xb8] sm:$0xf] %vm2764_vm0, %v2610_v12  ;;  %v2230_v16 = vadd.f32 %v2229_v14, %v1721_v13  ;;  %v1473_v17 = vadd.f32 %v5380_v26, %v1472_v15  ;;  %v1981_v18 = vpop.f32.mrf.mxu1  ;;  %v3640_v12 = vor.u32 %v3999_v2, %v3637_v3 }
 0x219   :  { %v2510_v20 = vmax.f32 %v2230_v16, 0.0  ;;  %v1982_v21 = vadd.f32 %v1981_v18, %v1473_v17 }
 0x21b   :  { %v2710_v28 = vpack.c.bf16 %v2510_v20, %v2510_v20  ;;  %v2411_v48 = vmax.f32 %v1982_v21, 0.0 }
 0x21c   :  { %v1722_v31 = vpop.f32.mrf.mxu2 }
 0x21d   :  { %2911 = vst.msk [vmem:[%s6363_s3 + $0x248] sm:$0xf] %vm2764_vm0, %v2710_v28  ;;  %v2611_v32 = vpack.c.bf16 %v2411_v48, %v2411_v48  ;;  %v1723_v33 = vadd.f32 %v5380_v26, %v1722_v31  ;;  %v2231_v34 = vpop.f32.mrf.mxu3  ;;  %v3243_v48 = vld [vmem:[%s6362_s0 + $0x220] sm:$0xf]  ;;  %v3902_v31 = vld [vmem:[%s6362_s0 + $0x224] sm:$0xf0] }
 0x21e   :  { %v1475_v37 = vpop.f32.mrf.mxu0 }
 0x21f   :  { %2812 = vst.msk [vmem:[%s6363_s3 + $0xbc] sm:$0xf] %vm2764_vm0, %v2611_v32  ;;  %v2232_v40 = vadd.f32 %v2231_v34, %v1723_v33  ;;  %v1476_v41 = vadd.f32 %v5380_v26, %v1475_v37  ;;  %v1984_v42 = vpop.f32.mrf.mxu1  ;;  %v3643_v32 = vld [vmem:[%s6362_s0 + $0x540] sm:$0xf]  ;;  %v4002_v33 = vld [vmem:[%s6362_s0 + $0x544] sm:$0xf0] }
 0x220   :  { %v3901_v34 = vld [vmem:[%s6362_s0 + $0x224] sm:$0xf] }
 0x221   :  { %v2511_v43 = vmax.f32 %v2232_v40, 0.0  ;;  %v1985_v44 = vadd.f32 %v1984_v42, %v1476_v41  ;;  %1514 = vmatmul.bf16.gmra.mxu0 %v3228_v35  ;;  %1764 = vmatmul.bf16.gmra.mxu2 %v3628_v36  ;;  %v3245_v35 = vld [vmem:[%s6362_s0 + $0x228] sm:$0xf0] }
 0x222   :  { %2023 = vmatmul.bf16.gmra.mxu1 %v3232_v38  ;;  %2273 = vmatmul.bf16.gmra.mxu3 %v3632_v39  ;;  %v4001_v38 = vld [vmem:[%s6362_s0 + $0x544] sm:$0xf]  ;;  %v3645_v39 = vld [vmem:[%s6362_s0 + $0x548] sm:$0xf0] }
 0x223   :  { %v2711_v45 = vpack.c.bf16 %v2511_v43, %v2511_v43  ;;  %v2412_v46 = vmax.f32 %v1985_v44, 0.0  ;;  %v3244_v44 = vor.u32 %v3902_v31, %v3243_v48 }
 0x224   :  { %v1725_v47 = vpop.f32.mrf.mxu2 }
 0x225   :  { %2912 = vst.msk [vmem:[%s6363_s3 + $0x24c] sm:$0xf] %vm2764_vm0, %v2711_v45  ;;  %v2612_v49 = vpack.c.bf16 %v2412_v46, %v2412_v46  ;;  %v1726_v50 = vadd.f32 %v5380_v26, %v1725_v47  ;;  %v2234_v51 = vpop.f32.mrf.mxu3  ;;  %v3644_v45 = vor.u32 %v4002_v33, %v3643_v32  ;;  %v3248_v47 = vor.u32 %v3901_v34, %v3245_v35 }
 0x226   :  { %v1477_v52 = vpop.f32.mrf.mxu0 }
 0x227   :  { %2813 = vst.msk [vmem:[%s6363_s3 + $0xc0] sm:$0xf] %vm2764_vm0, %v2612_v49  ;;  %v2235_v53 = vadd.f32 %v2234_v51, %v1726_v50  ;;  %v1478_v54 = vadd.f32 %v5380_v26, %v1477_v52  ;;  %v1986_v55 = vpop.f32.mrf.mxu1  ;;  %v3648_v49 = vor.u32 %v4001_v38, %v3645_v39 }
 0x229   :  { %v2512_v57 = vmax.f32 %v2235_v53, 0.0  ;;  %v1987_v58 = vadd.f32 %v1986_v55, %v1478_v54 }
 0x22b   :  { %v2712_v0 = vpack.c.bf16 %v2512_v57, %v2512_v57  ;;  %v2413_v1 = vmax.f32 %v1987_v58, 0.0 }
 0x22c   :  { %v1727_v4 = vpop.f32.mrf.mxu2 }
 0x22d   :  { %2913 = vst.msk [vmem:[%s6363_s3 + $0x250] sm:$0xf] %vm2764_vm0, %v2712_v0  ;;  %v2613_v5 = vpack.c.bf16 %v2413_v1, %v2413_v1  ;;  %v1728_v6 = vadd.f32 %v5380_v26, %v1727_v4  ;;  %v2236_v7 = vpop.f32.mrf.mxu3  ;;  %v3251_v1 = vld [vmem:[%s6362_s0 + $0x230] sm:$0xf]  ;;  %v3904_v4 = vld [vmem:[%s6362_s0 + $0x234] sm:$0xf0] }
 0x22e   :  { %v1480_v10 = vpop.f32.mrf.mxu0 }
 0x22f   :  { %2814 = vst.msk [vmem:[%s6363_s3 + $0xc4] sm:$0xf] %vm2764_vm0, %v2613_v5  ;;  %v2237_v13 = vadd.f32 %v2236_v7, %v1728_v6  ;;  %v1481_v14 = vadd.f32 %v5380_v26, %v1480_v10  ;;  %v1989_v15 = vpop.f32.mrf.mxu1  ;;  %v3651_v5 = vld [vmem:[%s6362_s0 + $0x550] sm:$0xf]  ;;  %v4004_v6 = vld [vmem:[%s6362_s0 + $0x554] sm:$0xf0] }
 0x230   :  { %v3903_v7 = vld [vmem:[%s6362_s0 + $0x234] sm:$0xf] }
 0x231   :  { %v2513_v16 = vmax.f32 %v2237_v13, 0.0  ;;  %v1990_v17 = vadd.f32 %v1989_v15, %v1481_v14  ;;  %1519 = vmatmul.bf16.gmra.mxu0 %v3236_v8  ;;  %1769 = vmatmul.bf16.gmra.mxu2 %v3636_v9  ;;  %v3253_v8 = vld [vmem:[%s6362_s0 + $0x238] sm:$0xf0] }
 0x232   :  { %2028 = vmatmul.bf16.gmra.mxu1 %v3240_v11  ;;  %2278 = vmatmul.bf16.gmra.mxu3 %v3640_v12  ;;  %v4003_v11 = vld [vmem:[%s6362_s0 + $0x554] sm:$0xf]  ;;  %v3653_v12 = vld [vmem:[%s6362_s0 + $0x558] sm:$0xf0] }
 0x233   :  { %v2713_v18 = vpack.c.bf16 %v2513_v16, %v2513_v16  ;;  %v2414_v19 = vmax.f32 %v1990_v17, 0.0  ;;  %v3252_v17 = vor.u32 %v3904_v4, %v3251_v1 }
 0x234   :  { %v1730_v20 = vpop.f32.mrf.mxu2 }
 0x235   :  { %2914 = vst.msk [vmem:[%s6363_s3 + $0x254] sm:$0xf] %vm2764_vm0, %v2713_v18  ;;  %v2614_v21 = vpack.c.bf16 %v2414_v19, %v2414_v19  ;;  %v1731_v22 = vadd.f32 %v5380_v26, %v1730_v20  ;;  %v2239_v23 = vpop.f32.mrf.mxu3  ;;  %v3652_v18 = vor.u32 %v4004_v6, %v3651_v5  ;;  %v3256_v20 = vor.u32 %v3903_v7, %v3253_v8 }
 0x236   :  { %v1482_v24 = vpop.f32.mrf.mxu0 }
 0x237   :  { %2815 = vst.msk [vmem:[%s6363_s3 + $0xc8] sm:$0xf] %vm2764_vm0, %v2614_v21  ;;  %v2240_v25 = vadd.f32 %v2239_v23, %v1731_v22  ;;  %v1483_v27 = vadd.f32 %v5380_v26, %v1482_v24  ;;  %v1991_v28 = vpop.f32.mrf.mxu1  ;;  %v3656_v21 = vor.u32 %v4003_v11, %v3653_v12 }
 0x239   :  { %v2514_v29 = vmax.f32 %v2240_v25, 0.0  ;;  %v1992_v30 = vadd.f32 %v1991_v28, %v1483_v27 }
 0x23b   :  { %v2714_v36 = vpack.c.bf16 %v2514_v29, %v2514_v29  ;;  %v2415_v37 = vmax.f32 %v1992_v30, 0.0 }
 0x23c   :  { %v1732_v40 = vpop.f32.mrf.mxu2 }
 0x23d   :  { %2915 = vst.msk [vmem:[%s6363_s3 + $0x258] sm:$0xf] %vm2764_vm0, %v2714_v36  ;;  %v2615_v41 = vpack.c.bf16 %v2415_v37, %v2415_v37  ;;  %v1733_v42 = vadd.f32 %v5380_v26, %v1732_v40  ;;  %v2241_v43 = vpop.f32.mrf.mxu3  ;;  %v3259_v37 = vld [vmem:[%s6362_s0 + $0x240] sm:$0xf]  ;;  %v3906_v40 = vld [vmem:[%s6362_s0 + $0x244] sm:$0xf0] }
 0x23e   :  { %v1485_v46 = vpop.f32.mrf.mxu0 }
 0x23f   :  { %2816 = vst.msk [vmem:[%s6363_s3 + $0xcc] sm:$0xf] %vm2764_vm0, %v2615_v41  ;;  %v2242_v50 = vadd.f32 %v2241_v43, %v1733_v42  ;;  %v1486_v51 = vadd.f32 %v5380_v26, %v1485_v46  ;;  %v1994_v52 = vpop.f32.mrf.mxu1  ;;  %v3659_v41 = vld [vmem:[%s6362_s0 + $0x560] sm:$0xf]  ;;  %v4006_v42 = vld [vmem:[%s6362_s0 + $0x564] sm:$0xf0] }
 0x240   :  { %v3905_v43 = vld [vmem:[%s6362_s0 + $0x244] sm:$0xf] }
 0x241   :  { %v2515_v53 = vmax.f32 %v2242_v50, 0.0  ;;  %v1995_v54 = vadd.f32 %v1994_v52, %v1486_v51  ;;  %1524 = vmatmul.bf16.gmra.mxu0 %v3244_v44  ;;  %1774 = vmatmul.bf16.gmra.mxu2 %v3644_v45  ;;  %v3261_v44 = vld [vmem:[%s6362_s0 + $0x248] sm:$0xf0] }
 0x242   :  { %2033 = vmatmul.bf16.gmra.mxu1 %v3248_v47  ;;  %2283 = vmatmul.bf16.gmra.mxu3 %v3648_v49  ;;  %v4005_v47 = vld [vmem:[%s6362_s0 + $0x564] sm:$0xf]  ;;  %v3661_v49 = vld [vmem:[%s6362_s0 + $0x568] sm:$0xf0] }
 0x243   :  { %v2715_v55 = vpack.c.bf16 %v2515_v53, %v2515_v53  ;;  %v2416_v56 = vmax.f32 %v1995_v54, 0.0  ;;  %v3260_v54 = vor.u32 %v3906_v40, %v3259_v37 }
 0x244   :  { %v1735_v57 = vpop.f32.mrf.mxu2 }
 0x245   :  { %2916 = vst.msk [vmem:[%s6363_s3 + $0x25c] sm:$0xf] %vm2764_vm0, %v2715_v55  ;;  %v2616_v58 = vpack.c.bf16 %v2416_v56, %v2416_v56  ;;  %v1736_v59 = vadd.f32 %v5380_v26, %v1735_v57  ;;  %v2244_v60 = vpop.f32.mrf.mxu3  ;;  %v3660_v55 = vor.u32 %v4006_v42, %v3659_v41  ;;  %v3264_v57 = vor.u32 %v3905_v43, %v3261_v44 }
 0x246   :  { %v1487_v61 = vpop.f32.mrf.mxu0 }
 0x247   :  { %2817 = vst.msk [vmem:[%s6363_s3 + $0xd0] sm:$0xf] %vm2764_vm0, %v2616_v58  ;;  %v2245_v62 = vadd.f32 %v2244_v60, %v1736_v59  ;;  %v1488_v63 = vadd.f32 %v5380_v26, %v1487_v61  ;;  %v1996_v0 = vpop.f32.mrf.mxu1  ;;  %v3664_v58 = vor.u32 %v4005_v47, %v3661_v49 }
 0x249   :  { %v2516_v2 = vmax.f32 %v2245_v62, 0.0  ;;  %v1997_v3 = vadd.f32 %v1996_v0, %v1488_v63 }
 0x24b   :  { %v2716_v9 = vpack.c.bf16 %v2516_v2, %v2516_v2  ;;  %v2417_v10 = vmax.f32 %v1997_v3, 0.0 }
 0x24c   :  { %v1737_v13 = vpop.f32.mrf.mxu2 }
 0x24d   :  { %2917 = vst.msk [vmem:[%s6363_s3 + $0x260] sm:$0xf] %vm2764_vm0, %v2716_v9  ;;  %v2617_v14 = vpack.c.bf16 %v2417_v10, %v2417_v10  ;;  %v1738_v15 = vadd.f32 %v5380_v26, %v1737_v13  ;;  %v2246_v16 = vpop.f32.mrf.mxu3  ;;  %v3267_v10 = vld [vmem:[%s6362_s0 + $0x250] sm:$0xf]  ;;  %v3908_v13 = vld [vmem:[%s6362_s0 + $0x254] sm:$0xf0] }
 0x24e   :  { %v1490_v19 = vpop.f32.mrf.mxu0 }
 0x24f   :  { %2818 = vst.msk [vmem:[%s6363_s3 + $0xd4] sm:$0xf] %vm2764_vm0, %v2617_v14  ;;  %v2247_v22 = vadd.f32 %v2246_v16, %v1738_v15  ;;  %v1491_v23 = vadd.f32 %v5380_v26, %v1490_v19  ;;  %v1999_v24 = vpop.f32.mrf.mxu1  ;;  %v3667_v14 = vld [vmem:[%s6362_s0 + $0x570] sm:$0xf]  ;;  %v4008_v15 = vld [vmem:[%s6362_s0 + $0x574] sm:$0xf0] }
 0x250   :  { %v3907_v16 = vld [vmem:[%s6362_s0 + $0x254] sm:$0xf] }
 0x251   :  { %v2517_v25 = vmax.f32 %v2247_v22, 0.0  ;;  %v2000_v27 = vadd.f32 %v1999_v24, %v1491_v23  ;;  %1529 = vmatmul.bf16.gmra.mxu0 %v3252_v17  ;;  %1779 = vmatmul.bf16.gmra.mxu2 %v3652_v18  ;;  %v3269_v17 = vld [vmem:[%s6362_s0 + $0x258] sm:$0xf0] }
 0x252   :  { %2038 = vmatmul.bf16.gmra.mxu1 %v3256_v20  ;;  %2288 = vmatmul.bf16.gmra.mxu3 %v3656_v21  ;;  %v4007_v20 = vld [vmem:[%s6362_s0 + $0x574] sm:$0xf]  ;;  %v3669_v21 = vld [vmem:[%s6362_s0 + $0x578] sm:$0xf0] }
 0x253   :  { %v2717_v28 = vpack.c.bf16 %v2517_v25, %v2517_v25  ;;  %v2418_v48 = vmax.f32 %v2000_v27, 0.0  ;;  %v3268_v27 = vor.u32 %v3908_v13, %v3267_v10 }
 0x254   :  { %v1740_v29 = vpop.f32.mrf.mxu2 }
 0x255   :  { %2918 = vst.msk [vmem:[%s6363_s3 + $0x264] sm:$0xf] %vm2764_vm0, %v2717_v28  ;;  %v2618_v30 = vpack.c.bf16 %v2418_v48, %v2418_v48  ;;  %v1741_v31 = vadd.f32 %v5380_v26, %v1740_v29  ;;  %v2249_v32 = vpop.f32.mrf.mxu3  ;;  %v3668_v28 = vor.u32 %v4008_v15, %v3667_v14  ;;  %v3272_v29 = vor.u32 %v3907_v16, %v3269_v17 }
 0x256   :  { %v1492_v33 = vpop.f32.mrf.mxu0 }
 0x257   :  { %2819 = vst.msk [vmem:[%s6363_s3 + $0xd8] sm:$0xf] %vm2764_vm0, %v2618_v30  ;;  %v2250_v34 = vadd.f32 %v2249_v32, %v1741_v31  ;;  %v1493_v35 = vadd.f32 %v5380_v26, %v1492_v33  ;;  %v2001_v36 = vpop.f32.mrf.mxu1  ;;  %v3672_v30 = vor.u32 %v4007_v20, %v3669_v21 }
 0x259   :  { %v2518_v38 = vmax.f32 %v2250_v34, 0.0  ;;  %v2002_v39 = vadd.f32 %v2001_v36, %v1493_v35 }
 0x25b   :  { %v2718_v45 = vpack.c.bf16 %v2518_v38, %v2518_v38  ;;  %v2419_v46 = vmax.f32 %v2002_v39, 0.0 }
 0x25c   :  { %v1742_v50 = vpop.f32.mrf.mxu2 }
 0x25d   :  { %2919 = vst.msk [vmem:[%s6363_s3 + $0x268] sm:$0xf] %vm2764_vm0, %v2718_v45  ;;  %v2619_v51 = vpack.c.bf16 %v2419_v46, %v2419_v46  ;;  %v1743_v52 = vadd.f32 %v5380_v26, %v1742_v50  ;;  %v2251_v53 = vpop.f32.mrf.mxu3  ;;  %v3275_v46 = vld [vmem:[%s6362_s0 + $0x260] sm:$0xf]  ;;  %v3910_v50 = vld [vmem:[%s6362_s0 + $0x264] sm:$0xf0] }
 0x25e   :  { %v1495_v56 = vpop.f32.mrf.mxu0 }
 0x25f   :  { %2820 = vst.msk [vmem:[%s6363_s3 + $0xdc] sm:$0xf] %vm2764_vm0, %v2619_v51  ;;  %v2252_v59 = vadd.f32 %v2251_v53, %v1743_v52  ;;  %v1496_v60 = vadd.f32 %v5380_v26, %v1495_v56  ;;  %v2004_v61 = vpop.f32.mrf.mxu1  ;;  %v3675_v51 = vld [vmem:[%s6362_s0 + $0x580] sm:$0xf]  ;;  %v4010_v52 = vld [vmem:[%s6362_s0 + $0x584] sm:$0xf0] }
 0x260   :  { %v3909_v53 = vld [vmem:[%s6362_s0 + $0x264] sm:$0xf] }
 0x261   :  { %v2519_v62 = vmax.f32 %v2252_v59, 0.0  ;;  %v2005_v63 = vadd.f32 %v2004_v61, %v1496_v60  ;;  %1534 = vmatmul.bf16.gmra.mxu0 %v3260_v54  ;;  %1784 = vmatmul.bf16.gmra.mxu2 %v3660_v55  ;;  %v3277_v54 = vld [vmem:[%s6362_s0 + $0x268] sm:$0xf0] }
 0x262   :  { %2043 = vmatmul.bf16.gmra.mxu1 %v3264_v57  ;;  %2293 = vmatmul.bf16.gmra.mxu3 %v3664_v58  ;;  %v4009_v57 = vld [vmem:[%s6362_s0 + $0x584] sm:$0xf]  ;;  %v3677_v58 = vld [vmem:[%s6362_s0 + $0x588] sm:$0xf0] }
 0x263   :  { %v2719_v0 = vpack.c.bf16 %v2519_v62, %v2519_v62  ;;  %v2420_v1 = vmax.f32 %v2005_v63, 0.0  ;;  %v3276_v63 = vor.u32 %v3910_v50, %v3275_v46 }
 0x264   :  { %v1745_v2 = vpop.f32.mrf.mxu2 }
 0x265   :  { %2920 = vst.msk [vmem:[%s6363_s3 + $0x26c] sm:$0xf] %vm2764_vm0, %v2719_v0  ;;  %v2620_v3 = vpack.c.bf16 %v2420_v1, %v2420_v1  ;;  %v1746_v4 = vadd.f32 %v5380_v26, %v1745_v2  ;;  %v2254_v5 = vpop.f32.mrf.mxu3  ;;  %v3676_v0 = vor.u32 %v4010_v52, %v3675_v51  ;;  %v3280_v2 = vor.u32 %v3909_v53, %v3277_v54 }
 0x266   :  { %v1497_v6 = vpop.f32.mrf.mxu0 }
 0x267   :  { %2821 = vst.msk [vmem:[%s6363_s3 + $0xe0] sm:$0xf] %vm2764_vm0, %v2620_v3  ;;  %v2255_v7 = vadd.f32 %v2254_v5, %v1746_v4  ;;  %v1498_v8 = vadd.f32 %v5380_v26, %v1497_v6  ;;  %v2006_v9 = vpop.f32.mrf.mxu1  ;;  %v3680_v3 = vor.u32 %v4009_v57, %v3677_v58 }
 0x269   :  { %v2520_v11 = vmax.f32 %v2255_v7, 0.0  ;;  %v2007_v12 = vadd.f32 %v2006_v9, %v1498_v8 }
 0x26b   :  { %v2720_v18 = vpack.c.bf16 %v2520_v11, %v2520_v11  ;;  %v2421_v19 = vmax.f32 %v2007_v12, 0.0 }
 0x26c   :  { %v1747_v22 = vpop.f32.mrf.mxu2 }
 0x26d   :  { %2921 = vst.msk [vmem:[%s6363_s3 + $0x270] sm:$0xf] %vm2764_vm0, %v2720_v18  ;;  %v2621_v23 = vpack.c.bf16 %v2421_v19, %v2421_v19  ;;  %v1748_v24 = vadd.f32 %v5380_v26, %v1747_v22  ;;  %v2256_v25 = vpop.f32.mrf.mxu3  ;;  %v3283_v19 = vld [vmem:[%s6362_s0 + $0x270] sm:$0xf]  ;;  %v3912_v22 = vld [vmem:[%s6362_s0 + $0x274] sm:$0xf0] }
 0x26e   :  { %v1500_v48 = vpop.f32.mrf.mxu0 }
 0x26f   :  { %2822 = vst.msk [vmem:[%s6363_s3 + $0xe4] sm:$0xf] %vm2764_vm0, %v2621_v23  ;;  %v2257_v31 = vadd.f32 %v2256_v25, %v1748_v24  ;;  %v1501_v32 = vadd.f32 %v5380_v26, %v1500_v48  ;;  %v2009_v33 = vpop.f32.mrf.mxu1  ;;  %v3683_v23 = vld [vmem:[%s6362_s0 + $0x590] sm:$0xf]  ;;  %v4012_v24 = vld [vmem:[%s6362_s0 + $0x594] sm:$0xf0] }
 0x270   :  { %v3911_v25 = vld [vmem:[%s6362_s0 + $0x274] sm:$0xf] }
 0x271   :  { %v2521_v34 = vmax.f32 %v2257_v31, 0.0  ;;  %v2010_v35 = vadd.f32 %v2009_v33, %v1501_v32  ;;  %1539 = vmatmul.bf16.gmra.mxu0 %v3268_v27  ;;  %1789 = vmatmul.bf16.gmra.mxu2 %v3668_v28  ;;  %v3285_v27 = vld [vmem:[%s6362_s0 + $0x278] sm:$0xf0] }
 0x272   :  { %2048 = vmatmul.bf16.gmra.mxu1 %v3272_v29  ;;  %2298 = vmatmul.bf16.gmra.mxu3 %v3672_v30  ;;  %v4011_v29 = vld [vmem:[%s6362_s0 + $0x594] sm:$0xf]  ;;  %v3685_v30 = vld [vmem:[%s6362_s0 + $0x598] sm:$0xf0] }
 0x273   :  { %v2721_v36 = vpack.c.bf16 %v2521_v34, %v2521_v34  ;;  %v2422_v37 = vmax.f32 %v2010_v35, 0.0  ;;  %v3284_v35 = vor.u32 %v3912_v22, %v3283_v19 }
 0x274   :  { %v1750_v38 = vpop.f32.mrf.mxu2 }
 0x275   :  { %2922 = vst.msk [vmem:[%s6363_s3 + $0x274] sm:$0xf] %vm2764_vm0, %v2721_v36  ;;  %v2622_v39 = vpack.c.bf16 %v2422_v37, %v2422_v37  ;;  %v1751_v40 = vadd.f32 %v5380_v26, %v1750_v38  ;;  %v2259_v41 = vpop.f32.mrf.mxu3  ;;  %v3684_v36 = vor.u32 %v4012_v24, %v3683_v23  ;;  %v3288_v38 = vor.u32 %v3911_v25, %v3285_v27 }
 0x276   :  { %v1502_v42 = vpop.f32.mrf.mxu0 }
 0x277   :  { %2823 = vst.msk [vmem:[%s6363_s3 + $0xe8] sm:$0xf] %vm2764_vm0, %v2622_v39  ;;  %v2260_v43 = vadd.f32 %v2259_v41, %v1751_v40  ;;  %v1503_v44 = vadd.f32 %v5380_v26, %v1502_v42  ;;  %v2011_v45 = vpop.f32.mrf.mxu1  ;;  %v3688_v39 = vor.u32 %v4011_v29, %v3685_v30 }
 0x279   :  { %v2522_v47 = vmax.f32 %v2260_v43, 0.0  ;;  %v2012_v49 = vadd.f32 %v2011_v45, %v1503_v44 }
 0x27b   :  { %v2722_v55 = vpack.c.bf16 %v2522_v47, %v2522_v47  ;;  %v2423_v56 = vmax.f32 %v2012_v49, 0.0 }
 0x27c   :  { %v1752_v59 = vpop.f32.mrf.mxu2 }
 0x27d   :  { %2923 = vst.msk [vmem:[%s6363_s3 + $0x278] sm:$0xf] %vm2764_vm0, %v2722_v55  ;;  %v2623_v60 = vpack.c.bf16 %v2423_v56, %v2423_v56  ;;  %v1753_v61 = vadd.f32 %v5380_v26, %v1752_v59  ;;  %v2261_v62 = vpop.f32.mrf.mxu3  ;;  %v3291_v56 = vld [vmem:[%s6362_s0 + $0x280] sm:$0xf]  ;;  %v3914_v59 = vld [vmem:[%s6362_s0 + $0x284] sm:$0xf0] }
 0x27e   :  { %v1505_v1 = vpop.f32.mrf.mxu0 }
 0x27f   :  { %2824 = vst.msk [vmem:[%s6363_s3 + $0xec] sm:$0xf] %vm2764_vm0, %v2623_v60  ;;  %v2262_v4 = vadd.f32 %v2261_v62, %v1753_v61  ;;  %v1506_v5 = vadd.f32 %v5380_v26, %v1505_v1  ;;  %v2014_v6 = vpop.f32.mrf.mxu1  ;;  %v3691_v60 = vld [vmem:[%s6362_s0 + $0x5a0] sm:$0xf]  ;;  %v4014_v61 = vld [vmem:[%s6362_s0 + $0x5a4] sm:$0xf0] }
 0x280   :  { %v3913_v62 = vld [vmem:[%s6362_s0 + $0x284] sm:$0xf] }
 0x281   :  { %v2523_v7 = vmax.f32 %v2262_v4, 0.0  ;;  %v2015_v8 = vadd.f32 %v2014_v6, %v1506_v5  ;;  %1544 = vmatmul.bf16.gmra.mxu0 %v3276_v63  ;;  %1794 = vmatmul.bf16.gmra.mxu2 %v3676_v0  ;;  %v3293_v63 = vld [vmem:[%s6362_s0 + $0x288] sm:$0xf0] }
 0x282   :  { %2053 = vmatmul.bf16.gmra.mxu1 %v3280_v2  ;;  %2303 = vmatmul.bf16.gmra.mxu3 %v3680_v3  ;;  %v4013_v2 = vld [vmem:[%s6362_s0 + $0x5a4] sm:$0xf]  ;;  %v3693_v3 = vld [vmem:[%s6362_s0 + $0x5a8] sm:$0xf0] }
 0x283   :  { %v2723_v9 = vpack.c.bf16 %v2523_v7, %v2523_v7  ;;  %v2424_v10 = vmax.f32 %v2015_v8, 0.0  ;;  %v3292_v8 = vor.u32 %v3914_v59, %v3291_v56 }
 0x284   :  { %v1755_v11 = vpop.f32.mrf.mxu2 }
 0x285   :  { %2924 = vst.msk [vmem:[%s6363_s3 + $0x27c] sm:$0xf] %vm2764_vm0, %v2723_v9  ;;  %v2624_v12 = vpack.c.bf16 %v2424_v10, %v2424_v10  ;;  %v1756_v13 = vadd.f32 %v5380_v26, %v1755_v11  ;;  %v2264_v14 = vpop.f32.mrf.mxu3  ;;  %v3692_v9 = vor.u32 %v4014_v61, %v3691_v60  ;;  %v3296_v11 = vor.u32 %v3913_v62, %v3293_v63 }
 0x286   :  { %v1507_v15 = vpop.f32.mrf.mxu0 }
 0x287   :  { %2825 = vst.msk [vmem:[%s6363_s3 + $0xf0] sm:$0xf] %vm2764_vm0, %v2624_v12  ;;  %v2265_v16 = vadd.f32 %v2264_v14, %v1756_v13  ;;  %v1508_v17 = vadd.f32 %v5380_v26, %v1507_v15  ;;  %v2016_v18 = vpop.f32.mrf.mxu1  ;;  %v3696_v12 = vor.u32 %v4013_v2, %v3693_v3 }
 0x289   :  { %v2524_v20 = vmax.f32 %v2265_v16, 0.0  ;;  %v2017_v21 = vadd.f32 %v2016_v18, %v1508_v17 }
 0x28b   :  { %v2724_v28 = vpack.c.bf16 %v2524_v20, %v2524_v20  ;;  %v2425_v48 = vmax.f32 %v2017_v21, 0.0 }
 0x28c   :  { %v1757_v31 = vpop.f32.mrf.mxu2 }
 0x28d   :  { %2925 = vst.msk [vmem:[%s6363_s3 + $0x280] sm:$0xf] %vm2764_vm0, %v2724_v28  ;;  %v2625_v32 = vpack.c.bf16 %v2425_v48, %v2425_v48  ;;  %v1758_v33 = vadd.f32 %v5380_v26, %v1757_v31  ;;  %v2266_v34 = vpop.f32.mrf.mxu3  ;;  %v3299_v48 = vld [vmem:[%s6362_s0 + $0x290] sm:$0xf]  ;;  %v3916_v31 = vld [vmem:[%s6362_s0 + $0x294] sm:$0xf0] }
 0x28e   :  { %v1510_v37 = vpop.f32.mrf.mxu0 }
 0x28f   :  { %2826 = vst.msk [vmem:[%s6363_s3 + $0xf4] sm:$0xf] %vm2764_vm0, %v2625_v32  ;;  %v2267_v40 = vadd.f32 %v2266_v34, %v1758_v33  ;;  %v1511_v41 = vadd.f32 %v5380_v26, %v1510_v37  ;;  %v2019_v42 = vpop.f32.mrf.mxu1  ;;  %v3699_v32 = vld [vmem:[%s6362_s0 + $0x5b0] sm:$0xf]  ;;  %v4016_v33 = vld [vmem:[%s6362_s0 + $0x5b4] sm:$0xf0] }
 0x290   :  { %v3915_v34 = vld [vmem:[%s6362_s0 + $0x294] sm:$0xf] }
 0x291   :  { %v2525_v43 = vmax.f32 %v2267_v40, 0.0  ;;  %v2020_v44 = vadd.f32 %v2019_v42, %v1511_v41  ;;  %1549 = vmatmul.bf16.gmra.mxu0 %v3284_v35  ;;  %1799 = vmatmul.bf16.gmra.mxu2 %v3684_v36  ;;  %v3301_v35 = vld [vmem:[%s6362_s0 + $0x298] sm:$0xf0] }
 0x292   :  { %2058 = vmatmul.bf16.gmra.mxu1 %v3288_v38  ;;  %2308 = vmatmul.bf16.gmra.mxu3 %v3688_v39  ;;  %v4015_v38 = vld [vmem:[%s6362_s0 + $0x5b4] sm:$0xf]  ;;  %v3701_v39 = vld [vmem:[%s6362_s0 + $0x5b8] sm:$0xf0] }
 0x293   :  { %v2725_v45 = vpack.c.bf16 %v2525_v43, %v2525_v43  ;;  %v2426_v46 = vmax.f32 %v2020_v44, 0.0  ;;  %v3300_v44 = vor.u32 %v3916_v31, %v3299_v48 }
 0x294   :  { %v1760_v47 = vpop.f32.mrf.mxu2 }
 0x295   :  { %2926 = vst.msk [vmem:[%s6363_s3 + $0x284] sm:$0xf] %vm2764_vm0, %v2725_v45  ;;  %v2626_v49 = vpack.c.bf16 %v2426_v46, %v2426_v46  ;;  %v1761_v50 = vadd.f32 %v5380_v26, %v1760_v47  ;;  %v2269_v51 = vpop.f32.mrf.mxu3  ;;  %v3700_v45 = vor.u32 %v4016_v33, %v3699_v32  ;;  %v3304_v47 = vor.u32 %v3915_v34, %v3301_v35 }
 0x296   :  { %v1512_v52 = vpop.f32.mrf.mxu0 }
 0x297   :  { %2827 = vst.msk [vmem:[%s6363_s3 + $0xf8] sm:$0xf] %vm2764_vm0, %v2626_v49  ;;  %v2270_v53 = vadd.f32 %v2269_v51, %v1761_v50  ;;  %v1513_v54 = vadd.f32 %v5380_v26, %v1512_v52  ;;  %v2021_v55 = vpop.f32.mrf.mxu1  ;;  %v3704_v49 = vor.u32 %v4015_v38, %v3701_v39 }
 0x299   :  { %v2526_v57 = vmax.f32 %v2270_v53, 0.0  ;;  %v2022_v58 = vadd.f32 %v2021_v55, %v1513_v54 }
 0x29b   :  { %v2726_v0 = vpack.c.bf16 %v2526_v57, %v2526_v57  ;;  %v2427_v1 = vmax.f32 %v2022_v58, 0.0 }
 0x29c   :  { %v1762_v4 = vpop.f32.mrf.mxu2 }
 0x29d   :  { %2927 = vst.msk [vmem:[%s6363_s3 + $0x288] sm:$0xf] %vm2764_vm0, %v2726_v0  ;;  %v2627_v5 = vpack.c.bf16 %v2427_v1, %v2427_v1  ;;  %v1763_v6 = vadd.f32 %v5380_v26, %v1762_v4  ;;  %v2271_v7 = vpop.f32.mrf.mxu3  ;;  %v3307_v1 = vld [vmem:[%s6362_s0 + $0x2a0] sm:$0xf]  ;;  %v3918_v4 = vld [vmem:[%s6362_s0 + $0x2a4] sm:$0xf0] }
 0x29e   :  { %v1515_v10 = vpop.f32.mrf.mxu0 }
 0x29f   :  { %2828 = vst.msk [vmem:[%s6363_s3 + $0xfc] sm:$0xf] %vm2764_vm0, %v2627_v5  ;;  %v2272_v13 = vadd.f32 %v2271_v7, %v1763_v6  ;;  %v1516_v14 = vadd.f32 %v5380_v26, %v1515_v10  ;;  %v2024_v15 = vpop.f32.mrf.mxu1  ;;  %v3707_v5 = vld [vmem:[%s6362_s0 + $0x5c0] sm:$0xf]  ;;  %v4018_v6 = vld [vmem:[%s6362_s0 + $0x5c4] sm:$0xf0] }
 0x2a0   :  { %v3917_v7 = vld [vmem:[%s6362_s0 + $0x2a4] sm:$0xf] }
 0x2a1   :  { %v2527_v16 = vmax.f32 %v2272_v13, 0.0  ;;  %v2025_v17 = vadd.f32 %v2024_v15, %v1516_v14  ;;  %1554 = vmatmul.bf16.gmra.mxu0 %v3292_v8  ;;  %1804 = vmatmul.bf16.gmra.mxu2 %v3692_v9  ;;  %v3309_v8 = vld [vmem:[%s6362_s0 + $0x2a8] sm:$0xf0] }
 0x2a2   :  { %2063 = vmatmul.bf16.gmra.mxu1 %v3296_v11  ;;  %2313 = vmatmul.bf16.gmra.mxu3 %v3696_v12  ;;  %v4017_v11 = vld [vmem:[%s6362_s0 + $0x5c4] sm:$0xf]  ;;  %v3709_v12 = vld [vmem:[%s6362_s0 + $0x5c8] sm:$0xf0] }
 0x2a3   :  { %v2727_v18 = vpack.c.bf16 %v2527_v16, %v2527_v16  ;;  %v2428_v19 = vmax.f32 %v2025_v17, 0.0  ;;  %v3308_v17 = vor.u32 %v3918_v4, %v3307_v1 }
 0x2a4   :  { %v1765_v20 = vpop.f32.mrf.mxu2 }
 0x2a5   :  { %2928 = vst.msk [vmem:[%s6363_s3 + $0x28c] sm:$0xf] %vm2764_vm0, %v2727_v18  ;;  %v2628_v21 = vpack.c.bf16 %v2428_v19, %v2428_v19  ;;  %v1766_v22 = vadd.f32 %v5380_v26, %v1765_v20  ;;  %v2274_v23 = vpop.f32.mrf.mxu3  ;;  %v3708_v18 = vor.u32 %v4018_v6, %v3707_v5  ;;  %v3312_v20 = vor.u32 %v3917_v7, %v3309_v8 }
 0x2a6   :  { %v1517_v24 = vpop.f32.mrf.mxu0 }
 0x2a7   :  { %2829 = vst.msk [vmem:[%s6363_s3 + $0x100] sm:$0xf] %vm2764_vm0, %v2628_v21  ;;  %v2275_v25 = vadd.f32 %v2274_v23, %v1766_v22  ;;  %v1518_v27 = vadd.f32 %v5380_v26, %v1517_v24  ;;  %v2026_v28 = vpop.f32.mrf.mxu1  ;;  %v3712_v21 = vor.u32 %v4017_v11, %v3709_v12 }
 0x2a9   :  { %v2528_v29 = vmax.f32 %v2275_v25, 0.0  ;;  %v2027_v30 = vadd.f32 %v2026_v28, %v1518_v27 }
 0x2ab   :  { %v2728_v36 = vpack.c.bf16 %v2528_v29, %v2528_v29  ;;  %v2429_v37 = vmax.f32 %v2027_v30, 0.0 }
 0x2ac   :  { %v1767_v40 = vpop.f32.mrf.mxu2 }
 0x2ad   :  { %2929 = vst.msk [vmem:[%s6363_s3 + $0x290] sm:$0xf] %vm2764_vm0, %v2728_v36  ;;  %v2629_v41 = vpack.c.bf16 %v2429_v37, %v2429_v37  ;;  %v1768_v42 = vadd.f32 %v5380_v26, %v1767_v40  ;;  %v2276_v43 = vpop.f32.mrf.mxu3  ;;  %v3315_v37 = vld [vmem:[%s6362_s0 + $0x2b0] sm:$0xf]  ;;  %v3920_v40 = vld [vmem:[%s6362_s0 + $0x2b4] sm:$0xf0] }
 0x2ae   :  { %v1520_v46 = vpop.f32.mrf.mxu0 }
 0x2af   :  { %2830 = vst.msk [vmem:[%s6363_s3 + $0x104] sm:$0xf] %vm2764_vm0, %v2629_v41  ;;  %v2277_v50 = vadd.f32 %v2276_v43, %v1768_v42  ;;  %v1521_v51 = vadd.f32 %v5380_v26, %v1520_v46  ;;  %v2029_v52 = vpop.f32.mrf.mxu1  ;;  %v3715_v41 = vld [vmem:[%s6362_s0 + $0x5d0] sm:$0xf]  ;;  %v4020_v42 = vld [vmem:[%s6362_s0 + $0x5d4] sm:$0xf0] }
 0x2b0   :  { %v3919_v43 = vld [vmem:[%s6362_s0 + $0x2b4] sm:$0xf] }
 0x2b1   :  { %v2529_v53 = vmax.f32 %v2277_v50, 0.0  ;;  %v2030_v54 = vadd.f32 %v2029_v52, %v1521_v51  ;;  %1559 = vmatmul.bf16.gmra.mxu0 %v3300_v44  ;;  %1809 = vmatmul.bf16.gmra.mxu2 %v3700_v45  ;;  %v3317_v44 = vld [vmem:[%s6362_s0 + $0x2b8] sm:$0xf0] }
 0x2b2   :  { %2068 = vmatmul.bf16.gmra.mxu1 %v3304_v47  ;;  %2318 = vmatmul.bf16.gmra.mxu3 %v3704_v49  ;;  %v4019_v47 = vld [vmem:[%s6362_s0 + $0x5d4] sm:$0xf]  ;;  %v3717_v49 = vld [vmem:[%s6362_s0 + $0x5d8] sm:$0xf0] }
 0x2b3   :  { %v2729_v55 = vpack.c.bf16 %v2529_v53, %v2529_v53  ;;  %v2430_v56 = vmax.f32 %v2030_v54, 0.0  ;;  %v3316_v54 = vor.u32 %v3920_v40, %v3315_v37 }
 0x2b4   :  { %v1770_v57 = vpop.f32.mrf.mxu2 }
 0x2b5   :  { %2930 = vst.msk [vmem:[%s6363_s3 + $0x294] sm:$0xf] %vm2764_vm0, %v2729_v55  ;;  %v2630_v58 = vpack.c.bf16 %v2430_v56, %v2430_v56  ;;  %v1771_v59 = vadd.f32 %v5380_v26, %v1770_v57  ;;  %v2279_v60 = vpop.f32.mrf.mxu3  ;;  %v3716_v55 = vor.u32 %v4020_v42, %v3715_v41  ;;  %v3320_v57 = vor.u32 %v3919_v43, %v3317_v44 }
 0x2b6   :  { %v1522_v61 = vpop.f32.mrf.mxu0 }
 0x2b7   :  { %2831 = vst.msk [vmem:[%s6363_s3 + $0x108] sm:$0xf] %vm2764_vm0, %v2630_v58  ;;  %v2280_v62 = vadd.f32 %v2279_v60, %v1771_v59  ;;  %v1523_v63 = vadd.f32 %v5380_v26, %v1522_v61  ;;  %v2031_v0 = vpop.f32.mrf.mxu1  ;;  %v3720_v58 = vor.u32 %v4019_v47, %v3717_v49  ;;  %v5908_v60 = vld [vmem:[%s6361_s2] ss:$0 sm:$0xff] }
 0x2b9   :  { %v2530_v2 = vmax.f32 %v2280_v62, 0.0  ;;  %v2032_v3 = vadd.f32 %v2031_v0, %v1523_v63 }
 0x2bb   :  { %v2730_v9 = vpack.c.bf16 %v2530_v2, %v2530_v2  ;;  %v2431_v10 = vmax.f32 %v2032_v3, 0.0 }
 0x2bc   :  { %v1772_v13 = vpop.f32.mrf.mxu2 }
 0x2bd   :  { %2931 = vst.msk [vmem:[%s6363_s3 + $0x298] sm:$0xf] %vm2764_vm0, %v2730_v9  ;;  %v2631_v14 = vpack.c.bf16 %v2431_v10, %v2431_v10  ;;  %v1773_v15 = vadd.f32 %v5380_v26, %v1772_v13  ;;  %v2281_v16 = vpop.f32.mrf.mxu3  ;;  %v3323_v10 = vld [vmem:[%s6362_s0 + $0x2c0] sm:$0xf]  ;;  %v3922_v13 = vld [vmem:[%s6362_s0 + $0x2c4] sm:$0xf0] }
 0x2be   :  { %v1525_v19 = vpop.f32.mrf.mxu0 }
 0x2bf   :  { %2832 = vst.msk [vmem:[%s6363_s3 + $0x10c] sm:$0xf] %vm2764_vm0, %v2631_v14  ;;  %v2282_v22 = vadd.f32 %v2281_v16, %v1773_v15  ;;  %v1526_v23 = vadd.f32 %v5380_v26, %v1525_v19  ;;  %v2034_v24 = vpop.f32.mrf.mxu1  ;;  %v3723_v14 = vld [vmem:[%s6362_s0 + $0x5e0] sm:$0xf]  ;;  %v4022_v15 = vld [vmem:[%s6362_s0 + $0x5e4] sm:$0xf0] }
 0x2c0   :  { %v3921_v16 = vld [vmem:[%s6362_s0 + $0x2c4] sm:$0xf] }
 0x2c1   :  { %v2531_v25 = vmax.f32 %v2282_v22, 0.0  ;;  %v2035_v27 = vadd.f32 %v2034_v24, %v1526_v23  ;;  %1564 = vmatmul.bf16.gmra.mxu0 %v3308_v17  ;;  %1814 = vmatmul.bf16.gmra.mxu2 %v3708_v18  ;;  %v3325_v17 = vld [vmem:[%s6362_s0 + $0x2c8] sm:$0xf0] }
 0x2c2   :  { %2073 = vmatmul.bf16.gmra.mxu1 %v3312_v20  ;;  %2323 = vmatmul.bf16.gmra.mxu3 %v3712_v21  ;;  %v4021_v20 = vld [vmem:[%s6362_s0 + $0x5e4] sm:$0xf]  ;;  %v3725_v21 = vld [vmem:[%s6362_s0 + $0x5e8] sm:$0xf0] }
 0x2c3   :  { %v2731_v28 = vpack.c.bf16 %v2531_v25, %v2531_v25  ;;  %v2432_v48 = vmax.f32 %v2035_v27, 0.0  ;;  %v3324_v27 = vor.u32 %v3922_v13, %v3323_v10 }
 0x2c4   :  { %v1775_v29 = vpop.f32.mrf.mxu2 }
 0x2c5   :  { %2932 = vst.msk [vmem:[%s6363_s3 + $0x29c] sm:$0xf] %vm2764_vm0, %v2731_v28  ;;  %v2632_v30 = vpack.c.bf16 %v2432_v48, %v2432_v48  ;;  %v1776_v31 = vadd.f32 %v5380_v26, %v1775_v29  ;;  %v2284_v32 = vpop.f32.mrf.mxu3  ;;  %v3724_v28 = vor.u32 %v4022_v15, %v3723_v14  ;;  %v3328_v29 = vor.u32 %v3921_v16, %v3325_v17 }
 0x2c6   :  { %v1527_v33 = vpop.f32.mrf.mxu0 }
 0x2c7   :  { %2833 = vst.msk [vmem:[%s6363_s3 + $0x110] sm:$0xf] %vm2764_vm0, %v2632_v30  ;;  %v2285_v34 = vadd.f32 %v2284_v32, %v1776_v31  ;;  %v1528_v35 = vadd.f32 %v5380_v26, %v1527_v33  ;;  %v2036_v36 = vpop.f32.mrf.mxu1  ;;  %v3728_v30 = vor.u32 %v4021_v20, %v3725_v21 }
 0x2c9   :  { %v2532_v38 = vmax.f32 %v2285_v34, 0.0  ;;  %v2037_v39 = vadd.f32 %v2036_v36, %v1528_v35 }
 0x2cb   :  { %v2732_v45 = vpack.c.bf16 %v2532_v38, %v2532_v38  ;;  %v2433_v46 = vmax.f32 %v2037_v39, 0.0 }
 0x2cc   :  { %v1777_v50 = vpop.f32.mrf.mxu2 }
 0x2cd   :  { %2933 = vst.msk [vmem:[%s6363_s3 + $0x2a0] sm:$0xf] %vm2764_vm0, %v2732_v45  ;;  %v2633_v51 = vpack.c.bf16 %v2433_v46, %v2433_v46  ;;  %v1778_v52 = vadd.f32 %v5380_v26, %v1777_v50  ;;  %v2286_v53 = vpop.f32.mrf.mxu3  ;;  %v3331_v46 = vld [vmem:[%s6362_s0 + $0x2d0] sm:$0xf]  ;;  %v3924_v50 = vld [vmem:[%s6362_s0 + $0x2d4] sm:$0xf0] }
 0x2ce   :  { %v1530_v56 = vpop.f32.mrf.mxu0 }
 0x2cf   :  { %2834 = vst.msk [vmem:[%s6363_s3 + $0x114] sm:$0xf] %vm2764_vm0, %v2633_v51  ;;  %v2287_v59 = vadd.f32 %v2286_v53, %v1778_v52  ;;  %v1531_v61 = vadd.f32 %v5908_v60, %v1530_v56  ;;  %v2039_v26 = vpop.f32.mrf.mxu1  ;;  %v3731_v51 = vld [vmem:[%s6362_s0 + $0x5f0] sm:$0xf]  ;;  %v4024_v52 = vld [vmem:[%s6362_s0 + $0x5f4] sm:$0xf0] }
 0x2d0   :  { %v3923_v53 = vld [vmem:[%s6362_s0 + $0x2d4] sm:$0xf] }
 0x2d1   :  { %v2533_v62 = vmax.f32 %v2287_v59, 0.0  ;;  %v2040_v63 = vadd.f32 %v2039_v26, %v1531_v61  ;;  %1569 = vmatmul.bf16.gmra.mxu0 %v3316_v54  ;;  %1819 = vmatmul.bf16.gmra.mxu2 %v3716_v55  ;;  %v3333_v54 = vld [vmem:[%s6362_s0 + $0x2d8] sm:$0xf0] }
 0x2d2   :  { %2078 = vmatmul.bf16.gmra.mxu1 %v3320_v57  ;;  %2328 = vmatmul.bf16.gmra.mxu3 %v3720_v58  ;;  %v4023_v57 = vld [vmem:[%s6362_s0 + $0x5f4] sm:$0xf]  ;;  %v3733_v58 = vld [vmem:[%s6362_s0 + $0x5f8] sm:$0xf0] }
 0x2d3   :  { %v2733_v0 = vpack.c.bf16 %v2533_v62, %v2533_v62  ;;  %v2434_v1 = vmax.f32 %v2040_v63, 0.0  ;;  %v3332_v63 = vor.u32 %v3924_v50, %v3331_v46 }
 0x2d4   :  { %v1780_v2 = vpop.f32.mrf.mxu2 }
 0x2d5   :  { %2934 = vst.msk [vmem:[%s6363_s3 + $0x2a4] sm:$0xf] %vm2764_vm0, %v2733_v0  ;;  %v2634_v3 = vpack.c.bf16 %v2434_v1, %v2434_v1  ;;  %v1781_v4 = vadd.f32 %v5908_v60, %v1780_v2  ;;  %v2289_v5 = vpop.f32.mrf.mxu3  ;;  %v3732_v0 = vor.u32 %v4024_v52, %v3731_v51  ;;  %v3336_v2 = vor.u32 %v3923_v53, %v3333_v54 }
 0x2d6   :  { %v1532_v6 = vpop.f32.mrf.mxu0 }
 0x2d7   :  { %2835 = vst.msk [vmem:[%s6363_s3 + $0x118] sm:$0xf] %vm2764_vm0, %v2634_v3  ;;  %v2290_v7 = vadd.f32 %v2289_v5, %v1781_v4  ;;  %v1533_v8 = vadd.f32 %v5908_v60, %v1532_v6  ;;  %v2041_v9 = vpop.f32.mrf.mxu1  ;;  %v3736_v3 = vor.u32 %v4023_v57, %v3733_v58 }
 0x2d9   :  { %v2534_v11 = vmax.f32 %v2290_v7, 0.0  ;;  %v2042_v12 = vadd.f32 %v2041_v9, %v1533_v8 }
 0x2db   :  { %v2734_v18 = vpack.c.bf16 %v2534_v11, %v2534_v11  ;;  %v2435_v19 = vmax.f32 %v2042_v12, 0.0 }
 0x2dc   :  { %v1782_v22 = vpop.f32.mrf.mxu2 }
 0x2dd   :  { %2935 = vst.msk [vmem:[%s6363_s3 + $0x2a8] sm:$0xf] %vm2764_vm0, %v2734_v18  ;;  %v2635_v23 = vpack.c.bf16 %v2435_v19, %v2435_v19  ;;  %v1783_v24 = vadd.f32 %v5908_v60, %v1782_v22  ;;  %v2291_v25 = vpop.f32.mrf.mxu3  ;;  %v3339_v19 = vld [vmem:[%s6362_s0 + $0x2e0] sm:$0xf]  ;;  %v3926_v22 = vld [vmem:[%s6362_s0 + $0x2e4] sm:$0xf0] }
 0x2de   :  { %v1535_v48 = vpop.f32.mrf.mxu0 }
 0x2df   :  { %2836 = vst.msk [vmem:[%s6363_s3 + $0x11c] sm:$0xf] %vm2764_vm0, %v2635_v23  ;;  %v2292_v31 = vadd.f32 %v2291_v25, %v1783_v24  ;;  %v1536_v32 = vadd.f32 %v5908_v60, %v1535_v48  ;;  %v2044_v33 = vpop.f32.mrf.mxu1  ;;  %v3739_v23 = vld [vmem:[%s6362_s0 + $0x600] sm:$0xf]  ;;  %v4026_v24 = vld [vmem:[%s6362_s0 + $0x604] sm:$0xf0] }
 0x2e0   :  { %v3925_v25 = vld [vmem:[%s6362_s0 + $0x2e4] sm:$0xf] }
 0x2e1   :  { %v2535_v34 = vmax.f32 %v2292_v31, 0.0  ;;  %v2045_v35 = vadd.f32 %v2044_v33, %v1536_v32  ;;  %1574 = vmatmul.bf16.gmra.mxu0 %v3324_v27  ;;  %1824 = vmatmul.bf16.gmra.mxu2 %v3724_v28  ;;  %v3341_v27 = vld [vmem:[%s6362_s0 + $0x2e8] sm:$0xf0] }
 0x2e2   :  { %2083 = vmatmul.bf16.gmra.mxu1 %v3328_v29  ;;  %2333 = vmatmul.bf16.gmra.mxu3 %v3728_v30  ;;  %v4025_v29 = vld [vmem:[%s6362_s0 + $0x604] sm:$0xf]  ;;  %v3741_v30 = vld [vmem:[%s6362_s0 + $0x608] sm:$0xf0] }
 0x2e3   :  { %v2735_v36 = vpack.c.bf16 %v2535_v34, %v2535_v34  ;;  %v2436_v37 = vmax.f32 %v2045_v35, 0.0  ;;  %v3340_v35 = vor.u32 %v3926_v22, %v3339_v19 }
 0x2e4   :  { %v1785_v38 = vpop.f32.mrf.mxu2 }
 0x2e5   :  { %2936 = vst.msk [vmem:[%s6363_s3 + $0x2ac] sm:$0xf] %vm2764_vm0, %v2735_v36  ;;  %v2636_v39 = vpack.c.bf16 %v2436_v37, %v2436_v37  ;;  %v1786_v40 = vadd.f32 %v5908_v60, %v1785_v38  ;;  %v2294_v41 = vpop.f32.mrf.mxu3  ;;  %v3740_v36 = vor.u32 %v4026_v24, %v3739_v23  ;;  %v3344_v38 = vor.u32 %v3925_v25, %v3341_v27 }
 0x2e6   :  { %v1537_v42 = vpop.f32.mrf.mxu0 }
 0x2e7   :  { %2837 = vst.msk [vmem:[%s6363_s3 + $0x120] sm:$0xf] %vm2764_vm0, %v2636_v39  ;;  %v2295_v43 = vadd.f32 %v2294_v41, %v1786_v40  ;;  %v1538_v44 = vadd.f32 %v5908_v60, %v1537_v42  ;;  %v2046_v45 = vpop.f32.mrf.mxu1  ;;  %v3744_v39 = vor.u32 %v4025_v29, %v3741_v30 }
 0x2e9   :  { %v2536_v47 = vmax.f32 %v2295_v43, 0.0  ;;  %v2047_v49 = vadd.f32 %v2046_v45, %v1538_v44 }
 0x2eb   :  { %v2736_v55 = vpack.c.bf16 %v2536_v47, %v2536_v47  ;;  %v2437_v56 = vmax.f32 %v2047_v49, 0.0 }
 0x2ec   :  { %v1787_v59 = vpop.f32.mrf.mxu2 }
 0x2ed   :  { %2937 = vst.msk [vmem:[%s6363_s3 + $0x2b0] sm:$0xf] %vm2764_vm0, %v2736_v55  ;;  %v2637_v61 = vpack.c.bf16 %v2437_v56, %v2437_v56  ;;  %v1788_v26 = vadd.f32 %v5908_v60, %v1787_v59  ;;  %v2296_v62 = vpop.f32.mrf.mxu3  ;;  %v3347_v56 = vld [vmem:[%s6362_s0 + $0x2f0] sm:$0xf]  ;;  %v3928_v59 = vld [vmem:[%s6362_s0 + $0x2f4] sm:$0xf0] }
 0x2ee   :  { %v1540_v1 = vpop.f32.mrf.mxu0 }
 0x2ef   :  { %2838 = vst.msk [vmem:[%s6363_s3 + $0x124] sm:$0xf] %vm2764_vm0, %v2637_v61  ;;  %v2297_v4 = vadd.f32 %v2296_v62, %v1788_v26  ;;  %v1541_v5 = vadd.f32 %v5908_v60, %v1540_v1  ;;  %v2049_v6 = vpop.f32.mrf.mxu1  ;;  %v3747_v61 = vld [vmem:[%s6362_s0 + $0x610] sm:$0xf]  ;;  %v4028_v26 = vld [vmem:[%s6362_s0 + $0x614] sm:$0xf0] }
 0x2f0   :  { %v3927_v62 = vld [vmem:[%s6362_s0 + $0x2f4] sm:$0xf] }
 0x2f1   :  { %v2537_v7 = vmax.f32 %v2297_v4, 0.0  ;;  %v2050_v8 = vadd.f32 %v2049_v6, %v1541_v5  ;;  %1579 = vmatmul.bf16.gmra.mxu0 %v3332_v63  ;;  %1829 = vmatmul.bf16.gmra.mxu2 %v3732_v0  ;;  %v3349_v63 = vld [vmem:[%s6362_s0 + $0x2f8] sm:$0xf0] }
 0x2f2   :  { %2088 = vmatmul.bf16.gmra.mxu1 %v3336_v2  ;;  %2338 = vmatmul.bf16.gmra.mxu3 %v3736_v3  ;;  %v4027_v2 = vld [vmem:[%s6362_s0 + $0x614] sm:$0xf]  ;;  %v3749_v3 = vld [vmem:[%s6362_s0 + $0x618] sm:$0xf0] }
 0x2f3   :  { %v2737_v9 = vpack.c.bf16 %v2537_v7, %v2537_v7  ;;  %v2438_v10 = vmax.f32 %v2050_v8, 0.0  ;;  %v3348_v8 = vor.u32 %v3928_v59, %v3347_v56 }
 0x2f4   :  { %v1790_v11 = vpop.f32.mrf.mxu2 }
 0x2f5   :  { %2938 = vst.msk [vmem:[%s6363_s3 + $0x2b4] sm:$0xf] %vm2764_vm0, %v2737_v9  ;;  %v2638_v12 = vpack.c.bf16 %v2438_v10, %v2438_v10  ;;  %v1791_v13 = vadd.f32 %v5908_v60, %v1790_v11  ;;  %v2299_v14 = vpop.f32.mrf.mxu3  ;;  %v3748_v9 = vor.u32 %v4028_v26, %v3747_v61  ;;  %v3352_v11 = vor.u32 %v3927_v62, %v3349_v63 }
 0x2f6   :  { %v1542_v15 = vpop.f32.mrf.mxu0 }
 0x2f7   :  { %2839 = vst.msk [vmem:[%s6363_s3 + $0x128] sm:$0xf] %vm2764_vm0, %v2638_v12  ;;  %v2300_v16 = vadd.f32 %v2299_v14, %v1791_v13  ;;  %v1543_v17 = vadd.f32 %v5908_v60, %v1542_v15  ;;  %v2051_v18 = vpop.f32.mrf.mxu1  ;;  %v3752_v12 = vor.u32 %v4027_v2, %v3749_v3 }
 0x2f9   :  { %v2538_v20 = vmax.f32 %v2300_v16, 0.0  ;;  %v2052_v21 = vadd.f32 %v2051_v18, %v1543_v17 }
 0x2fb   :  { %v2738_v28 = vpack.c.bf16 %v2538_v20, %v2538_v20  ;;  %v2439_v48 = vmax.f32 %v2052_v21, 0.0 }
 0x2fc   :  { %v1792_v31 = vpop.f32.mrf.mxu2 }
 0x2fd   :  { %2939 = vst.msk [vmem:[%s6363_s3 + $0x2b8] sm:$0xf] %vm2764_vm0, %v2738_v28  ;;  %v2639_v32 = vpack.c.bf16 %v2439_v48, %v2439_v48  ;;  %v1793_v33 = vadd.f32 %v5908_v60, %v1792_v31  ;;  %v2301_v34 = vpop.f32.mrf.mxu3  ;;  %v3355_v48 = vld [vmem:[%s6362_s0 + $0x300] sm:$0xf]  ;;  %v3930_v31 = vld [vmem:[%s6362_s0 + $0x304] sm:$0xf0] }
 0x2fe   :  { %v1545_v37 = vpop.f32.mrf.mxu0 }
 0x2ff   :  { %2840 = vst.msk [vmem:[%s6363_s3 + $0x12c] sm:$0xf] %vm2764_vm0, %v2639_v32  ;;  %v2302_v40 = vadd.f32 %v2301_v34, %v1793_v33  ;;  %v1546_v41 = vadd.f32 %v5908_v60, %v1545_v37  ;;  %v2054_v42 = vpop.f32.mrf.mxu1  ;;  %v3755_v32 = vld [vmem:[%s6362_s0 + $0x620] sm:$0xf]  ;;  %v4030_v33 = vld [vmem:[%s6362_s0 + $0x624] sm:$0xf0] }
 0x300   :  { %v3929_v34 = vld [vmem:[%s6362_s0 + $0x304] sm:$0xf] }
 0x301   :  { %v2539_v43 = vmax.f32 %v2302_v40, 0.0  ;;  %v2055_v44 = vadd.f32 %v2054_v42, %v1546_v41  ;;  %1584 = vmatmul.bf16.gmra.mxu0 %v3340_v35  ;;  %1834 = vmatmul.bf16.gmra.mxu2 %v3740_v36  ;;  %v3357_v35 = vld [vmem:[%s6362_s0 + $0x308] sm:$0xf0] }
 0x302   :  { %2093 = vmatmul.bf16.gmra.mxu1 %v3344_v38  ;;  %2343 = vmatmul.bf16.gmra.mxu3 %v3744_v39  ;;  %v4029_v38 = vld [vmem:[%s6362_s0 + $0x624] sm:$0xf]  ;;  %v3757_v39 = vld [vmem:[%s6362_s0 + $0x628] sm:$0xf0] }
 0x303   :  { %v2739_v45 = vpack.c.bf16 %v2539_v43, %v2539_v43  ;;  %v2440_v46 = vmax.f32 %v2055_v44, 0.0  ;;  %v3356_v44 = vor.u32 %v3930_v31, %v3355_v48 }
 0x304   :  { %v1795_v47 = vpop.f32.mrf.mxu2 }
 0x305   :  { %2940 = vst.msk [vmem:[%s6363_s3 + $0x2bc] sm:$0xf] %vm2764_vm0, %v2739_v45  ;;  %v2640_v49 = vpack.c.bf16 %v2440_v46, %v2440_v46  ;;  %v1796_v50 = vadd.f32 %v5908_v60, %v1795_v47  ;;  %v2304_v51 = vpop.f32.mrf.mxu3  ;;  %v3756_v45 = vor.u32 %v4030_v33, %v3755_v32  ;;  %v3360_v47 = vor.u32 %v3929_v34, %v3357_v35 }
 0x306   :  { %v1547_v52 = vpop.f32.mrf.mxu0 }
 0x307   :  { %2841 = vst.msk [vmem:[%s6363_s3 + $0x130] sm:$0xf] %vm2764_vm0, %v2640_v49  ;;  %v2305_v53 = vadd.f32 %v2304_v51, %v1796_v50  ;;  %v1548_v54 = vadd.f32 %v5908_v60, %v1547_v52  ;;  %v2056_v55 = vpop.f32.mrf.mxu1  ;;  %v3760_v49 = vor.u32 %v4029_v38, %v3757_v39 }
 0x309   :  { %v2540_v57 = vmax.f32 %v2305_v53, 0.0  ;;  %v2057_v58 = vadd.f32 %v2056_v55, %v1548_v54 }
 0x30b   :  { %v2740_v0 = vpack.c.bf16 %v2540_v57, %v2540_v57  ;;  %v2441_v1 = vmax.f32 %v2057_v58, 0.0 }
 0x30c   :  { %v1797_v4 = vpop.f32.mrf.mxu2 }
 0x30d   :  { %2941 = vst.msk [vmem:[%s6363_s3 + $0x2c0] sm:$0xf] %vm2764_vm0, %v2740_v0  ;;  %v2641_v5 = vpack.c.bf16 %v2441_v1, %v2441_v1  ;;  %v1798_v6 = vadd.f32 %v5908_v60, %v1797_v4  ;;  %v2306_v7 = vpop.f32.mrf.mxu3  ;;  %v3363_v1 = vld [vmem:[%s6362_s0 + $0x310] sm:$0xf]  ;;  %v3932_v4 = vld [vmem:[%s6362_s0 + $0x314] sm:$0xf0] }
 0x30e   :  { %v1550_v10 = vpop.f32.mrf.mxu0 }
 0x30f   :  { %2842 = vst.msk [vmem:[%s6363_s3 + $0x134] sm:$0xf] %vm2764_vm0, %v2641_v5  ;;  %v2307_v13 = vadd.f32 %v2306_v7, %v1798_v6  ;;  %v1551_v14 = vadd.f32 %v5908_v60, %v1550_v10  ;;  %v2059_v15 = vpop.f32.mrf.mxu1  ;;  %v3763_v5 = vld [vmem:[%s6362_s0 + $0x630] sm:$0xf]  ;;  %v4032_v6 = vld [vmem:[%s6362_s0 + $0x634] sm:$0xf0] }
 0x310   :  { %v3931_v7 = vld [vmem:[%s6362_s0 + $0x314] sm:$0xf] }
 0x311   :  { %v2541_v16 = vmax.f32 %v2307_v13, 0.0  ;;  %v2060_v17 = vadd.f32 %v2059_v15, %v1551_v14  ;;  %1589 = vmatmul.bf16.gmra.mxu0 %v3348_v8  ;;  %1839 = vmatmul.bf16.gmra.mxu2 %v3748_v9  ;;  %v3365_v8 = vld [vmem:[%s6362_s0 + $0x318] sm:$0xf0] }
 0x312   :  { %2098 = vmatmul.bf16.gmra.mxu1 %v3352_v11  ;;  %2348 = vmatmul.bf16.gmra.mxu3 %v3752_v12  ;;  %v4031_v11 = vld [vmem:[%s6362_s0 + $0x634] sm:$0xf]  ;;  %v3765_v12 = vld [vmem:[%s6362_s0 + $0x638] sm:$0xf0] }
 0x313   :  { %v2741_v18 = vpack.c.bf16 %v2541_v16, %v2541_v16  ;;  %v2442_v19 = vmax.f32 %v2060_v17, 0.0  ;;  %v3364_v17 = vor.u32 %v3932_v4, %v3363_v1 }
 0x314   :  { %v1800_v20 = vpop.f32.mrf.mxu2 }
 0x315   :  { %2942 = vst.msk [vmem:[%s6363_s3 + $0x2c4] sm:$0xf] %vm2764_vm0, %v2741_v18  ;;  %v2642_v21 = vpack.c.bf16 %v2442_v19, %v2442_v19  ;;  %v1801_v22 = vadd.f32 %v5908_v60, %v1800_v20  ;;  %v2309_v23 = vpop.f32.mrf.mxu3  ;;  %v3764_v18 = vor.u32 %v4032_v6, %v3763_v5  ;;  %v3368_v20 = vor.u32 %v3931_v7, %v3365_v8 }
 0x316   :  { %v1552_v24 = vpop.f32.mrf.mxu0 }
 0x317   :  { %2843 = vst.msk [vmem:[%s6363_s3 + $0x138] sm:$0xf] %vm2764_vm0, %v2642_v21  ;;  %v2310_v25 = vadd.f32 %v2309_v23, %v1801_v22  ;;  %v1553_v27 = vadd.f32 %v5908_v60, %v1552_v24  ;;  %v2061_v28 = vpop.f32.mrf.mxu1  ;;  %v3768_v21 = vor.u32 %v4031_v11, %v3765_v12 }
 0x319   :  { %v2542_v29 = vmax.f32 %v2310_v25, 0.0  ;;  %v2062_v30 = vadd.f32 %v2061_v28, %v1553_v27 }
 0x31b   :  { %v2742_v36 = vpack.c.bf16 %v2542_v29, %v2542_v29  ;;  %v2443_v37 = vmax.f32 %v2062_v30, 0.0 }
 0x31c   :  { %v1802_v40 = vpop.f32.mrf.mxu2 }
 0x31d   :  { %2943 = vst.msk [vmem:[%s6363_s3 + $0x2c8] sm:$0xf] %vm2764_vm0, %v2742_v36  ;;  %v2643_v41 = vpack.c.bf16 %v2443_v37, %v2443_v37  ;;  %v1803_v42 = vadd.f32 %v5908_v60, %v1802_v40  ;;  %v2311_v43 = vpop.f32.mrf.mxu3 }
 0x31e   :  { %v1555_v46 = vpop.f32.mrf.mxu0 }
 0x31f   :  { %2844 = vst.msk [vmem:[%s6363_s3 + $0x13c] sm:$0xf] %vm2764_vm0, %v2643_v41  ;;  %v2312_v50 = vadd.f32 %v2311_v43, %v1803_v42  ;;  %v1556_v51 = vadd.f32 %v5908_v60, %v1555_v46  ;;  %v2064_v52 = vpop.f32.mrf.mxu1 }
 0x321   :  { %v2543_v53 = vmax.f32 %v2312_v50, 0.0  ;;  %v2065_v54 = vadd.f32 %v2064_v52, %v1556_v51  ;;  %1594 = vmatmul.bf16.gmra.mxu0 %v3356_v44  ;;  %1844 = vmatmul.bf16.gmra.mxu2 %v3756_v45 }
 0x322   :  { %2103 = vmatmul.bf16.gmra.mxu1 %v3360_v47  ;;  %2353 = vmatmul.bf16.gmra.mxu3 %v3760_v49 }
 0x323   :  { %v2743_v55 = vpack.c.bf16 %v2543_v53, %v2543_v53  ;;  %v2444_v56 = vmax.f32 %v2065_v54, 0.0 }
 0x324   :  { %v1805_v57 = vpop.f32.mrf.mxu2 }
 0x325   :  { %2944 = vst.msk [vmem:[%s6363_s3 + $0x2cc] sm:$0xf] %vm2764_vm0, %v2743_v55  ;;  %v2644_v58 = vpack.c.bf16 %v2444_v56, %v2444_v56  ;;  %v1806_v59 = vadd.f32 %v5908_v60, %v1805_v57  ;;  %v2314_v61 = vpop.f32.mrf.mxu3 }
 0x326   :  { %v1557_v26 = vpop.f32.mrf.mxu0 }
 0x327   :  { %2845 = vst.msk [vmem:[%s6363_s3 + $0x140] sm:$0xf] %vm2764_vm0, %v2644_v58  ;;  %v2315_v62 = vadd.f32 %v2314_v61, %v1806_v59  ;;  %v1558_v63 = vadd.f32 %v5908_v60, %v1557_v26  ;;  %v2066_v0 = vpop.f32.mrf.mxu1 }
 0x329   :  { %v2544_v2 = vmax.f32 %v2315_v62, 0.0  ;;  %v2067_v3 = vadd.f32 %v2066_v0, %v1558_v63 }
 0x32b   :  { %v2744_v9 = vpack.c.bf16 %v2544_v2, %v2544_v2  ;;  %v2445_v10 = vmax.f32 %v2067_v3, 0.0 }
 0x32c   :  { %v1807_v13 = vpop.f32.mrf.mxu2 }
 0x32d   :  { %2945 = vst.msk [vmem:[%s6363_s3 + $0x2d0] sm:$0xf] %vm2764_vm0, %v2744_v9  ;;  %v2645_v14 = vpack.c.bf16 %v2445_v10, %v2445_v10  ;;  %v1808_v15 = vadd.f32 %v5908_v60, %v1807_v13  ;;  %v2316_v16 = vpop.f32.mrf.mxu3 }
 0x32e   :  { %v1560_v19 = vpop.f32.mrf.mxu0 }
 0x32f   :  { %2846 = vst.msk [vmem:[%s6363_s3 + $0x144] sm:$0xf] %vm2764_vm0, %v2645_v14  ;;  %v2317_v22 = vadd.f32 %v2316_v16, %v1808_v15  ;;  %v1561_v23 = vadd.f32 %v5908_v60, %v1560_v19  ;;  %v2069_v24 = vpop.f32.mrf.mxu1 }
 0x331   :  { %v2545_v25 = vmax.f32 %v2317_v22, 0.0  ;;  %v2070_v27 = vadd.f32 %v2069_v24, %v1561_v23  ;;  %1599 = vmatmul.bf16.gmra.mxu0 %v3364_v17  ;;  %1849 = vmatmul.bf16.gmra.mxu2 %v3764_v18 }
 0x332   :  { %2108 = vmatmul.bf16.gmra.mxu1 %v3368_v20  ;;  %2358 = vmatmul.bf16.gmra.mxu3 %v3768_v21 }
 0x333   :  { %v2745_v28 = vpack.c.bf16 %v2545_v25, %v2545_v25  ;;  %v2446_v48 = vmax.f32 %v2070_v27, 0.0 }
 0x334   :  { %v1810_v29 = vpop.f32.mrf.mxu2 }
 0x335   :  { %2946 = vst.msk [vmem:[%s6363_s3 + $0x2d4] sm:$0xf] %vm2764_vm0, %v2745_v28  ;;  %v2646_v30 = vpack.c.bf16 %v2446_v48, %v2446_v48  ;;  %v1811_v31 = vadd.f32 %v5908_v60, %v1810_v29  ;;  %v2319_v32 = vpop.f32.mrf.mxu3 }
 0x336   :  { %v1562_v33 = vpop.f32.mrf.mxu0 }
 0x337   :  { %2847 = vst.msk [vmem:[%s6363_s3 + $0x148] sm:$0xf] %vm2764_vm0, %v2646_v30  ;;  %v2320_v34 = vadd.f32 %v2319_v32, %v1811_v31  ;;  %v1563_v35 = vadd.f32 %v5908_v60, %v1562_v33  ;;  %v2071_v36 = vpop.f32.mrf.mxu1 }
 0x339   :  { %v2546_v37 = vmax.f32 %v2320_v34, 0.0  ;;  %v2072_v38 = vadd.f32 %v2071_v36, %v1563_v35 }
 0x33b   :  { %v2746_v39 = vpack.c.bf16 %v2546_v37, %v2546_v37  ;;  %v2447_v40 = vmax.f32 %v2072_v38, 0.0 }
 0x33c   :  { %v1812_v41 = vpop.f32.mrf.mxu2 }
 0x33d   :  { %2947 = vst.msk [vmem:[%s6363_s3 + $0x2d8] sm:$0xf] %vm2764_vm0, %v2746_v39  ;;  %v2647_v42 = vpack.c.bf16 %v2447_v40, %v2447_v40  ;;  %v1813_v43 = vadd.f32 %v5908_v60, %v1812_v41  ;;  %v2321_v44 = vpop.f32.mrf.mxu3 }
 0x33e   :  { %v1565_v45 = vpop.f32.mrf.mxu0 }
 0x33f   :  { %2848 = vst.msk [vmem:[%s6363_s3 + $0x14c] sm:$0xf] %vm2764_vm0, %v2647_v42  ;;  %v2322_v46 = vadd.f32 %v2321_v44, %v1813_v43  ;;  %v1566_v47 = vadd.f32 %v5908_v60, %v1565_v45  ;;  %v2074_v49 = vpop.f32.mrf.mxu1 }
 0x341   :  { %v2547_v50 = vmax.f32 %v2322_v46, 0.0  ;;  %v2075_v51 = vadd.f32 %v2074_v49, %v1566_v47 }
 0x343   :  { %v2747_v52 = vpack.c.bf16 %v2547_v50, %v2547_v50  ;;  %v2448_v53 = vmax.f32 %v2075_v51, 0.0 }
 0x344   :  { %v1815_v54 = vpop.f32.mrf.mxu2 }
 0x345   :  { %2948 = vst.msk [vmem:[%s6363_s3 + $0x2dc] sm:$0xf] %vm2764_vm0, %v2747_v52  ;;  %v2648_v55 = vpack.c.bf16 %v2448_v53, %v2448_v53  ;;  %v1816_v56 = vadd.f32 %v5908_v60, %v1815_v54  ;;  %v2324_v57 = vpop.f32.mrf.mxu3 }
 0x346   :  { %v1567_v58 = vpop.f32.mrf.mxu0 }
 0x347   :  { %2849 = vst.msk [vmem:[%s6363_s3 + $0x150] sm:$0xf] %vm2764_vm0, %v2648_v55  ;;  %v2325_v59 = vadd.f32 %v2324_v57, %v1816_v56  ;;  %v1568_v61 = vadd.f32 %v5908_v60, %v1567_v58  ;;  %v2076_v26 = vpop.f32.mrf.mxu1 }
 0x349   :  { %v2548_v62 = vmax.f32 %v2325_v59, 0.0  ;;  %v2077_v63 = vadd.f32 %v2076_v26, %v1568_v61 }
 0x34b   :  { %v2748_v0 = vpack.c.bf16 %v2548_v62, %v2548_v62  ;;  %v2449_v1 = vmax.f32 %v2077_v63, 0.0 }
 0x34c   :  { %v1817_v2 = vpop.f32.mrf.mxu2 }
 0x34d   :  { %2949 = vst.msk [vmem:[%s6363_s3 + $0x2e0] sm:$0xf] %vm2764_vm0, %v2748_v0  ;;  %v2649_v3 = vpack.c.bf16 %v2449_v1, %v2449_v1  ;;  %v1818_v4 = vadd.f32 %v5908_v60, %v1817_v2  ;;  %v2326_v5 = vpop.f32.mrf.mxu3 }
 0x34e   :  { %v1570_v6 = vpop.f32.mrf.mxu0 }
 0x34f   :  { %2850 = vst.msk [vmem:[%s6363_s3 + $0x154] sm:$0xf] %vm2764_vm0, %v2649_v3  ;;  %v2327_v7 = vadd.f32 %v2326_v5, %v1818_v4  ;;  %v1571_v8 = vadd.f32 %v5908_v60, %v1570_v6  ;;  %v2079_v9 = vpop.f32.mrf.mxu1 }
 0x351   :  { %v2549_v10 = vmax.f32 %v2327_v7, 0.0  ;;  %v2080_v11 = vadd.f32 %v2079_v9, %v1571_v8 }
 0x353   :  { %v2749_v12 = vpack.c.bf16 %v2549_v10, %v2549_v10  ;;  %v2450_v13 = vmax.f32 %v2080_v11, 0.0 }
 0x354   :  { %v1820_v14 = vpop.f32.mrf.mxu2 }
 0x355   :  { %2950 = vst.msk [vmem:[%s6363_s3 + $0x2e4] sm:$0xf] %vm2764_vm0, %v2749_v12  ;;  %v2650_v15 = vpack.c.bf16 %v2450_v13, %v2450_v13  ;;  %v1821_v16 = vadd.f32 %v5908_v60, %v1820_v14  ;;  %v2329_v17 = vpop.f32.mrf.mxu3 }
 0x356   :  { %v1572_v18 = vpop.f32.mrf.mxu0 }
 0x357   :  { %2851 = vst.msk [vmem:[%s6363_s3 + $0x158] sm:$0xf] %vm2764_vm0, %v2650_v15  ;;  %v2330_v19 = vadd.f32 %v2329_v17, %v1821_v16  ;;  %v1573_v20 = vadd.f32 %v5908_v60, %v1572_v18  ;;  %v2081_v21 = vpop.f32.mrf.mxu1 }
 0x359   :  { %v2550_v22 = vmax.f32 %v2330_v19, 0.0  ;;  %v2082_v23 = vadd.f32 %v2081_v21, %v1573_v20 }
 0x35b   :  { %v2750_v24 = vpack.c.bf16 %v2550_v22, %v2550_v22  ;;  %v2451_v25 = vmax.f32 %v2082_v23, 0.0 }
 0x35c   :  { %v1822_v27 = vpop.f32.mrf.mxu2 }
 0x35d   :  { %2951 = vst.msk [vmem:[%s6363_s3 + $0x2e8] sm:$0xf] %vm2764_vm0, %v2750_v24  ;;  %v2651_v28 = vpack.c.bf16 %v2451_v25, %v2451_v25  ;;  %v1823_v48 = vadd.f32 %v5908_v60, %v1822_v27  ;;  %v2331_v29 = vpop.f32.mrf.mxu3 }
 0x35e   :  { %v1575_v30 = vpop.f32.mrf.mxu0 }
 0x35f   :  { %2852 = vst.msk [vmem:[%s6363_s3 + $0x15c] sm:$0xf] %vm2764_vm0, %v2651_v28  ;;  %v2332_v31 = vadd.f32 %v2331_v29, %v1823_v48  ;;  %v1576_v32 = vadd.f32 %v5908_v60, %v1575_v30  ;;  %v2084_v33 = vpop.f32.mrf.mxu1 }
 0x361   :  { %v2551_v34 = vmax.f32 %v2332_v31, 0.0  ;;  %v2085_v35 = vadd.f32 %v2084_v33, %v1576_v32 }
 0x363   :  { %v2751_v36 = vpack.c.bf16 %v2551_v34, %v2551_v34  ;;  %v2452_v37 = vmax.f32 %v2085_v35, 0.0 }
 0x364   :  { %v1825_v38 = vpop.f32.mrf.mxu2 }
 0x365   :  { %2952 = vst.msk [vmem:[%s6363_s3 + $0x2ec] sm:$0xf] %vm2764_vm0, %v2751_v36  ;;  %v2652_v39 = vpack.c.bf16 %v2452_v37, %v2452_v37  ;;  %v1826_v40 = vadd.f32 %v5908_v60, %v1825_v38  ;;  %v2334_v41 = vpop.f32.mrf.mxu3 }
 0x366   :  { %v1577_v42 = vpop.f32.mrf.mxu0 }
 0x367   :  { %2853 = vst.msk [vmem:[%s6363_s3 + $0x160] sm:$0xf] %vm2764_vm0, %v2652_v39  ;;  %v2335_v43 = vadd.f32 %v2334_v41, %v1826_v40  ;;  %v1578_v44 = vadd.f32 %v5908_v60, %v1577_v42  ;;  %v2086_v45 = vpop.f32.mrf.mxu1 }
 0x369   :  { %v2552_v46 = vmax.f32 %v2335_v43, 0.0  ;;  %v2087_v47 = vadd.f32 %v2086_v45, %v1578_v44 }
 0x36b   :  { %v2752_v49 = vpack.c.bf16 %v2552_v46, %v2552_v46  ;;  %v2453_v50 = vmax.f32 %v2087_v47, 0.0 }
 0x36c   :  { %v1827_v51 = vpop.f32.mrf.mxu2 }
 0x36d   :  { %2953 = vst.msk [vmem:[%s6363_s3 + $0x2f0] sm:$0xf] %vm2764_vm0, %v2752_v49  ;;  %v2653_v52 = vpack.c.bf16 %v2453_v50, %v2453_v50  ;;  %v1828_v53 = vadd.f32 %v5908_v60, %v1827_v51  ;;  %v2336_v54 = vpop.f32.mrf.mxu3 }
 0x36e   :  { %v1580_v55 = vpop.f32.mrf.mxu0 }
 0x36f   :  { %2854 = vst.msk [vmem:[%s6363_s3 + $0x164] sm:$0xf] %vm2764_vm0, %v2653_v52  ;;  %v2337_v56 = vadd.f32 %v2336_v54, %v1828_v53  ;;  %v1581_v57 = vadd.f32 %v5908_v60, %v1580_v55  ;;  %v2089_v58 = vpop.f32.mrf.mxu1 }
 0x371   :  { %v2553_v59 = vmax.f32 %v2337_v56, 0.0  ;;  %v2090_v61 = vadd.f32 %v2089_v58, %v1581_v57 }
 0x373   :  { %v2753_v26 = vpack.c.bf16 %v2553_v59, %v2553_v59  ;;  %v2454_v62 = vmax.f32 %v2090_v61, 0.0 }
 0x374   :  { %v1830_v63 = vpop.f32.mrf.mxu2 }
 0x375   :  { %2954 = vst.msk [vmem:[%s6363_s3 + $0x2f4] sm:$0xf] %vm2764_vm0, %v2753_v26  ;;  %v2654_v0 = vpack.c.bf16 %v2454_v62, %v2454_v62  ;;  %v1831_v1 = vadd.f32 %v5908_v60, %v1830_v63  ;;  %v2339_v2 = vpop.f32.mrf.mxu3 }
 0x376   :  { %v1582_v3 = vpop.f32.mrf.mxu0 }
 0x377   :  { %2855 = vst.msk [vmem:[%s6363_s3 + $0x168] sm:$0xf] %vm2764_vm0, %v2654_v0  ;;  %v2340_v4 = vadd.f32 %v2339_v2, %v1831_v1  ;;  %v1583_v5 = vadd.f32 %v5908_v60, %v1582_v3  ;;  %v2091_v6 = vpop.f32.mrf.mxu1 }
 0x379   :  { %v2554_v7 = vmax.f32 %v2340_v4, 0.0  ;;  %v2092_v8 = vadd.f32 %v2091_v6, %v1583_v5 }
 0x37b   :  { %v2754_v9 = vpack.c.bf16 %v2554_v7, %v2554_v7  ;;  %v2455_v10 = vmax.f32 %v2092_v8, 0.0 }
 0x37c   :  { %v1832_v11 = vpop.f32.mrf.mxu2 }
 0x37d   :  { %2955 = vst.msk [vmem:[%s6363_s3 + $0x2f8] sm:$0xf] %vm2764_vm0, %v2754_v9  ;;  %v2655_v12 = vpack.c.bf16 %v2455_v10, %v2455_v10  ;;  %v1833_v13 = vadd.f32 %v5908_v60, %v1832_v11  ;;  %v2341_v14 = vpop.f32.mrf.mxu3 }
 0x37e   :  { %v1585_v15 = vpop.f32.mrf.mxu0 }
 0x37f   :  { %2856 = vst.msk [vmem:[%s6363_s3 + $0x16c] sm:$0xf] %vm2764_vm0, %v2655_v12  ;;  %v2342_v16 = vadd.f32 %v2341_v14, %v1833_v13  ;;  %v1586_v17 = vadd.f32 %v5908_v60, %v1585_v15  ;;  %v2094_v18 = vpop.f32.mrf.mxu1 }
 0x381   :  { %v2555_v19 = vmax.f32 %v2342_v16, 0.0  ;;  %v2095_v20 = vadd.f32 %v2094_v18, %v1586_v17 }
 0x383   :  { %v2755_v21 = vpack.c.bf16 %v2555_v19, %v2555_v19  ;;  %v2456_v22 = vmax.f32 %v2095_v20, 0.0 }
 0x384   :  { %v1835_v23 = vpop.f32.mrf.mxu2 }
 0x385   :  { %2956 = vst.msk [vmem:[%s6363_s3 + $0x2fc] sm:$0xf] %vm2764_vm0, %v2755_v21  ;;  %v2656_v24 = vpack.c.bf16 %v2456_v22, %v2456_v22  ;;  %v1836_v25 = vadd.f32 %v5908_v60, %v1835_v23  ;;  %v2344_v27 = vpop.f32.mrf.mxu3 }
 0x386   :  { %v1587_v28 = vpop.f32.mrf.mxu0 }
 0x387   :  { %2857 = vst.msk [vmem:[%s6363_s3 + $0x170] sm:$0xf] %vm2764_vm0, %v2656_v24  ;;  %v2345_v48 = vadd.f32 %v2344_v27, %v1836_v25  ;;  %v1588_v29 = vadd.f32 %v5908_v60, %v1587_v28  ;;  %v2096_v30 = vpop.f32.mrf.mxu1 }
 0x389   :  { %v2556_v31 = vmax.f32 %v2345_v48, 0.0  ;;  %v2097_v32 = vadd.f32 %v2096_v30, %v1588_v29 }
 0x38b   :  { %v2756_v33 = vpack.c.bf16 %v2556_v31, %v2556_v31  ;;  %v2457_v34 = vmax.f32 %v2097_v32, 0.0 }
 0x38c   :  { %v1837_v35 = vpop.f32.mrf.mxu2 }
 0x38d   :  { %2957 = vst.msk [vmem:[%s6363_s3 + $0x300] sm:$0xf] %vm2764_vm0, %v2756_v33  ;;  %v2657_v36 = vpack.c.bf16 %v2457_v34, %v2457_v34  ;;  %v1838_v37 = vadd.f32 %v5908_v60, %v1837_v35  ;;  %v2346_v38 = vpop.f32.mrf.mxu3 }
 0x38e   :  { %v1590_v39 = vpop.f32.mrf.mxu0 }
 0x38f   :  { %2858 = vst.msk [vmem:[%s6363_s3 + $0x174] sm:$0xf] %vm2764_vm0, %v2657_v36  ;;  %v2347_v40 = vadd.f32 %v2346_v38, %v1838_v37  ;;  %v1591_v41 = vadd.f32 %v5908_v60, %v1590_v39  ;;  %v2099_v42 = vpop.f32.mrf.mxu1 }
 0x391   :  { %v2557_v43 = vmax.f32 %v2347_v40, 0.0  ;;  %v2100_v44 = vadd.f32 %v2099_v42, %v1591_v41 }
 0x393   :  { %v2757_v45 = vpack.c.bf16 %v2557_v43, %v2557_v43  ;;  %v2458_v46 = vmax.f32 %v2100_v44, 0.0 }
 0x394   :  { %v1840_v47 = vpop.f32.mrf.mxu2 }
 0x395   :  { %2958 = vst.msk [vmem:[%s6363_s3 + $0x304] sm:$0xf] %vm2764_vm0, %v2757_v45  ;;  %v2658_v49 = vpack.c.bf16 %v2458_v46, %v2458_v46  ;;  %v1841_v50 = vadd.f32 %v5908_v60, %v1840_v47  ;;  %v2349_v51 = vpop.f32.mrf.mxu3  ;;  %v4069_v46 = vld [vmem:[%s6361_s2] ss:$0 sm:$0xff] }
 0x396   :  { %v1592_v52 = vpop.f32.mrf.mxu0 }
 0x397   :  { %2859 = vst.msk [vmem:[%s6363_s3 + $0x178] sm:$0xf] %vm2764_vm0, %v2658_v49  ;;  %v2350_v53 = vadd.f32 %v2349_v51, %v1841_v50  ;;  %v1593_v54 = vadd.f32 %v5908_v60, %v1592_v52  ;;  %v2101_v55 = vpop.f32.mrf.mxu1 }
 0x399   :  { %v2558_v56 = vmax.f32 %v2350_v53, 0.0  ;;  %v2102_v57 = vadd.f32 %v2101_v55, %v1593_v54 }
 0x39b   :  { %v2758_v58 = vpack.c.bf16 %v2558_v56, %v2558_v56  ;;  %v2459_v59 = vmax.f32 %v2102_v57, 0.0 }
 0x39c   :  { %v1842_v61 = vpop.f32.mrf.mxu2 }
 0x39d   :  { %2959 = vst.msk [vmem:[%s6363_s3 + $0x308] sm:$0xf] %vm2764_vm0, %v2758_v58  ;;  %v2659_v26 = vpack.c.bf16 %v2459_v59, %v2459_v59  ;;  %v1843_v62 = vadd.f32 %v5908_v60, %v1842_v61  ;;  %v2351_v63 = vpop.f32.mrf.mxu3 }
 0x39e   :  { %v1595_v0 = vpop.f32.mrf.mxu0 }
 0x39f   :  { %2860 = vst.msk [vmem:[%s6363_s3 + $0x17c] sm:$0xf] %vm2764_vm0, %v2659_v26  ;;  %v2352_v1 = vadd.f32 %v2351_v63, %v1843_v62  ;;  %v1596_v2 = vadd.f32 %v5908_v60, %v1595_v0  ;;  %v2104_v3 = vpop.f32.mrf.mxu1 }
 0x3a1   :  { %v2559_v4 = vmax.f32 %v2352_v1, 0.0  ;;  %v2105_v5 = vadd.f32 %v2104_v3, %v1596_v2 }
 0x3a3   :  { %v2759_v6 = vpack.c.bf16 %v2559_v4, %v2559_v4  ;;  %v2460_v7 = vmax.f32 %v2105_v5, 0.0 }
 0x3a4   :  { %v1845_v8 = vpop.f32.mrf.mxu2 }
 0x3a5   :  { %2960 = vst.msk [vmem:[%s6363_s3 + $0x30c] sm:$0xf] %vm2764_vm0, %v2759_v6  ;;  %v2660_v9 = vpack.c.bf16 %v2460_v7, %v2460_v7  ;;  %v1846_v10 = vadd.f32 %v5908_v60, %v1845_v8  ;;  %v2354_v11 = vpop.f32.mrf.mxu3 }
 0x3a6   :  { %v1597_v12 = vpop.f32.mrf.mxu0 }
 0x3a7   :  { %2861 = vst.msk [vmem:[%s6363_s3 + $0x180] sm:$0xf] %vm2764_vm0, %v2660_v9  ;;  %v2355_v13 = vadd.f32 %v2354_v11, %v1846_v10  ;;  %v1598_v14 = vadd.f32 %v5908_v60, %v1597_v12  ;;  %v2106_v15 = vpop.f32.mrf.mxu1 }
 0x3a9   :  { %v2560_v16 = vmax.f32 %v2355_v13, 0.0  ;;  %v2107_v17 = vadd.f32 %v2106_v15, %v1598_v14 }
 0x3ab   :  { %v2760_v18 = vpack.c.bf16 %v2560_v16, %v2560_v16  ;;  %v2461_v19 = vmax.f32 %v2107_v17, 0.0 }
 0x3ac   :  { %v1847_v20 = vpop.f32.mrf.mxu2 }
 0x3ad   :  { %2961 = vst.msk [vmem:[%s6363_s3 + $0x310] sm:$0xf] %vm2764_vm0, %v2760_v18  ;;  %v2661_v21 = vpack.c.bf16 %v2461_v19, %v2461_v19  ;;  %v1848_v22 = vadd.f32 %v5908_v60, %v1847_v20  ;;  %v2356_v23 = vpop.f32.mrf.mxu3 }
 0x3ae   :  { %v1600_v24 = vpop.f32.mrf.mxu0 }
 0x3af   :  { %2862 = vst.msk [vmem:[%s6363_s3 + $0x184] sm:$0xf] %vm2764_vm0, %v2661_v21  ;;  %v2357_v25 = vadd.f32 %v2356_v23, %v1848_v22  ;;  %v1601_v27 = vadd.f32 %v5908_v60, %v1600_v24  ;;  %v2109_v28 = vpop.f32.mrf.mxu1 }
 0x3b1   :  { %v2561_v48 = vmax.f32 %v2357_v25, 0.0  ;;  %v2110_v29 = vadd.f32 %v2109_v28, %v1601_v27 }
 0x3b3   :  { %v2761_v30 = vpack.c.bf16 %v2561_v48, %v2561_v48  ;;  %v2462_v31 = vmax.f32 %v2110_v29, 0.0 }
 0x3b4   :  { %v1850_v32 = vpop.f32.mrf.mxu2 }
 0x3b5   :  { %2962 = vst.msk [vmem:[%s6363_s3 + $0x314] sm:$0xf] %vm2764_vm0, %v2761_v30  ;;  %v2662_v33 = vpack.c.bf16 %v2462_v31, %v2462_v31  ;;  %v1851_v34 = vadd.f32 %v5908_v60, %v1850_v32  ;;  %v2359_v35 = vpop.f32.mrf.mxu3 }
 0x3b6   :  { %v1602_v36 = vpop.f32.mrf.mxu0 }
 0x3b7   :  { %2863 = vst.msk [vmem:[%s6363_s3 + $0x188] sm:$0xf] %vm2764_vm0, %v2662_v33  ;;  %v2360_v37 = vadd.f32 %v2359_v35, %v1851_v34  ;;  %v1603_v38 = vadd.f32 %v5908_v60, %v1602_v36  ;;  %v2111_v39 = vpop.f32.mrf.mxu1 }
 0x3b9   :  { %v2562_v40 = vmax.f32 %v2360_v37, 0.0  ;;  %v2112_v41 = vadd.f32 %v2111_v39, %v1603_v38 }
 0x3bb   :  { %v2762_v42 = vpack.c.bf16 %v2562_v40, %v2562_v40  ;;  %v2463_v43 = vmax.f32 %v2112_v41, 0.0 }
 0x3bc   :  { %v1852_v44 = vpop.f32.mrf.mxu2 }
 0x3bd   :  { %2963 = vst.msk [vmem:[%s6363_s3 + $0x318] sm:$0xf] %vm2764_vm0, %v2762_v42  ;;  %v2663_v45 = vpack.c.bf16 %v2463_v43, %v2463_v43  ;;  %v1853_v47 = vadd.f32 %v4069_v46, %v1852_v44  ;;  %v2361_v49 = vpop.f32.mrf.mxu3 }
 0x3bf   :  { %2864 = vst.msk [vmem:[%s6363_s3 + $0x18c] sm:$0xf] %vm2764_vm0, %v2663_v45  ;;  %v2362_v60 = vadd.f32 %v2361_v49, %v1853_v47 }
 0x3c1   :  { %v2563_v50 = vmax.f32 %v2362_v60, 0.0 }
 0x3c3   :  { %v2763_v51 = vpack.c.bf16 %v2563_v50, %v2563_v50 }
 0x3c5   :  { %2964 = vst.msk [vmem:[%s6363_s3 + $0x31c] sm:$0xf] %vm2764_vm0, %v2763_v51 }

// kernel: _lambda_.5
= control target key start
LH: loop header
LB: loop body
LE: loop exit
PB: predicated region body
PF: predicated region fallthrough
CT: control target
= control target key end

     0   :  { %vm1304_vm0 = vcmask 519168   ;;  %vm1345_vm1 = vcmask 517120   ;;  %s2729_s1 = inlined_call_operand.vmem [shape: bf16[512,64], index: 1, kind: input, shape index: {}]   ;;  %s2730_s2 = inlined_call_operand.vmem [shape: f32[1,64], index: 2, kind: input, shape index: {}]   ;;  %s2731_s0 = inlined_call_operand.vmem [shape: bf16[324,512], index: 0, kind: input, shape index: {}]   ;;  %s2732_s3 = inlined_call_operand.vmem [shape: bf16[324,64], index: 3, kind: output, shape index: {}]  }
   0x1   :  { %v1886_v0 = vld [vmem:[%s2729_s1 + $0x38] sm:$0xff]  ;;  %v1885_v4 = vld [vmem:[%s2729_s1 + $0x30] sm:$0xff]  ;;  %v1884_v8 = vld [vmem:[%s2729_s1 + $0x28] sm:$0xff] }
   0x2   :  { %v1894_v1 = vld [vmem:[%s2729_s1 + $0x78] sm:$0xff]  ;;  %770 = vmatpush.bf16.msra.mxu0 %v1886_v0  ;;  %v1893_v5 = vld [vmem:[%s2729_s1 + $0x70] sm:$0xff]  ;;  %v1892_v9 = vld [vmem:[%s2729_s1 + $0x68] sm:$0xff] }
   0x3   :  { %v1902_v2 = vld [vmem:[%s2729_s1 + $0xb8] sm:$0xff]  ;;  %883 = vmatpush.bf16.msra.mxu1 %v1894_v1  ;;  %v1901_v6 = vld [vmem:[%s2729_s1 + $0xb0] sm:$0xff]  ;;  %v1900_v10 = vld [vmem:[%s2729_s1 + $0xa8] sm:$0xff] }
   0x4   :  { %v1910_v3 = vld [vmem:[%s2729_s1 + $0xf8] sm:$0xff]  ;;  %996 = vmatpush.bf16.msra.mxu2 %v1902_v2  ;;  %v1909_v7 = vld [vmem:[%s2729_s1 + $0xf0] sm:$0xff]  ;;  %v1908_v11 = vld [vmem:[%s2729_s1 + $0xe8] sm:$0xff] }
   0x5   :  { %1109 = vmatpush.bf16.msra.mxu3 %v1910_v3  ;;  %v1883_v12 = vld [vmem:[%s2729_s1 + $0x20] sm:$0xff]  ;;  %v1882_v16 = vld [vmem:[%s2729_s1 + $0x18] sm:$0xff]  ;;  %v1881_v20 = vld [vmem:[%s2729_s1 + $0x10] sm:$0xff] }
   0x6   :  { %771 = vmatpush.bf16.msra.mxu0 %v1885_v4  ;;  %v1891_v13 = vld [vmem:[%s2729_s1 + $0x60] sm:$0xff]  ;;  %v1890_v17 = vld [vmem:[%s2729_s1 + $0x58] sm:$0xff]  ;;  %v1889_v21 = vld [vmem:[%s2729_s1 + $0x50] sm:$0xff] }
   0x7   :  { %884 = vmatpush.bf16.msra.mxu1 %v1893_v5  ;;  %v1899_v14 = vld [vmem:[%s2729_s1 + $0xa0] sm:$0xff]  ;;  %v1898_v18 = vld [vmem:[%s2729_s1 + $0x98] sm:$0xff]  ;;  %v1897_v22 = vld [vmem:[%s2729_s1 + $0x90] sm:$0xff] }
   0x8   :  { %997 = vmatpush.bf16.msra.mxu2 %v1901_v6  ;;  %v1907_v15 = vld [vmem:[%s2729_s1 + $0xe0] sm:$0xff]  ;;  %v1906_v19 = vld [vmem:[%s2729_s1 + $0xd8] sm:$0xff]  ;;  %v1905_v23 = vld [vmem:[%s2729_s1 + $0xd0] sm:$0xff] }
   0x9   :  { %1110 = vmatpush.bf16.msra.mxu3 %v1909_v7  ;;  %v1880_v24 = vld [vmem:[%s2729_s1 + $0x8] sm:$0xff]  ;;  %v1879_v28 = vld [vmem:[%s2729_s1] sm:$0xff]  ;;  %v1801_v33 = vld [vmem:[%s2731_s0 + $0xc] sm:$0xf0] }
   0xa   :  { %772 = vmatpush.bf16.msra.mxu0 %v1884_v8  ;;  %v1888_v25 = vld [vmem:[%s2729_s1 + $0x48] sm:$0xff]  ;;  %v1887_v29 = vld [vmem:[%s2729_s1 + $0x40] sm:$0xff]  ;;  %v1355_v35 = vld [vmem:[%s2731_s0 + $0x10] sm:$0xf0] }
   0xb   :  { %885 = vmatpush.bf16.msra.mxu1 %v1892_v9  ;;  %v1896_v26 = vld [vmem:[%s2729_s1 + $0x88] sm:$0xff]  ;;  %v1895_v30 = vld [vmem:[%s2729_s1 + $0x80] sm:$0xff]  ;;  %v1802_v37 = vld [vmem:[%s2731_s0 + $0x14] sm:$0xf0] }
   0xc   :  { %998 = vmatpush.bf16.msra.mxu2 %v1900_v10  ;;  %v1904_v27 = vld [vmem:[%s2729_s1 + $0xc8] sm:$0xff]  ;;  %v1903_v31 = vld [vmem:[%s2729_s1 + $0xc0] sm:$0xff]  ;;  %v1363_v39 = vld [vmem:[%s2731_s0 + $0x18] sm:$0xf0] }
   0xd   :  { %1111 = vmatpush.bf16.msra.mxu3 %v1908_v11  ;;  %v1353_v32 = vld [vmem:[%s2731_s0] sm:$0xf]  ;;  %v1799_v34 = vld [vmem:[%s2731_s0 + $0x4] sm:$0xf]  ;;  %v1361_v36 = vld [vmem:[%s2731_s0 + $0x8] sm:$0xf] }
   0xe   :  { %773 = vmatpush.bf16.msra.mxu0 %v1883_v12  ;;  %v1800_v38 = vld [vmem:[%s2731_s0 + $0xc] sm:$0xf]  ;;  %v1354_v40 = vor.u32 %v1801_v33, %v1353_v32  ;;  %v1358_v41 = vor.u32 %v1799_v34, %v1355_v35  ;;  %v1362_v42 = vor.u32 %v1802_v37, %v1361_v36  ;;  %v1369_v44 = vld [vmem:[%s2731_s0 + $0x20] sm:$0xf]  ;;  %v1805_v45 = vld [vmem:[%s2731_s0 + $0x2c] sm:$0xf0] }
   0xf   :  { %886 = vmatpush.bf16.msra.mxu1 %v1891_v13  ;;  %v1366_v43 = vor.u32 %v1800_v38, %v1363_v39  ;;  %v1803_v46 = vld [vmem:[%s2731_s0 + $0x24] sm:$0xf]  ;;  %v1371_v47 = vld [vmem:[%s2731_s0 + $0x30] sm:$0xf0]  ;;  %v1377_v48 = vld [vmem:[%s2731_s0 + $0x28] sm:$0xf]  ;;  %v1370_v52 = vor.u32 %v1805_v45, %v1369_v44 }
  0x10   :  { %999 = vmatpush.bf16.msra.mxu2 %v1899_v14  ;;  %v1806_v49 = vld [vmem:[%s2731_s0 + $0x34] sm:$0xf0]  ;;  %v1804_v50 = vld [vmem:[%s2731_s0 + $0x2c] sm:$0xf]  ;;  %v1379_v51 = vld [vmem:[%s2731_s0 + $0x38] sm:$0xf0]  ;;  %v1374_v53 = vor.u32 %v1803_v46, %v1371_v47 }
  0x11   :  { %1112 = vmatpush.bf16.msra.mxu3 %v1907_v15  ;;  %v1378_v54 = vor.u32 %v1806_v49, %v1377_v48  ;;  %v1382_v55 = vor.u32 %v1804_v50, %v1379_v51  ;;  %v1385_v56 = vld [vmem:[%s2731_s0 + $0x40] sm:$0xf]  ;;  %v1809_v57 = vld [vmem:[%s2731_s0 + $0x4c] sm:$0xf0]  ;;  %v1807_v58 = vld [vmem:[%s2731_s0 + $0x44] sm:$0xf] }
  0x12   :  { %774 = vmatpush.bf16.msra.mxu0 %v1882_v16  ;;  %v1387_v59 = vld [vmem:[%s2731_s0 + $0x50] sm:$0xf0]  ;;  %v1393_v60 = vld [vmem:[%s2731_s0 + $0x48] sm:$0xf]  ;;  %v1810_v61 = vld [vmem:[%s2731_s0 + $0x54] sm:$0xf0]  ;;  %v1386_v0 = vor.u32 %v1809_v57, %v1385_v56 }
  0x13   :  { %887 = vmatpush.bf16.msra.mxu1 %v1890_v17  ;;  %v1808_v62 = vld [vmem:[%s2731_s0 + $0x4c] sm:$0xf]  ;;  %v1395_v63 = vld [vmem:[%s2731_s0 + $0x58] sm:$0xf0]  ;;  %v1390_v1 = vor.u32 %v1807_v58, %v1387_v59  ;;  %v1394_v2 = vor.u32 %v1810_v61, %v1393_v60  ;;  %v1401_v4 = vld [vmem:[%s2731_s0 + $0x60] sm:$0xf] }
  0x14   :  { %1000 = vmatpush.bf16.msra.mxu2 %v1898_v18  ;;  %v1398_v3 = vor.u32 %v1808_v62, %v1395_v63  ;;  %v1813_v5 = vld [vmem:[%s2731_s0 + $0x6c] sm:$0xf0]  ;;  %v1811_v6 = vld [vmem:[%s2731_s0 + $0x64] sm:$0xf]  ;;  %v1403_v7 = vld [vmem:[%s2731_s0 + $0x70] sm:$0xf0] }
  0x15   :  { %1113 = vmatpush.bf16.msra.mxu3 %v1906_v19  ;;  %v1409_v8 = vld [vmem:[%s2731_s0 + $0x68] sm:$0xf]  ;;  %v1814_v9 = vld [vmem:[%s2731_s0 + $0x74] sm:$0xf0]  ;;  %v1812_v10 = vld [vmem:[%s2731_s0 + $0x6c] sm:$0xf]  ;;  %v1402_v12 = vor.u32 %v1813_v5, %v1401_v4  ;;  %v1406_v13 = vor.u32 %v1811_v6, %v1403_v7 }
  0x16   :  { %775 = vmatpush.bf16.msra.mxu0 %v1881_v20  ;;  %v1411_v11 = vld [vmem:[%s2731_s0 + $0x78] sm:$0xf0]  ;;  %v1410_v14 = vor.u32 %v1814_v9, %v1409_v8  ;;  %v1417_v16 = vld [vmem:[%s2731_s0 + $0x80] sm:$0xf]  ;;  %v1817_v17 = vld [vmem:[%s2731_s0 + $0x8c] sm:$0xf0] }
  0x17   :  { %888 = vmatpush.bf16.msra.mxu1 %v1889_v21  ;;  %v1414_v15 = vor.u32 %v1812_v10, %v1411_v11  ;;  %v1815_v18 = vld [vmem:[%s2731_s0 + $0x84] sm:$0xf]  ;;  %v1419_v19 = vld [vmem:[%s2731_s0 + $0x90] sm:$0xf0]  ;;  %v1425_v20 = vld [vmem:[%s2731_s0 + $0x88] sm:$0xf] }
  0x18   :  { %1001 = vmatpush.bf16.msra.mxu2 %v1897_v22  ;;  %v1818_v21 = vld [vmem:[%s2731_s0 + $0x94] sm:$0xf0]  ;;  %v1816_v22 = vld [vmem:[%s2731_s0 + $0x8c] sm:$0xf]  ;;  %v1441_v32 = vld [vmem:[%s2731_s0 + $0xa8] sm:$0xf] }
  0x19   :  { %1114 = vmatpush.bf16.msra.mxu3 %v1905_v23  ;;  %v1427_v23 = vld [vmem:[%s2731_s0 + $0x98] sm:$0xf0]  ;;  %v1822_v33 = vld [vmem:[%s2731_s0 + $0xb4] sm:$0xf0]  ;;  %v1820_v34 = vld [vmem:[%s2731_s0 + $0xac] sm:$0xf] }
  0x1a   :  { %776 = vmatpush.bf16.msra.mxu0 %v1880_v24  ;;  %v1418_v24 = vor.u32 %v1817_v17, %v1417_v16  ;;  %v1443_v35 = vld [vmem:[%s2731_s0 + $0xb8] sm:$0xf0]  ;;  %v1442_v38 = vor.u32 %v1822_v33, %v1441_v32  ;;  %v1457_v44 = vld [vmem:[%s2731_s0 + $0xc8] sm:$0xf]  ;;  %v1826_v45 = vld [vmem:[%s2731_s0 + $0xd4] sm:$0xf0] }
  0x1b   :  { %889 = vmatpush.bf16.msra.mxu1 %v1888_v25  ;;  %v1422_v25 = vor.u32 %v1815_v18, %v1419_v19  ;;  %v1446_v39 = vor.u32 %v1820_v34, %v1443_v35  ;;  %v1824_v46 = vld [vmem:[%s2731_s0 + $0xcc] sm:$0xf]  ;;  %v1459_v47 = vld [vmem:[%s2731_s0 + $0xd8] sm:$0xf0]  ;;  %v1458_v50 = vor.u32 %v1826_v45, %v1457_v44  ;;  %v1473_v56 = vld [vmem:[%s2731_s0 + $0xe8] sm:$0xf] }
  0x1c   :  { %1002 = vmatpush.bf16.msra.mxu2 %v1896_v26  ;;  %v1426_v26 = vor.u32 %v1818_v21, %v1425_v20  ;;  %v1462_v51 = vor.u32 %v1824_v46, %v1459_v47  ;;  %v1830_v57 = vld [vmem:[%s2731_s0 + $0xf4] sm:$0xf0]  ;;  %v1828_v58 = vld [vmem:[%s2731_s0 + $0xec] sm:$0xf]  ;;  %v1475_v59 = vld [vmem:[%s2731_s0 + $0xf8] sm:$0xf0] }
  0x1d   :  { %1115 = vmatpush.bf16.msra.mxu3 %v1904_v27  ;;  %v1430_v27 = vor.u32 %v1816_v22, %v1427_v23  ;;  %v1474_v62 = vor.u32 %v1830_v57, %v1473_v56  ;;  %v1478_v63 = vor.u32 %v1828_v58, %v1475_v59  ;;  %v1483_v4 = vld [vmem:[%s2731_s0 + $0x110] sm:$0xf0]  ;;  %v1489_v5 = vld [vmem:[%s2731_s0 + $0x108] sm:$0xf]  ;;  %v1834_v6 = vld [vmem:[%s2731_s0 + $0x114] sm:$0xf0] }
  0x1e   :  { %777 = vmatpush.bf16.msra.mxu0 %v1879_v28  ;;  %v1433_v28 = vld [vmem:[%s2731_s0 + $0xa0] sm:$0xf]  ;;  %v1832_v7 = vld [vmem:[%s2731_s0 + $0x10c] sm:$0xf]  ;;  %v1491_v8 = vld [vmem:[%s2731_s0 + $0x118] sm:$0xf0] }
  0x1f   :  { %890 = vmatpush.bf16.msra.mxu1 %v1887_v29  ;;  %v1821_v29 = vld [vmem:[%s2731_s0 + $0xac] sm:$0xf0]  ;;  %v1507_v32 = vld [vmem:[%s2731_s0 + $0x138] sm:$0xf0]  ;;  %v1513_v56 = vld [vmem:[%s2731_s0 + $0x140] sm:$0xf] }
  0x20   :  { %1003 = vmatpush.bf16.msra.mxu2 %v1895_v30  ;;  %v1819_v30 = vld [vmem:[%s2731_s0 + $0xa4] sm:$0xf]  ;;  %v1434_v36 = vor.u32 %v1821_v29, %v1433_v28  ;;  %v1499_v28 = vld [vmem:[%s2731_s0 + $0x130] sm:$0xf0]  ;;  %v1505_v29 = vld [vmem:[%s2731_s0 + $0x128] sm:$0xf] }
  0x21   :  { %1116 = vmatpush.bf16.msra.mxu3 %v1903_v31  ;;  %778 = vmatmul.bf16.vlgmr.msra.gmra.mxu0 %v1354_v40  ;;  %v1435_v31 = vld [vmem:[%s2731_s0 + $0xb0] sm:$0xf0]  ;;  %v1449_v40 = vld [vmem:[%s2731_s0 + $0xc0] sm:$0xf]  ;;  %v1841_v57 = vld [vmem:[%s2731_s0 + $0x14c] sm:$0xf0] }
  0x22   :  { %891 = vmatmul.bf16.vlgmr.msra.gmra.mxu1 %v1358_v41  ;;  %v1438_v37 = vor.u32 %v1819_v30, %v1435_v31  ;;  %v1825_v41 = vld [vmem:[%s2731_s0 + $0xcc] sm:$0xf0]  ;;  %v1838_v30 = vld [vmem:[%s2731_s0 + $0x134] sm:$0xf0]  ;;  %v1836_v31 = vld [vmem:[%s2731_s0 + $0x12c] sm:$0xf] }
  0x23   :  { %1004 = vmatmul.bf16.vlgmr.msra.gmra.mxu2 %v1362_v42  ;;  %v1823_v42 = vld [vmem:[%s2731_s0 + $0xc4] sm:$0xf]  ;;  %v1450_v48 = vor.u32 %v1825_v41, %v1449_v40 }
  0x24   :  { %1117 = vmatmul.bf16.vlgmr.msra.gmra.mxu3 %v1366_v43  ;;  %v1451_v43 = vld [vmem:[%s2731_s0 + $0xd0] sm:$0xf0]  ;;  %v1839_v58 = vld [vmem:[%s2731_s0 + $0x144] sm:$0xf] }
  0x25   :  { %v1454_v49 = vor.u32 %v1823_v42, %v1451_v43  ;;  %v1506_v42 = vor.u32 %v1838_v30, %v1505_v29  ;;  %v1510_v43 = vor.u32 %v1836_v31, %v1507_v32  ;;  %v1531_v29 = vld [vmem:[%s2731_s0 + $0x170] sm:$0xf0]  ;;  %v1537_v30 = vld [vmem:[%s2731_s0 + $0x168] sm:$0xf]  ;;  %v1846_v31 = vld [vmem:[%s2731_s0 + $0x174] sm:$0xf0] }
  0x26   :  { %v1844_v32 = vld [vmem:[%s2731_s0 + $0x16c] sm:$0xf] }
  0x31   :  { %783 = vmatmul.bf16.gmra.mxu0 %v1370_v52  ;;  %v1465_v52 = vld [vmem:[%s2731_s0 + $0xe0] sm:$0xf] }
  0x32   :  { %896 = vmatmul.bf16.gmra.mxu1 %v1374_v53  ;;  %v1829_v53 = vld [vmem:[%s2731_s0 + $0xec] sm:$0xf0] }
  0x33   :  { %1009 = vmatmul.bf16.gmra.mxu2 %v1378_v54  ;;  %v1827_v54 = vld [vmem:[%s2731_s0 + $0xe4] sm:$0xf]  ;;  %v1466_v60 = vor.u32 %v1829_v53, %v1465_v52 }
  0x34   :  { %1122 = vmatmul.bf16.gmra.mxu3 %v1382_v55  ;;  %v1467_v55 = vld [vmem:[%s2731_s0 + $0xf0] sm:$0xf0] }
  0x35   :  { %v1470_v61 = vor.u32 %v1827_v54, %v1467_v55 }
  0x41   :  { %788 = vmatmul.bf16.gmra.mxu0 %v1386_v0  ;;  %v2224_v0 = vld [vmem:[%s2730_s2] ss:$0 sm:$0xff] }
  0x42   :  { %901 = vmatmul.bf16.gmra.mxu1 %v1390_v1  ;;  %v1481_v1 = vld [vmem:[%s2731_s0 + $0x100] sm:$0xf] }
  0x43   :  { %1014 = vmatmul.bf16.gmra.mxu2 %v1394_v2  ;;  %v1833_v2 = vld [vmem:[%s2731_s0 + $0x10c] sm:$0xf0] }
  0x44   :  { %1127 = vmatmul.bf16.gmra.mxu3 %v1398_v3  ;;  %v1831_v3 = vld [vmem:[%s2731_s0 + $0x104] sm:$0xf]  ;;  %v1482_v9 = vor.u32 %v1833_v2, %v1481_v1  ;;  %v1523_v1 = vld [vmem:[%s2731_s0 + $0x158] sm:$0xf0] }
  0x45   :  { %v1486_v10 = vor.u32 %v1831_v3, %v1483_v4 }
  0x51   :  { %793 = vmatmul.bf16.gmra.mxu0 %v1402_v12 }
  0x52   :  { %906 = vmatmul.bf16.gmra.mxu1 %v1406_v13  ;;  %v1490_v13 = vor.u32 %v1834_v6, %v1489_v5  ;;  %v1514_v6 = vor.u32 %v1841_v57, %v1513_v56  ;;  %v1545_v57 = vld [vmem:[%s2731_s0 + $0x180] sm:$0xf] }
  0x53   :  { %1019 = vmatmul.bf16.gmra.mxu2 %v1410_v14  ;;  %v1494_v14 = vor.u32 %v1832_v7, %v1491_v8 }
  0x54   :  { %1132 = vmatmul.bf16.gmra.mxu3 %v1414_v15 }
  0x61   :  { %798 = vmatmul.bf16.gmra.mxu0 %v1418_v24  ;;  %v1497_v24 = vld [vmem:[%s2731_s0 + $0x120] sm:$0xf] }
  0x62   :  { %911 = vmatmul.bf16.gmra.mxu1 %v1422_v25  ;;  %v1837_v25 = vld [vmem:[%s2731_s0 + $0x12c] sm:$0xf0] }
  0x63   :  { %1024 = vmatmul.bf16.gmra.mxu2 %v1426_v26  ;;  %v1835_v26 = vld [vmem:[%s2731_s0 + $0x124] sm:$0xf] }
  0x64   :  { %1137 = vmatmul.bf16.gmra.mxu3 %v1430_v27 }
  0x71   :  { %803 = vmatmul.bf16.gmra.mxu0 %v1434_v36 }
  0x72   :  { %916 = vmatmul.bf16.gmra.mxu1 %v1438_v37  ;;  %v1498_v37 = vor.u32 %v1837_v25, %v1497_v24  ;;  %v1529_v25 = vld [vmem:[%s2731_s0 + $0x160] sm:$0xf] }
  0x73   :  { %1029 = vmatmul.bf16.gmra.mxu2 %v1442_v38  ;;  %v1502_v38 = vor.u32 %v1835_v26, %v1499_v28  ;;  %v1845_v26 = vld [vmem:[%s2731_s0 + $0x16c] sm:$0xf0] }
  0x74   :  { %1142 = vmatmul.bf16.gmra.mxu3 %v1446_v39 }
  0x81   :  { %808 = vmatmul.bf16.gmra.mxu0 %v1450_v48 }
  0x82   :  { %921 = vmatmul.bf16.gmra.mxu1 %v1454_v49 }
  0x83   :  { %1034 = vmatmul.bf16.gmra.mxu2 %v1458_v50 }
  0x84   :  { %1147 = vmatmul.bf16.gmra.mxu3 %v1462_v51 }
  0x91   :  { %813 = vmatmul.bf16.gmra.mxu0 %v1466_v60  ;;  %v1515_v60 = vld [vmem:[%s2731_s0 + $0x150] sm:$0xf0] }
  0x92   :  { %926 = vmatmul.bf16.gmra.mxu1 %v1470_v61  ;;  %v1521_v61 = vld [vmem:[%s2731_s0 + $0x148] sm:$0xf]  ;;  %v1518_v7 = vor.u32 %v1839_v58, %v1515_v60  ;;  %v1849_v58 = vld [vmem:[%s2731_s0 + $0x18c] sm:$0xf0] }
  0x93   :  { %1039 = vmatmul.bf16.gmra.mxu2 %v1474_v62  ;;  %v1842_v62 = vld [vmem:[%s2731_s0 + $0x154] sm:$0xf0] }
  0x94   :  { %1152 = vmatmul.bf16.gmra.mxu3 %v1478_v63  ;;  %v1840_v63 = vld [vmem:[%s2731_s0 + $0x14c] sm:$0xf] }
  0x9e   :  { %v779_v11 = vpop.f32.mrf.mxu0 }
  0x9f   :  { %v892_v12 = vpop.f32.mrf.mxu1  ;;  %v780_v15 = vadd.f32 %v2224_v0, %v779_v11  ;;  %v1522_v11 = vor.u32 %v1842_v62, %v1521_v61  ;;  %v1547_v61 = vld [vmem:[%s2731_s0 + $0x190] sm:$0xf0]  ;;  %v1553_v62 = vld [vmem:[%s2731_s0 + $0x188] sm:$0xf] }
  0xa1   :  { %818 = vmatmul.bf16.gmra.mxu0 %v1482_v9  ;;  %v893_v16 = vadd.f32 %v892_v12, %v780_v15  ;;  %v1526_v12 = vor.u32 %v1840_v63, %v1523_v1  ;;  %v1850_v63 = vld [vmem:[%s2731_s0 + $0x194] sm:$0xf0]  ;;  %v1848_v1 = vld [vmem:[%s2731_s0 + $0x18c] sm:$0xf] }
  0xa2   :  { %931 = vmatmul.bf16.gmra.mxu1 %v1486_v10 }
  0xa3   :  { %1044 = vmatmul.bf16.gmra.mxu2 %v1490_v13 }
  0xa4   :  { %1157 = vmatmul.bf16.gmra.mxu3 %v1494_v14 }
  0xa6   :  { %v1005_v17 = vpop.f32.mrf.mxu2  ;;  %v781_v20 = vpop.f32.mrf.mxu0 }
  0xa7   :  { %v1118_v18 = vpop.f32.mrf.mxu3  ;;  %v1006_v19 = vadd.f32 %v1005_v17, %v893_v16  ;;  %v894_v21 = vpop.f32.mrf.mxu1  ;;  %v782_v23 = vadd.f32 %v2224_v0, %v781_v20 }
  0xa9   :  { %v1119_v22 = vadd.f32 %v1118_v18, %v1006_v19  ;;  %v895_v34 = vadd.f32 %v894_v21, %v782_v23 }
  0xab   :  { %v1222_v27 = vmax.f32 %v1119_v22, 0.0 }
  0xad   :  { %v1263_v33 = vpack.c.bf16 %v1222_v27, %v1222_v27  ;;  %v1843_v27 = vld [vmem:[%s2731_s0 + $0x164] sm:$0xf] }
  0xae   :  { %v1007_v35 = vpop.f32.mrf.mxu2  ;;  %v784_v40 = vpop.f32.mrf.mxu0 }
  0xaf   :  { %v1120_v36 = vpop.f32.mrf.mxu3  ;;  %1305 = vst.msk [vmem:[%s2732_s3] sm:$0xf] %vm1304_vm0, %v1263_v33  ;;  %v1008_v39 = vadd.f32 %v1007_v35, %v895_v34  ;;  %v897_v41 = vpop.f32.mrf.mxu1  ;;  %v785_v44 = vadd.f32 %v2224_v0, %v784_v40  ;;  %v1539_v33 = vld [vmem:[%s2731_s0 + $0x178] sm:$0xf0] }
  0xb1   :  { %v1121_v45 = vadd.f32 %v1120_v36, %v1008_v39  ;;  %823 = vmatmul.bf16.gmra.mxu0 %v1498_v37  ;;  %v898_v47 = vadd.f32 %v897_v41, %v785_v44  ;;  %v1534_v39 = vor.u32 %v1843_v27, %v1531_v29  ;;  %v1542_v44 = vor.u32 %v1844_v32, %v1539_v33  ;;  %v1853_v27 = vld [vmem:[%s2731_s0 + $0x1ac] sm:$0xf0]  ;;  %v1854_v32 = vld [vmem:[%s2731_s0 + $0x1b4] sm:$0xf0]  ;;  %v1852_v33 = vld [vmem:[%s2731_s0 + $0x1ac] sm:$0xf] }
  0xb2   :  { %936 = vmatmul.bf16.gmra.mxu1 %v1502_v38  ;;  %v1530_v38 = vor.u32 %v1845_v26, %v1529_v25  ;;  %v1561_v26 = vld [vmem:[%s2731_s0 + $0x1a0] sm:$0xf] }
  0xb3   :  { %v1223_v46 = vmax.f32 %v1121_v45, 0.0  ;;  %1049 = vmatmul.bf16.gmra.mxu2 %v1506_v42 }
  0xb4   :  { %1162 = vmatmul.bf16.gmra.mxu3 %v1510_v43  ;;  %v1538_v43 = vor.u32 %v1846_v31, %v1537_v30  ;;  %v1563_v30 = vld [vmem:[%s2731_s0 + $0x1b0] sm:$0xf0]  ;;  %v1569_v31 = vld [vmem:[%s2731_s0 + $0x1a8] sm:$0xf] }
  0xb5   :  { %v1264_v48 = vpack.c.bf16 %v1223_v46, %v1223_v46 }
  0xb6   :  { %v1010_v49 = vpop.f32.mrf.mxu2  ;;  %v786_v52 = vpop.f32.mrf.mxu0 }
  0xb7   :  { %v1123_v50 = vpop.f32.mrf.mxu3  ;;  %1306 = vst.msk [vmem:[%s2732_s3 + $0x4] sm:$0xf] %vm1304_vm0, %v1264_v48  ;;  %v1011_v51 = vadd.f32 %v1010_v49, %v898_v47  ;;  %v899_v53 = vpop.f32.mrf.mxu1  ;;  %v787_v55 = vadd.f32 %v2224_v0, %v786_v52 }
  0xb9   :  { %v1124_v54 = vadd.f32 %v1123_v50, %v1011_v51  ;;  %v900_v3 = vadd.f32 %v899_v53, %v787_v55 }
  0xbb   :  { %v1224_v59 = vmax.f32 %v1124_v54, 0.0 }
  0xbd   :  { %v1265_v2 = vpack.c.bf16 %v1224_v59, %v1224_v59  ;;  %v1847_v59 = vld [vmem:[%s2731_s0 + $0x184] sm:$0xf] }
  0xbe   :  { %v1012_v4 = vpop.f32.mrf.mxu2  ;;  %v789_v9 = vpop.f32.mrf.mxu0 }
  0xbf   :  { %v1125_v5 = vpop.f32.mrf.mxu3  ;;  %1307 = vst.msk [vmem:[%s2732_s3 + $0x8] sm:$0xf] %vm1304_vm0, %v1265_v2  ;;  %v1013_v8 = vadd.f32 %v1012_v4, %v900_v3  ;;  %v902_v10 = vpop.f32.mrf.mxu1  ;;  %v790_v13 = vadd.f32 %v2224_v0, %v789_v9  ;;  %v1555_v2 = vld [vmem:[%s2731_s0 + $0x198] sm:$0xf0] }
  0xc1   :  { %v1126_v14 = vadd.f32 %v1125_v5, %v1013_v8  ;;  %828 = vmatmul.bf16.gmra.mxu0 %v1514_v6  ;;  %v903_v16 = vadd.f32 %v902_v10, %v790_v13  ;;  %v1550_v8 = vor.u32 %v1847_v59, %v1547_v61  ;;  %v1558_v13 = vor.u32 %v1848_v1, %v1555_v2  ;;  %v1857_v59 = vld [vmem:[%s2731_s0 + $0x1cc] sm:$0xf0]  ;;  %v1858_v1 = vld [vmem:[%s2731_s0 + $0x1d4] sm:$0xf0]  ;;  %v1856_v2 = vld [vmem:[%s2731_s0 + $0x1cc] sm:$0xf] }
  0xc2   :  { %941 = vmatmul.bf16.gmra.mxu1 %v1518_v7  ;;  %v1546_v7 = vor.u32 %v1849_v58, %v1545_v57  ;;  %v1577_v58 = vld [vmem:[%s2731_s0 + $0x1c0] sm:$0xf] }
  0xc3   :  { %v1225_v15 = vmax.f32 %v1126_v14, 0.0  ;;  %1054 = vmatmul.bf16.gmra.mxu2 %v1522_v11 }
  0xc4   :  { %1167 = vmatmul.bf16.gmra.mxu3 %v1526_v12  ;;  %v1554_v12 = vor.u32 %v1850_v63, %v1553_v62  ;;  %v1579_v62 = vld [vmem:[%s2731_s0 + $0x1d0] sm:$0xf0]  ;;  %v1585_v63 = vld [vmem:[%s2731_s0 + $0x1c8] sm:$0xf] }
  0xc5   :  { %v1266_v17 = vpack.c.bf16 %v1225_v15, %v1225_v15 }
  0xc6   :  { %v1015_v18 = vpop.f32.mrf.mxu2  ;;  %v791_v21 = vpop.f32.mrf.mxu0 }
  0xc7   :  { %v1128_v19 = vpop.f32.mrf.mxu3  ;;  %1308 = vst.msk [vmem:[%s2732_s3 + $0xc] sm:$0xf] %vm1304_vm0, %v1266_v17  ;;  %v1016_v20 = vadd.f32 %v1015_v18, %v903_v16  ;;  %v904_v22 = vpop.f32.mrf.mxu1  ;;  %v792_v24 = vadd.f32 %v2224_v0, %v791_v21 }
  0xc9   :  { %v1129_v23 = vadd.f32 %v1128_v19, %v1016_v20  ;;  %v905_v35 = vadd.f32 %v904_v22, %v792_v24 }
  0xcb   :  { %v1226_v28 = vmax.f32 %v1129_v23, 0.0 }
  0xcd   :  { %v1267_v34 = vpack.c.bf16 %v1226_v28, %v1226_v28  ;;  %v1851_v28 = vld [vmem:[%s2731_s0 + $0x1a4] sm:$0xf] }
  0xce   :  { %v1017_v36 = vpop.f32.mrf.mxu2  ;;  %v794_v41 = vpop.f32.mrf.mxu0 }
  0xcf   :  { %v1130_v37 = vpop.f32.mrf.mxu3  ;;  %1309 = vst.msk [vmem:[%s2732_s3 + $0x10] sm:$0xf] %vm1304_vm0, %v1267_v34  ;;  %v1018_v40 = vadd.f32 %v1017_v36, %v905_v35  ;;  %v907_v42 = vpop.f32.mrf.mxu1  ;;  %v795_v45 = vadd.f32 %v2224_v0, %v794_v41  ;;  %v1571_v34 = vld [vmem:[%s2731_s0 + $0x1b8] sm:$0xf0] }
  0xd1   :  { %v1131_v46 = vadd.f32 %v1130_v37, %v1018_v40  ;;  %833 = vmatmul.bf16.gmra.mxu0 %v1530_v38  ;;  %v908_v48 = vadd.f32 %v907_v42, %v795_v45  ;;  %v1566_v40 = vor.u32 %v1851_v28, %v1563_v30  ;;  %v1574_v45 = vor.u32 %v1852_v33, %v1571_v34  ;;  %v1861_v28 = vld [vmem:[%s2731_s0 + $0x1ec] sm:$0xf0]  ;;  %v1862_v33 = vld [vmem:[%s2731_s0 + $0x1f4] sm:$0xf0]  ;;  %v1860_v34 = vld [vmem:[%s2731_s0 + $0x1ec] sm:$0xf] }
  0xd2   :  { %946 = vmatmul.bf16.gmra.mxu1 %v1534_v39  ;;  %v1562_v39 = vor.u32 %v1853_v27, %v1561_v26  ;;  %v1593_v27 = vld [vmem:[%s2731_s0 + $0x1e0] sm:$0xf] }
  0xd3   :  { %v1227_v47 = vmax.f32 %v1131_v46, 0.0  ;;  %1059 = vmatmul.bf16.gmra.mxu2 %v1538_v43 }
  0xd4   :  { %1172 = vmatmul.bf16.gmra.mxu3 %v1542_v44  ;;  %v1570_v44 = vor.u32 %v1854_v32, %v1569_v31  ;;  %v1595_v31 = vld [vmem:[%s2731_s0 + $0x1f0] sm:$0xf0]  ;;  %v1601_v32 = vld [vmem:[%s2731_s0 + $0x1e8] sm:$0xf] }
  0xd5   :  { %v1268_v49 = vpack.c.bf16 %v1227_v47, %v1227_v47 }
  0xd6   :  { %v1020_v50 = vpop.f32.mrf.mxu2  ;;  %v796_v53 = vpop.f32.mrf.mxu0 }
  0xd7   :  { %v1133_v51 = vpop.f32.mrf.mxu3  ;;  %1310 = vst.msk [vmem:[%s2732_s3 + $0x14] sm:$0xf] %vm1304_vm0, %v1268_v49  ;;  %v1021_v52 = vadd.f32 %v1020_v50, %v908_v48  ;;  %v909_v54 = vpop.f32.mrf.mxu1  ;;  %v797_v56 = vadd.f32 %v2224_v0, %v796_v53 }
  0xd9   :  { %v1134_v55 = vadd.f32 %v1133_v51, %v1021_v52  ;;  %v910_v4 = vadd.f32 %v909_v54, %v797_v56 }
  0xdb   :  { %v1228_v60 = vmax.f32 %v1134_v55, 0.0 }
  0xdd   :  { %v1269_v3 = vpack.c.bf16 %v1228_v60, %v1228_v60  ;;  %v1855_v60 = vld [vmem:[%s2731_s0 + $0x1c4] sm:$0xf] }
  0xde   :  { %v1022_v5 = vpop.f32.mrf.mxu2  ;;  %v799_v10 = vpop.f32.mrf.mxu0 }
  0xdf   :  { %v1135_v6 = vpop.f32.mrf.mxu3  ;;  %1311 = vst.msk [vmem:[%s2732_s3 + $0x18] sm:$0xf] %vm1304_vm0, %v1269_v3  ;;  %v1023_v9 = vadd.f32 %v1022_v5, %v910_v4  ;;  %v912_v11 = vpop.f32.mrf.mxu1  ;;  %v800_v14 = vadd.f32 %v2224_v0, %v799_v10  ;;  %v1587_v3 = vld [vmem:[%s2731_s0 + $0x1d8] sm:$0xf0] }
  0xe1   :  { %v1136_v15 = vadd.f32 %v1135_v6, %v1023_v9  ;;  %838 = vmatmul.bf16.gmra.mxu0 %v1546_v7  ;;  %v913_v17 = vadd.f32 %v912_v11, %v800_v14  ;;  %v1582_v9 = vor.u32 %v1855_v60, %v1579_v62  ;;  %v1590_v14 = vor.u32 %v1856_v2, %v1587_v3  ;;  %v1865_v60 = vld [vmem:[%s2731_s0 + $0x20c] sm:$0xf0]  ;;  %v1866_v2 = vld [vmem:[%s2731_s0 + $0x214] sm:$0xf0]  ;;  %v1864_v3 = vld [vmem:[%s2731_s0 + $0x20c] sm:$0xf] }
  0xe2   :  { %951 = vmatmul.bf16.gmra.mxu1 %v1550_v8  ;;  %v1578_v8 = vor.u32 %v1857_v59, %v1577_v58  ;;  %v1609_v59 = vld [vmem:[%s2731_s0 + $0x200] sm:$0xf] }
  0xe3   :  { %v1229_v16 = vmax.f32 %v1136_v15, 0.0  ;;  %1064 = vmatmul.bf16.gmra.mxu2 %v1554_v12 }
  0xe4   :  { %1177 = vmatmul.bf16.gmra.mxu3 %v1558_v13  ;;  %v1586_v13 = vor.u32 %v1858_v1, %v1585_v63  ;;  %v1611_v63 = vld [vmem:[%s2731_s0 + $0x210] sm:$0xf0]  ;;  %v1617_v1 = vld [vmem:[%s2731_s0 + $0x208] sm:$0xf] }
  0xe5   :  { %v1270_v18 = vpack.c.bf16 %v1229_v16, %v1229_v16 }
  0xe6   :  { %v1025_v19 = vpop.f32.mrf.mxu2  ;;  %v801_v22 = vpop.f32.mrf.mxu0 }
  0xe7   :  { %v1138_v20 = vpop.f32.mrf.mxu3  ;;  %1312 = vst.msk [vmem:[%s2732_s3 + $0x1c] sm:$0xf] %vm1304_vm0, %v1270_v18  ;;  %v1026_v21 = vadd.f32 %v1025_v19, %v913_v17  ;;  %v914_v23 = vpop.f32.mrf.mxu1  ;;  %v802_v25 = vadd.f32 %v2224_v0, %v801_v22 }
  0xe9   :  { %v1139_v24 = vadd.f32 %v1138_v20, %v1026_v21  ;;  %v915_v36 = vadd.f32 %v914_v23, %v802_v25 }
  0xeb   :  { %v1230_v29 = vmax.f32 %v1139_v24, 0.0 }
  0xed   :  { %v1271_v35 = vpack.c.bf16 %v1230_v29, %v1230_v29  ;;  %v1859_v29 = vld [vmem:[%s2731_s0 + $0x1e4] sm:$0xf] }
  0xee   :  { %v1027_v37 = vpop.f32.mrf.mxu2  ;;  %v804_v42 = vpop.f32.mrf.mxu0 }
  0xef   :  { %v1140_v38 = vpop.f32.mrf.mxu3  ;;  %1313 = vst.msk [vmem:[%s2732_s3 + $0x20] sm:$0xf] %vm1304_vm0, %v1271_v35  ;;  %v1028_v41 = vadd.f32 %v1027_v37, %v915_v36  ;;  %v917_v43 = vpop.f32.mrf.mxu1  ;;  %v805_v46 = vadd.f32 %v2224_v0, %v804_v42  ;;  %v1603_v35 = vld [vmem:[%s2731_s0 + $0x1f8] sm:$0xf0] }
  0xf1   :  { %v1141_v47 = vadd.f32 %v1140_v38, %v1028_v41  ;;  %843 = vmatmul.bf16.gmra.mxu0 %v1562_v39  ;;  %v918_v49 = vadd.f32 %v917_v43, %v805_v46  ;;  %v1598_v41 = vor.u32 %v1859_v29, %v1595_v31  ;;  %v1606_v46 = vor.u32 %v1860_v34, %v1603_v35  ;;  %v1869_v29 = vld [vmem:[%s2731_s0 + $0x22c] sm:$0xf0]  ;;  %v1870_v34 = vld [vmem:[%s2731_s0 + $0x234] sm:$0xf0]  ;;  %v1868_v35 = vld [vmem:[%s2731_s0 + $0x22c] sm:$0xf] }
  0xf2   :  { %956 = vmatmul.bf16.gmra.mxu1 %v1566_v40  ;;  %v1594_v40 = vor.u32 %v1861_v28, %v1593_v27  ;;  %v1625_v28 = vld [vmem:[%s2731_s0 + $0x220] sm:$0xf] }
  0xf3   :  { %v1231_v48 = vmax.f32 %v1141_v47, 0.0  ;;  %1069 = vmatmul.bf16.gmra.mxu2 %v1570_v44 }
  0xf4   :  { %1182 = vmatmul.bf16.gmra.mxu3 %v1574_v45  ;;  %v1602_v45 = vor.u32 %v1862_v33, %v1601_v32  ;;  %v1627_v32 = vld [vmem:[%s2731_s0 + $0x230] sm:$0xf0]  ;;  %v1633_v33 = vld [vmem:[%s2731_s0 + $0x228] sm:$0xf] }
  0xf5   :  { %v1272_v50 = vpack.c.bf16 %v1231_v48, %v1231_v48 }
  0xf6   :  { %v1030_v51 = vpop.f32.mrf.mxu2  ;;  %v806_v54 = vpop.f32.mrf.mxu0 }
  0xf7   :  { %v1143_v52 = vpop.f32.mrf.mxu3  ;;  %1314 = vst.msk [vmem:[%s2732_s3 + $0x24] sm:$0xf] %vm1304_vm0, %v1272_v50  ;;  %v1031_v53 = vadd.f32 %v1030_v51, %v918_v49  ;;  %v919_v55 = vpop.f32.mrf.mxu1  ;;  %v807_v57 = vadd.f32 %v2224_v0, %v806_v54 }
  0xf9   :  { %v1144_v56 = vadd.f32 %v1143_v52, %v1031_v53  ;;  %v920_v5 = vadd.f32 %v919_v55, %v807_v57 }
  0xfb   :  { %v1232_v61 = vmax.f32 %v1144_v56, 0.0 }
  0xfd   :  { %v1273_v4 = vpack.c.bf16 %v1232_v61, %v1232_v61  ;;  %v1863_v61 = vld [vmem:[%s2731_s0 + $0x204] sm:$0xf] }
  0xfe   :  { %v1032_v6 = vpop.f32.mrf.mxu2  ;;  %v809_v11 = vpop.f32.mrf.mxu0 }
  0xff   :  { %v1145_v7 = vpop.f32.mrf.mxu3  ;;  %1315 = vst.msk [vmem:[%s2732_s3 + $0x28] sm:$0xf] %vm1304_vm0, %v1273_v4  ;;  %v1033_v10 = vadd.f32 %v1032_v6, %v920_v5  ;;  %v922_v12 = vpop.f32.mrf.mxu1  ;;  %v810_v15 = vadd.f32 %v2224_v0, %v809_v11  ;;  %v1619_v4 = vld [vmem:[%s2731_s0 + $0x218] sm:$0xf0] }
 0x101   :  { %v1146_v16 = vadd.f32 %v1145_v7, %v1033_v10  ;;  %848 = vmatmul.bf16.gmra.mxu0 %v1578_v8  ;;  %v923_v18 = vadd.f32 %v922_v12, %v810_v15  ;;  %v1614_v10 = vor.u32 %v1863_v61, %v1611_v63  ;;  %v1622_v15 = vor.u32 %v1864_v3, %v1619_v4  ;;  %v1873_v61 = vld [vmem:[%s2731_s0 + $0x24c] sm:$0xf0]  ;;  %v1874_v3 = vld [vmem:[%s2731_s0 + $0x254] sm:$0xf0]  ;;  %v1872_v4 = vld [vmem:[%s2731_s0 + $0x24c] sm:$0xf] }
 0x102   :  { %961 = vmatmul.bf16.gmra.mxu1 %v1582_v9  ;;  %v1610_v9 = vor.u32 %v1865_v60, %v1609_v59  ;;  %v1641_v60 = vld [vmem:[%s2731_s0 + $0x240] sm:$0xf] }
 0x103   :  { %v1233_v17 = vmax.f32 %v1146_v16, 0.0  ;;  %1074 = vmatmul.bf16.gmra.mxu2 %v1586_v13 }
 0x104   :  { %1187 = vmatmul.bf16.gmra.mxu3 %v1590_v14  ;;  %v1618_v14 = vor.u32 %v1866_v2, %v1617_v1  ;;  %v1643_v1 = vld [vmem:[%s2731_s0 + $0x250] sm:$0xf0]  ;;  %v1649_v2 = vld [vmem:[%s2731_s0 + $0x248] sm:$0xf] }
 0x105   :  { %v1274_v19 = vpack.c.bf16 %v1233_v17, %v1233_v17 }
 0x106   :  { %v1035_v20 = vpop.f32.mrf.mxu2  ;;  %v811_v23 = vpop.f32.mrf.mxu0 }
 0x107   :  { %v1148_v21 = vpop.f32.mrf.mxu3  ;;  %1316 = vst.msk [vmem:[%s2732_s3 + $0x2c] sm:$0xf] %vm1304_vm0, %v1274_v19  ;;  %v1036_v22 = vadd.f32 %v1035_v20, %v923_v18  ;;  %v924_v24 = vpop.f32.mrf.mxu1  ;;  %v812_v26 = vadd.f32 %v2224_v0, %v811_v23 }
 0x109   :  { %v1149_v25 = vadd.f32 %v1148_v21, %v1036_v22  ;;  %v925_v37 = vadd.f32 %v924_v24, %v812_v26 }
 0x10b   :  { %v1234_v30 = vmax.f32 %v1149_v25, 0.0 }
 0x10d   :  { %v1275_v36 = vpack.c.bf16 %v1234_v30, %v1234_v30  ;;  %v1867_v30 = vld [vmem:[%s2731_s0 + $0x224] sm:$0xf] }
 0x10e   :  { %v1037_v38 = vpop.f32.mrf.mxu2  ;;  %v814_v43 = vpop.f32.mrf.mxu0 }
 0x10f   :  { %v1150_v39 = vpop.f32.mrf.mxu3  ;;  %1317 = vst.msk [vmem:[%s2732_s3 + $0x30] sm:$0xf] %vm1304_vm0, %v1275_v36  ;;  %v1038_v42 = vadd.f32 %v1037_v38, %v925_v37  ;;  %v927_v44 = vpop.f32.mrf.mxu1  ;;  %v815_v47 = vadd.f32 %v2224_v0, %v814_v43  ;;  %v1635_v36 = vld [vmem:[%s2731_s0 + $0x238] sm:$0xf0] }
 0x111   :  { %v1151_v48 = vadd.f32 %v1150_v39, %v1038_v42  ;;  %853 = vmatmul.bf16.gmra.mxu0 %v1594_v40  ;;  %v928_v50 = vadd.f32 %v927_v44, %v815_v47  ;;  %v1630_v42 = vor.u32 %v1867_v30, %v1627_v32  ;;  %v1638_v47 = vor.u32 %v1868_v35, %v1635_v36  ;;  %v1877_v30 = vld [vmem:[%s2731_s0 + $0x26c] sm:$0xf0]  ;;  %v1878_v35 = vld [vmem:[%s2731_s0 + $0x274] sm:$0xf0]  ;;  %v1876_v36 = vld [vmem:[%s2731_s0 + $0x26c] sm:$0xf] }
 0x112   :  { %966 = vmatmul.bf16.gmra.mxu1 %v1598_v41  ;;  %v1626_v41 = vor.u32 %v1869_v29, %v1625_v28  ;;  %v1657_v29 = vld [vmem:[%s2731_s0 + $0x260] sm:$0xf] }
 0x113   :  { %v1235_v49 = vmax.f32 %v1151_v48, 0.0  ;;  %1079 = vmatmul.bf16.gmra.mxu2 %v1602_v45 }
 0x114   :  { %1192 = vmatmul.bf16.gmra.mxu3 %v1606_v46  ;;  %v1634_v46 = vor.u32 %v1870_v34, %v1633_v33  ;;  %v1659_v33 = vld [vmem:[%s2731_s0 + $0x270] sm:$0xf0]  ;;  %v1665_v34 = vld [vmem:[%s2731_s0 + $0x268] sm:$0xf] }
 0x115   :  { %v1276_v51 = vpack.c.bf16 %v1235_v49, %v1235_v49 }
 0x116   :  { %v1040_v52 = vpop.f32.mrf.mxu2  ;;  %v816_v55 = vpop.f32.mrf.mxu0 }
 0x117   :  { %v1153_v53 = vpop.f32.mrf.mxu3  ;;  %1318 = vst.msk [vmem:[%s2732_s3 + $0x34] sm:$0xf] %vm1304_vm0, %v1276_v51  ;;  %v1041_v54 = vadd.f32 %v1040_v52, %v928_v50  ;;  %v929_v56 = vpop.f32.mrf.mxu1  ;;  %v817_v58 = vadd.f32 %v2224_v0, %v816_v55 }
 0x119   :  { %v1154_v57 = vadd.f32 %v1153_v53, %v1041_v54  ;;  %v930_v6 = vadd.f32 %v929_v56, %v817_v58 }
 0x11b   :  { %v1236_v62 = vmax.f32 %v1154_v57, 0.0 }
 0x11d   :  { %v1277_v5 = vpack.c.bf16 %v1236_v62, %v1236_v62  ;;  %v1871_v62 = vld [vmem:[%s2731_s0 + $0x244] sm:$0xf] }
 0x11e   :  { %v1042_v7 = vpop.f32.mrf.mxu2  ;;  %v819_v12 = vpop.f32.mrf.mxu0 }
 0x11f   :  { %v1155_v8 = vpop.f32.mrf.mxu3  ;;  %1319 = vst.msk [vmem:[%s2732_s3 + $0x38] sm:$0xf] %vm1304_vm0, %v1277_v5  ;;  %v1043_v11 = vadd.f32 %v1042_v7, %v930_v6  ;;  %v932_v13 = vpop.f32.mrf.mxu1  ;;  %v820_v16 = vadd.f32 %v2224_v0, %v819_v12  ;;  %v1651_v5 = vld [vmem:[%s2731_s0 + $0x258] sm:$0xf0] }
 0x121   :  { %v1156_v17 = vadd.f32 %v1155_v8, %v1043_v11  ;;  %858 = vmatmul.bf16.gmra.mxu0 %v1610_v9  ;;  %v933_v19 = vadd.f32 %v932_v13, %v820_v16  ;;  %v1646_v11 = vor.u32 %v1871_v62, %v1643_v1  ;;  %v1654_v16 = vor.u32 %v1872_v4, %v1651_v5 }
 0x122   :  { %971 = vmatmul.bf16.gmra.mxu1 %v1614_v10  ;;  %v1642_v10 = vor.u32 %v1873_v61, %v1641_v60  ;;  %v95_v60 = vld [vmem:[%s2731_s0 + $0x288] sm:$0x33] }
 0x123   :  { %v1237_v18 = vmax.f32 %v1156_v17, 0.0  ;;  %1084 = vmatmul.bf16.gmra.mxu2 %v1618_v14  ;;  %v409_v4 = vunpack.c.h.b16 %v95_v60 }
 0x124   :  { %1197 = vmatmul.bf16.gmra.mxu3 %v1622_v15  ;;  %v1650_v15 = vor.u32 %v1874_v3, %v1649_v2  ;;  %v408_v3 = vunpack.c.l.b16 %v95_v60 }
 0x125   :  { %v1278_v20 = vpack.c.bf16 %v1237_v18, %v1237_v18 }
 0x126   :  { %v1045_v21 = vpop.f32.mrf.mxu2  ;;  %v821_v24 = vpop.f32.mrf.mxu0 }
 0x127   :  { %v1158_v22 = vpop.f32.mrf.mxu3  ;;  %1320 = vst.msk [vmem:[%s2732_s3 + $0x3c] sm:$0xf] %vm1304_vm0, %v1278_v20  ;;  %v1046_v23 = vadd.f32 %v1045_v21, %v933_v19  ;;  %v934_v25 = vpop.f32.mrf.mxu1  ;;  %v822_v27 = vadd.f32 %v2224_v0, %v821_v24 }
 0x129   :  { %v1159_v26 = vadd.f32 %v1158_v22, %v1046_v23  ;;  %v935_v38 = vadd.f32 %v934_v25, %v822_v27 }
 0x12b   :  { %v1238_v31 = vmax.f32 %v1159_v26, 0.0 }
 0x12d   :  { %v1279_v37 = vpack.c.bf16 %v1238_v31, %v1238_v31  ;;  %v1875_v31 = vld [vmem:[%s2731_s0 + $0x264] sm:$0xf] }
 0x12e   :  { %v1047_v39 = vpop.f32.mrf.mxu2  ;;  %v824_v44 = vpop.f32.mrf.mxu0 }
 0x12f   :  { %v1160_v40 = vpop.f32.mrf.mxu3  ;;  %1321 = vst.msk [vmem:[%s2732_s3 + $0x40] sm:$0xf] %vm1304_vm0, %v1279_v37  ;;  %v1048_v43 = vadd.f32 %v1047_v39, %v935_v38  ;;  %v937_v45 = vpop.f32.mrf.mxu1  ;;  %v825_v48 = vadd.f32 %v2224_v0, %v824_v44  ;;  %v1667_v37 = vld [vmem:[%s2731_s0 + $0x278] sm:$0xf0] }
 0x131   :  { %v1161_v49 = vadd.f32 %v1160_v40, %v1048_v43  ;;  %863 = vmatmul.bf16.gmra.mxu0 %v1626_v41  ;;  %v938_v51 = vadd.f32 %v937_v45, %v825_v48  ;;  %v1662_v43 = vor.u32 %v1875_v31, %v1659_v33  ;;  %v1670_v48 = vor.u32 %v1876_v36, %v1667_v37 }
 0x132   :  { %976 = vmatmul.bf16.gmra.mxu1 %v1630_v42  ;;  %v1658_v42 = vor.u32 %v1877_v30, %v1657_v29 }
 0x133   :  { %v1239_v50 = vmax.f32 %v1161_v49, 0.0  ;;  %1089 = vmatmul.bf16.gmra.mxu2 %v1634_v46 }
 0x134   :  { %1202 = vmatmul.bf16.gmra.mxu3 %v1638_v47  ;;  %v1666_v47 = vor.u32 %v1878_v35, %v1665_v34 }
 0x135   :  { %v1280_v52 = vpack.c.bf16 %v1239_v50, %v1239_v50 }
 0x136   :  { %v1050_v53 = vpop.f32.mrf.mxu2  ;;  %v826_v56 = vpop.f32.mrf.mxu0 }
 0x137   :  { %v1163_v54 = vpop.f32.mrf.mxu3  ;;  %1322 = vst.msk [vmem:[%s2732_s3 + $0x44] sm:$0xf] %vm1304_vm0, %v1280_v52  ;;  %v1051_v55 = vadd.f32 %v1050_v53, %v938_v51  ;;  %v939_v57 = vpop.f32.mrf.mxu1  ;;  %v827_v59 = vadd.f32 %v2224_v0, %v826_v56 }
 0x139   :  { %v1164_v58 = vadd.f32 %v1163_v54, %v1051_v55  ;;  %v940_v7 = vadd.f32 %v939_v57, %v827_v59  ;;  %v94_v59 = vld [vmem:[%s2731_s0 + $0x280] sm:$0x33] }
 0x13a   :  { %v407_v1 = vunpack.c.h.b16 %v94_v59 }
 0x13b   :  { %v1240_v63 = vmax.f32 %v1164_v58, 0.0 }
 0x13d   :  { %v1281_v6 = vpack.c.bf16 %v1240_v63, %v1240_v63  ;;  %v406_v63 = vunpack.c.l.b16 %v94_v59 }
 0x13e   :  { %v1052_v8 = vpop.f32.mrf.mxu2  ;;  %v829_v13 = vpop.f32.mrf.mxu0 }
 0x13f   :  { %v1165_v9 = vpop.f32.mrf.mxu3  ;;  %1323 = vst.msk [vmem:[%s2732_s3 + $0x48] sm:$0xf] %vm1304_vm0, %v1281_v6  ;;  %v1053_v12 = vadd.f32 %v1052_v8, %v940_v7  ;;  %v942_v14 = vpop.f32.mrf.mxu1  ;;  %v830_v17 = vadd.f32 %v2224_v0, %v829_v13 }
 0x141   :  { %v1166_v18 = vadd.f32 %v1165_v9, %v1053_v12  ;;  %868 = vmatmul.bf16.gmra.mxu0 %v1642_v10  ;;  %v943_v20 = vadd.f32 %v942_v14, %v830_v17  ;;  %v490_v9 = vpack.c.b16 %v406_v63, %v406_v63  ;;  %v491_v10 = vpack.c.b16 %v407_v1, %v407_v1 }
 0x142   :  { %981 = vmatmul.bf16.gmra.mxu1 %v1646_v11  ;;  %v492_v14 = vpack.c.b16 %v408_v3, %v408_v3 }
 0x143   :  { %v1241_v19 = vmax.f32 %v1166_v18, 0.0  ;;  %1094 = vmatmul.bf16.gmra.mxu2 %v1650_v15  ;;  %v493_v15 = vpack.c.b16 %v409_v4, %v409_v4 }
 0x144   :  { %1207 = vmatmul.bf16.gmra.mxu3 %v1654_v16 }
 0x145   :  { %v1282_v21 = vpack.c.bf16 %v1241_v19, %v1241_v19 }
 0x146   :  { %v1055_v22 = vpop.f32.mrf.mxu2  ;;  %v831_v25 = vpop.f32.mrf.mxu0 }
 0x147   :  { %v1168_v23 = vpop.f32.mrf.mxu3  ;;  %1324 = vst.msk [vmem:[%s2732_s3 + $0x4c] sm:$0xf] %vm1304_vm0, %v1282_v21  ;;  %v1056_v24 = vadd.f32 %v1055_v22, %v943_v20  ;;  %v944_v26 = vpop.f32.mrf.mxu1  ;;  %v832_v28 = vadd.f32 %v2224_v0, %v831_v25 }
 0x149   :  { %v1169_v27 = vadd.f32 %v1168_v23, %v1056_v24  ;;  %v945_v39 = vadd.f32 %v944_v26, %v832_v28 }
 0x14b   :  { %v1242_v32 = vmax.f32 %v1169_v27, 0.0 }
 0x14d   :  { %v1283_v38 = vpack.c.bf16 %v1242_v32, %v1242_v32 }
 0x14e   :  { %v1057_v40 = vpop.f32.mrf.mxu2  ;;  %v834_v45 = vpop.f32.mrf.mxu0 }
 0x14f   :  { %v1170_v41 = vpop.f32.mrf.mxu3  ;;  %1325 = vst.msk [vmem:[%s2732_s3 + $0x50] sm:$0xf] %vm1304_vm0, %v1283_v38  ;;  %v1058_v44 = vadd.f32 %v1057_v40, %v945_v39  ;;  %v947_v46 = vpop.f32.mrf.mxu1  ;;  %v835_v49 = vadd.f32 %v2224_v0, %v834_v45 }
 0x151   :  { %v1171_v50 = vadd.f32 %v1170_v41, %v1058_v44  ;;  %873 = vmatmul.bf16.gmra.mxu0 %v1658_v42  ;;  %v948_v52 = vadd.f32 %v947_v46, %v835_v49 }
 0x152   :  { %986 = vmatmul.bf16.gmra.mxu1 %v1662_v43 }
 0x153   :  { %v1243_v51 = vmax.f32 %v1171_v50, 0.0  ;;  %1099 = vmatmul.bf16.gmra.mxu2 %v1666_v47 }
 0x154   :  { %1212 = vmatmul.bf16.gmra.mxu3 %v1670_v48 }
 0x155   :  { %v1284_v53 = vpack.c.bf16 %v1243_v51, %v1243_v51 }
 0x156   :  { %v1060_v54 = vpop.f32.mrf.mxu2  ;;  %v836_v57 = vpop.f32.mrf.mxu0 }
 0x157   :  { %v1173_v55 = vpop.f32.mrf.mxu3  ;;  %1326 = vst.msk [vmem:[%s2732_s3 + $0x54] sm:$0xf] %vm1304_vm0, %v1284_v53  ;;  %v1061_v56 = vadd.f32 %v1060_v54, %v948_v52  ;;  %v949_v58 = vpop.f32.mrf.mxu1  ;;  %v837_v62 = vadd.f32 %v2224_v0, %v836_v57 }
 0x159   :  { %v1174_v61 = vadd.f32 %v1173_v55, %v1061_v56  ;;  %v950_v6 = vadd.f32 %v949_v58, %v837_v62  ;;  %v2659_v56 = vld [vmem:[%s2730_s2] ss:$0 sm:$0xff] }
 0x15b   :  { %v1244_v2 = vmax.f32 %v1174_v61, 0.0 }
 0x15d   :  { %v1285_v5 = vpack.c.bf16 %v1244_v2, %v1244_v2 }
 0x15e   :  { %v1062_v7 = vpop.f32.mrf.mxu2  ;;  %v839_v12 = vpop.f32.mrf.mxu0 }
 0x15f   :  { %v1175_v8 = vpop.f32.mrf.mxu3  ;;  %1327 = vst.msk [vmem:[%s2732_s3 + $0x58] sm:$0xf] %vm1304_vm0, %v1285_v5  ;;  %v1063_v11 = vadd.f32 %v1062_v7, %v950_v6  ;;  %v952_v13 = vpop.f32.mrf.mxu1  ;;  %v840_v16 = vadd.f32 %v2224_v0, %v839_v12 }
 0x161   :  { %v1176_v17 = vadd.f32 %v1175_v8, %v1063_v11  ;;  %878 = vmatmul.bf16.gmra.mxu0 %v490_v9  ;;  %v953_v19 = vadd.f32 %v952_v13, %v840_v16 }
 0x162   :  { %991 = vmatmul.bf16.gmra.mxu1 %v491_v10 }
 0x163   :  { %v1245_v18 = vmax.f32 %v1176_v17, 0.0  ;;  %1104 = vmatmul.bf16.gmra.mxu2 %v492_v14 }
 0x164   :  { %1217 = vmatmul.bf16.gmra.mxu3 %v493_v15 }
 0x165   :  { %v1286_v20 = vpack.c.bf16 %v1245_v18, %v1245_v18 }
 0x166   :  { %v1065_v21 = vpop.f32.mrf.mxu2  ;;  %v841_v24 = vpop.f32.mrf.mxu0 }
 0x167   :  { %v1178_v22 = vpop.f32.mrf.mxu3  ;;  %1328 = vst.msk [vmem:[%s2732_s3 + $0x5c] sm:$0xf] %vm1304_vm0, %v1286_v20  ;;  %v1066_v23 = vadd.f32 %v1065_v21, %v953_v19  ;;  %v954_v25 = vpop.f32.mrf.mxu1  ;;  %v842_v27 = vadd.f32 %v2224_v0, %v841_v24 }
 0x169   :  { %v1179_v26 = vadd.f32 %v1178_v22, %v1066_v23  ;;  %v955_v30 = vadd.f32 %v954_v25, %v842_v27 }
 0x16b   :  { %v1246_v28 = vmax.f32 %v1179_v26, 0.0 }
 0x16d   :  { %v1287_v29 = vpack.c.bf16 %v1246_v28, %v1246_v28 }
 0x16e   :  { %v1067_v31 = vpop.f32.mrf.mxu2  ;;  %v844_v34 = vpop.f32.mrf.mxu0 }
 0x16f   :  { %v1180_v32 = vpop.f32.mrf.mxu3  ;;  %1329 = vst.msk [vmem:[%s2732_s3 + $0x60] sm:$0xf] %vm1304_vm0, %v1287_v29  ;;  %v1068_v33 = vadd.f32 %v1067_v31, %v955_v30  ;;  %v957_v35 = vpop.f32.mrf.mxu1  ;;  %v845_v36 = vadd.f32 %v2224_v0, %v844_v34 }
 0x171   :  { %v1181_v37 = vadd.f32 %v1180_v32, %v1068_v33  ;;  %v958_v39 = vadd.f32 %v957_v35, %v845_v36 }
 0x173   :  { %v1247_v38 = vmax.f32 %v1181_v37, 0.0 }
 0x175   :  { %v1288_v40 = vpack.c.bf16 %v1247_v38, %v1247_v38 }
 0x176   :  { %v1070_v41 = vpop.f32.mrf.mxu2  ;;  %v846_v44 = vpop.f32.mrf.mxu0 }
 0x177   :  { %v1183_v42 = vpop.f32.mrf.mxu3  ;;  %1330 = vst.msk [vmem:[%s2732_s3 + $0x64] sm:$0xf] %vm1304_vm0, %v1288_v40  ;;  %v1071_v43 = vadd.f32 %v1070_v41, %v958_v39  ;;  %v959_v45 = vpop.f32.mrf.mxu1  ;;  %v847_v47 = vadd.f32 %v2224_v0, %v846_v44 }
 0x179   :  { %v1184_v46 = vadd.f32 %v1183_v42, %v1071_v43  ;;  %v960_v50 = vadd.f32 %v959_v45, %v847_v47 }
 0x17b   :  { %v1248_v48 = vmax.f32 %v1184_v46, 0.0 }
 0x17d   :  { %v1289_v49 = vpack.c.bf16 %v1248_v48, %v1248_v48 }
 0x17e   :  { %v1072_v51 = vpop.f32.mrf.mxu2  ;;  %v849_v54 = vpop.f32.mrf.mxu0 }
 0x17f   :  { %v1185_v52 = vpop.f32.mrf.mxu3  ;;  %1331 = vst.msk [vmem:[%s2732_s3 + $0x68] sm:$0xf] %vm1304_vm0, %v1289_v49  ;;  %v1073_v53 = vadd.f32 %v1072_v51, %v960_v50  ;;  %v962_v55 = vpop.f32.mrf.mxu1  ;;  %v850_v0 = vadd.f32 %v2659_v56, %v849_v54 }
 0x181   :  { %v1186_v57 = vadd.f32 %v1185_v52, %v1073_v53  ;;  %v963_v59 = vadd.f32 %v962_v55, %v850_v0 }
 0x183   :  { %v1249_v58 = vmax.f32 %v1186_v57, 0.0 }
 0x185   :  { %v1290_v60 = vpack.c.bf16 %v1249_v58, %v1249_v58 }
 0x186   :  { %v1075_v61 = vpop.f32.mrf.mxu2  ;;  %v851_v1 = vpop.f32.mrf.mxu0 }
 0x187   :  { %v1188_v62 = vpop.f32.mrf.mxu3  ;;  %1332 = vst.msk [vmem:[%s2732_s3 + $0x6c] sm:$0xf] %vm1304_vm0, %v1290_v60  ;;  %v1076_v63 = vadd.f32 %v1075_v61, %v963_v59  ;;  %v964_v2 = vpop.f32.mrf.mxu1  ;;  %v852_v4 = vadd.f32 %v2659_v56, %v851_v1 }
 0x189   :  { %v1189_v3 = vadd.f32 %v1188_v62, %v1076_v63  ;;  %v965_v7 = vadd.f32 %v964_v2, %v852_v4 }
 0x18b   :  { %v1250_v5 = vmax.f32 %v1189_v3, 0.0 }
 0x18d   :  { %v1291_v6 = vpack.c.bf16 %v1250_v5, %v1250_v5 }
 0x18e   :  { %v1077_v8 = vpop.f32.mrf.mxu2  ;;  %v854_v11 = vpop.f32.mrf.mxu0 }
 0x18f   :  { %v1190_v9 = vpop.f32.mrf.mxu3  ;;  %1333 = vst.msk [vmem:[%s2732_s3 + $0x70] sm:$0xf] %vm1304_vm0, %v1291_v6  ;;  %v1078_v10 = vadd.f32 %v1077_v8, %v965_v7  ;;  %v967_v12 = vpop.f32.mrf.mxu1  ;;  %v855_v13 = vadd.f32 %v2659_v56, %v854_v11 }
 0x191   :  { %v1191_v14 = vadd.f32 %v1190_v9, %v1078_v10  ;;  %v968_v16 = vadd.f32 %v967_v12, %v855_v13 }
 0x193   :  { %v1251_v15 = vmax.f32 %v1191_v14, 0.0 }
 0x195   :  { %v1292_v17 = vpack.c.bf16 %v1251_v15, %v1251_v15 }
 0x196   :  { %v1080_v18 = vpop.f32.mrf.mxu2  ;;  %v856_v21 = vpop.f32.mrf.mxu0 }
 0x197   :  { %v1193_v19 = vpop.f32.mrf.mxu3  ;;  %1334 = vst.msk [vmem:[%s2732_s3 + $0x74] sm:$0xf] %vm1304_vm0, %v1292_v17  ;;  %v1081_v20 = vadd.f32 %v1080_v18, %v968_v16  ;;  %v969_v22 = vpop.f32.mrf.mxu1  ;;  %v857_v24 = vadd.f32 %v2659_v56, %v856_v21 }
 0x199   :  { %v1194_v23 = vadd.f32 %v1193_v19, %v1081_v20  ;;  %v970_v27 = vadd.f32 %v969_v22, %v857_v24 }
 0x19b   :  { %v1252_v25 = vmax.f32 %v1194_v23, 0.0 }
 0x19d   :  { %v1293_v26 = vpack.c.bf16 %v1252_v25, %v1252_v25 }
 0x19e   :  { %v1082_v28 = vpop.f32.mrf.mxu2  ;;  %v859_v31 = vpop.f32.mrf.mxu0 }
 0x19f   :  { %v1195_v29 = vpop.f32.mrf.mxu3  ;;  %1335 = vst.msk [vmem:[%s2732_s3 + $0x78] sm:$0xf] %vm1304_vm0, %v1293_v26  ;;  %v1083_v30 = vadd.f32 %v1082_v28, %v970_v27  ;;  %v972_v32 = vpop.f32.mrf.mxu1  ;;  %v860_v33 = vadd.f32 %v2659_v56, %v859_v31 }
 0x1a1   :  { %v1196_v34 = vadd.f32 %v1195_v29, %v1083_v30  ;;  %v973_v36 = vadd.f32 %v972_v32, %v860_v33 }
 0x1a3   :  { %v1253_v35 = vmax.f32 %v1196_v34, 0.0 }
 0x1a5   :  { %v1294_v37 = vpack.c.bf16 %v1253_v35, %v1253_v35 }
 0x1a6   :  { %v1085_v38 = vpop.f32.mrf.mxu2  ;;  %v861_v41 = vpop.f32.mrf.mxu0 }
 0x1a7   :  { %v1198_v39 = vpop.f32.mrf.mxu3  ;;  %1336 = vst.msk [vmem:[%s2732_s3 + $0x7c] sm:$0xf] %vm1304_vm0, %v1294_v37  ;;  %v1086_v40 = vadd.f32 %v1085_v38, %v973_v36  ;;  %v974_v42 = vpop.f32.mrf.mxu1  ;;  %v862_v44 = vadd.f32 %v2659_v56, %v861_v41 }
 0x1a9   :  { %v1199_v43 = vadd.f32 %v1198_v39, %v1086_v40  ;;  %v975_v47 = vadd.f32 %v974_v42, %v862_v44 }
 0x1ab   :  { %v1254_v45 = vmax.f32 %v1199_v43, 0.0 }
 0x1ad   :  { %v1295_v46 = vpack.c.bf16 %v1254_v45, %v1254_v45 }
 0x1ae   :  { %v1087_v48 = vpop.f32.mrf.mxu2  ;;  %v864_v51 = vpop.f32.mrf.mxu0 }
 0x1af   :  { %v1200_v49 = vpop.f32.mrf.mxu3  ;;  %1337 = vst.msk [vmem:[%s2732_s3 + $0x80] sm:$0xf] %vm1304_vm0, %v1295_v46  ;;  %v1088_v50 = vadd.f32 %v1087_v48, %v975_v47  ;;  %v977_v52 = vpop.f32.mrf.mxu1  ;;  %v865_v53 = vadd.f32 %v2659_v56, %v864_v51 }
 0x1b1   :  { %v1201_v54 = vadd.f32 %v1200_v49, %v1088_v50  ;;  %v978_v0 = vadd.f32 %v977_v52, %v865_v53 }
 0x1b3   :  { %v1255_v55 = vmax.f32 %v1201_v54, 0.0 }
 0x1b5   :  { %v1296_v57 = vpack.c.bf16 %v1255_v55, %v1255_v55 }
 0x1b6   :  { %v1090_v58 = vpop.f32.mrf.mxu2  ;;  %v866_v61 = vpop.f32.mrf.mxu0 }
 0x1b7   :  { %v1203_v59 = vpop.f32.mrf.mxu3  ;;  %1338 = vst.msk [vmem:[%s2732_s3 + $0x84] sm:$0xf] %vm1304_vm0, %v1296_v57  ;;  %v1091_v60 = vadd.f32 %v1090_v58, %v978_v0  ;;  %v979_v62 = vpop.f32.mrf.mxu1  ;;  %v867_v1 = vadd.f32 %v2659_v56, %v866_v61 }
 0x1b9   :  { %v1204_v63 = vadd.f32 %v1203_v59, %v1091_v60  ;;  %v980_v4 = vadd.f32 %v979_v62, %v867_v1 }
 0x1bb   :  { %v1256_v2 = vmax.f32 %v1204_v63, 0.0 }
 0x1bd   :  { %v1297_v3 = vpack.c.bf16 %v1256_v2, %v1256_v2 }
 0x1be   :  { %v1092_v5 = vpop.f32.mrf.mxu2  ;;  %v869_v8 = vpop.f32.mrf.mxu0 }
 0x1bf   :  { %v1205_v6 = vpop.f32.mrf.mxu3  ;;  %1339 = vst.msk [vmem:[%s2732_s3 + $0x88] sm:$0xf] %vm1304_vm0, %v1297_v3  ;;  %v1093_v7 = vadd.f32 %v1092_v5, %v980_v4  ;;  %v982_v9 = vpop.f32.mrf.mxu1  ;;  %v870_v10 = vadd.f32 %v2659_v56, %v869_v8 }
 0x1c1   :  { %v1206_v11 = vadd.f32 %v1205_v6, %v1093_v7  ;;  %v983_v13 = vadd.f32 %v982_v9, %v870_v10 }
 0x1c3   :  { %v1257_v12 = vmax.f32 %v1206_v11, 0.0 }
 0x1c5   :  { %v1298_v14 = vpack.c.bf16 %v1257_v12, %v1257_v12 }
 0x1c6   :  { %v1095_v15 = vpop.f32.mrf.mxu2  ;;  %v871_v18 = vpop.f32.mrf.mxu0 }
 0x1c7   :  { %v1208_v16 = vpop.f32.mrf.mxu3  ;;  %1340 = vst.msk [vmem:[%s2732_s3 + $0x8c] sm:$0xf] %vm1304_vm0, %v1298_v14  ;;  %v1096_v17 = vadd.f32 %v1095_v15, %v983_v13  ;;  %v984_v19 = vpop.f32.mrf.mxu1  ;;  %v872_v21 = vadd.f32 %v2659_v56, %v871_v18 }
 0x1c9   :  { %v1209_v20 = vadd.f32 %v1208_v16, %v1096_v17  ;;  %v985_v24 = vadd.f32 %v984_v19, %v872_v21 }
 0x1cb   :  { %v1258_v22 = vmax.f32 %v1209_v20, 0.0 }
 0x1cd   :  { %v1299_v23 = vpack.c.bf16 %v1258_v22, %v1258_v22 }
 0x1ce   :  { %v1097_v25 = vpop.f32.mrf.mxu2  ;;  %v874_v28 = vpop.f32.mrf.mxu0 }
 0x1cf   :  { %v1210_v26 = vpop.f32.mrf.mxu3  ;;  %1341 = vst.msk [vmem:[%s2732_s3 + $0x90] sm:$0xf] %vm1304_vm0, %v1299_v23  ;;  %v1098_v27 = vadd.f32 %v1097_v25, %v985_v24  ;;  %v987_v29 = vpop.f32.mrf.mxu1  ;;  %v875_v30 = vadd.f32 %v2659_v56, %v874_v28 }
 0x1d1   :  { %v1211_v31 = vadd.f32 %v1210_v26, %v1098_v27  ;;  %v988_v33 = vadd.f32 %v987_v29, %v875_v30 }
 0x1d3   :  { %v1259_v32 = vmax.f32 %v1211_v31, 0.0 }
 0x1d5   :  { %v1300_v34 = vpack.c.bf16 %v1259_v32, %v1259_v32 }
 0x1d6   :  { %v1100_v35 = vpop.f32.mrf.mxu2  ;;  %v876_v38 = vpop.f32.mrf.mxu0 }
 0x1d7   :  { %v1213_v36 = vpop.f32.mrf.mxu3  ;;  %1342 = vst.msk [vmem:[%s2732_s3 + $0x94] sm:$0xf] %vm1304_vm0, %v1300_v34  ;;  %v1101_v37 = vadd.f32 %v1100_v35, %v988_v33  ;;  %v989_v39 = vpop.f32.mrf.mxu1  ;;  %v877_v41 = vadd.f32 %v2659_v56, %v876_v38 }
 0x1d9   :  { %v1214_v40 = vadd.f32 %v1213_v36, %v1101_v37  ;;  %v990_v44 = vadd.f32 %v989_v39, %v877_v41 }
 0x1db   :  { %v1260_v42 = vmax.f32 %v1214_v40, 0.0 }
 0x1dd   :  { %v1301_v43 = vpack.c.bf16 %v1260_v42, %v1260_v42 }
 0x1de   :  { %v1102_v45 = vpop.f32.mrf.mxu2  ;;  %v879_v48 = vpop.f32.mrf.mxu0 }
 0x1df   :  { %v1215_v46 = vpop.f32.mrf.mxu3  ;;  %1343 = vst.msk [vmem:[%s2732_s3 + $0x98] sm:$0xf] %vm1304_vm0, %v1301_v43  ;;  %v1103_v47 = vadd.f32 %v1102_v45, %v990_v44  ;;  %v992_v49 = vpop.f32.mrf.mxu1  ;;  %v880_v50 = vadd.f32 %v2659_v56, %v879_v48 }
 0x1e1   :  { %v1216_v51 = vadd.f32 %v1215_v46, %v1103_v47  ;;  %v993_v53 = vadd.f32 %v992_v49, %v880_v50 }
 0x1e3   :  { %v1261_v52 = vmax.f32 %v1216_v51, 0.0 }
 0x1e5   :  { %v1302_v54 = vpack.c.bf16 %v1261_v52, %v1261_v52 }
 0x1e6   :  { %v1105_v55 = vpop.f32.mrf.mxu2  ;;  %v881_v58 = vpop.f32.mrf.mxu0 }
 0x1e7   :  { %v1218_v0 = vpop.f32.mrf.mxu3  ;;  %1344 = vst.msk [vmem:[%s2732_s3 + $0x9c] sm:$0xf] %vm1304_vm0, %v1302_v54  ;;  %v1106_v57 = vadd.f32 %v1105_v55, %v993_v53  ;;  %v994_v59 = vpop.f32.mrf.mxu1 }
 0x1e9   :  { %v1219_v60 = vadd.f32 %v1218_v0, %v1106_v57 }
 0x1eb   :  { %v1262_v61 = vmax.f32 %v1219_v60, 0.0 }
 0x1ed   :  { %v1303_v62 = vpack.c.bf16 %v1262_v61, %v1262_v61 }
 0x1ee   :  { %v1107_v63 = vpop.f32.mrf.mxu2 }
 0x1ef   :  { %v1220_v56 = vpop.f32.mrf.mxu3  ;;  %1346 = vst.msk [vmem:[%s2732_s3 + $0xa0] sm:$0x3] %vm1345_vm1, %v1303_v62 }

// kernel: _lambda_.6
= control target key start
LH: loop header
LB: loop body
LE: loop exit
PB: predicated region body
PF: predicated region fallthrough
CT: control target
= control target key end

     0   :  { %vm699_vm0 = vcmask 523264   ;;  %vm1154_vm1 = vcmask 519168   ;;  %vm1179_vm2 = vcmask 517120   ;;  %s2424_s1 = inlined_call_operand.vmem [shape: bf16[576,64], index: 1, kind: input, shape index: {}]   ;;  %s2425_s2 = inlined_call_operand.vmem [shape: f32[1,64], index: 2, kind: input, shape index: {}]   ;;  %s2426_s0 = inlined_call_operand.vmem [shape: bf16[196,576], index: 0, kind: input, shape index: {}]   ;;  %s2427_s3 = inlined_call_operand.vmem [shape: bf16[196,64], index: 3, kind: output, shape index: {}]  }
   0x1   :  { %v1649_v0 = vld [vmem:[%s2424_s1 + $0x38] sm:$0xff]  ;;  %v1648_v1 = vld [vmem:[%s2424_s1 + $0x30] sm:$0xff]  ;;  %v1647_v2 = vld [vmem:[%s2424_s1 + $0x28] sm:$0xff] }
   0x2   :  { %739 = vmatpush.bf16.msra.mxu0 %v1649_v0  ;;  %1678 = vmatpush.bf16.msra.mxu1 %v1649_v0  ;;  %v1646_v3 = vld [vmem:[%s2424_s1 + $0x20] sm:$0xff]  ;;  %v1645_v4 = vld [vmem:[%s2424_s1 + $0x18] sm:$0xff]  ;;  %v1644_v5 = vld [vmem:[%s2424_s1 + $0x10] sm:$0xff] }
   0x3   :  { %1680 = vmatpush.bf16.msra.mxu3 %v1649_v0  ;;  %1679 = vmatpush.bf16.msra.mxu2 %v1649_v0  ;;  %v1643_v6 = vld [vmem:[%s2424_s1 + $0x8] sm:$0xff]  ;;  %v1642_v7 = vld [vmem:[%s2424_s1] sm:$0xff]  ;;  %v1584_v9 = vld [vmem:[%s2426_s0 + $0x10] sm:$0xf0] }
   0x4   :  { %v1187_v8 = vld [vmem:[%s2426_s0] sm:$0xf]  ;;  %v1604_v11 = vld [vmem:[%s2426_s0 + $0xb0] sm:$0xf0]  ;;  %v1657_v12 = vld [vmem:[%s2424_s1 + $0x78] sm:$0xff] }
   0x5   :  { %v1267_v10 = vld [vmem:[%s2426_s0 + $0xa0] sm:$0xf]  ;;  %v1387_v13 = vld [vmem:[%s2426_s0 + $0x190] sm:$0xf]  ;;  %v1634_v14 = vld [vmem:[%s2426_s0 + $0x1a0] sm:$0xf0]  ;;  %v1188_v17 = vor.u32 %v1584_v9, %v1187_v8 }
   0x6   :  { %740 = vmatpush.bf16.msra.mxu0 %v1648_v1  ;;  %1681 = vmatpush.bf16.msra.mxu1 %v1648_v1  ;;  %v1677_v15 = vld [vmem:[%s2424_s1 + $0x118] sm:$0xff]  ;;  %v1268_v18 = vor.u32 %v1604_v11, %v1267_v10  ;;  %v1388_v19 = vor.u32 %v1634_v14, %v1387_v13  ;;  %v1347_v20 = vld [vmem:[%s2426_s0 + $0x140] sm:$0xf]  ;;  %v1624_v21 = vld [vmem:[%s2426_s0 + $0x150] sm:$0xf0] }
   0x7   :  { %1683 = vmatpush.bf16.msra.mxu3 %v1648_v1  ;;  %1682 = vmatpush.bf16.msra.mxu2 %v1648_v1  ;;  %v1673_v16 = vld [vmem:[%s2424_s1 + $0xf8] sm:$0xff]  ;;  %v1656_v22 = vld [vmem:[%s2424_s1 + $0x70] sm:$0xff]  ;;  %v1348_v26 = vor.u32 %v1624_v21, %v1347_v20  ;;  %v1655_v27 = vld [vmem:[%s2424_s1 + $0x68] sm:$0xff] }
   0x8   :  { %v1665_v23 = vld [vmem:[%s2424_s1 + $0xb8] sm:$0xff]  ;;  %v1672_v24 = vld [vmem:[%s2424_s1 + $0xf0] sm:$0xff]  ;;  %v1671_v29 = vld [vmem:[%s2424_s1 + $0xe8] sm:$0xff] }
   0x9   :  { %v1676_v25 = vld [vmem:[%s2424_s1 + $0x110] sm:$0xff]  ;;  %v1675_v30 = vld [vmem:[%s2424_s1 + $0x108] sm:$0xff]  ;;  %v1654_v31 = vld [vmem:[%s2424_s1 + $0x60] sm:$0xff] }
   0xa   :  { %741 = vmatpush.bf16.msra.mxu0 %v1647_v2  ;;  %1684 = vmatpush.bf16.msra.mxu1 %v1647_v2  ;;  %v1664_v28 = vld [vmem:[%s2424_s1 + $0xb0] sm:$0xff]  ;;  %v1663_v32 = vld [vmem:[%s2424_s1 + $0xa8] sm:$0xff]  ;;  %v1670_v33 = vld [vmem:[%s2424_s1 + $0xe0] sm:$0xff] }
   0xb   :  { %1686 = vmatpush.bf16.msra.mxu3 %v1647_v2  ;;  %1685 = vmatpush.bf16.msra.mxu2 %v1647_v2  ;;  %v1207_v34 = vld [vmem:[%s2426_s0 + $0x28] sm:$0xf]  ;;  %v1589_v35 = vld [vmem:[%s2426_s0 + $0x38] sm:$0xf0]  ;;  %v1407_v38 = vld [vmem:[%s2426_s0 + $0x1b8] sm:$0xf] }
   0xc   :  { %v1287_v36 = vld [vmem:[%s2426_s0 + $0xc8] sm:$0xf]  ;;  %v1609_v37 = vld [vmem:[%s2426_s0 + $0xd8] sm:$0xf0]  ;;  %v1639_v39 = vld [vmem:[%s2426_s0 + $0x1c8] sm:$0xf0]  ;;  %v1208_v43 = vor.u32 %v1589_v35, %v1207_v34 }
   0xd   :  { %v1653_v40 = vld [vmem:[%s2424_s1 + $0x58] sm:$0xff]  ;;  %v1662_v41 = vld [vmem:[%s2424_s1 + $0xa0] sm:$0xff]  ;;  %v1288_v44 = vor.u32 %v1609_v37, %v1287_v36  ;;  %v1408_v45 = vor.u32 %v1639_v39, %v1407_v38  ;;  %v1367_v46 = vld [vmem:[%s2426_s0 + $0x168] sm:$0xf] }
   0xe   :  { %742 = vmatpush.bf16.msra.mxu0 %v1646_v3  ;;  %1687 = vmatpush.bf16.msra.mxu1 %v1646_v3  ;;  %v1669_v42 = vld [vmem:[%s2424_s1 + $0xd8] sm:$0xff]  ;;  %v1652_v49 = vld [vmem:[%s2424_s1 + $0x50] sm:$0xff]  ;;  %v1674_v52 = vld [vmem:[%s2424_s1 + $0x100] sm:$0xff] }
   0xf   :  { %1689 = vmatpush.bf16.msra.mxu3 %v1646_v3  ;;  %1688 = vmatpush.bf16.msra.mxu2 %v1646_v3  ;;  %v1629_v47 = vld [vmem:[%s2426_s0 + $0x178] sm:$0xf0]  ;;  %v1668_v50 = vld [vmem:[%s2424_s1 + $0xd0] sm:$0xff]  ;;  %v1651_v54 = vld [vmem:[%s2424_s1 + $0x48] sm:$0xff] }
  0x10   :  { %v1661_v48 = vld [vmem:[%s2424_s1 + $0x98] sm:$0xff]  ;;  %v1368_v51 = vor.u32 %v1629_v47, %v1367_v46  ;;  %v1660_v53 = vld [vmem:[%s2424_s1 + $0x90] sm:$0xff]  ;;  %v1667_v55 = vld [vmem:[%s2424_s1 + $0xc8] sm:$0xff] }
  0x11   :  { %v1870_v56 = vld [vmem:[%s2426_s0 + $0x1e0] sm:$0x33]  ;;  %v1659_v57 = vld [vmem:[%s2424_s1 + $0x88] sm:$0xff]  ;;  %v1227_v60 = vld [vmem:[%s2426_s0 + $0x50] sm:$0xf] }
  0x12   :  { %743 = vmatpush.bf16.msra.mxu0 %v1645_v4  ;;  %1690 = vmatpush.bf16.msra.mxu1 %v1645_v4  ;;  %v1650_v58 = vld [vmem:[%s2424_s1 + $0x40] sm:$0xff]  ;;  %v1307_v62 = vld [vmem:[%s2426_s0 + $0xf0] sm:$0xf]  ;;  %v361_v0 = vunpack.c.l.b16 %v1870_v56  ;;  %v1247_v8 = vld [vmem:[%s2426_s0 + $0x78] sm:$0xf] }
  0x13   :  { %1692 = vmatpush.bf16.msra.mxu3 %v1645_v4  ;;  %1691 = vmatpush.bf16.msra.mxu2 %v1645_v4  ;;  %v1666_v59 = vld [vmem:[%s2424_s1 + $0xc0] sm:$0xff]  ;;  %v1599_v9 = vld [vmem:[%s2426_s0 + $0x88] sm:$0xf0]  ;;  %v1327_v10 = vld [vmem:[%s2426_s0 + $0x118] sm:$0xf] }
  0x14   :  { %v1594_v61 = vld [vmem:[%s2426_s0 + $0x60] sm:$0xf0]  ;;  %v426_v4 = vpack.c.b16 %v361_v0, %v361_v0  ;;  %v1619_v11 = vld [vmem:[%s2426_s0 + $0x128] sm:$0xf0]  ;;  %v1197_v13 = vld [vmem:[%s2426_s0 + $0x1c] sm:$0xf0]  ;;  %v1248_v14 = vor.u32 %v1599_v9, %v1247_v8 }
  0x15   :  { %v1614_v63 = vld [vmem:[%s2426_s0 + $0x100] sm:$0xf0]  ;;  %v1228_v2 = vor.u32 %v1594_v61, %v1227_v60  ;;  %v1189_v21 = vld [vmem:[%s2426_s0 + $0x14] sm:$0xf0]  ;;  %v1591_v35 = vld [vmem:[%s2426_s0 + $0x48] sm:$0xf0] }
  0x16   :  { %744 = vmatpush.bf16.msra.mxu0 %v1644_v5  ;;  %1693 = vmatpush.bf16.msra.mxu1 %v1644_v5  ;;  %v1658_v1 = vld [vmem:[%s2424_s1 + $0x80] sm:$0xff]  ;;  %v1308_v3 = vor.u32 %v1614_v63, %v1307_v62  ;;  %v1223_v34 = vld [vmem:[%s2426_s0 + $0x38] sm:$0xf]  ;;  %v1593_v36 = vld [vmem:[%s2426_s0 + $0x5c] sm:$0xf] }
  0x17   :  { %1695 = vmatpush.bf16.msra.mxu3 %v1644_v5  ;;  %1694 = vmatpush.bf16.msra.mxu2 %v1644_v5  ;;  %v1195_v5 = vld [vmem:[%s2426_s0 + $0x8] sm:$0xf]  ;;  %v1582_v20 = vld [vmem:[%s2426_s0 + $0x4] sm:$0xf]  ;;  %v1237_v37 = vld [vmem:[%s2426_s0 + $0x6c] sm:$0xf0]  ;;  %v1224_v39 = vor.u32 %v1591_v35, %v1223_v34 }
  0x18   :  { %v1243_v46 = vld [vmem:[%s2426_s0 + $0x60] sm:$0xf]  ;;  %v1596_v47 = vld [vmem:[%s2426_s0 + $0x70] sm:$0xf0]  ;;  %v1601_v60 = vld [vmem:[%s2426_s0 + $0x98] sm:$0xf0] }
  0x19   :  { %v1603_v61 = vld [vmem:[%s2426_s0 + $0xac] sm:$0xf]  ;;  %v1277_v62 = vld [vmem:[%s2426_s0 + $0xbc] sm:$0xf0]  ;;  %v1606_v8 = vld [vmem:[%s2426_s0 + $0xc0] sm:$0xf0] }
  0x1a   :  { %745 = vmatpush.bf16.msra.mxu0 %v1643_v6  ;;  %1696 = vmatpush.bf16.msra.mxu1 %v1643_v6  ;;  %v2042_v9 = vld [vmem:[%s2425_s2] ss:$0 sm:$0xff] }
  0x1b   :  { %1698 = vmatpush.bf16.msra.mxu3 %v1643_v6  ;;  %1697 = vmatpush.bf16.msra.mxu2 %v1643_v6  ;;  %v1585_v6 = vld [vmem:[%s2426_s0 + $0x18] sm:$0xf0] }
  0x1e   :  { %746 = vmatpush.bf16.msra.mxu0 %v1642_v7  ;;  %1699 = vmatpush.bf16.msra.mxu1 %v1642_v7 }
  0x1f   :  { %1701 = vmatpush.bf16.msra.mxu3 %v1642_v7  ;;  %1700 = vmatpush.bf16.msra.mxu2 %v1642_v7  ;;  %v1196_v7 = vor.u32 %v1585_v6, %v1195_v5  ;;  %v1602_v5 = vld [vmem:[%s2426_s0 + $0xa4] sm:$0xf]  ;;  %v1269_v6 = vld [vmem:[%s2426_s0 + $0xb4] sm:$0xf0] }
  0x21   :  { %747 = vmatmul.bf16.vlgmr.msra.gmra.mxu0 %v1188_v17  ;;  %767 = vmatmul.bf16.vlgmr.msra.gmra.mxu1 %v1268_v18  ;;  %v1215_v17 = vld [vmem:[%s2426_s0 + $0x30] sm:$0xf]  ;;  %v1590_v18 = vld [vmem:[%s2426_s0 + $0x40] sm:$0xf0] }
  0x22   :  { %812 = vmatpush.bf16.msrb.mxu1 %v1657_v12  ;;  %1035 = vmatpush.bf16.msrb.mxu0 %v1677_v15  ;;  %v1583_v12 = vld [vmem:[%s2426_s0 + $0xc] sm:$0xf]  ;;  %v1328_v15 = vor.u32 %v1619_v11, %v1327_v10  ;;  %v1608_v10 = vld [vmem:[%s2426_s0 + $0xd4] sm:$0xf]  ;;  %v1297_v11 = vld [vmem:[%s2426_s0 + $0xe4] sm:$0xf0] }
  0x23   :  { %958 = vmatpush.bf16.msrb.mxu3 %v1673_v16  ;;  %885 = vmatpush.bf16.msrb.mxu2 %v1665_v23  ;;  %v1200_v16 = vor.u32 %v1583_v12, %v1197_v13  ;;  %v1586_v23 = vld [vmem:[%s2426_s0 + $0x20] sm:$0xf0]  ;;  %v1272_v12 = vor.u32 %v1602_v5, %v1269_v6  ;;  %v1625_v5 = vld [vmem:[%s2426_s0 + $0x158] sm:$0xf0] }
  0x24   :  { %797 = vmatmul.bf16.vlgmr.msra.gmra.mxu3 %v1388_v19  ;;  %787 = vmatmul.bf16.vlgmr.msra.gmra.mxu2 %v1348_v26  ;;  %v1216_v19 = vor.u32 %v1590_v18, %v1215_v17  ;;  %v1192_v26 = vor.u32 %v1582_v20, %v1189_v21  ;;  %v1315_v17 = vld [vmem:[%s2426_s0 + $0xf8] sm:$0xf]  ;;  %v1615_v18 = vld [vmem:[%s2426_s0 + $0x108] sm:$0xf0] }
  0x25   :  { %v1316_v20 = vor.u32 %v1615_v18, %v1315_v17  ;;  %v1617_v18 = vld [vmem:[%s2426_s0 + $0x11c] sm:$0xf] }
  0x26   :  { %813 = vmatpush.bf16.msrb.mxu1 %v1656_v22  ;;  %1036 = vmatpush.bf16.msrb.mxu0 %v1676_v25  ;;  %v1203_v22 = vld [vmem:[%s2426_s0 + $0x10] sm:$0xf]  ;;  %v1217_v25 = vld [vmem:[%s2426_s0 + $0x44] sm:$0xf0] }
  0x27   :  { %959 = vmatpush.bf16.msrb.mxu3 %v1672_v24  ;;  %886 = vmatpush.bf16.msrb.mxu2 %v1664_v28  ;;  %v1588_v24 = vld [vmem:[%s2426_s0 + $0x34] sm:$0xf] }
  0x28   :  { %v1220_v28 = vor.u32 %v1588_v24, %v1217_v25 }
  0x2a   :  { %814 = vmatpush.bf16.msrb.mxu1 %v1655_v27  ;;  %1037 = vmatpush.bf16.msrb.mxu0 %v1675_v30  ;;  %v1204_v27 = vor.u32 %v1586_v23, %v1203_v22  ;;  %v1595_v30 = vld [vmem:[%s2426_s0 + $0x68] sm:$0xf0] }
  0x2b   :  { %960 = vmatpush.bf16.msrb.mxu3 %v1671_v29  ;;  %887 = vmatpush.bf16.msrb.mxu2 %v1663_v32  ;;  %v1235_v29 = vld [vmem:[%s2426_s0 + $0x58] sm:$0xf]  ;;  %v1587_v32 = vld [vmem:[%s2426_s0 + $0x2c] sm:$0xf] }
  0x2e   :  { %815 = vmatpush.bf16.msrb.mxu1 %v1654_v31  ;;  %1038 = vmatpush.bf16.msrb.mxu0 %v1674_v52  ;;  %v1236_v31 = vor.u32 %v1595_v30, %v1235_v29  ;;  %v1289_v29 = vld [vmem:[%s2426_s0 + $0xdc] sm:$0xf0]  ;;  %v1303_v30 = vld [vmem:[%s2426_s0 + $0xd8] sm:$0xf] }
  0x2f   :  { %961 = vmatpush.bf16.msrb.mxu3 %v1670_v33  ;;  %888 = vmatpush.bf16.msrb.mxu2 %v1662_v41  ;;  %v1209_v33 = vld [vmem:[%s2426_s0 + $0x3c] sm:$0xf0] }
  0x30   :  { %v1212_v38 = vor.u32 %v1587_v32, %v1209_v33  ;;  %v1255_v41 = vld [vmem:[%s2426_s0 + $0x80] sm:$0xf]  ;;  %v1613_v32 = vld [vmem:[%s2426_s0 + $0xfc] sm:$0xf]  ;;  %v1317_v33 = vld [vmem:[%s2426_s0 + $0x10c] sm:$0xf0] }
  0x31   :  { %752 = vmatmul.bf16.gmra.mxu0 %v1208_v43  ;;  %772 = vmatmul.bf16.gmra.mxu1 %v1288_v44  ;;  %v1592_v44 = vld [vmem:[%s2426_s0 + $0x54] sm:$0xf] }
  0x32   :  { %816 = vmatpush.bf16.msrb.mxu1 %v1653_v40  ;;  %v1240_v40 = vor.u32 %v1593_v36, %v1237_v37 }
  0x33   :  { %962 = vmatpush.bf16.msrb.mxu3 %v1669_v42  ;;  %889 = vmatpush.bf16.msrb.mxu2 %v1661_v48  ;;  %v1600_v42 = vld [vmem:[%s2426_s0 + $0x90] sm:$0xf0]  ;;  %v1598_v48 = vld [vmem:[%s2426_s0 + $0x84] sm:$0xf] }
  0x34   :  { %802 = vmatmul.bf16.gmra.mxu3 %v1408_v45  ;;  %792 = vmatmul.bf16.gmra.mxu2 %v1368_v51  ;;  %v1256_v43 = vor.u32 %v1600_v42, %v1255_v41  ;;  %v1229_v45 = vld [vmem:[%s2426_s0 + $0x64] sm:$0xf0]  ;;  %v1244_v51 = vor.u32 %v1596_v47, %v1243_v46  ;;  %v1335_v41 = vld [vmem:[%s2426_s0 + $0x120] sm:$0xf]  ;;  %v1620_v42 = vld [vmem:[%s2426_s0 + $0x130] sm:$0xf0] }
  0x35   :  { %v1336_v46 = vor.u32 %v1620_v42, %v1335_v41 }
  0x36   :  { %817 = vmatpush.bf16.msrb.mxu1 %v1652_v49  ;;  %v1257_v49 = vld [vmem:[%s2426_s0 + $0x94] sm:$0xf0] }
  0x37   :  { %963 = vmatpush.bf16.msrb.mxu3 %v1668_v50  ;;  %890 = vmatpush.bf16.msrb.mxu2 %v1660_v53  ;;  %v1232_v50 = vor.u32 %v1592_v44, %v1229_v45  ;;  %v1260_v52 = vor.u32 %v1598_v48, %v1257_v49  ;;  %v1275_v53 = vld [vmem:[%s2426_s0 + $0xa8] sm:$0xf] }
  0x3a   :  { %818 = vmatpush.bf16.msrb.mxu1 %v1651_v54  ;;  %v1605_v54 = vld [vmem:[%s2426_s0 + $0xb8] sm:$0xf0] }
  0x3b   :  { %964 = vmatpush.bf16.msrb.mxu3 %v1667_v55  ;;  %891 = vmatpush.bf16.msrb.mxu2 %v1659_v57  ;;  %v1276_v55 = vor.u32 %v1605_v54, %v1275_v53  ;;  %v1597_v57 = vld [vmem:[%s2426_s0 + $0x7c] sm:$0xf]  ;;  %v1612_v53 = vld [vmem:[%s2426_s0 + $0xf4] sm:$0xf] }
  0x3e   :  { %819 = vmatpush.bf16.msrb.mxu1 %v1650_v58  ;;  %v1249_v58 = vld [vmem:[%s2426_s0 + $0x8c] sm:$0xf0] }
  0x3f   :  { %965 = vmatpush.bf16.msrb.mxu3 %v1666_v59  ;;  %892 = vmatpush.bf16.msrb.mxu2 %v1658_v1  ;;  %v1263_v59 = vld [vmem:[%s2426_s0 + $0x88] sm:$0xf]  ;;  %v1252_v63 = vor.u32 %v1597_v57, %v1249_v58  ;;  %v1280_v1 = vor.u32 %v1603_v61, %v1277_v62  ;;  %v1323_v57 = vld [vmem:[%s2426_s0 + $0x100] sm:$0xf]  ;;  %v1616_v58 = vld [vmem:[%s2426_s0 + $0x110] sm:$0xf0] }
  0x40   :  { %v1264_v0 = vor.u32 %v1601_v60, %v1263_v59  ;;  %v1618_v59 = vld [vmem:[%s2426_s0 + $0x124] sm:$0xf]  ;;  %v1337_v60 = vld [vmem:[%s2426_s0 + $0x134] sm:$0xf0]  ;;  %v1324_v62 = vor.u32 %v1616_v58, %v1323_v57  ;;  %v1628_v58 = vld [vmem:[%s2426_s0 + $0x174] sm:$0xf] }
  0x41   :  { %757 = vmatmul.bf16.gmra.mxu0 %v1228_v2  ;;  %777 = vmatmul.bf16.gmra.mxu1 %v1308_v3  ;;  %v1295_v2 = vld [vmem:[%s2426_s0 + $0xd0] sm:$0xf]  ;;  %v1610_v3 = vld [vmem:[%s2426_s0 + $0xe0] sm:$0xf0] }
  0x42   :  { %v1626_v57 = vld [vmem:[%s2426_s0 + $0x160] sm:$0xf0] }
  0x44   :  { %807 = vmatmul.bf16.gmra.mxu3 %v426_v4  ;;  %893 = vmatmul.bf16.vlgmr.msrb.gmra.mxu2 %v1196_v7  ;;  %v1296_v4 = vor.u32 %v1610_v3, %v1295_v2  ;;  %v1283_v7 = vld [vmem:[%s2426_s0 + $0xb0] sm:$0xf]  ;;  %v1340_v3 = vor.u32 %v1618_v59, %v1337_v60  ;;  %v1377_v59 = vld [vmem:[%s2426_s0 + $0x184] sm:$0xf0] }
  0x45   :  { %v1284_v13 = vor.u32 %v1606_v8, %v1283_v7 }
  0x51   :  { %762 = vmatmul.bf16.gmra.mxu0 %v1248_v14  ;;  %782 = vmatmul.bf16.gmra.mxu1 %v1328_v15 }
  0x54   :  { %966 = vmatmul.bf16.vlgmr.msrb.gmra.mxu3 %v1200_v16  ;;  %898 = vmatmul.bf16.gmra.mxu2 %v1216_v19  ;;  %v1300_v16 = vor.u32 %v1608_v10, %v1297_v11 }
  0x61   :  { %820 = vmatmul.bf16.vlgmr.msrb.gmra.mxu1 %v1192_v26  ;;  %1569 = vmatmul.msk.bf16.vlgmr.msrb.gmra.mxu0 %vm699_vm0, %v1204_v27  ;;  %v1607_v27 = vld [vmem:[%s2426_s0 + $0xcc] sm:$0xf] }
  0x62   :  { %v1292_v34 = vor.u32 %v1607_v27, %v1289_v29  ;;  %v1357_v27 = vld [vmem:[%s2426_s0 + $0x15c] sm:$0xf0] }
  0x64   :  { %971 = vmatmul.bf16.gmra.mxu3 %v1220_v28  ;;  %903 = vmatmul.bf16.gmra.mxu2 %v1236_v31  ;;  %v1611_v31 = vld [vmem:[%s2426_s0 + $0xe8] sm:$0xf0] }
  0x65   :  { %v1304_v35 = vor.u32 %v1611_v31, %v1303_v30 }
  0x71   :  { %825 = vmatmul.bf16.gmra.mxu1 %v1212_v38  ;;  %1570 = vmatmul.msk.bf16.gmra.mxu0 %vm699_vm0, %v1224_v39 }
  0x74   :  { %976 = vmatmul.bf16.gmra.mxu3 %v1240_v40  ;;  %908 = vmatmul.bf16.gmra.mxu2 %v1256_v43  ;;  %v1320_v40 = vor.u32 %v1613_v32, %v1317_v33 }
  0x81   :  { %830 = vmatmul.bf16.gmra.mxu1 %v1232_v50  ;;  %1571 = vmatmul.msk.bf16.gmra.mxu0 %vm699_vm0, %v1244_v51 }
  0x84   :  { %981 = vmatmul.bf16.gmra.mxu3 %v1260_v52  ;;  %913 = vmatmul.bf16.gmra.mxu2 %v1276_v55  ;;  %v1309_v55 = vld [vmem:[%s2426_s0 + $0x104] sm:$0xf0] }
  0x85   :  { %v1312_v61 = vor.u32 %v1612_v53, %v1309_v55  ;;  %v1349_v53 = vld [vmem:[%s2426_s0 + $0x154] sm:$0xf0]  ;;  %v1363_v55 = vld [vmem:[%s2426_s0 + $0x150] sm:$0xf] }
  0x91   :  { %835 = vmatmul.bf16.gmra.mxu1 %v1252_v63  ;;  %1572 = vmatmul.msk.bf16.gmra.mxu0 %vm699_vm0, %v1264_v0 }
  0x94   :  { %986 = vmatmul.bf16.gmra.mxu3 %v1280_v1  ;;  %918 = vmatmul.bf16.gmra.mxu2 %v1296_v4  ;;  %v1355_v4 = vld [vmem:[%s2426_s0 + $0x148] sm:$0xf] }
  0x95   :  { %v1356_v10 = vor.u32 %v1625_v5, %v1355_v4  ;;  %v1380_v4 = vor.u32 %v1628_v58, %v1377_v59  ;;  %v1395_v5 = vld [vmem:[%s2426_s0 + $0x198] sm:$0xf] }
  0x9e   :  { %v2050_v14 = vpop.f32.mrf.mxu0  ;;  %v768_v15 = vpop.f32.mrf.mxu1 }
  0x9f   :  { %v2059_v19 = vadd.f32 %v2042_v9, %v768_v15  ;;  %v749_v60 = vadd.f32 %v2042_v9, %v2050_v14 }
  0xa1   :  { %840 = vmatmul.bf16.gmra.mxu1 %v1272_v12  ;;  %1573 = vmatmul.msk.bf16.gmra.mxu0 %vm699_vm0, %v1284_v13 }
  0xa4   :  { %991 = vmatmul.bf16.gmra.mxu3 %v1300_v16  ;;  %923 = vmatmul.bf16.gmra.mxu2 %v1316_v20  ;;  %v1329_v20 = vld [vmem:[%s2426_s0 + $0x12c] sm:$0xf0] }
  0xa5   :  { %v1332_v29 = vor.u32 %v1617_v18, %v1329_v20 }
  0xa6   :  { %v2062_v22 = vpop.f32.mrf.mxu0  ;;  %v770_v23 = vpop.f32.mrf.mxu1 }
  0xa7   :  { %v798_v21 = vpop.f32.mrf.mxu3  ;;  %v2068_v25 = vadd.f32 %v2042_v9, %v770_v23  ;;  %v788_v26 = vpop.f32.mrf.mxu2  ;;  %v1621_v23 = vld [vmem:[%s2426_s0 + $0x138] sm:$0xf0]  ;;  %v751_v20 = vadd.f32 %v2042_v9, %v2062_v22  ;;  %v1369_v22 = vld [vmem:[%s2426_s0 + $0x17c] sm:$0xf0] }
  0xa8   :  { %v2065_v24 = vadd.f32 %v2042_v9, %v798_v21  ;;  %v2074_v28 = vadd.f32 %v2042_v9, %v788_v26  ;;  %v1343_v21 = vld [vmem:[%s2426_s0 + $0x128] sm:$0xf]  ;;  %v1623_v26 = vld [vmem:[%s2426_s0 + $0x14c] sm:$0xf] }
  0xa9   :  { %v1344_v30 = vor.u32 %v1621_v23, %v1343_v21 }
  0xae   :  { %v2091_v37 = vpop.f32.mrf.mxu0  ;;  %v773_v38 = vpop.f32.mrf.mxu1 }
  0xaf   :  { %v800_v36 = vpop.f32.mrf.mxu3  ;;  %v2103_v43 = vadd.f32 %v2042_v9, %v773_v38  ;;  %v790_v44 = vpop.f32.mrf.mxu2 }
  0xb0   :  { %v2094_v39 = vadd.f32 %v2042_v9, %v800_v36  ;;  %v2107_v45 = vadd.f32 %v2042_v9, %v790_v44  ;;  %v1630_v36 = vld [vmem:[%s2426_s0 + $0x180] sm:$0xf0] }
  0xb1   :  { %845 = vmatmul.bf16.gmra.mxu1 %v1292_v34  ;;  %1574 = vmatmul.msk.bf16.gmra.mxu0 %vm699_vm0, %v1304_v35  ;;  %v1360_v34 = vor.u32 %v1623_v26, %v1357_v27  ;;  %v1375_v35 = vld [vmem:[%s2426_s0 + $0x170] sm:$0xf] }
  0xb2   :  { %v1376_v41 = vor.u32 %v1630_v36, %v1375_v35  ;;  %v1383_v35 = vld [vmem:[%s2426_s0 + $0x178] sm:$0xf]  ;;  %v1631_v36 = vld [vmem:[%s2426_s0 + $0x188] sm:$0xf0] }
  0xb4   :  { %996 = vmatmul.bf16.gmra.mxu3 %v1320_v40  ;;  %928 = vmatmul.bf16.gmra.mxu2 %v1336_v46 }
  0xb6   :  { %v2109_v48 = vpop.f32.mrf.mxu0  ;;  %v775_v49 = vpop.f32.mrf.mxu1 }
  0xb7   :  { %v803_v47 = vpop.f32.mrf.mxu3  ;;  %v2115_v51 = vadd.f32 %v2042_v9, %v775_v49  ;;  %v793_v52 = vpop.f32.mrf.mxu2 }
  0xb8   :  { %v2112_v50 = vadd.f32 %v2042_v9, %v803_v47  ;;  %v2121_v54 = vadd.f32 %v2042_v9, %v793_v52  ;;  %v1622_v52 = vld [vmem:[%s2426_s0 + $0x144] sm:$0xf] }
  0xbe   :  { %v2138_v0 = vpop.f32.mrf.mxu0  ;;  %v778_v1 = vpop.f32.mrf.mxu1 }
  0xbf   :  { %v805_v63 = vpop.f32.mrf.mxu3  ;;  %v2150_v6 = vadd.f32 %v2042_v9, %v778_v1  ;;  %v795_v7 = vpop.f32.mrf.mxu2 }
  0xc0   :  { %v2141_v2 = vadd.f32 %v2042_v9, %v805_v63  ;;  %v2154_v8 = vadd.f32 %v2042_v9, %v795_v7  ;;  %v1635_v7 = vld [vmem:[%s2426_s0 + $0x1a8] sm:$0xf0] }
  0xc1   :  { %850 = vmatmul.bf16.gmra.mxu1 %v1312_v61  ;;  %1575 = vmatmul.msk.bf16.gmra.mxu0 %vm699_vm0, %v1324_v62  ;;  %v1352_v61 = vor.u32 %v1622_v52, %v1349_v53  ;;  %v1364_v62 = vor.u32 %v1626_v57, %v1363_v55  ;;  %v1396_v14 = vor.u32 %v1635_v7, %v1395_v5 }
  0xc2   :  { %v1384_v55 = vor.u32 %v1631_v36, %v1383_v35  ;;  %v759_v35 = vadd.f32 %v2042_v9, %v2138_v0 }
  0xc4   :  { %1001 = vmatmul.bf16.gmra.mxu3 %v1340_v3  ;;  %933 = vmatmul.bf16.gmra.mxu2 %v1356_v10 }
  0xc6   :  { %v2156_v12 = vpop.f32.mrf.mxu0  ;;  %v780_v13 = vpop.f32.mrf.mxu1 }
  0xc7   :  { %v808_v11 = vpop.f32.mrf.mxu3  ;;  %v2162_v16 = vadd.f32 %v2042_v9, %v780_v13  ;;  %v894_v17 = vpop.f32.mrf.mxu2 }
  0xc8   :  { %v2159_v15 = vadd.f32 %v2042_v9, %v808_v11 }
  0xce   :  { %v2182_v32 = vpop.f32.mrf.mxu0  ;;  %v783_v33 = vpop.f32.mrf.mxu1 }
  0xcf   :  { %v810_v31 = vpop.f32.mrf.mxu3  ;;  %v2191_v38 = vadd.f32 %v2042_v9, %v783_v33  ;;  %v896_v40 = vpop.f32.mrf.mxu2 }
  0xd1   :  { %855 = vmatmul.bf16.gmra.mxu1 %v1332_v29  ;;  %1576 = vmatmul.msk.bf16.gmra.mxu0 %vm699_vm0, %v1344_v30 }
  0xd4   :  { %1006 = vmatmul.bf16.gmra.mxu3 %v1360_v34  ;;  %938 = vmatmul.bf16.gmra.mxu2 %v1376_v41  ;;  %v1627_v34 = vld [vmem:[%s2426_s0 + $0x16c] sm:$0xf]  ;;  %v1633_v41 = vld [vmem:[%s2426_s0 + $0x19c] sm:$0xf] }
  0xd5   :  { %v1372_v53 = vor.u32 %v1627_v34, %v1369_v22  ;;  %v1638_v34 = vld [vmem:[%s2426_s0 + $0x1c4] sm:$0xf]  ;;  %v1417_v22 = vld [vmem:[%s2426_s0 + $0x1d4] sm:$0xf0] }
  0xd6   :  { %v2194_v44 = vpop.f32.mrf.mxu0  ;;  %v785_v46 = vpop.f32.mrf.mxu1 }
  0xd7   :  { %v967_v42 = vpop.f32.mrf.mxu3  ;;  %v2197_v47 = vadd.f32 %v2042_v9, %v785_v46  ;;  %v899_v49 = vpop.f32.mrf.mxu2  ;;  %v754_v46 = vadd.f32 %v2042_v9, %v2091_v37 }
  0xde   :  { %v821_v1 = vpop.f32.mrf.mxu1  ;;  %v1040_v3 = vpop.f32.mrf.mxu0 }
  0xdf   :  { %v969_v63 = vpop.f32.mrf.mxu3  ;;  %v822_v10 = vadd.f32 %v821_v1, %v749_v60  ;;  %v901_v11 = vpop.f32.mrf.mxu2 }
  0xe1   :  { %v895_v13 = vadd.f32 %v894_v17, %v822_v10  ;;  %860 = vmatmul.bf16.gmra.mxu1 %v1352_v61  ;;  %1577 = vmatmul.msk.bf16.gmra.mxu0 %vm699_vm0, %v1364_v62  ;;  %v1415_v61 = vld [vmem:[%s2426_s0 + $0x1c0] sm:$0xf]  ;;  %v1640_v62 = vld [vmem:[%s2426_s0 + $0x1d0] sm:$0xf0]  ;;  %v756_v10 = vadd.f32 %v2042_v9, %v2109_v48 }
  0xe2   :  { %v1416_v5 = vor.u32 %v1640_v62, %v1415_v61  ;;  %v1403_v48 = vld [vmem:[%s2426_s0 + $0x1a0] sm:$0xf] }
  0xe3   :  { %v968_v18 = vadd.f32 %v967_v42, %v895_v13  ;;  %v1397_v42 = vld [vmem:[%s2426_s0 + $0x1ac] sm:$0xf0] }
  0xe4   :  { %1011 = vmatmul.bf16.gmra.mxu3 %v1380_v4  ;;  %943 = vmatmul.bf16.gmra.mxu2 %v1396_v14  ;;  %v1400_v60 = vor.u32 %v1633_v41, %v1397_v42 }
  0xe5   :  { %v1041_v21 = vadd.f32 %v1040_v3, %v968_v18 }
  0xe6   :  { %v823_v26 = vpop.f32.mrf.mxu1  ;;  %v1042_v27 = vpop.f32.mrf.mxu0 }
  0xe7   :  { %v972_v23 = vpop.f32.mrf.mxu3  ;;  %v1104_v29 = vmax.f32 %v1041_v21, 0.0  ;;  %v824_v30 = vadd.f32 %v823_v26, %v751_v20  ;;  %v2228_v31 = vpop.f32.mrf.mxu2 }
  0xe9   :  { %v1129_v17 = vpack.c.bf16 %v1104_v29, %v1104_v29  ;;  %v897_v33 = vadd.f32 %v896_v40, %v824_v30  ;;  %v1632_v30 = vld [vmem:[%s2426_s0 + $0x194] sm:$0xf] }
  0xeb   :  { %1155 = vst.msk [vmem:[%s2427_s3] sm:$0xf] %vm1154_vm1, %v1129_v17  ;;  %v970_v40 = vadd.f32 %v969_v63, %v897_v33  ;;  %v1636_v17 = vld [vmem:[%s2426_s0 + $0x1b0] sm:$0xf0] }
  0xec   :  { %v1404_v41 = vor.u32 %v1636_v17, %v1403_v48 }
  0xed   :  { %v1043_v52 = vadd.f32 %v1042_v27, %v970_v40 }
  0xee   :  { %v826_v58 = vpop.f32.mrf.mxu1  ;;  %v1045_v59 = vpop.f32.mrf.mxu0 }
  0xef   :  { %v974_v57 = vpop.f32.mrf.mxu3  ;;  %v1105_v63 = vmax.f32 %v1043_v52, 0.0  ;;  %v827_v1 = vadd.f32 %v826_v58, %v754_v46  ;;  %v906_v3 = vpop.f32.mrf.mxu2 }
  0xf1   :  { %v1130_v4 = vpack.c.bf16 %v1105_v63, %v1105_v63  ;;  %v900_v37 = vadd.f32 %v899_v49, %v827_v1  ;;  %865 = vmatmul.bf16.gmra.mxu1 %v1372_v53  ;;  %1578 = vmatmul.msk.bf16.gmra.mxu0 %vm699_vm0, %v1384_v55  ;;  %v1420_v55 = vor.u32 %v1638_v34, %v1417_v22 }
  0xf2   :  { %v761_v63 = vadd.f32 %v2042_v9, %v2156_v12  ;;  %v1423_v12 = vld [vmem:[%s2426_s0 + $0x1c8] sm:$0xf] }
  0xf3   :  { %1156 = vst.msk [vmem:[%s2427_s3 + $0x4] sm:$0xf] %vm1154_vm1, %v1130_v4  ;;  %v973_v7 = vadd.f32 %v972_v23, %v900_v37  ;;  %v1389_v23 = vld [vmem:[%s2426_s0 + $0x1a4] sm:$0xf0] }
  0xf4   :  { %1016 = vmatmul.bf16.gmra.mxu3 %v1400_v60  ;;  %948 = vmatmul.bf16.gmra.mxu2 %v1416_v5  ;;  %v1392_v40 = vor.u32 %v1632_v30, %v1389_v23 }
  0xf5   :  { %v1046_v13 = vadd.f32 %v1045_v59, %v973_v7 }
  0xf6   :  { %v828_v18 = vpop.f32.mrf.mxu1  ;;  %v1047_v20 = vpop.f32.mrf.mxu0 }
  0xf7   :  { %v977_v14 = vpop.f32.mrf.mxu3  ;;  %v1106_v49 = vmax.f32 %v1046_v13, 0.0  ;;  %v829_v21 = vadd.f32 %v828_v18, %v756_v10  ;;  %v909_v26 = vpop.f32.mrf.mxu2 }
  0xf9   :  { %v1131_v27 = vpack.c.bf16 %v1106_v49, %v1106_v49  ;;  %v902_v29 = vadd.f32 %v901_v11, %v829_v21  ;;  %v88_v11 = vld [vmem:[%s2426_s0 + $0x1e8] sm:$0x33]  ;;  %v1641_v49 = vld [vmem:[%s2426_s0 + $0x1d8] sm:$0xf0] }
  0xfa   :  { %v363_v46 = vunpack.c.l.b16 %v88_v11  ;;  %v364_v21 = vunpack.c.h.b16 %v88_v11  ;;  %v1424_v23 = vor.u32 %v1641_v49, %v1423_v12 }
  0xfb   :  { %1157 = vst.msk [vmem:[%s2427_s3 + $0x8] sm:$0xf] %vm1154_vm1, %v1131_v27  ;;  %v975_v33 = vadd.f32 %v974_v57, %v902_v29  ;;  %v764_v27 = vadd.f32 %v2042_v9, %v2182_v32 }
  0xfc   :  { %v428_v62 = vpack.c.b16 %v363_v46, %v363_v46  ;;  %v429_v34 = vpack.c.b16 %v364_v21, %v364_v21 }
  0xfd   :  { %v1048_v36 = vadd.f32 %v1047_v20, %v975_v33  ;;  %v1637_v20 = vld [vmem:[%s2426_s0 + $0x1bc] sm:$0xf] }
  0xfe   :  { %v831_v52 = vpop.f32.mrf.mxu1  ;;  %v1050_v53 = vpop.f32.mrf.mxu0 }
  0xff   :  { %v979_v42 = vpop.f32.mrf.mxu3  ;;  %v1107_v57 = vmax.f32 %v1048_v36, 0.0  ;;  %v832_v58 = vadd.f32 %v831_v52, %v759_v35  ;;  %v911_v59 = vpop.f32.mrf.mxu2 }
 0x101   :  { %v1132_v60 = vpack.c.bf16 %v1107_v57, %v1107_v57  ;;  %v905_v61 = vadd.f32 %v2228_v31, %v832_v58  ;;  %870 = vmatmul.bf16.gmra.mxu1 %v1392_v40  ;;  %1579 = vmatmul.msk.bf16.gmra.mxu0 %vm699_vm0, %v1404_v41  ;;  %v766_v41 = vadd.f32 %v2042_v9, %v2194_v44 }
 0x103   :  { %1158 = vst.msk [vmem:[%s2427_s3 + $0xc] sm:$0xf] %vm1154_vm1, %v1132_v60  ;;  %v978_v0 = vadd.f32 %v977_v14, %v905_v61  ;;  %v1409_v14 = vld [vmem:[%s2426_s0 + $0x1cc] sm:$0xf0]  ;;  %v362_v60 = vunpack.c.h.b16 %v1870_v56 }
 0x104   :  { %1021 = vmatmul.bf16.gmra.mxu3 %v1420_v55  ;;  %953 = vmatmul.bf16.gmra.mxu2 %v428_v62  ;;  %v1412_v30 = vor.u32 %v1637_v20, %v1409_v14 }
 0x105   :  { %v1051_v1 = vadd.f32 %v1050_v53, %v978_v0 }
 0x106   :  { %v833_v37 = vpop.f32.mrf.mxu1  ;;  %v1052_v5 = vpop.f32.mrf.mxu0 }
 0x107   :  { %v982_v4 = vpop.f32.mrf.mxu3  ;;  %v1108_v31 = vmax.f32 %v1051_v1, 0.0  ;;  %v834_v7 = vadd.f32 %v833_v37, %v761_v63  ;;  %v914_v10 = vpop.f32.mrf.mxu2  ;;  %v427_v63 = vpack.c.b16 %v362_v60, %v362_v60 }
 0x109   :  { %v1133_v13 = vpack.c.bf16 %v1108_v31, %v1108_v31  ;;  %v907_v18 = vadd.f32 %v906_v3, %v834_v7 }
 0x10b   :  { %1159 = vst.msk [vmem:[%s2427_s3 + $0x10] sm:$0xf] %vm1154_vm1, %v1133_v13  ;;  %v980_v3 = vadd.f32 %v979_v42, %v907_v18 }
 0x10d   :  { %v1053_v29 = vadd.f32 %v1052_v5, %v980_v3 }
 0x10e   :  { %v836_v17 = vpop.f32.mrf.mxu1  ;;  %v1055_v33 = vpop.f32.mrf.mxu0 }
 0x10f   :  { %v984_v48 = vpop.f32.mrf.mxu3  ;;  %v1109_v22 = vmax.f32 %v1053_v29, 0.0  ;;  %v837_v35 = vadd.f32 %v836_v17, %v764_v27  ;;  %v916_v36 = vpop.f32.mrf.mxu2 }
 0x111   :  { %v1134_v11 = vpack.c.bf16 %v1109_v22, %v1109_v22  ;;  %v910_v40 = vadd.f32 %v909_v26, %v837_v35  ;;  %875 = vmatmul.bf16.gmra.mxu1 %v1412_v30  ;;  %1580 = vmatmul.msk.bf16.gmra.mxu0 %vm699_vm0, %v1424_v23  ;;  %v89_v26 = vld [vmem:[%s2426_s0 + $0x1f0] sm:$0x3] }
 0x112   :  { %v365_v0 = vunpack.c.l.b16 %v89_v26 }
 0x113   :  { %1160 = vst.msk [vmem:[%s2427_s3 + $0x14] sm:$0xf] %vm1154_vm1, %v1134_v11  ;;  %v983_v32 = vadd.f32 %v982_v4, %v910_v40 }
 0x114   :  { %1026 = vmatmul.bf16.gmra.mxu3 %v429_v34  ;;  %v430_v1 = vpack.c.b16 %v365_v0, %v365_v0 }
 0x115   :  { %v1056_v42 = vadd.f32 %v1055_v33, %v983_v32 }
 0x116   :  { %v838_v52 = vpop.f32.mrf.mxu1  ;;  %v1057_v53 = vpop.f32.mrf.mxu0 }
 0x117   :  { %v987_v46 = vpop.f32.mrf.mxu3  ;;  %v1110_v55 = vmax.f32 %v1056_v42, 0.0  ;;  %v839_v57 = vadd.f32 %v838_v52, %v766_v41  ;;  %v919_v58 = vpop.f32.mrf.mxu2 }
 0x119   :  { %v1135_v61 = vpack.c.bf16 %v1110_v55, %v1110_v55  ;;  %v912_v62 = vadd.f32 %v911_v59, %v839_v57 }
 0x11b   :  { %1161 = vst.msk [vmem:[%s2427_s3 + $0x18] sm:$0xf] %vm1154_vm1, %v1135_v61  ;;  %v985_v9 = vadd.f32 %v984_v48, %v912_v62 }
 0x11d   :  { %v1058_v44 = vadd.f32 %v1057_v53, %v985_v9 }
 0x11e   :  { %v841_v37 = vpop.f32.mrf.mxu1  ;;  %v1060_v5 = vpop.f32.mrf.mxu0 }
 0x11f   :  { %v989_v4 = vpop.f32.mrf.mxu3  ;;  %v1111_v31 = vmax.f32 %v1058_v44, 0.0  ;;  %v842_v7 = vadd.f32 %v841_v37, %v2059_v19  ;;  %v921_v13 = vpop.f32.mrf.mxu2 }
 0x121   :  { %v1136_v56 = vpack.c.bf16 %v1111_v31, %v1111_v31  ;;  %v915_v18 = vadd.f32 %v914_v10, %v842_v7  ;;  %880 = vmatmul.bf16.gmra.mxu1 %v427_v63  ;;  %1581 = vmatmul.msk.bf16.gmra.mxu0 %vm699_vm0, %v430_v1 }
 0x123   :  { %1162 = vst.msk [vmem:[%s2427_s3 + $0x1c] sm:$0xf] %vm1154_vm1, %v1136_v56  ;;  %v988_v59 = vadd.f32 %v987_v46, %v915_v18 }
 0x125   :  { %v1061_v20 = vadd.f32 %v1060_v5, %v988_v59 }
 0x126   :  { %v843_v12 = vpop.f32.mrf.mxu1  ;;  %v1062_v49 = vpop.f32.mrf.mxu0 }
 0x127   :  { %v992_v14 = vpop.f32.mrf.mxu3  ;;  %v1112_v21 = vmax.f32 %v1061_v20, 0.0  ;;  %v844_v3 = vadd.f32 %v843_v12, %v2068_v25  ;;  %v924_v19 = vpop.f32.mrf.mxu2 }
 0x129   :  { %v1137_v27 = vpack.c.bf16 %v1112_v21, %v1112_v21  ;;  %v917_v29 = vadd.f32 %v916_v36, %v844_v3 }
 0x12b   :  { %1163 = vst.msk [vmem:[%s2427_s3 + $0x20] sm:$0xf] %vm1154_vm1, %v1137_v27  ;;  %v990_v10 = vadd.f32 %v989_v4, %v917_v29 }
 0x12d   :  { %v1063_v30 = vadd.f32 %v1062_v49, %v990_v10 }
 0x12e   :  { %v846_v48 = vpop.f32.mrf.mxu1  ;;  %v1065_v17 = vpop.f32.mrf.mxu0 }
 0x12f   :  { %v994_v23 = vpop.f32.mrf.mxu3  ;;  %v1113_v33 = vmax.f32 %v1063_v30, 0.0  ;;  %v847_v34 = vadd.f32 %v846_v48, %v2103_v43  ;;  %v926_v22 = vpop.f32.mrf.mxu2 }
 0x131   :  { %v1138_v35 = vpack.c.bf16 %v1113_v33, %v1113_v33  ;;  %v920_v11 = vadd.f32 %v919_v58, %v847_v34 }
 0x133   :  { %1164 = vst.msk [vmem:[%s2427_s3 + $0x24] sm:$0xf] %vm1154_vm1, %v1138_v35  ;;  %v993_v25 = vadd.f32 %v992_v14, %v920_v11 }
 0x135   :  { %v1066_v36 = vadd.f32 %v1065_v17, %v993_v25 }
 0x136   :  { %v848_v32 = vpop.f32.mrf.mxu1  ;;  %v1067_v41 = vpop.f32.mrf.mxu0 }
 0x137   :  { %v997_v40 = vpop.f32.mrf.mxu3  ;;  %v1114_v42 = vmax.f32 %v1066_v36, 0.0  ;;  %v849_v46 = vadd.f32 %v848_v32, %v2115_v51  ;;  %v929_v52 = vpop.f32.mrf.mxu2 }
 0x139   :  { %v1139_v53 = vpack.c.bf16 %v1114_v42, %v1114_v42  ;;  %v922_v26 = vadd.f32 %v921_v13, %v849_v46 }
 0x13b   :  { %1165 = vst.msk [vmem:[%s2427_s3 + $0x28] sm:$0xf] %vm1154_vm1, %v1139_v53  ;;  %v995_v43 = vadd.f32 %v994_v23, %v922_v26 }
 0x13d   :  { %v1068_v55 = vadd.f32 %v1067_v41, %v995_v43 }
 0x13e   :  { %v851_v58 = vpop.f32.mrf.mxu1  ;;  %v1070_v60 = vpop.f32.mrf.mxu0 }
 0x13f   :  { %v999_v57 = vpop.f32.mrf.mxu3  ;;  %v1115_v61 = vmax.f32 %v1068_v55, 0.0  ;;  %v852_v62 = vadd.f32 %v851_v58, %v2150_v6  ;;  %v931_v0 = vpop.f32.mrf.mxu2 }
 0x141   :  { %v1140_v9 = vpack.c.bf16 %v1115_v61, %v1115_v61  ;;  %v925_v44 = vadd.f32 %v924_v19, %v852_v62 }
 0x143   :  { %1166 = vst.msk [vmem:[%s2427_s3 + $0x2c] sm:$0xf] %vm1154_vm1, %v1140_v9  ;;  %v998_v51 = vadd.f32 %v997_v40, %v925_v44 }
 0x145   :  { %v1071_v63 = vadd.f32 %v1070_v60, %v998_v51 }
 0x146   :  { %v853_v4 = vpop.f32.mrf.mxu1  ;;  %v1072_v37 = vpop.f32.mrf.mxu0 }
 0x147   :  { %v1002_v1 = vpop.f32.mrf.mxu3  ;;  %v1116_v5 = vmax.f32 %v1071_v63, 0.0  ;;  %v854_v31 = vadd.f32 %v853_v4, %v2162_v16  ;;  %v934_v7 = vpop.f32.mrf.mxu2 }
 0x149   :  { %v1141_v13 = vpack.c.bf16 %v1116_v5, %v1116_v5  ;;  %v927_v56 = vadd.f32 %v926_v22, %v854_v31 }
 0x14b   :  { %1167 = vst.msk [vmem:[%s2427_s3 + $0x30] sm:$0xf] %vm1154_vm1, %v1141_v13  ;;  %v1000_v6 = vadd.f32 %v999_v57, %v927_v56 }
 0x14d   :  { %v1073_v18 = vadd.f32 %v1072_v37, %v1000_v6 }
 0x14e   :  { %v856_v20 = vpop.f32.mrf.mxu1  ;;  %v1075_v14 = vpop.f32.mrf.mxu0 }
 0x14f   :  { %v1004_v59 = vpop.f32.mrf.mxu3  ;;  %v1117_v12 = vmax.f32 %v1073_v18, 0.0  ;;  %v857_v49 = vadd.f32 %v856_v20, %v2191_v38  ;;  %v936_v21 = vpop.f32.mrf.mxu2 }
 0x151   :  { %v1142_v3 = vpack.c.bf16 %v1117_v12, %v1117_v12  ;;  %v930_v19 = vadd.f32 %v929_v52, %v857_v49 }
 0x153   :  { %1168 = vst.msk [vmem:[%s2427_s3 + $0x34] sm:$0xf] %vm1154_vm1, %v1142_v3  ;;  %v1003_v16 = vadd.f32 %v1002_v1, %v930_v19 }
 0x155   :  { %v1076_v27 = vadd.f32 %v1075_v14, %v1003_v16 }
 0x156   :  { %v858_v10 = vpop.f32.mrf.mxu1  ;;  %v1077_v30 = vpop.f32.mrf.mxu0 }
 0x157   :  { %v1007_v29 = vpop.f32.mrf.mxu3  ;;  %v1118_v23 = vmax.f32 %v1076_v27, 0.0  ;;  %v859_v48 = vadd.f32 %v858_v10, %v2197_v47  ;;  %v939_v17 = vpop.f32.mrf.mxu2 }
 0x159   :  { %v1143_v33 = vpack.c.bf16 %v1118_v23, %v1118_v23  ;;  %v932_v34 = vadd.f32 %v931_v0, %v859_v48 }
 0x15b   :  { %1169 = vst.msk [vmem:[%s2427_s3 + $0x38] sm:$0xf] %vm1154_vm1, %v1143_v33  ;;  %v1005_v38 = vadd.f32 %v1004_v59, %v932_v34 }
 0x15d   :  { %v1078_v22 = vadd.f32 %v1077_v30, %v1005_v38 }
 0x15e   :  { %v861_v11 = vpop.f32.mrf.mxu1  ;;  %v1080_v25 = vpop.f32.mrf.mxu0 }
 0x15f   :  { %v1009_v35 = vpop.f32.mrf.mxu3  ;;  %v1119_v36 = vmax.f32 %v1078_v22, 0.0  ;;  %v862_v40 = vadd.f32 %v861_v11, %v2074_v28  ;;  %v941_v32 = vpop.f32.mrf.mxu2 }
 0x161   :  { %v1144_v41 = vpack.c.bf16 %v1119_v36, %v1119_v36  ;;  %v935_v42 = vadd.f32 %v934_v7, %v862_v40 }
 0x163   :  { %1170 = vst.msk [vmem:[%s2427_s3 + $0x3c] sm:$0xf] %vm1154_vm1, %v1144_v41  ;;  %v1008_v47 = vadd.f32 %v1007_v29, %v935_v42 }
 0x165   :  { %v1081_v46 = vadd.f32 %v1080_v25, %v1008_v47 }
 0x166   :  { %v863_v53 = vpop.f32.mrf.mxu1  ;;  %v1082_v26 = vpop.f32.mrf.mxu0 }
 0x167   :  { %v1012_v52 = vpop.f32.mrf.mxu3  ;;  %v1120_v43 = vmax.f32 %v1081_v46, 0.0  ;;  %v864_v55 = vadd.f32 %v863_v53, %v2107_v45  ;;  %v944_v57 = vpop.f32.mrf.mxu2 }
 0x169   :  { %v1145_v58 = vpack.c.bf16 %v1120_v43, %v1120_v43  ;;  %v937_v60 = vadd.f32 %v936_v21, %v864_v55 }
 0x16b   :  { %1171 = vst.msk [vmem:[%s2427_s3 + $0x40] sm:$0xf] %vm1154_vm1, %v1145_v58  ;;  %v1010_v28 = vadd.f32 %v1009_v35, %v937_v60 }
 0x16d   :  { %v1083_v61 = vadd.f32 %v1082_v26, %v1010_v28 }
 0x16e   :  { %v866_v0 = vpop.f32.mrf.mxu1  ;;  %v1085_v9 = vpop.f32.mrf.mxu0 }
 0x16f   :  { %v1014_v62 = vpop.f32.mrf.mxu3  ;;  %v1121_v44 = vmax.f32 %v1083_v61, 0.0  ;;  %v867_v51 = vadd.f32 %v866_v0, %v2121_v54  ;;  %v946_v63 = vpop.f32.mrf.mxu2 }
 0x171   :  { %v1146_v1 = vpack.c.bf16 %v1121_v44, %v1121_v44  ;;  %v940_v4 = vadd.f32 %v939_v17, %v867_v51 }
 0x173   :  { %1172 = vst.msk [vmem:[%s2427_s3 + $0x44] sm:$0xf] %vm1154_vm1, %v1146_v1  ;;  %v1013_v45 = vadd.f32 %v1012_v52, %v940_v4 }
 0x175   :  { %v1086_v37 = vadd.f32 %v1085_v9, %v1013_v45 }
 0x176   :  { %v868_v31 = vpop.f32.mrf.mxu1  ;;  %v1087_v7 = vpop.f32.mrf.mxu0 }
 0x177   :  { %v1017_v5 = vpop.f32.mrf.mxu3  ;;  %v1122_v13 = vmax.f32 %v1086_v37, 0.0  ;;  %v869_v56 = vadd.f32 %v868_v31, %v2154_v8  ;;  %v949_v6 = vpop.f32.mrf.mxu2 }
 0x179   :  { %v1147_v18 = vpack.c.bf16 %v1122_v13, %v1122_v13  ;;  %v942_v59 = vadd.f32 %v941_v32, %v869_v56 }
 0x17b   :  { %1173 = vst.msk [vmem:[%s2427_s3 + $0x48] sm:$0xf] %vm1154_vm1, %v1147_v18  ;;  %v1015_v54 = vadd.f32 %v1014_v62, %v942_v59 }
 0x17d   :  { %v1088_v20 = vadd.f32 %v1087_v7, %v1015_v54 }
 0x17e   :  { %v871_v12 = vpop.f32.mrf.mxu1  ;;  %v1090_v49 = vpop.f32.mrf.mxu0 }
 0x17f   :  { %v1019_v14 = vpop.f32.mrf.mxu3  ;;  %v1123_v21 = vmax.f32 %v1088_v20, 0.0  ;;  %v872_v3 = vadd.f32 %v871_v12, %v2065_v24  ;;  %v951_v19 = vpop.f32.mrf.mxu2 }
 0x181   :  { %v1148_v16 = vpack.c.bf16 %v1123_v21, %v1123_v21  ;;  %v945_v27 = vadd.f32 %v944_v57, %v872_v3 }
 0x183   :  { %1174 = vst.msk [vmem:[%s2427_s3 + $0x4c] sm:$0xf] %vm1154_vm1, %v1148_v16  ;;  %v1018_v8 = vadd.f32 %v1017_v5, %v945_v27 }
 0x185   :  { %v1091_v29 = vadd.f32 %v1090_v49, %v1018_v8 }
 0x186   :  { %v873_v30 = vpop.f32.mrf.mxu1  ;;  %v1092_v23 = vpop.f32.mrf.mxu0 }
 0x187   :  { %v1022_v10 = vpop.f32.mrf.mxu3  ;;  %v1124_v48 = vmax.f32 %v1091_v29, 0.0  ;;  %v874_v17 = vadd.f32 %v873_v30, %v2094_v39  ;;  %v954_v33 = vpop.f32.mrf.mxu2 }
 0x189   :  { %v1149_v34 = vpack.c.bf16 %v1124_v48, %v1124_v48  ;;  %v947_v38 = vadd.f32 %v946_v63, %v874_v17 }
 0x18b   :  { %1175 = vst.msk [vmem:[%s2427_s3 + $0x50] sm:$0xf] %vm1154_vm1, %v1149_v34  ;;  %v1020_v24 = vadd.f32 %v1019_v14, %v947_v38 }
 0x18d   :  { %v1093_v22 = vadd.f32 %v1092_v23, %v1020_v24 }
 0x18e   :  { %v876_v11 = vpop.f32.mrf.mxu1  ;;  %v1095_v25 = vpop.f32.mrf.mxu0 }
 0x18f   :  { %v1024_v35 = vpop.f32.mrf.mxu3  ;;  %v1125_v36 = vmax.f32 %v1093_v22, 0.0  ;;  %v877_v40 = vadd.f32 %v876_v11, %v2112_v50  ;;  %v956_v32 = vpop.f32.mrf.mxu2 }
 0x191   :  { %v1150_v41 = vpack.c.bf16 %v1125_v36, %v1125_v36  ;;  %v950_v42 = vadd.f32 %v949_v6, %v877_v40 }
 0x193   :  { %1176 = vst.msk [vmem:[%s2427_s3 + $0x54] sm:$0xf] %vm1154_vm1, %v1150_v41  ;;  %v1023_v39 = vadd.f32 %v1022_v10, %v950_v42 }
 0x195   :  { %v1096_v47 = vadd.f32 %v1095_v25, %v1023_v39 }
 0x196   :  { %v878_v52 = vpop.f32.mrf.mxu1  ;;  %v1097_v53 = vpop.f32.mrf.mxu0 }
 0x197   :  { %v1027_v46 = vpop.f32.mrf.mxu3  ;;  %v1126_v26 = vmax.f32 %v1096_v47, 0.0  ;;  %v879_v43 = vadd.f32 %v878_v52, %v2141_v2 }
 0x199   :  { %v1151_v55 = vpack.c.bf16 %v1126_v26, %v1126_v26  ;;  %v952_v57 = vadd.f32 %v951_v19, %v879_v43 }
 0x19b   :  { %1177 = vst.msk [vmem:[%s2427_s3 + $0x58] sm:$0xf] %vm1154_vm1, %v1151_v55  ;;  %v1025_v50 = vadd.f32 %v1024_v35, %v952_v57 }
 0x19d   :  { %v1098_v58 = vadd.f32 %v1097_v53, %v1025_v50 }
 0x19e   :  { %v881_v28 = vpop.f32.mrf.mxu1  ;;  %v1100_v61 = vpop.f32.mrf.mxu0 }
 0x19f   :  { %v1029_v60 = vpop.f32.mrf.mxu3  ;;  %v1127_v62 = vmax.f32 %v1098_v58, 0.0  ;;  %v882_v0 = vadd.f32 %v881_v28, %v2159_v15 }
 0x1a1   :  { %v1152_v9 = vpack.c.bf16 %v1127_v62, %v1127_v62  ;;  %v955_v44 = vadd.f32 %v954_v33, %v882_v0 }
 0x1a3   :  { %1178 = vst.msk [vmem:[%s2427_s3 + $0x5c] sm:$0xf] %vm1154_vm1, %v1152_v9  ;;  %v1028_v2 = vadd.f32 %v1027_v46, %v955_v44 }
 0x1a5   :  { %v1101_v51 = vadd.f32 %v1100_v61, %v1028_v2 }
 0x1a6   :  { %v883_v63 = vpop.f32.mrf.mxu1  ;;  %v1102_v1 = vpop.f32.mrf.mxu0 }
 0x1a7   :  { %v1128_v4 = vmax.f32 %v1101_v51, 0.0 }
 0x1a9   :  { %v1153_v45 = vpack.c.bf16 %v1128_v4, %v1128_v4 }
 0x1ab   :  { %1180 = vst.msk [vmem:[%s2427_s3 + $0x60] sm:$0x3] %vm1179_vm2, %v1153_v45 }

// kernel: _lambda_.7
= control target key start
LH: loop header
LB: loop body
LE: loop exit
PB: predicated region body
PF: predicated region fallthrough
CT: control target
= control target key end

     0   :  { %s10757_s0 = inlined_call_operand.vmem [shape: bf16[4,3136], index: 0, kind: input, shape index: {}]   ;;  %s10758_s1 = inlined_call_operand.vmem [shape: s32[2,1], index: 1, kind: input, shape index: {}]   ;;  %s10759_s2 = inlined_call_operand.vmem [shape: bf16[3136,256], index: 2, kind: input, shape index: {}]   ;;  %s10760_s3 = inlined_call_operand.vmem [shape: f32[1,256], index: 3, kind: input, shape index: {}]   ;;  %s10761_s4 = inlined_call_operand.vmem [shape: bf16[256,256], index: 4, kind: input, shape index: {}]   ;;  %s10762_s5 = inlined_call_operand.vmem [shape: bf16[256,256], index: 5, kind: input, shape index: {}]   ;;  %s10763_s6 = inlined_call_operand.vmem [shape: f32[1,256], index: 6, kind: input, shape index: {}]   ;;  %s10764_s7 = inlined_call_operand.vmem [shape: bf16[256,4], index: 7, kind: input, shape index: {}]   ;;  %s10765_s8 = inlined_call_operand.vmem [shape: f32[1,4], index: 8, kind: input, shape index: {}]   ;;  %s10766_s9 = inlined_call_operand.vmem [shape: bf16[256,256], index: 9, kind: input, shape index: {}]   ;;  %s10767_s10 = inlined_call_operand.vmem [shape: bf16[4,256], index: 10, kind: input, shape index: {}]   ;;  %s10768_s11 = inlined_call_operand.vmem [shape: f32[1,256], index: 11, kind: input, shape index: {}]   ;;  %s10769_s12 = inlined_call_operand.vmem [shape: bf16[256,256], index: 12, kind: input, shape index: {}]   ;;  %s10770_s13 = inlined_call_operand.vmem [shape: f32[1,256], index: 13, kind: input, shape index: {}]   ;;  %s10771_s14 = inlined_call_operand.hbm [shape: f32[2,256], index: 14, kind: output, shape index: {0}]   ;;  %s10772_s15 = inlined_call_operand.hbm [shape: f32[2,256], index: 15, kind: output, shape index: {1}]   ;;  %s10773_s16 = inlined_call_operand.hbm [shape: f32[2,4], index: 16, kind: output, shape index: {2}]   ;;  %s10774_s17 = inlined_call_operand.hbm [shape: f32[2,256], index: 17, kind: output, shape index: {3}]  }
   0x1   :  { %10776 = sst [smem:[#allocation12_spill]] %s10757_s0 }
   0x2   :  { %10777 = sst [smem:[#allocation13_spill]] %s10758_s1 }
   0x3   :  { %23 = vsyncpa [#allocation3], 0 }
   0x4   :  { %24 = vsyncpa [#allocation5], 0  ;;  %v4502_v0 = vld [vmem:[%s10759_s2 + $0x70] sm:$0xf]  ;;  %v6608_v1 = vld [vmem:[%s10759_s2 + $0x74] sm:$0xf0] }
   0x5   :  { %v4566_v2 = vld [vmem:[%s10759_s2 + $0xf0] sm:$0xf]  ;;  %v4503_v3 = vor.u32 %v6608_v1, %v4502_v0  ;;  %v6624_v4 = vld [vmem:[%s10759_s2 + $0xf4] sm:$0xf0]  ;;  %v4494_v11 = vld [vmem:[%s10759_s2 + $0x60] sm:$0xf] }
   0x6   :  { %v4630_v5 = vld [vmem:[%s10759_s2 + $0x170] sm:$0xf]  ;;  %v6640_v6 = vld [vmem:[%s10759_s2 + $0x174] sm:$0xf0]  ;;  %v4567_v7 = vor.u32 %v6624_v4, %v4566_v2  ;;  %v6606_v13 = vld [vmem:[%s10759_s2 + $0x64] sm:$0xf0] }
   0x7   :  { %v4631_v8 = vor.u32 %v6640_v6, %v4630_v5  ;;  %v4694_v9 = vld [vmem:[%s10759_s2 + $0x1f0] sm:$0xf]  ;;  %v6656_v10 = vld [vmem:[%s10759_s2 + $0x1f4] sm:$0xf0]  ;;  %2487 = vmatpush.bf16.msra.mxu0 %v4503_v3  ;;  %v4558_v14 = vld [vmem:[%s10759_s2 + $0xe0] sm:$0xf]  ;;  %v4495_v16 = vor.u32 %v6606_v13, %v4494_v11 }
   0x8   :  { %v4695_v12 = vor.u32 %v6656_v10, %v4694_v9  ;;  %v6622_v15 = vld [vmem:[%s10759_s2 + $0xe4] sm:$0xf0]  ;;  %2500 = vmatpush.bf16.msra.mxu1 %v4567_v7  ;;  %v4622_v18 = vld [vmem:[%s10759_s2 + $0x160] sm:$0xf]  ;;  %v4486_v23 = vld [vmem:[%s10759_s2 + $0x50] sm:$0xf] }
   0x9   :  { %2513 = vmatpush.bf16.msra.mxu2 %v4631_v8  ;;  %v4559_v17 = vor.u32 %v6622_v15, %v4558_v14  ;;  %v6638_v19 = vld [vmem:[%s10759_s2 + $0x164] sm:$0xf0]  ;;  %v4686_v20 = vld [vmem:[%s10759_s2 + $0x1e0] sm:$0xf]  ;;  %v6604_v24 = vld [vmem:[%s10759_s2 + $0x54] sm:$0xf0] }
   0xa   :  { %2526 = vmatpush.bf16.msra.mxu3 %v4695_v12  ;;  %v4623_v21 = vor.u32 %v6638_v19, %v4622_v18  ;;  %v6654_v22 = vld [vmem:[%s10759_s2 + $0x1e4] sm:$0xf0]  ;;  %v4550_v26 = vld [vmem:[%s10759_s2 + $0xd0] sm:$0xf]  ;;  %v6620_v27 = vld [vmem:[%s10759_s2 + $0xd4] sm:$0xf0]  ;;  %v4487_v29 = vor.u32 %v6604_v24, %v4486_v23 }
   0xb   :  { %v4687_v25 = vor.u32 %v6654_v22, %v4686_v20  ;;  %v4614_v28 = vld [vmem:[%s10759_s2 + $0x150] sm:$0xf]  ;;  %2488 = vmatpush.bf16.msra.mxu0 %v4495_v16  ;;  %v6636_v30 = vld [vmem:[%s10759_s2 + $0x154] sm:$0xf0]  ;;  %v4551_v33 = vor.u32 %v6620_v27, %v4550_v26  ;;  %v4478_v35 = vld [vmem:[%s10759_s2 + $0x40] sm:$0xf] }
   0xc   :  { %v4678_v31 = vld [vmem:[%s10759_s2 + $0x1d0] sm:$0xf]  ;;  %v6652_v32 = vld [vmem:[%s10759_s2 + $0x1d4] sm:$0xf0]  ;;  %2501 = vmatpush.bf16.msra.mxu1 %v4559_v17  ;;  %v4615_v34 = vor.u32 %v6636_v30, %v4614_v28  ;;  %v6602_v36 = vld [vmem:[%s10759_s2 + $0x44] sm:$0xf0] }
   0xd   :  { %2514 = vmatpush.bf16.msra.mxu2 %v4623_v21  ;;  %v4542_v37 = vld [vmem:[%s10759_s2 + $0xc0] sm:$0xf]  ;;  %v4679_v38 = vor.u32 %v6652_v32, %v4678_v31  ;;  %v6618_v39 = vld [vmem:[%s10759_s2 + $0xc4] sm:$0xf0]  ;;  %v4479_v44 = vor.u32 %v6602_v36, %v4478_v35  ;;  %v4470_v47 = vld [vmem:[%s10759_s2 + $0x30] sm:$0xf] }
   0xe   :  { %2527 = vmatpush.bf16.msra.mxu3 %v4687_v25  ;;  %v4606_v40 = vld [vmem:[%s10759_s2 + $0x140] sm:$0xf]  ;;  %v6634_v41 = vld [vmem:[%s10759_s2 + $0x144] sm:$0xf0]  ;;  %v4543_v45 = vor.u32 %v6618_v39, %v4542_v37  ;;  %v6600_v48 = vld [vmem:[%s10759_s2 + $0x34] sm:$0xf0] }
   0xf   :  { %v4670_v42 = vld [vmem:[%s10759_s2 + $0x1c0] sm:$0xf]  ;;  %v6650_v43 = vld [vmem:[%s10759_s2 + $0x1c4] sm:$0xf0]  ;;  %2489 = vmatpush.bf16.msra.mxu0 %v4487_v29  ;;  %v4607_v46 = vor.u32 %v6634_v41, %v4606_v40  ;;  %v4534_v49 = vld [vmem:[%s10759_s2 + $0xb0] sm:$0xf]  ;;  %v4471_v56 = vor.u32 %v6600_v48, %v4470_v47 }
  0x10   :  { %2502 = vmatpush.bf16.msra.mxu1 %v4551_v33  ;;  %v4671_v50 = vor.u32 %v6650_v43, %v4670_v42  ;;  %v6616_v51 = vld [vmem:[%s10759_s2 + $0xb4] sm:$0xf0]  ;;  %v4598_v52 = vld [vmem:[%s10759_s2 + $0x130] sm:$0xf]  ;;  %v4462_v59 = vld [vmem:[%s10759_s2 + $0x20] sm:$0xf] }
  0x11   :  { %2515 = vmatpush.bf16.msra.mxu2 %v4615_v34  ;;  %v6632_v53 = vld [vmem:[%s10759_s2 + $0x134] sm:$0xf0]  ;;  %v4662_v54 = vld [vmem:[%s10759_s2 + $0x1b0] sm:$0xf]  ;;  %v4535_v57 = vor.u32 %v6616_v51, %v4534_v49  ;;  %v6598_v60 = vld [vmem:[%s10759_s2 + $0x24] sm:$0xf0] }
  0x12   :  { %2528 = vmatpush.bf16.msra.mxu3 %v4679_v38  ;;  %v6648_v55 = vld [vmem:[%s10759_s2 + $0x1b4] sm:$0xf0]  ;;  %v4599_v58 = vor.u32 %v6632_v53, %v4598_v52  ;;  %v4526_v61 = vld [vmem:[%s10759_s2 + $0xa0] sm:$0xf]  ;;  %v6614_v63 = vld [vmem:[%s10759_s2 + $0xa4] sm:$0xf0]  ;;  %v4463_v4 = vor.u32 %v6598_v60, %v4462_v59 }
  0x13   :  { %2490 = vmatpush.bf16.msra.mxu0 %v4479_v44  ;;  %v4663_v62 = vor.u32 %v6648_v55, %v4662_v54  ;;  %v4590_v0 = vld [vmem:[%s10759_s2 + $0x120] sm:$0xf]  ;;  %v6630_v1 = vld [vmem:[%s10759_s2 + $0x124] sm:$0xf0]  ;;  %v4527_v5 = vor.u32 %v6614_v63, %v4526_v61  ;;  %v4454_v7 = vld [vmem:[%s10759_s2 + $0x10] sm:$0xf] }
  0x14   :  { %2503 = vmatpush.bf16.msra.mxu1 %v4543_v45  ;;  %v4654_v2 = vld [vmem:[%s10759_s2 + $0x1a0] sm:$0xf]  ;;  %v6646_v3 = vld [vmem:[%s10759_s2 + $0x1a4] sm:$0xf0]  ;;  %v4591_v6 = vor.u32 %v6630_v1, %v4590_v0  ;;  %v6596_v8 = vld [vmem:[%s10759_s2 + $0x14] sm:$0xf0] }
  0x15   :  { %2516 = vmatpush.bf16.msra.mxu2 %v4607_v46  ;;  %v4518_v9 = vld [vmem:[%s10759_s2 + $0x90] sm:$0xf]  ;;  %v4655_v10 = vor.u32 %v6646_v3, %v4654_v2  ;;  %v6612_v11 = vld [vmem:[%s10759_s2 + $0x94] sm:$0xf0]  ;;  %v4455_v16 = vor.u32 %v6596_v8, %v4454_v7  ;;  %v4446_v17 = vld [vmem:[%s10759_s2] sm:$0xf] }
  0x16   :  { %2529 = vmatpush.bf16.msra.mxu3 %v4671_v50  ;;  %v4582_v12 = vld [vmem:[%s10759_s2 + $0x110] sm:$0xf]  ;;  %v6628_v13 = vld [vmem:[%s10759_s2 + $0x114] sm:$0xf0]  ;;  %v6594_v18 = vld [vmem:[%s10759_s2 + $0x4] sm:$0xf0]  ;;  %v4519_v19 = vor.u32 %v6612_v11, %v4518_v9 }
  0x17   :  { %2491 = vmatpush.bf16.msra.mxu0 %v4471_v56  ;;  %v4646_v14 = vld [vmem:[%s10759_s2 + $0x190] sm:$0xf]  ;;  %v6644_v15 = vld [vmem:[%s10759_s2 + $0x194] sm:$0xf0]  ;;  %v4583_v20 = vor.u32 %v6628_v13, %v4582_v12  ;;  %v4510_v21 = vld [vmem:[%s10759_s2 + $0x80] sm:$0xf]  ;;  %v4447_v31 = vor.u32 %v6594_v18, %v4446_v17 }
  0x18   :  { %2504 = vmatpush.bf16.msra.mxu1 %v4535_v57  ;;  %v6610_v22 = vld [vmem:[%s10759_s2 + $0x84] sm:$0xf0]  ;;  %v4574_v23 = vld [vmem:[%s10759_s2 + $0x100] sm:$0xf]  ;;  %v4647_v24 = vor.u32 %v6644_v15, %v4646_v14  ;;  %v4758_v28 = vld [vmem:[%s10759_s2 + $0x270] sm:$0xf] }
  0x19   :  { %2517 = vmatpush.bf16.msra.mxu2 %v4599_v58  ;;  %v6626_v25 = vld [vmem:[%s10759_s2 + $0x104] sm:$0xf0]  ;;  %v4638_v26 = vld [vmem:[%s10759_s2 + $0x180] sm:$0xf]  ;;  %v6672_v29 = vld [vmem:[%s10759_s2 + $0x274] sm:$0xf0]  ;;  %v4511_v35 = vor.u32 %v6610_v22, %v4510_v21 }
  0x1a   :  { %2530 = vmatpush.bf16.msra.mxu3 %v4663_v62  ;;  %v6642_v27 = vld [vmem:[%s10759_s2 + $0x184] sm:$0xf0]  ;;  %v4822_v30 = vld [vmem:[%s10759_s2 + $0x2f0] sm:$0xf]  ;;  %v6688_v32 = vld [vmem:[%s10759_s2 + $0x2f4] sm:$0xf0]  ;;  %v4575_v36 = vor.u32 %v6626_v25, %v4574_v23  ;;  %v4759_v40 = vor.u32 %v6672_v29, %v4758_v28 }
  0x1b   :  { %2492 = vmatpush.bf16.msra.mxu0 %v4463_v4  ;;  %v4886_v33 = vld [vmem:[%s10759_s2 + $0x370] sm:$0xf]  ;;  %v6704_v34 = vld [vmem:[%s10759_s2 + $0x374] sm:$0xf0]  ;;  %v4639_v39 = vor.u32 %v6642_v27, %v4638_v26  ;;  %v4823_v41 = vor.u32 %v6688_v32, %v4822_v30  ;;  %v4750_v43 = vld [vmem:[%s10759_s2 + $0x260] sm:$0xf] }
  0x1c   :  { %2505 = vmatpush.bf16.msra.mxu1 %v4527_v5  ;;  %v4950_v37 = vld [vmem:[%s10759_s2 + $0x3f0] sm:$0xf]  ;;  %v6720_v38 = vld [vmem:[%s10759_s2 + $0x3f4] sm:$0xf0]  ;;  %v4887_v42 = vor.u32 %v6704_v34, %v4886_v33  ;;  %v6670_v44 = vld [vmem:[%s10759_s2 + $0x264] sm:$0xf0] }
  0x1d   :  { %2518 = vmatpush.bf16.msra.mxu2 %v4591_v6  ;;  %v4814_v45 = vld [vmem:[%s10759_s2 + $0x2e0] sm:$0xf]  ;;  %v4951_v46 = vor.u32 %v6720_v38, %v4950_v37  ;;  %v6686_v47 = vld [vmem:[%s10759_s2 + $0x2e4] sm:$0xf0]  ;;  %v4751_v52 = vor.u32 %v6670_v44, %v4750_v43  ;;  %v4742_v53 = vld [vmem:[%s10759_s2 + $0x250] sm:$0xf] }
  0x1e   :  { %2531 = vmatpush.bf16.msra.mxu3 %v4655_v10  ;;  %v4878_v48 = vld [vmem:[%s10759_s2 + $0x360] sm:$0xf]  ;;  %v6702_v49 = vld [vmem:[%s10759_s2 + $0x364] sm:$0xf0]  ;;  %v6668_v54 = vld [vmem:[%s10759_s2 + $0x254] sm:$0xf0]  ;;  %v4815_v55 = vor.u32 %v6686_v47, %v4814_v45 }
  0x1f   :  { %2493 = vmatpush.bf16.msra.mxu0 %v4455_v16  ;;  %v4942_v50 = vld [vmem:[%s10759_s2 + $0x3e0] sm:$0xf]  ;;  %v6718_v51 = vld [vmem:[%s10759_s2 + $0x3e4] sm:$0xf0]  ;;  %v4879_v56 = vor.u32 %v6702_v49, %v4878_v48  ;;  %v4806_v57 = vld [vmem:[%s10759_s2 + $0x2d0] sm:$0xf]  ;;  %v4743_v1 = vor.u32 %v6668_v54, %v4742_v53 }
  0x20   :  { %2506 = vmatpush.bf16.msra.mxu1 %v4519_v19  ;;  %v6684_v58 = vld [vmem:[%s10759_s2 + $0x2d4] sm:$0xf0]  ;;  %s10778_s29 = sld [smem:[#allocation12_spill]]  ;;  %v4943_v60 = vor.u32 %v6718_v51, %v4942_v50  ;;  %v4870_v61 = vld [vmem:[%s10759_s2 + $0x350] sm:$0xf] }
  0x21   :  { %2519 = vmatpush.bf16.msra.mxu2 %v4583_v20  ;;  %v6700_v62 = vld [vmem:[%s10759_s2 + $0x354] sm:$0xf0]  ;;  %v4934_v63 = vld [vmem:[%s10759_s2 + $0x3d0] sm:$0xf]  ;;  %v4734_v2 = vld [vmem:[%s10759_s2 + $0x240] sm:$0xf]  ;;  %v4807_v3 = vor.u32 %v6684_v58, %v4806_v57 }
  0x22   :  { %2532 = vmatpush.bf16.msra.mxu3 %v4647_v24  ;;  %v6716_v0 = vld [vmem:[%s10759_s2 + $0x3d4] sm:$0xf0]  ;;  %v4871_v4 = vor.u32 %v6700_v62, %v4870_v61  ;;  %v6666_v5 = vld [vmem:[%s10759_s2 + $0x244] sm:$0xf0]  ;;  %v4798_v6 = vld [vmem:[%s10759_s2 + $0x2c0] sm:$0xf] }
  0x23   :  { %2494 = vmatpush.bf16.msra.mxu0 %v4447_v31  ;;  %v6682_v7 = vld [vmem:[%s10759_s2 + $0x2c4] sm:$0xf0]  ;;  %v4935_v8 = vor.u32 %v6716_v0, %v4934_v63  ;;  %v4862_v9 = vld [vmem:[%s10759_s2 + $0x340] sm:$0xf]  ;;  %v4726_v13 = vld [vmem:[%s10759_s2 + $0x230] sm:$0xf]  ;;  %v4735_v15 = vor.u32 %v6666_v5, %v4734_v2 }
  0x24   :  { %2507 = vmatpush.bf16.msra.mxu1 %v4511_v35  ;;  %v6698_v10 = vld [vmem:[%s10759_s2 + $0x344] sm:$0xf0]  ;;  %v4926_v11 = vld [vmem:[%s10759_s2 + $0x3c0] sm:$0xf]  ;;  %v6664_v14 = vld [vmem:[%s10759_s2 + $0x234] sm:$0xf0]  ;;  %v4799_v21 = vor.u32 %v6682_v7, %v4798_v6 }
  0x25   :  { %2520 = vmatpush.bf16.msra.mxu2 %v4575_v36  ;;  %v6714_v12 = vld [vmem:[%s10759_s2 + $0x3c4] sm:$0xf0]  ;;  %v4790_v16 = vld [vmem:[%s10759_s2 + $0x2b0] sm:$0xf]  ;;  %v6680_v17 = vld [vmem:[%s10759_s2 + $0x2b4] sm:$0xf0]  ;;  %v4863_v22 = vor.u32 %v6698_v10, %v4862_v9  ;;  %v4727_v30 = vor.u32 %v6664_v14, %v4726_v13 }
  0x26   :  { %2533 = vmatpush.bf16.msra.mxu3 %v4639_v39  ;;  %v55_v59 = vld [vmem:[%s10778_s29] sm:$0xff]  ;;  %v4854_v18 = vld [vmem:[%s10759_s2 + $0x330] sm:$0xf]  ;;  %v6696_v19 = vld [vmem:[%s10759_s2 + $0x334] sm:$0xf0]  ;;  %v4927_v25 = vor.u32 %v6714_v12, %v4926_v11  ;;  %v4791_v31 = vor.u32 %v6680_v17, %v4790_v16 }
  0x27   :  { %2539 = vmatpush.bf16.msrb.mxu0 %v4759_v40  ;;  %461 = vst [vmem:[#allocation1] ss:$4 sm:$0xff] %v55_v59  ;;  %v57_v20 = vld [vmem:[%s10778_s29 + $0x10] sm:$0xff]  ;;  %v6712_v29 = vld [vmem:[%s10759_s2 + $0x3b4] sm:$0xf0]  ;;  %v4855_v32 = vor.u32 %v6696_v19, %v4854_v18 }
  0x28   :  { %2552 = vmatpush.bf16.msrb.mxu1 %v4823_v41  ;;  %v4918_v28 = vld [vmem:[%s10759_s2 + $0x3b0] sm:$0xf]  ;;  %v4718_v33 = vld [vmem:[%s10759_s2 + $0x220] sm:$0xf]  ;;  %v6662_v34 = vld [vmem:[%s10759_s2 + $0x224] sm:$0xf0] }
  0x29   :  { %2565 = vmatpush.bf16.msrb.mxu2 %v4887_v42  ;;  %v4782_v35 = vld [vmem:[%s10759_s2 + $0x2a0] sm:$0xf]  ;;  %v4919_v36 = vor.u32 %v6712_v29, %v4918_v28  ;;  %v6678_v37 = vld [vmem:[%s10759_s2 + $0x2a4] sm:$0xf0]  ;;  %v4719_v43 = vor.u32 %v6662_v34, %v4718_v33  ;;  %v4710_v44 = vld [vmem:[%s10759_s2 + $0x210] sm:$0xf] }
  0x2a   :  { %2578 = vmatpush.bf16.msrb.mxu3 %v4951_v46  ;;  %v4846_v38 = vld [vmem:[%s10759_s2 + $0x320] sm:$0xf]  ;;  %v6694_v39 = vld [vmem:[%s10759_s2 + $0x324] sm:$0xf0]  ;;  %v4783_v45 = vor.u32 %v6678_v37, %v4782_v35  ;;  %v6660_v47 = vld [vmem:[%s10759_s2 + $0x214] sm:$0xf0] }
  0x2b   :  { %2540 = vmatpush.bf16.msrb.mxu0 %v4751_v52  ;;  %v4910_v40 = vld [vmem:[%s10759_s2 + $0x3a0] sm:$0xf]  ;;  %v6710_v41 = vld [vmem:[%s10759_s2 + $0x3a4] sm:$0xf0]  ;;  %v4847_v46 = vor.u32 %v6694_v39, %v4846_v38  ;;  %v4774_v48 = vld [vmem:[%s10759_s2 + $0x290] sm:$0xf]  ;;  %v4711_v57 = vor.u32 %v6660_v47, %v4710_v44 }
  0x2c   :  { %2553 = vmatpush.bf16.msrb.mxu1 %v4815_v55  ;;  %v56_v42 = vld [vmem:[%s10778_s29 + $0x8] sm:$0xff]  ;;  %v6676_v49 = vld [vmem:[%s10759_s2 + $0x294] sm:$0xf0]  ;;  %v4911_v50 = vor.u32 %v6710_v41, %v4910_v40  ;;  %v4838_v51 = vld [vmem:[%s10759_s2 + $0x310] sm:$0xf] }
  0x2d   :  { %2566 = vmatpush.bf16.msrb.mxu2 %v4879_v56  ;;  %464 = vst [vmem:[#allocation1 + $0x20] ss:$4 sm:$0xff] %v56_v42  ;;  %v6692_v52 = vld [vmem:[%s10759_s2 + $0x314] sm:$0xf0]  ;;  %v4902_v53 = vld [vmem:[%s10759_s2 + $0x390] sm:$0xf]  ;;  %v4775_v62 = vor.u32 %v6676_v49, %v4774_v48 }
  0x2e   :  { %2579 = vmatpush.bf16.msrb.mxu3 %v4943_v60  ;;  %v7652_v23 = vld.sshfl [vmem:[#allocation1 + $0x10] sm:$0xff pattern:$0x73625140]  ;;  %v7654_v24 = vld.sshfl [vmem:[#allocation1] sm:$0xff pattern:$0x73625140]  ;;  %v4839_v63 = vor.u32 %v6692_v52, %v4838_v51 }
  0x2f   :  { %2541 = vmatpush.bf16.msrb.mxu0 %v4743_v1  ;;  %2521 = vmatmul.bf16.vlgmr.msra.gmra.mxu2 %v7652_v23  ;;  %v7657_v26 = vld.sshfl [vmem:[#allocation1 + $0x18] sm:$0xff pattern:$0x73625140]  ;;  %v7659_v27 = vld.sshfl [vmem:[#allocation1 + $0x8] sm:$0xff pattern:$0x73625140] }
  0x30   :  { %2554 = vmatpush.bf16.msrb.mxu1 %v4807_v3  ;;  %2495 = vmatmul.bf16.vlgmr.msra.gmra.mxu0 %v7654_v24  ;;  %474 = vst [vmem:[#allocation1] ss:$4 sm:$0xff] %v57_v20  ;;  %v6708_v54 = vld [vmem:[%s10759_s2 + $0x394] sm:$0xf0]  ;;  %v4702_v55 = vld [vmem:[%s10759_s2 + $0x200] sm:$0xf] }
  0x31   :  { %2567 = vmatpush.bf16.msrb.mxu2 %v4871_v4  ;;  %2534 = vmatmul.bf16.vlgmr.msra.gmra.mxu3 %v7657_v26  ;;  %v6658_v56 = vld [vmem:[%s10759_s2 + $0x204] sm:$0xf0]  ;;  %v4766_v58 = vld [vmem:[%s10759_s2 + $0x280] sm:$0xf]  ;;  %v5014_v2 = vld [vmem:[%s10759_s2 + $0x470] sm:$0xf]  ;;  %v4903_v4 = vor.u32 %v6708_v54, %v4902_v53 }
  0x32   :  { %2580 = vmatpush.bf16.msrb.mxu3 %v4935_v8  ;;  %2508 = vmatmul.bf16.vlgmr.msra.gmra.mxu1 %v7659_v27  ;;  %v6674_v59 = vld [vmem:[%s10759_s2 + $0x284] sm:$0xf0]  ;;  %v4830_v60 = vld [vmem:[%s10759_s2 + $0x300] sm:$0xf]  ;;  %v6736_v3 = vld [vmem:[%s10759_s2 + $0x474] sm:$0xf0]  ;;  %v4703_v12 = vor.u32 %v6658_v56, %v4702_v55 }
  0x33   :  { %2542 = vmatpush.bf16.msrb.mxu0 %v4735_v15  ;;  %v6690_v61 = vld [vmem:[%s10759_s2 + $0x304] sm:$0xf0]  ;;  %v4894_v0 = vld [vmem:[%s10759_s2 + $0x380] sm:$0xf]  ;;  %v5078_v5 = vld [vmem:[%s10759_s2 + $0x4f0] sm:$0xf]  ;;  %v4767_v15 = vor.u32 %v6674_v59, %v4766_v58  ;;  %v5015_v20 = vor.u32 %v6736_v3, %v5014_v2 }
  0x34   :  { %2555 = vmatpush.bf16.msrb.mxu1 %v4799_v21  ;;  %v6706_v1 = vld [vmem:[%s10759_s2 + $0x384] sm:$0xf0]  ;;  %v6752_v6 = vld [vmem:[%s10759_s2 + $0x4f4] sm:$0xf0]  ;;  %v5142_v7 = vld [vmem:[%s10759_s2 + $0x570] sm:$0xf]  ;;  %v4831_v16 = vor.u32 %v6690_v61, %v4830_v60 }
  0x35   :  { %2568 = vmatpush.bf16.msrb.mxu2 %v4863_v22  ;;  %v6768_v8 = vld [vmem:[%s10759_s2 + $0x574] sm:$0xf0]  ;;  %v7766_v10 = vld.sshfl [vmem:[#allocation1 + $0x30] sm:$0xff pattern:$0x73625140]  ;;  %v4895_v19 = vor.u32 %v6706_v1, %v4894_v0  ;;  %v5079_v21 = vor.u32 %v6752_v6, %v5078_v5 }
  0x36   :  { %2581 = vmatpush.bf16.msrb.mxu3 %v4927_v25  ;;  %v58_v9 = vld [vmem:[%s10778_s29 + $0x18] sm:$0xff]  ;;  %v7768_v11 = vld.sshfl [vmem:[#allocation1 + $0x20] sm:$0xff pattern:$0x73625140]  ;;  %v5206_v17 = vld [vmem:[%s10759_s2 + $0x5f0] sm:$0xf]  ;;  %v5143_v22 = vor.u32 %v6768_v8, %v5142_v7 }
  0x37   :  { %2543 = vmatpush.bf16.msrb.mxu0 %v4727_v30  ;;  %v7770_v13 = vld.sshfl [vmem:[#allocation1 + $0x38] sm:$0xff pattern:$0x73625140]  ;;  %v7772_v14 = vld.sshfl [vmem:[#allocation1 + $0x28] sm:$0xff pattern:$0x73625140] }
  0x38   :  { %2556 = vmatpush.bf16.msrb.mxu1 %v4791_v31  ;;  %v6784_v18 = vld [vmem:[%s10759_s2 + $0x5f4] sm:$0xf0]  ;;  %476 = vst [vmem:[#allocation1 + $0x20] ss:$4 sm:$0xff] %v58_v9  ;;  %v5006_v25 = vld [vmem:[%s10759_s2 + $0x460] sm:$0xf] }
  0x39   :  { %2569 = vmatpush.bf16.msrb.mxu2 %v4855_v32  ;;  %v6734_v28 = vld [vmem:[%s10759_s2 + $0x464] sm:$0xf0]  ;;  %v5070_v29 = vld [vmem:[%s10759_s2 + $0x4e0] sm:$0xf]  ;;  %v5207_v30 = vor.u32 %v6784_v18, %v5206_v17  ;;  %v4998_v39 = vld [vmem:[%s10759_s2 + $0x450] sm:$0xf] }
  0x3a   :  { %2582 = vmatpush.bf16.msrb.mxu3 %v4919_v36  ;;  %v6750_v31 = vld [vmem:[%s10759_s2 + $0x4e4] sm:$0xf0]  ;;  %v5134_v32 = vld [vmem:[%s10759_s2 + $0x560] sm:$0xf]  ;;  %v5007_v36 = vor.u32 %v6734_v28, %v5006_v25  ;;  %v6732_v40 = vld [vmem:[%s10759_s2 + $0x454] sm:$0xf0] }
  0x3b   :  { %2544 = vmatpush.bf16.msrb.mxu0 %v4719_v43  ;;  %v6766_v33 = vld [vmem:[%s10759_s2 + $0x564] sm:$0xf0]  ;;  %v5198_v34 = vld [vmem:[%s10759_s2 + $0x5e0] sm:$0xf]  ;;  %v5071_v37 = vor.u32 %v6750_v31, %v5070_v29  ;;  %v5062_v41 = vld [vmem:[%s10759_s2 + $0x4d0] sm:$0xf]  ;;  %v4999_v48 = vor.u32 %v6732_v40, %v4998_v39 }
  0x3c   :  { %2557 = vmatpush.bf16.msrb.mxu1 %v4783_v45  ;;  %v6782_v35 = vld [vmem:[%s10759_s2 + $0x5e4] sm:$0xf0]  ;;  %v5135_v38 = vor.u32 %v6766_v33, %v5134_v32  ;;  %v6748_v43 = vld [vmem:[%s10759_s2 + $0x4d4] sm:$0xf0]  ;;  %v5126_v44 = vld [vmem:[%s10759_s2 + $0x550] sm:$0xf] }
  0x3d   :  { %2570 = vmatpush.bf16.msrb.mxu2 %v4847_v46  ;;  %v5199_v42 = vor.u32 %v6782_v35, %v5198_v34  ;;  %v6764_v45 = vld [vmem:[%s10759_s2 + $0x554] sm:$0xf0]  ;;  %v5190_v46 = vld [vmem:[%s10759_s2 + $0x5d0] sm:$0xf]  ;;  %v5063_v49 = vor.u32 %v6748_v43, %v5062_v41  ;;  %v4990_v51 = vld [vmem:[%s10759_s2 + $0x440] sm:$0xf] }
  0x3e   :  { %2583 = vmatpush.bf16.msrb.mxu3 %v4911_v50  ;;  %v6780_v47 = vld [vmem:[%s10759_s2 + $0x5d4] sm:$0xf0]  ;;  %v5127_v50 = vor.u32 %v6764_v45, %v5126_v44  ;;  %v6730_v52 = vld [vmem:[%s10759_s2 + $0x444] sm:$0xf0]  ;;  %v5054_v53 = vld [vmem:[%s10759_s2 + $0x4c0] sm:$0xf] }
  0x3f   :  { %2545 = vmatpush.bf16.msrb.mxu0 %v4711_v57  ;;  %v5191_v54 = vor.u32 %v6780_v47, %v5190_v46  ;;  %v6746_v55 = vld [vmem:[%s10759_s2 + $0x4c4] sm:$0xf0]  ;;  %v5118_v56 = vld [vmem:[%s10759_s2 + $0x540] sm:$0xf]  ;;  %v4991_v60 = vor.u32 %v6730_v52, %v4990_v51  ;;  %v4982_v61 = vld [vmem:[%s10759_s2 + $0x430] sm:$0xf] }
  0x40   :  { %2558 = vmatpush.bf16.msrb.mxu1 %v4775_v62  ;;  %v6762_v57 = vld [vmem:[%s10759_s2 + $0x544] sm:$0xf0]  ;;  %v5182_v58 = vld [vmem:[%s10759_s2 + $0x5c0] sm:$0xf]  ;;  %v6728_v62 = vld [vmem:[%s10759_s2 + $0x434] sm:$0xf0]  ;;  %v5055_v0 = vor.u32 %v6746_v55, %v5054_v53 }
  0x41   :  { %2571 = vmatpush.bf16.msrb.mxu2 %v4839_v63  ;;  %v6778_v59 = vld [vmem:[%s10759_s2 + $0x5c4] sm:$0xf0]  ;;  %v5046_v63 = vld [vmem:[%s10759_s2 + $0x4b0] sm:$0xf]  ;;  %v5119_v1 = vor.u32 %v6762_v57, %v5118_v56  ;;  %v6744_v2 = vld [vmem:[%s10759_s2 + $0x4b4] sm:$0xf0] }
  0x42   :  { %2584 = vmatpush.bf16.msrb.mxu3 %v4903_v4  ;;  %v5110_v3 = vld [vmem:[%s10759_s2 + $0x530] sm:$0xf]  ;;  %v6760_v4 = vld [vmem:[%s10759_s2 + $0x534] sm:$0xf0]  ;;  %v5183_v5 = vor.u32 %v6778_v59, %v5182_v58  ;;  %v59_v8 = vld [vmem:[%s10778_s29 + $0x20] sm:$0xff] }
  0x43   :  { %2546 = vmatpush.bf16.msrb.mxu0 %v4703_v12  ;;  %v5174_v6 = vld [vmem:[%s10759_s2 + $0x5b0] sm:$0xf]  ;;  %v6776_v7 = vld [vmem:[%s10759_s2 + $0x5b4] sm:$0xf0]  ;;  %v4974_v9 = vld [vmem:[%s10759_s2 + $0x420] sm:$0xf] }
  0x44   :  { %2559 = vmatpush.bf16.msrb.mxu1 %v4767_v15  ;;  %v7886_v12 = vld.sshfl [vmem:[#allocation1] sm:$0xff pattern:$0x73625140]  ;;  %v7888_v15 = vld.sshfl [vmem:[#allocation1 + $0x10] sm:$0xff pattern:$0x73625140]  ;;  %v5175_v25 = vor.u32 %v6776_v7, %v5174_v6 }
  0x45   :  { %2572 = vmatpush.bf16.msrb.mxu2 %v4831_v16  ;;  %v4983_v16 = vor.u32 %v6728_v62, %v4982_v61  ;;  %v7890_v17 = vld.sshfl [vmem:[#allocation1 + $0x8] sm:$0xff pattern:$0x73625140]  ;;  %v7892_v18 = vld.sshfl [vmem:[#allocation1 + $0x18] sm:$0xff pattern:$0x73625140] }
  0x46   :  { %2585 = vmatpush.bf16.msrb.mxu3 %v4895_v19  ;;  %2547 = vmatmul.bf16.vlgmr.msrb.gmra.mxu0 %v7768_v11  ;;  %v5047_v19 = vor.u32 %v6744_v2, %v5046_v63  ;;  %486 = vst [vmem:[#allocation1] ss:$4 sm:$0xff] %v59_v8  ;;  %v6742_v28 = vld [vmem:[%s10759_s2 + $0x4a4] sm:$0xf0]  ;;  %v5102_v29 = vld [vmem:[%s10759_s2 + $0x520] sm:$0xf] }
  0x47   :  { %2591 = vmatpush.bf16.msra.mxu0 %v5015_v20  ;;  %2560 = vmatmul.bf16.vlgmr.msrb.gmra.mxu1 %v7772_v14  ;;  %v5111_v20 = vor.u32 %v6760_v4, %v5110_v3  ;;  %v5166_v31 = vld [vmem:[%s10759_s2 + $0x5a0] sm:$0xf]  ;;  %v6774_v32 = vld [vmem:[%s10759_s2 + $0x5a4] sm:$0xf0]  ;;  %v6740_v40 = vld [vmem:[%s10759_s2 + $0x494] sm:$0xf0] }
  0x48   :  { %2604 = vmatpush.bf16.msra.mxu1 %v5079_v21  ;;  %2573 = vmatmul.bf16.vlgmr.msrb.gmra.mxu2 %v7766_v10  ;;  %v6726_v21 = vld [vmem:[%s10759_s2 + $0x424] sm:$0xf0]  ;;  %v5167_v39 = vor.u32 %v6774_v32, %v5166_v31  ;;  %v5094_v41 = vld [vmem:[%s10759_s2 + $0x510] sm:$0xf]  ;;  %v6772_v44 = vld [vmem:[%s10759_s2 + $0x594] sm:$0xf0] }
  0x49   :  { %2617 = vmatpush.bf16.msra.mxu2 %v5143_v22  ;;  %2586 = vmatmul.bf16.vlgmr.msrb.gmra.mxu3 %v7770_v13  ;;  %v5038_v22 = vld [vmem:[%s10759_s2 + $0x4a0] sm:$0xf]  ;;  %v4975_v33 = vor.u32 %v6726_v21, %v4974_v9  ;;  %v5158_v43 = vld [vmem:[%s10759_s2 + $0x590] sm:$0xf]  ;;  %v6722_v47 = vld [vmem:[%s10759_s2 + $0x404] sm:$0xf0] }
  0x4a   :  { %2630 = vmatpush.bf16.msra.mxu3 %v5207_v30  ;;  %v6758_v30 = vld [vmem:[%s10759_s2 + $0x524] sm:$0xf0]  ;;  %v5039_v34 = vor.u32 %v6742_v28, %v5038_v22  ;;  %v4958_v46 = vld [vmem:[%s10759_s2 + $0x400] sm:$0xf]  ;;  %v5159_v53 = vor.u32 %v6772_v44, %v5158_v43  ;;  %v5270_v57 = vld [vmem:[%s10759_s2 + $0x670] sm:$0xf] }
  0x4b   :  { %2592 = vmatpush.bf16.msra.mxu0 %v5007_v36  ;;  %v5103_v35 = vor.u32 %v6758_v30, %v5102_v29  ;;  %v4966_v36 = vld [vmem:[%s10759_s2 + $0x410] sm:$0xf]  ;;  %v6738_v51 = vld [vmem:[%s10759_s2 + $0x484] sm:$0xf0]  ;;  %v5086_v52 = vld [vmem:[%s10759_s2 + $0x500] sm:$0xf] }
  0x4c   :  { %2605 = vmatpush.bf16.msra.mxu1 %v5071_v37  ;;  %v6724_v37 = vld [vmem:[%s10759_s2 + $0x414] sm:$0xf0]  ;;  %v5150_v55 = vld [vmem:[%s10759_s2 + $0x580] sm:$0xf]  ;;  %v6770_v56 = vld [vmem:[%s10759_s2 + $0x584] sm:$0xf0] }
  0x4d   :  { %2618 = vmatpush.bf16.msra.mxu2 %v5135_v38  ;;  %v5030_v38 = vld [vmem:[%s10759_s2 + $0x490] sm:$0xf]  ;;  %v4967_v45 = vor.u32 %v6724_v37, %v4966_v36  ;;  %v6800_v58 = vld [vmem:[%s10759_s2 + $0x674] sm:$0xf0]  ;;  %v5151_v4 = vor.u32 %v6770_v56, %v5150_v55  ;;  %v5262_v8 = vld [vmem:[%s10759_s2 + $0x660] sm:$0xf] }
  0x4e   :  { %2631 = vmatpush.bf16.msra.mxu3 %v5199_v42  ;;  %v6756_v42 = vld [vmem:[%s10759_s2 + $0x514] sm:$0xf0]  ;;  %v5334_v59 = vld [vmem:[%s10759_s2 + $0x6f0] sm:$0xf]  ;;  %v6798_v9 = vld [vmem:[%s10759_s2 + $0x664] sm:$0xf0] }
  0x4f   :  { %2593 = vmatpush.bf16.msra.mxu0 %v4999_v48  ;;  %v5031_v48 = vor.u32 %v6740_v40, %v5030_v38  ;;  %v6816_v61 = vld [vmem:[%s10759_s2 + $0x6f4] sm:$0xf0]  ;;  %v5398_v62 = vld [vmem:[%s10759_s2 + $0x770] sm:$0xf]  ;;  %v5390_v21 = vld [vmem:[%s10759_s2 + $0x760] sm:$0xf]  ;;  %v5263_v29 = vor.u32 %v6798_v9, %v5262_v8 }
  0x50   :  { %2606 = vmatpush.bf16.msra.mxu1 %v5063_v49  ;;  %v5095_v49 = vor.u32 %v6756_v42, %v5094_v41  ;;  %v6832_v63 = vld [vmem:[%s10759_s2 + $0x774] sm:$0xf0]  ;;  %v5462_v2 = vld [vmem:[%s10759_s2 + $0x7f0] sm:$0xf]  ;;  %v5335_v6 = vor.u32 %v6816_v61, %v5334_v59  ;;  %v6830_v22 = vld [vmem:[%s10759_s2 + $0x764] sm:$0xf0] }
  0x51   :  { %2619 = vmatpush.bf16.msra.mxu2 %v5127_v50  ;;  %v5022_v50 = vld [vmem:[%s10759_s2 + $0x480] sm:$0xf]  ;;  %v6848_v3 = vld [vmem:[%s10759_s2 + $0x7f4] sm:$0xf0]  ;;  %v5399_v7 = vor.u32 %v6832_v63, %v5398_v62  ;;  %v6846_v28 = vld [vmem:[%s10759_s2 + $0x7e4] sm:$0xf0]  ;;  %v5391_v32 = vor.u32 %v6830_v22, %v5390_v21 }
  0x52   :  { %2632 = vmatpush.bf16.msra.mxu3 %v5191_v54  ;;  %v6754_v54 = vld [vmem:[%s10759_s2 + $0x504] sm:$0xf0]  ;;  %v5254_v30 = vld [vmem:[%s10759_s2 + $0x650] sm:$0xf]  ;;  %v6828_v38 = vld [vmem:[%s10759_s2 + $0x754] sm:$0xf0] }
  0x53   :  { %2594 = vmatpush.bf16.msra.mxu0 %v4991_v60  ;;  %v4959_v60 = vor.u32 %v6722_v47, %v4958_v46  ;;  %v5382_v37 = vld [vmem:[%s10759_s2 + $0x750] sm:$0xf]  ;;  %v6844_v40 = vld [vmem:[%s10759_s2 + $0x7d4] sm:$0xf0]  ;;  %v5246_v41 = vld [vmem:[%s10759_s2 + $0x640] sm:$0xf] }
  0x54   :  { %2607 = vmatpush.bf16.msra.mxu1 %v5055_v0  ;;  %v5023_v0 = vor.u32 %v6738_v51, %v5022_v50  ;;  %v6794_v42 = vld [vmem:[%s10759_s2 + $0x644] sm:$0xf0]  ;;  %v5310_v44 = vld [vmem:[%s10759_s2 + $0x6c0] sm:$0xf]  ;;  %v5383_v50 = vor.u32 %v6828_v38, %v5382_v37  ;;  %v5238_v61 = vld [vmem:[%s10759_s2 + $0x630] sm:$0xf] }
  0x55   :  { %2620 = vmatpush.bf16.msra.mxu2 %v5119_v1  ;;  %v5087_v1 = vor.u32 %v6754_v54, %v5086_v52  ;;  %v5374_v46 = vld [vmem:[%s10759_s2 + $0x740] sm:$0xf]  ;;  %v6826_v47 = vld [vmem:[%s10759_s2 + $0x744] sm:$0xf0]  ;;  %v6792_v62 = vld [vmem:[%s10759_s2 + $0x634] sm:$0xf0] }
  0x56   :  { %2633 = vmatpush.bf16.msra.mxu3 %v5183_v5  ;;  %v5271_v5 = vor.u32 %v6800_v58, %v5270_v57  ;;  %v8060_v51 = vld.sshfl [vmem:[#allocation1 + $0x20] sm:$0xff pattern:$0x73625140]  ;;  %v8062_v52 = vld.sshfl [vmem:[#allocation1 + $0x30] sm:$0xff pattern:$0x73625140]  ;;  %v5247_v58 = vor.u32 %v6794_v42, %v5246_v41 }
  0x57   :  { %2595 = vmatpush.bf16.msra.mxu0 %v4983_v16  ;;  %v5326_v16 = vld [vmem:[%s10759_s2 + $0x6e0] sm:$0xf]  ;;  %v8064_v54 = vld.sshfl [vmem:[#allocation1 + $0x28] sm:$0xff pattern:$0x73625140] }
  0x58   :  { %2608 = vmatpush.bf16.msra.mxu1 %v5047_v19  ;;  %v5463_v19 = vor.u32 %v6848_v3, %v5462_v2  ;;  %v8066_v55 = vld.sshfl [vmem:[#allocation1 + $0x38] sm:$0xff pattern:$0x73625140]  ;;  %v5438_v56 = vld [vmem:[%s10759_s2 + $0x7c0] sm:$0xf] }
  0x59   :  { %2621 = vmatpush.bf16.msra.mxu2 %v5111_v20  ;;  %v6814_v20 = vld [vmem:[%s10759_s2 + $0x6e4] sm:$0xf0]  ;;  %v5302_v63 = vld [vmem:[%s10759_s2 + $0x6b0] sm:$0xf]  ;;  %v6824_v3 = vld [vmem:[%s10759_s2 + $0x734] sm:$0xf0] }
  0x5a   :  { %2634 = vmatpush.bf16.msra.mxu3 %v5175_v25  ;;  %v5454_v25 = vld [vmem:[%s10759_s2 + $0x7e0] sm:$0xf]  ;;  %v5327_v31 = vor.u32 %v6814_v20, %v5326_v16  ;;  %v6842_v57 = vld [vmem:[%s10759_s2 + $0x7c4] sm:$0xf0]  ;;  %v5366_v2 = vld [vmem:[%s10759_s2 + $0x730] sm:$0xf] }
  0x5b   :  { %2596 = vmatpush.bf16.msra.mxu0 %v4975_v33  ;;  %v6796_v33 = vld [vmem:[%s10759_s2 + $0x654] sm:$0xf0]  ;;  %v5455_v36 = vor.u32 %v6846_v28, %v5454_v25  ;;  %v5367_v8 = vor.u32 %v6824_v3, %v5366_v2  ;;  %v5230_v9 = vld [vmem:[%s10759_s2 + $0x620] sm:$0xf]  ;;  %v6790_v16 = vld [vmem:[%s10759_s2 + $0x624] sm:$0xf0] }
  0x5c   :  { %2609 = vmatpush.bf16.msra.mxu1 %v5039_v34  ;;  %v5318_v34 = vld [vmem:[%s10759_s2 + $0x6d0] sm:$0xf]  ;;  %v5255_v43 = vor.u32 %v6796_v33, %v5254_v30  ;;  %v6806_v21 = vld [vmem:[%s10759_s2 + $0x6a4] sm:$0xf0]  ;;  %v5358_v22 = vld [vmem:[%s10759_s2 + $0x720] sm:$0xf]  ;;  %v5231_v30 = vor.u32 %v6790_v16, %v5230_v9 }
  0x5d   :  { %2622 = vmatpush.bf16.msra.mxu2 %v5103_v35  ;;  %v6812_v35 = vld [vmem:[%s10759_s2 + $0x6d4] sm:$0xf0]  ;;  %v6822_v25 = vld [vmem:[%s10759_s2 + $0x724] sm:$0xf0]  ;;  %v5422_v28 = vld [vmem:[%s10759_s2 + $0x7a0] sm:$0xf] }
  0x5e   :  { %2635 = vmatpush.bf16.msra.mxu3 %v5167_v39  ;;  %v5446_v39 = vld [vmem:[%s10759_s2 + $0x7d0] sm:$0xf]  ;;  %v6804_v37 = vld [vmem:[%s10759_s2 + $0x694] sm:$0xf0]  ;;  %v5214_v42 = vld [vmem:[%s10759_s2 + $0x600] sm:$0xf] }
  0x5f   :  { %2597 = vmatpush.bf16.msra.mxu0 %v4967_v45  ;;  %v6810_v45 = vld [vmem:[%s10759_s2 + $0x6c4] sm:$0xf0]  ;;  %v5222_v33 = vld [vmem:[%s10759_s2 + $0x610] sm:$0xf]  ;;  %v6836_v41 = vld [vmem:[%s10759_s2 + $0x794] sm:$0xf0] }
  0x60   :  { %2610 = vmatpush.bf16.msra.mxu1 %v5031_v48  ;;  %v60_v48 = vld [vmem:[%s10778_s29 + $0x28] sm:$0xff]  ;;  %v5311_v59 = vor.u32 %v6810_v45, %v5310_v44  ;;  %v5350_v38 = vld [vmem:[%s10759_s2 + $0x710] sm:$0xf]  ;;  %v5278_v45 = vld [vmem:[%s10759_s2 + $0x680] sm:$0xf] }
  0x61   :  { %2623 = vmatpush.bf16.msra.mxu2 %v5095_v49  ;;  %v5319_v49 = vor.u32 %v6812_v35, %v5318_v34  ;;  %488 = vst [vmem:[#allocation1 + $0x20] ss:$4 sm:$0xff] %v60_v48  ;;  %v6788_v34 = vld [vmem:[%s10759_s2 + $0x614] sm:$0xf0]  ;;  %v5286_v35 = vld [vmem:[%s10759_s2 + $0x690] sm:$0xf] }
  0x62   :  { %2636 = vmatpush.bf16.msra.mxu3 %v5159_v53  ;;  %v5447_v53 = vor.u32 %v6844_v40, %v5446_v39  ;;  %v6820_v39 = vld [vmem:[%s10759_s2 + $0x714] sm:$0xf0]  ;;  %v5414_v40 = vld [vmem:[%s10759_s2 + $0x790] sm:$0xf]  ;;  %v6786_v44 = vld [vmem:[%s10759_s2 + $0x604] sm:$0xf0] }
  0x63   :  { %2598 = vmatpush.bf16.msra.mxu0 %v4959_v60  ;;  %v5375_v60 = vor.u32 %v6826_v47, %v5374_v46  ;;  %v6802_v46 = vld [vmem:[%s10759_s2 + $0x684] sm:$0xf0]  ;;  %v5287_v47 = vor.u32 %v6804_v37, %v5286_v35  ;;  %v5351_v48 = vor.u32 %v6820_v39, %v5350_v38 }
  0x64   :  { %2611 = vmatpush.bf16.msra.mxu1 %v5023_v0  ;;  %v5439_v0 = vor.u32 %v6842_v57, %v5438_v56  ;;  %v5415_v56 = vor.u32 %v6836_v41, %v5414_v40  ;;  %v6834_v57 = vld [vmem:[%s10759_s2 + $0x784] sm:$0xf0] }
  0x65   :  { %2624 = vmatpush.bf16.msra.mxu2 %v5087_v1  ;;  %v6808_v1 = vld [vmem:[%s10759_s2 + $0x6b4] sm:$0xf0] }
  0x66   :  { %2637 = vmatpush.bf16.msra.mxu3 %v5151_v4  ;;  %2599 = vmatmul.bf16.vlgmr.msra.gmra.mxu0 %v7886_v12  ;;  %v5430_v4 = vld [vmem:[%s10759_s2 + $0x7b0] sm:$0xf] }
  0x67   :  { %2643 = vmatpush.bf16.msrb.mxu0 %v5271_v5  ;;  %2612 = vmatmul.bf16.vlgmr.msra.gmra.mxu1 %v7890_v17  ;;  %v6840_v5 = vld [vmem:[%s10759_s2 + $0x7b4] sm:$0xf0] }
  0x68   :  { %2656 = vmatpush.bf16.msrb.mxu1 %v5335_v6  ;;  %2625 = vmatmul.bf16.vlgmr.msra.gmra.mxu2 %v7888_v15  ;;  %v5239_v6 = vor.u32 %v6792_v62, %v5238_v61  ;;  %v5431_v20 = vor.u32 %v6840_v5, %v5430_v4 }
  0x69   :  { %2669 = vmatpush.bf16.msrb.mxu2 %v5399_v7  ;;  %2638 = vmatmul.bf16.vlgmr.msra.gmra.mxu3 %v7892_v18  ;;  %v5303_v7 = vor.u32 %v6808_v1, %v5302_v63 }
  0x6a   :  { %2682 = vmatpush.bf16.msrb.mxu3 %v5463_v19  ;;  %v5294_v19 = vld [vmem:[%s10759_s2 + $0x6a0] sm:$0xf] }
  0x6b   :  { %2644 = vmatpush.bf16.msrb.mxu0 %v5263_v29  ;;  %v6838_v29 = vld [vmem:[%s10759_s2 + $0x7a4] sm:$0xf0] }
  0x6c   :  { %2657 = vmatpush.bf16.msrb.mxu1 %v5327_v31  ;;  %v5295_v31 = vor.u32 %v6806_v21, %v5294_v19 }
  0x6d   :  { %2670 = vmatpush.bf16.msrb.mxu2 %v5391_v32  ;;  %v5359_v32 = vor.u32 %v6822_v25, %v5358_v22 }
  0x6e   :  { %2683 = vmatpush.bf16.msrb.mxu3 %v5455_v36  ;;  %v5423_v36 = vor.u32 %v6838_v29, %v5422_v28 }
  0x6f   :  { %2645 = vmatpush.bf16.msrb.mxu0 %v5255_v43  ;;  %v5223_v43 = vor.u32 %v6788_v34, %v5222_v33 }
  0x70   :  { %2658 = vmatpush.bf16.msrb.mxu1 %v5319_v49  ;;  %v5342_v49 = vld [vmem:[%s10759_s2 + $0x700] sm:$0xf] }
  0x71   :  { %2671 = vmatpush.bf16.msrb.mxu2 %v5383_v50  ;;  %v6818_v50 = vld [vmem:[%s10759_s2 + $0x704] sm:$0xf0] }
  0x72   :  { %2684 = vmatpush.bf16.msrb.mxu3 %v5447_v53  ;;  %v5406_v53 = vld [vmem:[%s10759_s2 + $0x780] sm:$0xf] }
  0x73   :  { %2646 = vmatpush.bf16.msrb.mxu0 %v5247_v58  ;;  %v5526_v58 = vld [vmem:[%s10759_s2 + $0x870] sm:$0xf] }
  0x74   :  { %2659 = vmatpush.bf16.msrb.mxu1 %v5311_v59  ;;  %v6864_v59 = vld [vmem:[%s10759_s2 + $0x874] sm:$0xf0] }
  0x75   :  { %2672 = vmatpush.bf16.msrb.mxu2 %v5375_v60  ;;  %v5590_v60 = vld [vmem:[%s10759_s2 + $0x8f0] sm:$0xf] }
  0x76   :  { %2685 = vmatpush.bf16.msrb.mxu3 %v5439_v0 }
  0x77   :  { %2647 = vmatpush.bf16.msrb.mxu0 %v5239_v6 }
  0x78   :  { %2660 = vmatpush.bf16.msrb.mxu1 %v5303_v7 }
  0x79   :  { %2673 = vmatpush.bf16.msrb.mxu2 %v5367_v8 }
  0x7a   :  { %2686 = vmatpush.bf16.msrb.mxu3 %v5431_v20 }
  0x7b   :  { %2648 = vmatpush.bf16.msrb.mxu0 %v5231_v30 }
  0x7c   :  { %2661 = vmatpush.bf16.msrb.mxu1 %v5295_v31 }
  0x7d   :  { %2674 = vmatpush.bf16.msrb.mxu2 %v5359_v32 }
  0x7e   :  { %2687 = vmatpush.bf16.msrb.mxu3 %v5423_v36 }
  0x7f   :  { %25 = vsyncpa [#allocation8], 0  ;;  %2649 = vmatpush.bf16.msrb.mxu0 %v5223_v43  ;;  %v5215_v61 = vor.u32 %v6786_v44, %v5214_v42  ;;  %v6880_v62 = vld [vmem:[%s10759_s2 + $0x8f4] sm:$0xf0]  ;;  %v5654_v63 = vld [vmem:[%s10759_s2 + $0x970] sm:$0xf]  ;;  %v5279_v1 = vor.u32 %v6802_v46, %v5278_v45  ;;  %v5343_v2 = vor.u32 %v6818_v50, %v5342_v49  ;;  %v5407_v5 = vor.u32 %v6834_v57, %v5406_v53 }
  0x80   :  { %v6896_v0 = vld [vmem:[%s10759_s2 + $0x974] sm:$0xf0]  ;;  %2662 = vmatpush.bf16.msrb.mxu1 %v5287_v47  ;;  %v5718_v3 = vld [vmem:[%s10759_s2 + $0x9f0] sm:$0xf]  ;;  %v5527_v6 = vor.u32 %v6864_v59, %v5526_v58  ;;  %v5591_v7 = vor.u32 %v6880_v62, %v5590_v60  ;;  %v5518_v9 = vld [vmem:[%s10759_s2 + $0x860] sm:$0xf] }
  0x81   :  { %2675 = vmatpush.bf16.msrb.mxu2 %v5351_v48  ;;  %v6912_v4 = vld [vmem:[%s10759_s2 + $0x9f4] sm:$0xf0]  ;;  %v5655_v8 = vor.u32 %v6896_v0, %v5654_v63  ;;  %v6862_v16 = vld [vmem:[%s10759_s2 + $0x864] sm:$0xf0]  ;;  %v5582_v19 = vld [vmem:[%s10759_s2 + $0x8e0] sm:$0xf] }
  0x82   :  { %2688 = vmatpush.bf16.msrb.mxu3 %v5415_v56  ;;  %v5719_v20 = vor.u32 %v6912_v4, %v5718_v3  ;;  %v6878_v21 = vld [vmem:[%s10759_s2 + $0x8e4] sm:$0xf0]  ;;  %v5646_v22 = vld [vmem:[%s10759_s2 + $0x960] sm:$0xf]  ;;  %v5519_v30 = vor.u32 %v6862_v16, %v5518_v9  ;;  %v5510_v33 = vld [vmem:[%s10759_s2 + $0x850] sm:$0xf] }
  0x83   :  { %2650 = vmatpush.bf16.msrb.mxu0 %v5215_v61  ;;  %v6894_v25 = vld [vmem:[%s10759_s2 + $0x964] sm:$0xf0]  ;;  %v5710_v28 = vld [vmem:[%s10759_s2 + $0x9e0] sm:$0xf]  ;;  %v5583_v31 = vor.u32 %v6878_v21, %v5582_v19  ;;  %v6860_v34 = vld [vmem:[%s10759_s2 + $0x854] sm:$0xf0] }
  0x84   :  { %2663 = vmatpush.bf16.msrb.mxu1 %v5279_v1  ;;  %v6910_v29 = vld [vmem:[%s10759_s2 + $0x9e4] sm:$0xf0]  ;;  %v5647_v32 = vor.u32 %v6894_v25, %v5646_v22  ;;  %v5574_v35 = vld [vmem:[%s10759_s2 + $0x8d0] sm:$0xf]  ;;  %v6876_v37 = vld [vmem:[%s10759_s2 + $0x8d4] sm:$0xf0]  ;;  %v5511_v42 = vor.u32 %v6860_v34, %v5510_v33 }
  0x85   :  { %2676 = vmatpush.bf16.msrb.mxu2 %v5343_v2  ;;  %v5711_v36 = vor.u32 %v6910_v29, %v5710_v28  ;;  %v5638_v38 = vld [vmem:[%s10759_s2 + $0x950] sm:$0xf]  ;;  %v6892_v39 = vld [vmem:[%s10759_s2 + $0x954] sm:$0xf0]  ;;  %v5575_v43 = vor.u32 %v6876_v37, %v5574_v35  ;;  %v5502_v45 = vld [vmem:[%s10759_s2 + $0x840] sm:$0xf] }
  0x86   :  { %2689 = vmatpush.bf16.msrb.mxu3 %v5407_v5  ;;  %2651 = vmatmul.bf16.vlgmr.msrb.gmra.mxu0 %v8060_v51  ;;  %v5702_v40 = vld [vmem:[%s10759_s2 + $0x9d0] sm:$0xf]  ;;  %v6908_v41 = vld [vmem:[%s10759_s2 + $0x9d4] sm:$0xf0]  ;;  %v5639_v44 = vor.u32 %v6892_v39, %v5638_v38  ;;  %v6858_v46 = vld [vmem:[%s10759_s2 + $0x844] sm:$0xf0] }
  0x87   :  { %2695 = vmatpush.bf16.msra.mxu0 %v5527_v6  ;;  %2664 = vmatmul.bf16.vlgmr.msrb.gmra.mxu1 %v8064_v54  ;;  %v5566_v47 = vld [vmem:[%s10759_s2 + $0x8c0] sm:$0xf]  ;;  %v5703_v48 = vor.u32 %v6908_v41, %v5702_v40  ;;  %v6874_v49 = vld [vmem:[%s10759_s2 + $0x8c4] sm:$0xf0]  ;;  %v5503_v58 = vor.u32 %v6858_v46, %v5502_v45  ;;  %v5494_v61 = vld [vmem:[%s10759_s2 + $0x830] sm:$0xf] }
  0x88   :  { %2708 = vmatpush.bf16.msra.mxu1 %v5591_v7  ;;  %2677 = vmatmul.bf16.vlgmr.msrb.gmra.mxu2 %v8062_v52  ;;  %v5630_v50 = vld [vmem:[%s10759_s2 + $0x940] sm:$0xf]  ;;  %v6890_v53 = vld [vmem:[%s10759_s2 + $0x944] sm:$0xf0]  ;;  %v5567_v59 = vor.u32 %v6874_v49, %v5566_v47  ;;  %v6856_v62 = vld [vmem:[%s10759_s2 + $0x834] sm:$0xf0] }
  0x89   :  { %2721 = vmatpush.bf16.msra.mxu2 %v5655_v8  ;;  %2690 = vmatmul.bf16.vlgmr.msrb.gmra.mxu3 %v8066_v55  ;;  %v5694_v56 = vld [vmem:[%s10759_s2 + $0x9c0] sm:$0xf]  ;;  %v6906_v57 = vld [vmem:[%s10759_s2 + $0x9c4] sm:$0xf0]  ;;  %v5631_v60 = vor.u32 %v6890_v53, %v5630_v50  ;;  %v5558_v63 = vld [vmem:[%s10759_s2 + $0x8b0] sm:$0xf]  ;;  %v5495_v6 = vor.u32 %v6856_v62, %v5494_v61 }
  0x8a   :  { %2734 = vmatpush.bf16.msra.mxu3 %v5719_v20  ;;  %v5695_v0 = vor.u32 %v6906_v57, %v5694_v56  ;;  %v6872_v1 = vld [vmem:[%s10759_s2 + $0x8b4] sm:$0xf0]  ;;  %v5622_v2 = vld [vmem:[%s10759_s2 + $0x930] sm:$0xf]  ;;  %v5486_v9 = vld [vmem:[%s10759_s2 + $0x820] sm:$0xf] }
  0x8b   :  { %2696 = vmatpush.bf16.msra.mxu0 %v5519_v30  ;;  %v6888_v3 = vld [vmem:[%s10759_s2 + $0x934] sm:$0xf0]  ;;  %v5686_v4 = vld [vmem:[%s10759_s2 + $0x9b0] sm:$0xf]  ;;  %v5559_v7 = vor.u32 %v6872_v1, %v5558_v63  ;;  %v6854_v16 = vld [vmem:[%s10759_s2 + $0x824] sm:$0xf0] }
  0x8c   :  { %2709 = vmatpush.bf16.msra.mxu1 %v5583_v31  ;;  %v6904_v5 = vld [vmem:[%s10759_s2 + $0x9b4] sm:$0xf0]  ;;  %v5623_v8 = vor.u32 %v6888_v3, %v5622_v2  ;;  %v5550_v19 = vld [vmem:[%s10759_s2 + $0x8a0] sm:$0xf]  ;;  %v6870_v21 = vld [vmem:[%s10759_s2 + $0x8a4] sm:$0xf0]  ;;  %v5487_v30 = vor.u32 %v6854_v16, %v5486_v9 }
  0x8d   :  { %2722 = vmatpush.bf16.msra.mxu2 %v5647_v32  ;;  %v5687_v20 = vor.u32 %v6904_v5, %v5686_v4  ;;  %v5614_v22 = vld [vmem:[%s10759_s2 + $0x920] sm:$0xf]  ;;  %v6886_v25 = vld [vmem:[%s10759_s2 + $0x924] sm:$0xf0]  ;;  %v5551_v31 = vor.u32 %v6870_v21, %v5550_v19  ;;  %v5478_v33 = vld [vmem:[%s10759_s2 + $0x810] sm:$0xf] }
  0x8e   :  { %2735 = vmatpush.bf16.msra.mxu3 %v5711_v36  ;;  %v5678_v28 = vld [vmem:[%s10759_s2 + $0x9a0] sm:$0xf]  ;;  %v6902_v29 = vld [vmem:[%s10759_s2 + $0x9a4] sm:$0xf0]  ;;  %v5615_v32 = vor.u32 %v6886_v25, %v5614_v22  ;;  %v6852_v34 = vld [vmem:[%s10759_s2 + $0x814] sm:$0xf0] }
  0x8f   :  { %2697 = vmatpush.bf16.msra.mxu0 %v5511_v42  ;;  %v5542_v35 = vld [vmem:[%s10759_s2 + $0x890] sm:$0xf]  ;;  %v5679_v36 = vor.u32 %v6902_v29, %v5678_v28  ;;  %v6868_v37 = vld [vmem:[%s10759_s2 + $0x894] sm:$0xf0]  ;;  %v5479_v42 = vor.u32 %v6852_v34, %v5478_v33  ;;  %v5534_v47 = vld [vmem:[%s10759_s2 + $0x880] sm:$0xf] }
  0x90   :  { %2710 = vmatpush.bf16.msra.mxu1 %v5575_v43  ;;  %v5606_v38 = vld [vmem:[%s10759_s2 + $0x910] sm:$0xf]  ;;  %v6884_v39 = vld [vmem:[%s10759_s2 + $0x914] sm:$0xf0]  ;;  %v5470_v43 = vld [vmem:[%s10759_s2 + $0x800] sm:$0xf]  ;;  %v5543_v45 = vor.u32 %v6868_v37, %v5542_v35 }
  0x91   :  { %2723 = vmatpush.bf16.msra.mxu2 %v5639_v44  ;;  %v5670_v40 = vld [vmem:[%s10759_s2 + $0x990] sm:$0xf]  ;;  %v6900_v41 = vld [vmem:[%s10759_s2 + $0x994] sm:$0xf0]  ;;  %v6850_v44 = vld [vmem:[%s10759_s2 + $0x804] sm:$0xf0]  ;;  %v5607_v46 = vor.u32 %v6884_v39, %v5606_v38 }
  0x92   :  { %2736 = vmatpush.bf16.msra.mxu3 %v5703_v48  ;;  %v6866_v48 = vld [vmem:[%s10759_s2 + $0x884] sm:$0xf0]  ;;  %v5598_v49 = vld [vmem:[%s10759_s2 + $0x900] sm:$0xf]  ;;  %v5671_v50 = vor.u32 %v6900_v41, %v5670_v40  ;;  %v5471_v61 = vor.u32 %v6850_v44, %v5470_v43  ;;  %v6944_v62 = vld [vmem:[%s10759_s2 + $0xaf4] sm:$0xf0] }
  0x93   :  { %2698 = vmatpush.bf16.msra.mxu0 %v5503_v58  ;;  %v6882_v53 = vld [vmem:[%s10759_s2 + $0x904] sm:$0xf0]  ;;  %v5662_v56 = vld [vmem:[%s10759_s2 + $0x980] sm:$0xf]  ;;  %v5782_v58 = vld [vmem:[%s10759_s2 + $0xa70] sm:$0xf]  ;;  %v5535_v1 = vor.u32 %v6866_v48, %v5534_v47 }
  0x94   :  { %2711 = vmatpush.bf16.msra.mxu1 %v5567_v59  ;;  %v6898_v57 = vld [vmem:[%s10759_s2 + $0x984] sm:$0xf0]  ;;  %v6928_v59 = vld [vmem:[%s10759_s2 + $0xa74] sm:$0xf0]  ;;  %v5910_v63 = vld [vmem:[%s10759_s2 + $0xb70] sm:$0xf]  ;;  %v5599_v2 = vor.u32 %v6882_v53, %v5598_v49 }
  0x95   :  { %2724 = vmatpush.bf16.msra.mxu2 %v5631_v60  ;;  %v5846_v60 = vld [vmem:[%s10759_s2 + $0xaf0] sm:$0xf]  ;;  %v6976_v4 = vld [vmem:[%s10759_s2 + $0xbf4] sm:$0xf0]  ;;  %v5663_v5 = vor.u32 %v6898_v57, %v5662_v56  ;;  %v5774_v16 = vld [vmem:[%s10759_s2 + $0xa60] sm:$0xf] }
  0x96   :  { %2737 = vmatpush.bf16.msra.mxu3 %v5695_v0  ;;  %v6960_v0 = vld [vmem:[%s10759_s2 + $0xb74] sm:$0xf0]  ;;  %v5974_v3 = vld [vmem:[%s10759_s2 + $0xbf0] sm:$0xf]  ;;  %v6926_v19 = vld [vmem:[%s10759_s2 + $0xa64] sm:$0xf0] }
  0x97   :  { %2699 = vmatpush.bf16.msra.mxu0 %v5495_v6  ;;  %v5783_v6 = vor.u32 %v6928_v59, %v5782_v58  ;;  %v8390_v9 = vld.sshfl [vmem:[#allocation1] sm:$0xff pattern:$0x73625140]  ;;  %v5975_v21 = vor.u32 %v6976_v4, %v5974_v3  ;;  %v8401_v22 = vld.sshfl [vmem:[#allocation1 + $0x10] sm:$0xff pattern:$0x73625140]  ;;  %v5775_v34 = vor.u32 %v6926_v19, %v5774_v16 }
  0x98   :  { %2712 = vmatpush.bf16.msra.mxu1 %v5559_v7  ;;  %v5847_v7 = vor.u32 %v6944_v62, %v5846_v60  ;;  %v6942_v25 = vld [vmem:[%s10759_s2 + $0xae4] sm:$0xf0]  ;;  %v5902_v28 = vld [vmem:[%s10759_s2 + $0xb60] sm:$0xf]  ;;  %v5766_v37 = vld [vmem:[%s10759_s2 + $0xa50] sm:$0xf] }
  0x99   :  { %2725 = vmatpush.bf16.msra.mxu2 %v5623_v8  ;;  %v5911_v8 = vor.u32 %v6960_v0, %v5910_v63  ;;  %v6958_v29 = vld [vmem:[%s10759_s2 + $0xb64] sm:$0xf0]  ;;  %v8420_v33 = vld.sshfl [vmem:[#allocation1 + $0x18] sm:$0xff pattern:$0x73625140]  ;;  %vm2484_vm0 = vcmask 523264  }
  0x9a   :  { %2738 = vmatpush.bf16.msra.mxu3 %v5687_v20  ;;  %v5838_v20 = vld [vmem:[%s10759_s2 + $0xae0] sm:$0xf]  ;;  %v6924_v38 = vld [vmem:[%s10759_s2 + $0xa54] sm:$0xf0]  ;;  %v5830_v39 = vld [vmem:[%s10759_s2 + $0xad0] sm:$0xf] }
  0x9b   :  { %2700 = vmatpush.bf16.msra.mxu0 %v5487_v30  ;;  %v5966_v30 = vld [vmem:[%s10759_s2 + $0xbe0] sm:$0xf]  ;;  %v5839_v35 = vor.u32 %v6942_v25, %v5838_v20  ;;  %v6940_v41 = vld [vmem:[%s10759_s2 + $0xad4] sm:$0xf0]  ;;  %v5958_v44 = vld [vmem:[%s10759_s2 + $0xbd0] sm:$0xf] }
  0x9c   :  { %2713 = vmatpush.bf16.msra.mxu1 %v5551_v31  ;;  %v6974_v31 = vld [vmem:[%s10759_s2 + $0xbe4] sm:$0xf0]  ;;  %v6956_v43 = vld [vmem:[%s10759_s2 + $0xb54] sm:$0xf0]  ;;  %v5831_v47 = vor.u32 %v6940_v41, %v5830_v39  ;;  %v5758_v49 = vld [vmem:[%s10759_s2 + $0xa40] sm:$0xf] }
  0x9d   :  { %2726 = vmatpush.bf16.msra.mxu2 %v5615_v32  ;;  %v8418_v32 = vld.sshfl [vmem:[#allocation1 + $0x8] sm:$0xff pattern:$0x73625140]  ;;  %v5967_v40 = vor.u32 %v6974_v31, %v5966_v30  ;;  %v5822_v53 = vld [vmem:[%s10759_s2 + $0xac0] sm:$0xf]  ;;  %vm3142_vm1 = vcmask 1041408  }
  0x9e   :  { %2739 = vmatpush.bf16.msra.mxu3 %v5679_v36  ;;  %v5903_v36 = vor.u32 %v6958_v29, %v5902_v28  ;;  %v6938_v57 = vld [vmem:[%s10759_s2 + $0xac4] sm:$0xf0]  ;;  %v5886_v58 = vld [vmem:[%s10759_s2 + $0xb40] sm:$0xf]  ;;  %v5750_v63 = vld [vmem:[%s10759_s2 + $0xa30] sm:$0xf] }
  0x9f   :  { %2701 = vmatpush.bf16.msra.mxu0 %v5479_v42  ;;  %v5894_v42 = vld [vmem:[%s10759_s2 + $0xb50] sm:$0xf]  ;;  %v6954_v59 = vld [vmem:[%s10759_s2 + $0xb44] sm:$0xf0]  ;;  %v5950_v60 = vld [vmem:[%s10759_s2 + $0xbc0] sm:$0xf]  ;;  %v5823_v0 = vor.u32 %v6938_v57, %v5822_v53 }
  0xa0   :  { %2714 = vmatpush.bf16.msra.mxu1 %v5543_v45  ;;  %v6972_v45 = vld [vmem:[%s10759_s2 + $0xbd4] sm:$0xf0]  ;;  %v5895_v48 = vor.u32 %v6956_v43, %v5894_v42  ;;  %v5814_v3 = vld [vmem:[%s10759_s2 + $0xab0] sm:$0xf]  ;;  %v5742_v25 = vld [vmem:[%s10759_s2 + $0xa20] sm:$0xf] }
  0xa1   :  { %2727 = vmatpush.bf16.msra.mxu2 %v5607_v46  ;;  %v5767_v46 = vor.u32 %v6924_v38, %v5766_v37  ;;  %v5959_v56 = vor.u32 %v6972_v45, %v5958_v44  ;;  %v6936_v4 = vld [vmem:[%s10759_s2 + $0xab4] sm:$0xf0]  ;;  %v5942_v16 = vld [vmem:[%s10759_s2 + $0xbb0] sm:$0xf]  ;;  %v6918_v30 = vld [vmem:[%s10759_s2 + $0xa24] sm:$0xf0] }
  0xa2   :  { %2740 = vmatpush.bf16.msra.mxu3 %v5671_v50  ;;  %v6922_v50 = vld [vmem:[%s10759_s2 + $0xa44] sm:$0xf0]  ;;  %v6968_v19 = vld [vmem:[%s10759_s2 + $0xbb4] sm:$0xf0]  ;;  %v61_v20 = vld [vmem:[%s10778_s29 + $0x30] sm:$0x3]  ;;  %v5815_v28 = vor.u32 %v6936_v4, %v5814_v3  ;;  %v5743_v41 = vor.u32 %v6918_v30, %v5742_v25 }
  0xa3   :  { %2702 = vmatpush.bf16.msra.mxu0 %v5471_v61  ;;  %v6970_v61 = vld [vmem:[%s10759_s2 + $0xbc4] sm:$0xf0]  ;;  %v5759_v62 = vor.u32 %v6922_v50, %v5758_v49  ;;  %498 = vst [vmem:[#allocation1] ss:$4 sm:$0xff] %v61_v20  ;;  %v5806_v31 = vld [vmem:[%s10759_s2 + $0xaa0] sm:$0xf] }
  0xa4   :  { %2715 = vmatpush.bf16.msra.mxu1 %v5535_v1  ;;  %v5887_v1 = vor.u32 %v6954_v59, %v5886_v58  ;;  %v5870_v37 = vld [vmem:[%s10759_s2 + $0xb20] sm:$0xf]  ;;  %v6950_v38 = vld [vmem:[%s10759_s2 + $0xb24] sm:$0xf0]  ;;  %v5734_v45 = vld [vmem:[%s10759_s2 + $0xa10] sm:$0xf] }
  0xa5   :  { %2728 = vmatpush.bf16.msra.mxu2 %v5599_v2  ;;  %v6920_v2 = vld [vmem:[%s10759_s2 + $0xa34] sm:$0xf0]  ;;  %v5934_v39 = vld [vmem:[%s10759_s2 + $0xba0] sm:$0xf]  ;;  %v5871_v44 = vor.u32 %v6950_v38, %v5870_v37  ;;  %v5926_v58 = vld [vmem:[%s10759_s2 + $0xb90] sm:$0xf] }
  0xa6   :  { %2741 = vmatpush.bf16.msra.mxu3 %v5663_v5  ;;  %2703 = vmatmul.bf16.vlgmr.msra.gmra.mxu0 %v8390_v9  ;;  %v5951_v5 = vor.u32 %v6970_v61, %v5950_v60  ;;  %v6932_v53 = vld [vmem:[%s10759_s2 + $0xa94] sm:$0xf0]  ;;  %v6930_v3 = vld [vmem:[%s10759_s2 + $0xa84] sm:$0xf0]  ;;  %v5854_v4 = vld [vmem:[%s10759_s2 + $0xb00] sm:$0xf] }
  0xa7   :  { %2747 = vmatpush.bf16.msrb.mxu0 %v5783_v6  ;;  %2716 = vmatmul.bf16.vlgmr.msra.gmra.mxu1 %v8418_v32  ;;  %v5878_v6 = vld [vmem:[%s10759_s2 + $0xb30] sm:$0xf]  ;;  %v6948_v57 = vld [vmem:[%s10759_s2 + $0xb14] sm:$0xf0]  ;;  %v4504_v30 = vld [vmem:[%s10759_s2 + $0x78] sm:$0xf0] }
  0xa8   :  { %2760 = vmatpush.bf16.msrb.mxu1 %v5847_v7  ;;  %2729 = vmatmul.bf16.vlgmr.msra.gmra.mxu2 %v8401_v22  ;;  %v6952_v7 = vld [vmem:[%s10759_s2 + $0xb34] sm:$0xf0]  ;;  %vm3867_vm3 = vcmask 31744   ;;  %vm3818_vm4 = vcmask 25600   ;;  %s7246_s21 = smov [#allocation4]   ;;  %s4388_s24 = sshll.u32 %s10771_s14, 4  ;;  %s4389_s24 = int_to_ptr.hbm [resolvable:$true] %s4388_s24 }
  0xa9   :  { %2773 = vmatpush.bf16.msrb.mxu2 %v5911_v8  ;;  %2742 = vmatmul.bf16.vlgmr.msra.gmra.mxu3 %v8420_v33  ;;  %v454_v8 = vld [vmem:[%s10760_s3] sm:$0x3]  ;;  %v5879_v29 = vor.u32 %v6952_v7, %v5878_v6  ;;  %v6964_v59 = vld [vmem:[%s10759_s2 + $0xb94] sm:$0xf0]  ;;  %v6946_v7 = vld [vmem:[%s10759_s2 + $0xb04] sm:$0xf0] }
  0xaa   :  { %2786 = vmatpush.bf16.msrb.mxu3 %v5975_v21  ;;  %v5751_v21 = vor.u32 %v6920_v2, %v5750_v63  ;;  %v6914_v63 = vld [vmem:[%s10759_s2 + $0xa04] sm:$0xf0]  ;;  %v5790_v2 = vld [vmem:[%s10759_s2 + $0xa80] sm:$0xf]  ;;  %v5927_v6 = vor.u32 %v6964_v59, %v5926_v58  ;;  %v6984_v25 = vld [vmem:[%s10759_s2 + $0xc34] sm:$0xf0]  ;;  %v5855_v38 = vor.u32 %v6946_v7, %v5854_v4 }
  0xab   :  { %2748 = vmatpush.bf16.msrb.mxu0 %v5775_v34  ;;  %v456_v34 = vperm.slane %v454_v8, 0  ;;  %v5918_v8 = vld [vmem:[%s10759_s2 + $0xb80] sm:$0xf]  ;;  %v5791_v37 = vor.u32 %v6930_v3, %v5790_v2  ;;  %v4560_v58 = vld [vmem:[%s10759_s2 + $0xe8] sm:$0xf0]  ;;  %s4397_s22 = sshll.u32 %s7246_s21, 4  ;;  %s4398_s22 = int_to_ptr.vmem [resolvable:$true] %s4397_s22 }
  0xac   :  { %2761 = vmatpush.bf16.msrb.mxu1 %v5839_v35  ;;  %v5943_v35 = vor.u32 %v6968_v19, %v5942_v16  ;;  %v6962_v16 = vld [vmem:[%s10759_s2 + $0xb84] sm:$0xf0]  ;;  %v6637_v59 = vld [vmem:[%s10759_s2 + $0x164] sm:$0xf]  ;;  %v5990_v4 = vld [vmem:[%s10759_s2 + $0xc10] sm:$0xf] }
  0xad   :  { %2774 = vmatpush.bf16.msrb.mxu2 %v5903_v36  ;;  %v6934_v36 = vld [vmem:[%s10759_s2 + $0xaa4] sm:$0xf0]  ;;  %v2496_v42 = vpop.f32.mrf.mxu0  ;;  %s7247_s25 = smov [#allocation2]   ;;  %s7248_s29 = smov [#allocation6]  }
  0xae   :  { %2787 = vmatpush.bf16.msrb.mxu3 %v5967_v40  ;;  %v6966_v40 = vld [vmem:[%s10759_s2 + $0xba4] sm:$0xf0]  ;;  %v5807_v43 = vor.u32 %v6934_v36, %v5806_v31  ;;  %v6623_v31 = vld [vmem:[%s10759_s2 + $0xf4] sm:$0xf]  ;;  %s4386_s26 = sshll.u32 %s7247_s25, 4  ;;  %s4408_s27 = sshll.u32 %s7248_s29, 4  ;;  %s4387_s26 = int_to_ptr.vmem [resolvable:$true] %s4386_s26  ;;  %s4409_s27 = int_to_ptr.vmem [resolvable:$true] %s4408_s27 }
  0xaf   :  { %2749 = vmatpush.bf16.msrb.mxu0 %v5767_v46  ;;  %v6916_v46 = vld [vmem:[%s10759_s2 + $0xa14] sm:$0xf0]  ;;  %v2509_v49 = vpop.f32.mrf.mxu1  ;;  %v5935_v50 = vor.u32 %v6966_v40, %v5934_v39  ;;  %v6639_v39 = vld [vmem:[%s10759_s2 + $0x174] sm:$0xf]  ;;  %v4632_v40 = vld [vmem:[%s10759_s2 + $0x178] sm:$0xf0] }
  0xb0   :  { %2762 = vmatpush.bf16.msrb.mxu1 %v5831_v47  ;;  %v5798_v47 = vld [vmem:[%s10759_s2 + $0xa90] sm:$0xf]  ;;  %v5735_v61 = vor.u32 %v6916_v46, %v5734_v45  ;;  %v493_v46 = vld.sshfl [vmem:[#allocation1 + $0x20] sm:$0xff pattern:$0x73625140]  ;;  %s7249_s14 = smov [#allocation7]  }
  0xb1   :  { %2775 = vmatpush.bf16.msrb.mxu2 %v5895_v48  ;;  %v2497_v48 = vadd.f32 %v2496_v42, %v456_v34  ;;  %v4568_v34 = vld [vmem:[%s10759_s2 + $0xf8] sm:$0xf0]  ;;  %v5919_v42 = vor.u32 %v6962_v16, %v5918_v8  ;;  %v6619_v16 = vld [vmem:[%s10759_s2 + $0xd4] sm:$0xf]  ;;  %s4419_s28 = sshll.u32 %s7249_s14, 4  ;;  %s4420_s28 = int_to_ptr.vmem [resolvable:$true] %s4419_s28 }
  0xb2   :  { %2788 = vmatpush.bf16.msrb.mxu3 %v5959_v56  ;;  %v5862_v56 = vld [vmem:[%s10759_s2 + $0xb10] sm:$0xf]  ;;  %v4571_v45 = vor.u32 %v6623_v31, %v4568_v34  ;;  %v4488_v8 = vld [vmem:[%s10759_s2 + $0x58] sm:$0xf0]  ;;  %v6978_v31 = vld [vmem:[%s10759_s2 + $0xc04] sm:$0xf0] }
  0xb3   :  { %2750 = vmatpush.bf16.msrb.mxu0 %v5759_v62  ;;  %v2510_v60 = vadd.f32 %v2509_v49, %v2497_v48  ;;  %v5726_v62 = vld [vmem:[%s10759_s2 + $0xa00] sm:$0xf]  ;;  %v6982_v48 = vld [vmem:[%s10759_s2 + $0xc24] sm:$0xf0]  ;;  %v6605_v49 = vld [vmem:[%s10759_s2 + $0x64] sm:$0xf] }
  0xb4   :  { %2763 = vmatpush.bf16.msrb.mxu1 %v5823_v0  ;;  %v5799_v0 = vor.u32 %v6932_v53, %v5798_v47  ;;  %v2535_v20 = vpop.f32.mrf.mxu3  ;;  %v5998_v47 = vld [vmem:[%s10759_s2 + $0xc20] sm:$0xf]  ;;  %v495_v53 = vld.sshfl [vmem:[#allocation1 + $0x30] sm:$0xff pattern:$0x73625140] }
  0xb5   :  { %2776 = vmatpush.bf16.msrb.mxu2 %v5887_v1  ;;  %v5863_v1 = vor.u32 %v6948_v57, %v5862_v56  ;;  %v2498_v36 = vpop.f32.mrf.mxu0  ;;  %v4496_v56 = vld [vmem:[%s10759_s2 + $0x68] sm:$0xf0]  ;;  %v6621_v57 = vld [vmem:[%s10759_s2 + $0xe4] sm:$0xf] }
  0xb6   :  { %2789 = vmatpush.bf16.msrb.mxu3 %v5951_v5  ;;  %v2522_v5 = vpop.f32.mrf.mxu2  ;;  %v4499_v2 = vor.u32 %v6605_v49, %v4496_v56  ;;  %v4563_v3 = vor.u32 %v6621_v57, %v4560_v58  ;;  %v6601_v34 = vld [vmem:[%s10759_s2 + $0x44] sm:$0xf]  ;;  %v4480_v36 = vld [vmem:[%s10759_s2 + $0x48] sm:$0xf0]  ;;  %v6599_v49 = vld [vmem:[%s10759_s2 + $0x34] sm:$0xf] }
  0xb7   :  { %2751 = vmatpush.bf16.msrb.mxu0 %v5751_v21  ;;  %v2523_v19 = vadd.f32 %v2522_v5, %v2510_v60  ;;  %v6006_v21 = vld [vmem:[%s10759_s2 + $0xc30] sm:$0xf]  ;;  %v4624_v60 = vld [vmem:[%s10759_s2 + $0x168] sm:$0xf0]  ;;  %v6980_v5 = vld [vmem:[%s10759_s2 + $0xc14] sm:$0xf0] }
  0xb8   :  { %2764 = vmatpush.bf16.msrb.mxu1 %v5815_v28  ;;  %v6607_v28 = vld [vmem:[%s10759_s2 + $0x74] sm:$0xf]  ;;  %v4627_v7 = vor.u32 %v6637_v59, %v4624_v60  ;;  %v4600_v60 = vld [vmem:[%s10759_s2 + $0x138] sm:$0xf0] }
  0xb9   :  { %2777 = vmatpush.bf16.msrb.mxu2 %v5879_v29  ;;  %v5727_v29 = vor.u32 %v6914_v63, %v5726_v62  ;;  %v494_v62 = vld.sshfl [vmem:[#allocation1 + $0x28] sm:$0xff pattern:$0x73625140]  ;;  %v496_v63 = vld.sshfl [vmem:[#allocation1 + $0x38] sm:$0xff pattern:$0x73625140] }
  0xba   :  { %2790 = vmatpush.bf16.msrb.mxu3 %v5943_v35  ;;  %v8594_v35 = vadd.f32 %v2535_v20, %v2523_v19  ;;  %v4552_v19 = vld [vmem:[%s10759_s2 + $0xd8] sm:$0xf0]  ;;  %v6635_v20 = vld [vmem:[%s10759_s2 + $0x154] sm:$0xf] }
  0xbb   :  { %2752 = vmatpush.bf16.msrb.mxu0 %v5743_v41  ;;  %v2511_v41 = vpop.f32.mrf.mxu1  ;;  %v6615_v58 = vld [vmem:[%s10759_s2 + $0xb4] sm:$0xf] }
  0xbc   :  { %2765 = vmatpush.bf16.msrb.mxu1 %v5807_v43  ;;  %v6007_v43 = vor.u32 %v6984_v25, %v6006_v21  ;;  %v4616_v21 = vld [vmem:[%s10759_s2 + $0x158] sm:$0xf0]  ;;  %v5991_v25 = vor.u32 %v6980_v5, %v5990_v4  ;;  %v4608_v41 = vld [vmem:[%s10759_s2 + $0x148] sm:$0xf0]  ;;  %v6631_v59 = vld [vmem:[%s10759_s2 + $0x134] sm:$0xf] }
  0xbd   :  { %2778 = vmatpush.bf16.msrb.mxu2 %v5871_v44  ;;  %v4507_v44 = vor.u32 %v6607_v28, %v4504_v30  ;;  %v5982_v28 = vld [vmem:[%s10759_s2 + $0xc00] sm:$0xf]  ;;  %v4555_v30 = vor.u32 %v6619_v16, %v4552_v19  ;;  %v4464_v4 = vld [vmem:[%s10759_s2 + $0x28] sm:$0xf0]  ;;  %v4603_v5 = vor.u32 %v6631_v59, %v4600_v60  ;;  %v6629_v19 = vld [vmem:[%s10759_s2 + $0x124] sm:$0xf] }
  0xbe   :  { %2791 = vmatpush.bf16.msrb.mxu3 %v5935_v50  ;;  %v4635_v50 = vor.u32 %v6639_v39, %v4632_v40  ;;  %v4544_v39 = vld [vmem:[%s10759_s2 + $0xc8] sm:$0xf0]  ;;  %v6633_v40 = vld [vmem:[%s10759_s2 + $0x144] sm:$0xf] }
  0xbf   :  { %2753 = vmatpush.bf16.msrb.mxu0 %v5735_v61  ;;  %v2524_v61 = vpop.f32.mrf.mxu2  ;;  %v4611_v56 = vor.u32 %v6633_v40, %v4608_v41  ;;  %v4528_v16 = vld [vmem:[%s10759_s2 + $0xa8] sm:$0xf0]  ;;  %v6625_v60 = vld [vmem:[%s10759_s2 + $0x104] sm:$0xf] }
  0xc0   :  { %2766 = vmatpush.bf16.msrb.mxu1 %v5799_v0  ;;  %v5999_v0 = vor.u32 %v6982_v48, %v5998_v47  ;;  %v4512_v59 = vld [vmem:[%s10759_s2 + $0x88] sm:$0xf0] }
  0xc1   :  { %2779 = vmatpush.bf16.msrb.mxu2 %v5863_v1  ;;  %v2537_v1 = vpop.f32.mrf.mxu3 }
  0xc2   :  { %2792 = vmatpush.bf16.msrb.mxu3 %v5927_v6  ;;  %v6603_v6 = vld [vmem:[%s10759_s2 + $0x54] sm:$0xf] }
  0xc3   :  { %2754 = vmatpush.bf16.msrb.mxu0 %v5727_v29  ;;  %v4491_v29 = vor.u32 %v6603_v6, %v4488_v8  ;;  %v6613_v8 = vld [vmem:[%s10759_s2 + $0xa4] sm:$0xf] }
  0xc4   :  { %2767 = vmatpush.bf16.msrb.mxu1 %v5791_v37  ;;  %v4619_v37 = vor.u32 %v6635_v20, %v4616_v21  ;;  %v4592_v21 = vld [vmem:[%s10759_s2 + $0x128] sm:$0xf0] }
  0xc5   :  { %2780 = vmatpush.bf16.msrb.mxu2 %v5855_v38  ;;  %v6617_v38 = vld [vmem:[%s10759_s2 + $0xc4] sm:$0xf]  ;;  %v4595_v40 = vor.u32 %v6629_v19, %v4592_v21 }
  0xc6   :  { %2793 = vmatpush.bf16.msrb.mxu3 %v5919_v42  ;;  %2755 = vmatmul.bf16.vlgmr.msrb.gmra.mxu0 %v493_v46  ;;  %v6655_v42 = vld [vmem:[%s10759_s2 + $0x1f4] sm:$0xf]  ;;  %v4483_v46 = vor.u32 %v6601_v34, %v4480_v36  ;;  %v4547_v47 = vor.u32 %v6617_v38, %v4544_v39  ;;  %v4531_v36 = vor.u32 %v6613_v8, %v4528_v16  ;;  %v4456_v38 = vld [vmem:[%s10759_s2 + $0x18] sm:$0xf0] }
  0xc7   :  { %2803 = vmatpush.bf16.msra.mxu0 %v6007_v43  ;;  %2768 = vmatmul.bf16.vlgmr.msrb.gmra.mxu1 %v494_v62  ;;  %v4696_v43 = vld [vmem:[%s10759_s2 + $0x1f8] sm:$0xf0]  ;;  %v6653_v62 = vld [vmem:[%s10759_s2 + $0x1e4] sm:$0xf] }
  0xc8   :  { %2812 = vmatpush.bf16.msra.mxu1 %v4507_v44  ;;  %2781 = vmatmul.bf16.vlgmr.msrb.gmra.mxu2 %v495_v53  ;;  %v5983_v44 = vor.u32 %v6978_v31, %v5982_v28  ;;  %v2561_v53 = vpop.f32.mrf.mxu1  ;;  %v4699_v57 = vor.u32 %v6655_v42, %v4696_v43  ;;  %v4680_v28 = vld [vmem:[%s10759_s2 + $0x1d8] sm:$0xf0]  ;;  %v6611_v42 = vld [vmem:[%s10759_s2 + $0x94] sm:$0xf] }
  0xc9   :  { %2825 = vmatpush.bf16.msra.mxu2 %v4571_v45  ;;  %2794 = vmatmul.bf16.vlgmr.msrb.gmra.mxu3 %v496_v63  ;;  %v2548_v45 = vpop.f32.mrf.mxu0  ;;  %v4688_v63 = vld [vmem:[%s10759_s2 + $0x1e8] sm:$0xf0]  ;;  %v4520_v43 = vld [vmem:[%s10759_s2 + $0x98] sm:$0xf0] }
  0xca   :  { %2838 = vmatpush.bf16.msra.mxu3 %v4635_v50  ;;  %v2549_v48 = vadd.f32 %v2548_v45, %v8594_v35  ;;  %v4472_v50 = vld [vmem:[%s10759_s2 + $0x38] sm:$0xf0]  ;;  %v4691_v6 = vor.u32 %v6653_v62, %v4688_v63  ;;  %v6647_v63 = vld [vmem:[%s10759_s2 + $0x1b4] sm:$0xf] }
  0xcb   :  { %2804 = vmatpush.bf16.msra.mxu0 %v5999_v0  ;;  %v4536_v35 = vld [vmem:[%s10759_s2 + $0xb8] sm:$0xf0]  ;;  %v4475_v0 = vor.u32 %v6599_v49, %v4472_v50  ;;  %v4523_v49 = vor.u32 %v6611_v42, %v4520_v43  ;;  %v6593_v50 = vld [vmem:[%s10759_s2 + $0x4] sm:$0xf] }
  0xcc   :  { %2813 = vmatpush.bf16.msra.mxu1 %v4499_v2  ;;  %v2562_v61 = vadd.f32 %v2561_v53, %v2549_v48  ;;  %v4539_v1 = vor.u32 %v6615_v58, %v4536_v35  ;;  %v2574_v2 = vpop.f32.mrf.mxu2  ;;  %v2587_v20 = vpop.f32.mrf.mxu3  ;;  %v4584_v45 = vld [vmem:[%s10759_s2 + $0x118] sm:$0xf0]  ;;  %v4448_v53 = vld [vmem:[%s10759_s2 + $0x8] sm:$0xf0] }
  0xcd   :  { %2826 = vmatpush.bf16.msra.mxu2 %v4563_v3  ;;  %v6597_v3 = vld [vmem:[%s10759_s2 + $0x24] sm:$0xf]  ;;  %v4888_v8 = vld [vmem:[%s10759_s2 + $0x378] sm:$0xf0] }
  0xce   :  { %2839 = vmatpush.bf16.msra.mxu3 %v4627_v7  ;;  %v2575_v7 = vadd.f32 %v2574_v2, %v2562_v61  ;;  %v4467_v34 = vor.u32 %v6597_v3, %v4464_v4  ;;  %v4576_v61 = vld [vmem:[%s10759_s2 + $0x108] sm:$0xf0]  ;;  %v4760_v2 = vld [vmem:[%s10759_s2 + $0x278] sm:$0xf0]  ;;  %v6687_v3 = vld [vmem:[%s10759_s2 + $0x2f4] sm:$0xf] }
  0xcf   :  { %2805 = vmatpush.bf16.msra.mxu0 %v5991_v25  ;;  %v6651_v25 = vld [vmem:[%s10759_s2 + $0x1d4] sm:$0xf]  ;;  %v4824_v4 = vld [vmem:[%s10759_s2 + $0x2f8] sm:$0xf0]  ;;  %v4579_v16 = vor.u32 %v6625_v60, %v4576_v61  ;;  %v6681_v61 = vld [vmem:[%s10759_s2 + $0x2c4] sm:$0xf] }
  0xd0   :  { %2814 = vmatpush.bf16.msra.mxu1 %v4491_v29  ;;  %v8729_v29 = vld.sshfl [vmem:[#allocation1] sm:$0xff pattern:$0x73625140]  ;;  %v2563_v39 = vpop.f32.mrf.mxu1  ;;  %v4683_v41 = vor.u32 %v6651_v25, %v4680_v28  ;;  %v4827_v21 = vor.u32 %v6687_v3, %v4824_v4  ;;  %v4656_v28 = vld [vmem:[%s10759_s2 + $0x1a8] sm:$0xf0] }
  0xd1   :  { %2827 = vmatpush.bf16.msra.mxu2 %v4555_v30  ;;  %v8731_v30 = vadd.f32 %v2587_v20, %v2575_v7  ;;  %v2550_v31 = vpop.f32.mrf.mxu0  ;;  %v6703_v7 = vld [vmem:[%s10759_s2 + $0x374] sm:$0xf]  ;;  %v6645_v25 = vld [vmem:[%s10759_s2 + $0x1a4] sm:$0xf]  ;;  %v4952_v3 = vld [vmem:[%s10759_s2 + $0x3f8] sm:$0xf0] }
  0xd2   :  { %2840 = vmatpush.bf16.msra.mxu3 %v4619_v37  ;;  %v6595_v37 = vld [vmem:[%s10759_s2 + $0x14] sm:$0xf]  ;;  %v6669_v31 = vld [vmem:[%s10759_s2 + $0x264] sm:$0xf] }
  0xd3   :  { %2806 = vmatpush.bf16.msra.mxu0 %v5983_v44  ;;  %v6627_v44 = vld [vmem:[%s10759_s2 + $0x114] sm:$0xf]  ;;  %v4459_v48 = vor.u32 %v6595_v37, %v4456_v38  ;;  %v6685_v37 = vld [vmem:[%s10759_s2 + $0x2e4] sm:$0xf]  ;;  %v4816_v38 = vld [vmem:[%s10759_s2 + $0x2e8] sm:$0xf0] }
  0xd4   :  { %2815 = vmatpush.bf16.msra.mxu1 %v4483_v46  ;;  %v6649_v46 = vld [vmem:[%s10759_s2 + $0x1c4] sm:$0xf]  ;;  %v4587_v58 = vor.u32 %v6627_v44, %v4584_v45  ;;  %v2589_v62 = vpop.f32.mrf.mxu3  ;;  %v4819_v43 = vor.u32 %v6685_v37, %v4816_v38  ;;  %v6643_v44 = vld [vmem:[%s10759_s2 + $0x194] sm:$0xf]  ;;  %v4648_v45 = vld [vmem:[%s10759_s2 + $0x198] sm:$0xf0] }
  0xd5   :  { %2828 = vmatpush.bf16.msra.mxu2 %v4547_v47  ;;  %v4672_v47 = vld [vmem:[%s10759_s2 + $0x1c8] sm:$0xf0]  ;;  %v6701_v39 = vld [vmem:[%s10759_s2 + $0x364] sm:$0xf] }
  0xd6   :  { %2841 = vmatpush.bf16.msra.mxu3 %v4611_v56  ;;  %6012 = vmatmul.msk.bf16.vlgmr.msra.gmra.mxu0 %vm2484_vm0, %v8729_v29  ;;  %v6609_v56 = vld [vmem:[%s10759_s2 + $0x84] sm:$0xf]  ;;  %v4675_v35 = vor.u32 %v6649_v46, %v4672_v47  ;;  %v6667_v46 = vld [vmem:[%s10759_s2 + $0x254] sm:$0xf]  ;;  %v4800_v62 = vld [vmem:[%s10759_s2 + $0x2c8] sm:$0xf0] }
  0xd7   :  { %2851 = vmatpush.bf16.msrb.mxu0 %v4699_v57  ;;  %v2576_v57 = vpop.f32.mrf.mxu2  ;;  %v4944_v37 = vld [vmem:[%s10759_s2 + $0x3e8] sm:$0xf0] }
  0xd8   :  { %2816 = vmatpush.bf16.msra.mxu1 %v4475_v0  ;;  %v4664_v0 = vld [vmem:[%s10759_s2 + $0x1b8] sm:$0xf0]  ;;  %v4651_v57 = vor.u32 %v6643_v44, %v4648_v45  ;;  %v6677_v45 = vld [vmem:[%s10759_s2 + $0x2a4] sm:$0xf] }
  0xd9   :  { %2829 = vmatpush.bf16.msra.mxu2 %v4539_v1  ;;  %v6671_v1 = vld [vmem:[%s10759_s2 + $0x274] sm:$0xf]  ;;  %v4667_v19 = vor.u32 %v6647_v63, %v4664_v0  ;;  %v6697_v63 = vld [vmem:[%s10759_s2 + $0x344] sm:$0xf] }
  0xda   :  { %2842 = vmatpush.bf16.msra.mxu3 %v4603_v5  ;;  %v4451_v5 = vor.u32 %v6593_v50, %v4448_v53  ;;  %v4763_v20 = vor.u32 %v6671_v1, %v4760_v2  ;;  %v4808_v50 = vld [vmem:[%s10759_s2 + $0x2d8] sm:$0xf0]  ;;  %v6699_v53 = vld [vmem:[%s10759_s2 + $0x354] sm:$0xf]  ;;  %v4864_v1 = vld [vmem:[%s10759_s2 + $0x348] sm:$0xf0] }
  0xdb   :  { %2852 = vmatpush.bf16.msrb.mxu0 %v4691_v6  ;;  %v4515_v6 = vor.u32 %v6609_v56, %v4512_v59  ;;  %v4872_v56 = vld [vmem:[%s10759_s2 + $0x358] sm:$0xf0]  ;;  %v4640_v59 = vld [vmem:[%s10759_s2 + $0x188] sm:$0xf0]  ;;  %v6719_v2 = vld [vmem:[%s10759_s2 + $0x3f4] sm:$0xf] }
  0xdc   :  { %2817 = vmatpush.bf16.msra.mxu1 %v4467_v34  ;;  %v4891_v34 = vor.u32 %v6703_v7, %v4888_v8  ;;  %v4875_v60 = vor.u32 %v6699_v53, %v4872_v56  ;;  %v4803_v8 = vor.u32 %v6681_v61, %v4800_v62  ;;  %v6715_v53 = vld [vmem:[%s10759_s2 + $0x3d4] sm:$0xf]  ;;  %v4936_v56 = vld [vmem:[%s10759_s2 + $0x3d8] sm:$0xf0] }
  0xdd   :  { %2830 = vmatpush.bf16.msra.mxu2 %v4531_v36  ;;  %v4752_v36 = vld [vmem:[%s10759_s2 + $0x268] sm:$0xf0]  ;;  %v6675_v61 = vld [vmem:[%s10759_s2 + $0x294] sm:$0xf]  ;;  %v4776_v62 = vld [vmem:[%s10759_s2 + $0x298] sm:$0xf0] }
  0xde   :  { %2843 = vmatpush.bf16.msra.mxu3 %v4595_v40  ;;  %v4880_v40 = vld [vmem:[%s10759_s2 + $0x368] sm:$0xf0]  ;;  %v4755_v42 = vor.u32 %v6669_v31, %v4752_v36  ;;  %v6695_v31 = vld [vmem:[%s10759_s2 + $0x334] sm:$0xf]  ;;  %v6717_v36 = vld [vmem:[%s10759_s2 + $0x3e4] sm:$0xf] }
  0xdf   :  { %2853 = vmatpush.bf16.msrb.mxu0 %v4683_v41  ;;  %v4659_v41 = vor.u32 %v6645_v25, %v4656_v28  ;;  %v4883_v47 = vor.u32 %v6701_v39, %v4880_v40  ;;  %v4955_v25 = vor.u32 %v6719_v2, %v4952_v3  ;;  %v4792_v28 = vld [vmem:[%s10759_s2 + $0x2b8] sm:$0xf0]  ;;  %v6661_v40 = vld [vmem:[%s10759_s2 + $0x224] sm:$0xf]  ;;  %v4947_v44 = vor.u32 %v6717_v36, %v4944_v37  ;;  %v4928_v2 = vld [vmem:[%s10759_s2 + $0x3c8] sm:$0xf0] }
  0xe0   :  { %2818 = vmatpush.bf16.msra.mxu1 %v4459_v48  ;;  %v4744_v48 = vld [vmem:[%s10759_s2 + $0x258] sm:$0xf0]  ;;  %v6751_v37 = vld [vmem:[%s10759_s2 + $0x4f4] sm:$0xf] }
  0xe1   :  { %2831 = vmatpush.bf16.msra.mxu2 %v4523_v49  ;;  %v6683_v49 = vld [vmem:[%s10759_s2 + $0x2d4] sm:$0xf]  ;;  %v5016_v36 = vld [vmem:[%s10759_s2 + $0x478] sm:$0xf0] }
  0xe2   :  { %2844 = vmatpush.bf16.msra.mxu3 %v4587_v58  ;;  %v6641_v58 = vld [vmem:[%s10759_s2 + $0x184] sm:$0xf] }
  0xe3   :  { %2854 = vmatpush.bf16.msrb.mxu0 %v4675_v35  ;;  %v4811_v35 = vor.u32 %v6683_v49, %v4808_v50  ;;  %v2600_v0 = vpop.f32.mrf.mxu0  ;;  %v4848_v50 = vld [vmem:[%s10759_s2 + $0x328] sm:$0xf0] }
  0xe4   :  { %2819 = vmatpush.bf16.msra.mxu1 %v4451_v5  ;;  %v2601_v4 = vadd.f32 %v2600_v0, %v8731_v30  ;;  %v4643_v5 = vor.u32 %v6641_v58, %v4640_v59  ;;  %v6679_v30 = vld [vmem:[%s10759_s2 + $0x2b4] sm:$0xf]  ;;  %v4840_v0 = vld [vmem:[%s10759_s2 + $0x318] sm:$0xf0] }
  0xe5   :  { %2832 = vmatpush.bf16.msra.mxu2 %v4515_v6  ;;  %v2613_v6 = vpop.f32.mrf.mxu1  ;;  %v4795_v39 = vor.u32 %v6679_v30, %v4792_v28  ;;  %v6711_v30 = vld [vmem:[%s10759_s2 + $0x3b4] sm:$0xf]  ;;  %v4920_v28 = vld [vmem:[%s10759_s2 + $0x3b8] sm:$0xf0] }
  0xe6   :  { %2845 = vmatpush.bf16.msra.mxu3 %v4579_v16  ;;  %v6663_v16 = vld [vmem:[%s10759_s2 + $0x234] sm:$0xf] }
  0xe7   :  { %2855 = vmatpush.bf16.msrb.mxu0 %v4667_v19  ;;  %2820 = vmatmul.bf16.vlgmr.msra.gmra.mxu1 %v7654_v24  ;;  %v4736_v24 = vld [vmem:[%s10759_s2 + $0x248] sm:$0xf0]  ;;  %v4728_v19 = vld [vmem:[%s10759_s2 + $0x238] sm:$0xf0] }
  0xe8   :  { %2864 = vmatpush.bf16.msrb.mxu1 %v4763_v20  ;;  %2833 = vmatmul.bf16.vlgmr.msra.gmra.mxu2 %v7659_v27  ;;  %v4747_v27 = vor.u32 %v6667_v46, %v4744_v48  ;;  %v4867_v20 = vor.u32 %v6697_v63, %v4864_v1  ;;  %v4731_v38 = vor.u32 %v6663_v16, %v4728_v19  ;;  %v4784_v46 = vld [vmem:[%s10759_s2 + $0x2a8] sm:$0xf0]  ;;  %v6691_v63 = vld [vmem:[%s10759_s2 + $0x314] sm:$0xf]  ;;  %v6713_v1 = vld [vmem:[%s10759_s2 + $0x3c4] sm:$0xf] }
  0xe9   :  { %2877 = vmatpush.bf16.msrb.mxu2 %v4827_v21  ;;  %2846 = vmatmul.bf16.vlgmr.msra.gmra.mxu3 %v7652_v23  ;;  %v6665_v23 = vld [vmem:[%s10759_s2 + $0x244] sm:$0xf]  ;;  %v2614_v21 = vadd.f32 %v2613_v6, %v2601_v4  ;;  %v4787_v59 = vor.u32 %v6677_v45, %v4784_v46  ;;  %v4779_v4 = vor.u32 %v6675_v61, %v4776_v62  ;;  %v4704_v6 = vld [vmem:[%s10759_s2 + $0x208] sm:$0xf0]  ;;  %v6731_v61 = vld [vmem:[%s10759_s2 + $0x454] sm:$0xf] }
  0xea   :  { %2890 = vmatpush.bf16.msrb.mxu3 %v4891_v34  ;;  %v4739_v7 = vor.u32 %v6665_v23, %v4736_v24  ;;  %v4856_v34 = vld [vmem:[%s10759_s2 + $0x338] sm:$0xf0]  ;;  %v6659_v23 = vld [vmem:[%s10759_s2 + $0x214] sm:$0xf]  ;;  %v4931_v16 = vor.u32 %v6713_v1, %v4928_v2  ;;  %v4768_v19 = vld [vmem:[%s10759_s2 + $0x288] sm:$0xf0] }
  0xeb   :  { %2856 = vmatpush.bf16.msrb.mxu0 %v4659_v41  ;;  %v4720_v41 = vld [vmem:[%s10759_s2 + $0x228] sm:$0xf0]  ;;  %v4712_v24 = vld [vmem:[%s10759_s2 + $0x218] sm:$0xf0] }
  0xec   :  { %2865 = vmatpush.bf16.msrb.mxu1 %v4755_v42  ;;  %v4859_v42 = vor.u32 %v6695_v31, %v4856_v34  ;;  %v2639_v49 = vpop.f32.mrf.mxu3  ;;  %v4715_v3 = vor.u32 %v6659_v23, %v4712_v24  ;;  %v6735_v31 = vld [vmem:[%s10759_s2 + $0x474] sm:$0xf]  ;;  %v5064_v1 = vld [vmem:[%s10759_s2 + $0x4d8] sm:$0xf0] }
  0xed   :  { %2878 = vmatpush.bf16.msrb.mxu2 %v4819_v43  ;;  %v2626_v43 = vpop.f32.mrf.mxu2  ;;  %v2615_v58 = vpop.f32.mrf.mxu1  ;;  %v5019_v45 = vor.u32 %v6735_v31, %v5016_v36  ;;  %v5128_v2 = vld [vmem:[%s10759_s2 + $0x558] sm:$0xf0] }
  0xee   :  { %2891 = vmatpush.bf16.msrb.mxu3 %v4883_v47  ;;  %v6693_v47 = vld [vmem:[%s10759_s2 + $0x324] sm:$0xf]  ;;  %v2627_v48 = vadd.f32 %v2626_v43, %v2614_v21  ;;  %v4832_v21 = vld [vmem:[%s10759_s2 + $0x308] sm:$0xf0] }
  0xef   :  { %2857 = vmatpush.bf16.msrb.mxu0 %v4651_v57  ;;  %v2602_v57 = vpop.f32.mrf.mxu0  ;;  %v6765_v58 = vld [vmem:[%s10759_s2 + $0x564] sm:$0xf] }
  0xf0   :  { %2866 = vmatpush.bf16.msrb.mxu1 %v4747_v27  ;;  %v8932_v27 = vadd.f32 %v2639_v49, %v2627_v48  ;;  %v4912_v48 = vld [vmem:[%s10759_s2 + $0x3a8] sm:$0xf0]  ;;  %v6733_v49 = vld [vmem:[%s10759_s2 + $0x464] sm:$0xf] }
  0xf1   :  { %2879 = vmatpush.bf16.msrb.mxu2 %v4811_v35  ;;  %v4723_v35 = vor.u32 %v6661_v40, %v4720_v41  ;;  %v6767_v41 = vld [vmem:[%s10759_s2 + $0x574] sm:$0xf]  ;;  %v5072_v57 = vld [vmem:[%s10759_s2 + $0x4e8] sm:$0xf0] }
  0xf2   :  { %2892 = vmatpush.bf16.msrb.mxu3 %v4875_v60  ;;  %v4851_v60 = vor.u32 %v6693_v47, %v4848_v50  ;;  %v6709_v47 = vld [vmem:[%s10759_s2 + $0x3a4] sm:$0xf] }
  0xf3   :  { %2858 = vmatpush.bf16.msrb.mxu0 %v4643_v5  ;;  %v6657_v5 = vld [vmem:[%s10759_s2 + $0x204] sm:$0xf] }
  0xf4   :  { %2867 = vmatpush.bf16.msrb.mxu1 %v4739_v7  ;;  %v6673_v7 = vld [vmem:[%s10759_s2 + $0x284] sm:$0xf]  ;;  %v2641_v34 = vpop.f32.mrf.mxu3 }
  0xf5   :  { %2880 = vmatpush.bf16.msrb.mxu2 %v4803_v8  ;;  %v4843_v8 = vor.u32 %v6691_v63, %v4840_v0  ;;  %v4771_v40 = vor.u32 %v6673_v7, %v4768_v19  ;;  %v5000_v63 = vld [vmem:[%s10759_s2 + $0x458] sm:$0xf0]  ;;  %v6747_v0 = vld [vmem:[%s10759_s2 + $0x4d4] sm:$0xf]  ;;  %v4992_v7 = vld [vmem:[%s10759_s2 + $0x448] sm:$0xf0] }
  0xf6   :  { %2893 = vmatpush.bf16.msrb.mxu3 %v4867_v20  ;;  %2859 = vmatmul.bf16.vlgmr.msrb.gmra.mxu0 %v7657_v26  ;;  %v4939_v26 = vor.u32 %v6715_v53, %v4936_v56  ;;  %v6689_v20 = vld [vmem:[%s10759_s2 + $0x304] sm:$0xf]  ;;  %v5008_v53 = vld [vmem:[%s10759_s2 + $0x468] sm:$0xf0] }
  0xf7   :  { %2903 = vmatpush.bf16.msra.mxu0 %v4955_v25  ;;  %v2628_v25 = vpop.f32.mrf.mxu2  ;;  %v4835_v43 = vor.u32 %v6689_v20, %v4832_v21  ;;  %v6749_v56 = vld [vmem:[%s10759_s2 + $0x4e4] sm:$0xf]  ;;  %v5011_v23 = vor.u32 %v6733_v49, %v5008_v53  ;;  %v5056_v19 = vld [vmem:[%s10759_s2 + $0x4c8] sm:$0xf0] }
  0xf8   :  { %2868 = vmatpush.bf16.msrb.mxu1 %v4731_v38  ;;  %v5080_v38 = vld [vmem:[%s10759_s2 + $0x4f8] sm:$0xf0]  ;;  %v5075_v24 = vor.u32 %v6749_v56, %v5072_v57  ;;  %v6761_v20 = vld [vmem:[%s10759_s2 + $0x544] sm:$0xf]  ;;  %v5120_v25 = vld [vmem:[%s10759_s2 + $0x548] sm:$0xf0] }
  0xf9   :  { %2881 = vmatpush.bf16.msrb.mxu2 %v4795_v39  ;;  %v4707_v39 = vor.u32 %v6657_v5, %v4704_v6  ;;  %v5083_v46 = vor.u32 %v6751_v37, %v5080_v38  ;;  %v5003_v5 = vor.u32 %v6731_v61, %v5000_v63  ;;  %v6729_v6 = vld [vmem:[%s10759_s2 + $0x444] sm:$0xf]  ;;  %v6727_v38 = vld [vmem:[%s10759_s2 + $0x434] sm:$0xf]  ;;  %v4976_v53 = vld [vmem:[%s10759_s2 + $0x428] sm:$0xf0] }
  0xfa   :  { %2894 = vmatpush.bf16.msrb.mxu3 %v4859_v42  ;;  %v5144_v42 = vld [vmem:[%s10759_s2 + $0x578] sm:$0xf0]  ;;  %v4995_v36 = vor.u32 %v6729_v6, %v4992_v7  ;;  %v6777_v6 = vld [vmem:[%s10759_s2 + $0x5c4] sm:$0xf]  ;;  %v5184_v7 = vld [vmem:[%s10759_s2 + $0x5c8] sm:$0xf0] }
  0xfb   :  { %2904 = vmatpush.bf16.msra.mxu0 %v4947_v44  ;;  %v4923_v44 = vor.u32 %v6711_v30, %v4920_v28  ;;  %v5147_v50 = vor.u32 %v6767_v41, %v5144_v42  ;;  %v6783_v30 = vld [vmem:[%s10759_s2 + $0x5f4] sm:$0xf]  ;;  %v5208_v28 = vld [vmem:[%s10759_s2 + $0x5f8] sm:$0xf0] }
  0xfc   :  { %2869 = vmatpush.bf16.msrb.mxu1 %v4723_v35  ;;  %v5136_v35 = vld [vmem:[%s10759_s2 + $0x568] sm:$0xf0]  ;;  %v5211_v41 = vor.u32 %v6783_v30, %v5208_v28  ;;  %v6743_v42 = vld [vmem:[%s10759_s2 + $0x4b4] sm:$0xf]  ;;  %v5192_v61 = vld [vmem:[%s10759_s2 + $0x5d8] sm:$0xf0]  ;;  %v5187_v28 = vor.u32 %v6777_v6, %v5184_v7 }
  0xfd   :  { %2882 = vmatpush.bf16.msrb.mxu2 %v4787_v59  ;;  %v4915_v59 = vor.u32 %v6709_v47, %v4912_v48  ;;  %v5139_v62 = vor.u32 %v6765_v58, %v5136_v35  ;;  %v5200_v47 = vld [vmem:[%s10759_s2 + $0x5e8] sm:$0xf0]  ;;  %v6741_v35 = vld [vmem:[%s10759_s2 + $0x4a4] sm:$0xf]  ;;  %v5320_v6 = vld [vmem:[%s10759_s2 + $0x6d8] sm:$0xf0] }
  0xfe   :  { %2895 = vmatpush.bf16.msrb.mxu3 %v4851_v60  ;;  %v6707_v60 = vld [vmem:[%s10759_s2 + $0x394] sm:$0xf]  ;;  %v5384_v7 = vld [vmem:[%s10759_s2 + $0x758] sm:$0xf0] }
  0xff   :  { %2905 = vmatpush.bf16.msra.mxu0 %v4939_v26  ;;  %v4904_v26 = vld [vmem:[%s10759_s2 + $0x398] sm:$0xf0] }
 0x100   :  { %2870 = vmatpush.bf16.msrb.mxu1 %v4715_v3  ;;  %v4907_v3 = vor.u32 %v6707_v60, %v4904_v26  ;;  %v5104_v60 = vld [vmem:[%s10759_s2 + $0x528] sm:$0xf0]  ;;  %v6779_v26 = vld [vmem:[%s10759_s2 + $0x5d4] sm:$0xf] }
 0x101   :  { %2883 = vmatpush.bf16.msrb.mxu2 %v4779_v4  ;;  %v6705_v4 = vld [vmem:[%s10759_s2 + $0x384] sm:$0xf] }
 0x102   :  { %2896 = vmatpush.bf16.msrb.mxu3 %v4843_v8 }
 0x103   :  { %2906 = vmatpush.bf16.msra.mxu0 %v4931_v16  ;;  %v6745_v16 = vld [vmem:[%s10759_s2 + $0x4c4] sm:$0xf]  ;;  %v9072_v21 = vpop.f32.mrf.mxu0 }
 0x104   :  { %2871 = vmatpush.bf16.msrb.mxu1 %v4707_v39  ;;  %v9083_v34 = vpop.f32.mrf.mxu1  ;;  %v5059_v37 = vor.u32 %v6745_v16, %v5056_v19  ;;  %v4984_v39 = vld [vmem:[%s10759_s2 + $0x438] sm:$0xf0]  ;;  %v6721_v19 = vld [vmem:[%s10759_s2 + $0x404] sm:$0xf] }
 0x105   :  { %2884 = vmatpush.bf16.msrb.mxu2 %v4771_v40  ;;  %v5123_v40 = vor.u32 %v6761_v20, %v5120_v25  ;;  %v4987_v48 = vor.u32 %v6727_v38, %v4984_v39  ;;  %v4960_v20 = vld [vmem:[%s10759_s2 + $0x408] sm:$0xf0]  ;;  %v6737_v25 = vld [vmem:[%s10759_s2 + $0x484] sm:$0xf]  ;;  %v6775_v39 = vld [vmem:[%s10759_s2 + $0x5b4] sm:$0xf] }
 0x106   :  { %2897 = vmatpush.bf16.msrb.mxu3 %v4835_v43  ;;  %v5048_v43 = vld [vmem:[%s10759_s2 + $0x4b8] sm:$0xf0] }
 0x107   :  { %2907 = vmatpush.bf16.msra.mxu0 %v4923_v44  ;;  %2872 = vmatmul.bf16.vlgmr.msrb.gmra.mxu1 %v7768_v11  ;;  %v4896_v11 = vld [vmem:[%s10759_s2 + $0x388] sm:$0xf0]  ;;  %v6759_v44 = vld [vmem:[%s10759_s2 + $0x534] sm:$0xf]  ;;  %v5051_v49 = vor.u32 %v6743_v42, %v5048_v43  ;;  %v5272_v43 = vld [vmem:[%s10759_s2 + $0x678] sm:$0xf0] }
 0x108   :  { %2916 = vmatpush.bf16.msra.mxu1 %v5019_v45  ;;  %2885 = vmatmul.bf16.vlgmr.msrb.gmra.mxu2 %v7772_v14  ;;  %v6763_v14 = vld [vmem:[%s10759_s2 + $0x554] sm:$0xf]  ;;  %v4899_v31 = vor.u32 %v6705_v4, %v4896_v11  ;;  %v5112_v45 = vld [vmem:[%s10759_s2 + $0x538] sm:$0xf0] }
 0x109   :  { %2929 = vmatpush.bf16.msra.mxu2 %v5083_v46  ;;  %2898 = vmatmul.bf16.vlgmr.msrb.gmra.mxu3 %v7766_v10  ;;  %v5067_v10 = vor.u32 %v6747_v0, %v5064_v1  ;;  %v5131_v8 = vor.u32 %v6763_v14, %v5128_v2  ;;  %v6781_v46 = vld [vmem:[%s10759_s2 + $0x5e4] sm:$0xf]  ;;  %v5115_v56 = vor.u32 %v6759_v44, %v5112_v45  ;;  %v6723_v1 = vld [vmem:[%s10759_s2 + $0x414] sm:$0xf]  ;;  %v4968_v14 = vld [vmem:[%s10759_s2 + $0x418] sm:$0xf0] }
 0x10a   :  { %2942 = vmatpush.bf16.msra.mxu3 %v5147_v50  ;;  %v6725_v50 = vld [vmem:[%s10759_s2 + $0x424] sm:$0xf]  ;;  %v5203_v58 = vor.u32 %v6781_v46, %v5200_v47  ;;  %v6739_v4 = vld [vmem:[%s10759_s2 + $0x494] sm:$0xf]  ;;  %v5096_v11 = vld [vmem:[%s10759_s2 + $0x518] sm:$0xf0]  ;;  %v4963_v46 = vor.u32 %v6721_v19, %v4960_v20 }
 0x10b   :  { %2908 = vmatpush.bf16.msra.mxu0 %v4915_v59  ;;  %v9115_v57 = vpop.f32.mrf.mxu2  ;;  %v5040_v59 = vld [vmem:[%s10759_s2 + $0x4a8] sm:$0xf0]  ;;  %v4979_v0 = vor.u32 %v6725_v50, %v4976_v53  ;;  %v6815_v44 = vld [vmem:[%s10759_s2 + $0x6f4] sm:$0xf]  ;;  %v5336_v45 = vld [vmem:[%s10759_s2 + $0x6f8] sm:$0xf0] }
 0x10c   :  { %2917 = vmatpush.bf16.msra.mxu1 %v5011_v23  ;;  %v6757_v23 = vld [vmem:[%s10759_s2 + $0x524] sm:$0xf]  ;;  %v2667_v63 = vpop.f32.mrf.mxu1 }
 0x10d   :  { %2930 = vmatpush.bf16.msra.mxu2 %v5075_v24  ;;  %v9127_v24 = vpop.f32.mrf.mxu3  ;;  %v5107_v2 = vor.u32 %v6757_v23, %v5104_v60  ;;  %v6797_v23 = vld [vmem:[%s10759_s2 + $0x664] sm:$0xf] }
 0x10e   :  { %2943 = vmatpush.bf16.msra.mxu3 %v5139_v62  ;;  %v2654_v62 = vpop.f32.mrf.mxu0  ;;  %v6829_v63 = vld [vmem:[%s10759_s2 + $0x764] sm:$0xf] }
 0x10f   :  { %2909 = vmatpush.bf16.msra.mxu0 %v4907_v3  ;;  %v5195_v3 = vor.u32 %v6779_v26, %v5192_v61  ;;  %v5264_v26 = vld [vmem:[%s10759_s2 + $0x668] sm:$0xf0]  ;;  %v6813_v61 = vld [vmem:[%s10759_s2 + $0x6e4] sm:$0xf] }
 0x110   :  { %2918 = vmatpush.bf16.msra.mxu1 %v5003_v5  ;;  %v5032_v5 = vld [vmem:[%s10759_s2 + $0x498] sm:$0xf0]  ;;  %v5328_v62 = vld [vmem:[%s10759_s2 + $0x6e8] sm:$0xf0]  ;;  %v6793_v20 = vld [vmem:[%s10759_s2 + $0x644] sm:$0xf] }
 0x111   :  { %2931 = vmatpush.bf16.msra.mxu2 %v5067_v10  ;;  %v6755_v10 = vld [vmem:[%s10759_s2 + $0x514] sm:$0xf]  ;;  %v5035_v16 = vor.u32 %v6739_v4, %v5032_v5 }
 0x112   :  { %2944 = vmatpush.bf16.msra.mxu3 %v5131_v8  ;;  %v4971_v8 = vor.u32 %v6723_v1, %v4968_v14  ;;  %v5099_v30 = vor.u32 %v6755_v10, %v5096_v11  ;;  %v5267_v1 = vor.u32 %v6797_v23, %v5264_v26  ;;  %v5331_v14 = vor.u32 %v6813_v61, %v5328_v62  ;;  %v6795_v4 = vld [vmem:[%s10759_s2 + $0x654] sm:$0xf]  ;;  %v5256_v10 = vld [vmem:[%s10759_s2 + $0x658] sm:$0xf0]  ;;  %v5232_v26 = vld [vmem:[%s10759_s2 + $0x628] sm:$0xf0] }
 0x113   :  { %2910 = vmatpush.bf16.msra.mxu0 %v4899_v31  ;;  %v5024_v31 = vld [vmem:[%s10759_s2 + $0x488] sm:$0xf0]  ;;  %v2680_v38 = vpop.f32.mrf.mxu2  ;;  %v6811_v11 = vld [vmem:[%s10759_s2 + $0x6d4] sm:$0xf]  ;;  %v5259_v19 = vor.u32 %v6795_v4, %v5256_v10  ;;  %v5448_v4 = vld [vmem:[%s10759_s2 + $0x7d8] sm:$0xf0] }
 0x114   :  { %2919 = vmatpush.bf16.msra.mxu1 %v4995_v36  ;;  %v6753_v36 = vld [vmem:[%s10759_s2 + $0x504] sm:$0xf]  ;;  %v5027_v47 = vor.u32 %v6737_v25, %v5024_v31  ;;  %v5248_v25 = vld [vmem:[%s10759_s2 + $0x648] sm:$0xf0] }
 0x115   :  { %2932 = vmatpush.bf16.msra.mxu2 %v5059_v37  ;;  %v5088_v37 = vld [vmem:[%s10759_s2 + $0x508] sm:$0xf0]  ;;  %v2693_v42 = vpop.f32.mrf.mxu3 }
 0x116   :  { %2945 = vmatpush.bf16.msra.mxu3 %v5123_v40  ;;  %2911 = vmatmul.bf16.vlgmr.msra.gmra.mxu0 %v7770_v13  ;;  %v5043_v13 = vor.u32 %v6741_v35, %v5040_v59  ;;  %v5176_v40 = vld [vmem:[%s10759_s2 + $0x5b8] sm:$0xf0]  ;;  %v5091_v50 = vor.u32 %v6753_v36, %v5088_v37  ;;  %v6773_v35 = vld [vmem:[%s10759_s2 + $0x5a4] sm:$0xf]  ;;  %v5168_v59 = vld [vmem:[%s10759_s2 + $0x5a8] sm:$0xf0] }
 0x117   :  { %2955 = vmatpush.bf16.msrb.mxu0 %v5211_v41  ;;  %v6799_v41 = vld [vmem:[%s10759_s2 + $0x674] sm:$0xf]  ;;  %v5179_v53 = vor.u32 %v6775_v39, %v5176_v40  ;;  %v5312_v31 = vld [vmem:[%s10759_s2 + $0x6c8] sm:$0xf0]  ;;  %v6825_v36 = vld [vmem:[%s10759_s2 + $0x744] sm:$0xf] }
 0x118   :  { %2920 = vmatpush.bf16.msra.mxu1 %v4987_v48  ;;  %v6831_v48 = vld [vmem:[%s10759_s2 + $0x774] sm:$0xf]  ;;  %v5376_v38 = vld [vmem:[%s10759_s2 + $0x748] sm:$0xf0]  ;;  %v5464_v40 = vld [vmem:[%s10759_s2 + $0x7f8] sm:$0xf0] }
 0x119   :  { %2933 = vmatpush.bf16.msra.mxu2 %v5051_v49  ;;  %v5400_v49 = vld [vmem:[%s10759_s2 + $0x778] sm:$0xf0]  ;;  %v6847_v39 = vld [vmem:[%s10759_s2 + $0x7f4] sm:$0xf] }
 0x11a   :  { %2946 = vmatpush.bf16.msra.mxu3 %v5115_v56  ;;  %v5275_v56 = vor.u32 %v6799_v41, %v5272_v43  ;;  %v5403_v60 = vor.u32 %v6831_v48, %v5400_v49  ;;  %v5251_v43 = vor.u32 %v6793_v20, %v5248_v25  ;;  %v5467_v48 = vor.u32 %v6847_v39, %v5464_v40  ;;  %v6807_v49 = vld [vmem:[%s10759_s2 + $0x6b4] sm:$0xf]  ;;  %v5352_v20 = vld [vmem:[%s10759_s2 + $0x718] sm:$0xf0]  ;;  %v6841_v25 = vld [vmem:[%s10759_s2 + $0x7c4] sm:$0xf] }
 0x11b   :  { %2956 = vmatpush.bf16.msrb.mxu0 %v5203_v58  ;;  %v5339_v58 = vor.u32 %v6815_v44, %v5336_v45  ;;  %v6791_v45 = vld [vmem:[%s10759_s2 + $0x634] sm:$0xf]  ;;  %v5280_v40 = vld [vmem:[%s10759_s2 + $0x688] sm:$0xf0] }
 0x11c   :  { %2921 = vmatpush.bf16.msra.mxu1 %v4979_v0  ;;  %v5392_v0 = vld [vmem:[%s10759_s2 + $0x768] sm:$0xf0] }
 0x11d   :  { %2934 = vmatpush.bf16.msra.mxu2 %v5043_v13  ;;  %v5171_v13 = vor.u32 %v6773_v35, %v5168_v59  ;;  %v5395_v5 = vor.u32 %v6829_v63, %v5392_v0  ;;  %v5456_v35 = vld [vmem:[%s10759_s2 + $0x7e8] sm:$0xf0]  ;;  %v6805_v0 = vld [vmem:[%s10759_s2 + $0x6a4] sm:$0xf] }
 0x11e   :  { %2947 = vmatpush.bf16.msra.mxu3 %v5107_v2  ;;  %v6771_v2 = vld [vmem:[%s10759_s2 + $0x594] sm:$0xf] }
 0x11f   :  { %2957 = vmatpush.bf16.msrb.mxu0 %v5195_v3  ;;  %v5160_v3 = vld [vmem:[%s10759_s2 + $0x598] sm:$0xf0] }
 0x120   :  { %2922 = vmatpush.bf16.msra.mxu1 %v4971_v8  ;;  %v5163_v8 = vor.u32 %v6771_v2, %v5160_v3  ;;  %v5360_v2 = vld [vmem:[%s10759_s2 + $0x728] sm:$0xf0]  ;;  %v6843_v3 = vld [vmem:[%s10759_s2 + $0x7d4] sm:$0xf] }
 0x121   :  { %2935 = vmatpush.bf16.msra.mxu2 %v5035_v16  ;;  %v6769_v16 = vld [vmem:[%s10759_s2 + $0x584] sm:$0xf] }
 0x122   :  { %2948 = vmatpush.bf16.msra.mxu3 %v5099_v30 }
 0x123   :  { %2958 = vmatpush.bf16.msrb.mxu0 %v5187_v28  ;;  %v6809_v28 = vld [vmem:[%s10759_s2 + $0x6c4] sm:$0xf]  ;;  %v9276_v37 = vpop.f32.mrf.mxu0 }
 0x124   :  { %2923 = vmatpush.bf16.msra.mxu1 %v4963_v46  ;;  %v9287_v42 = vpop.f32.mrf.mxu1  ;;  %v5315_v44 = vor.u32 %v6809_v28, %v5312_v31  ;;  %v5240_v46 = vld [vmem:[%s10759_s2 + $0x638] sm:$0xf0] }
 0x125   :  { %2936 = vmatpush.bf16.msra.mxu2 %v5027_v47  ;;  %v5379_v47 = vor.u32 %v6825_v36, %v5376_v38  ;;  %v5243_v59 = vor.u32 %v6791_v45, %v5240_v46  ;;  %v6801_v36 = vld [vmem:[%s10759_s2 + $0x684] sm:$0xf]  ;;  %v6839_v46 = vld [vmem:[%s10759_s2 + $0x7b4] sm:$0xf] }
 0x126   :  { %2949 = vmatpush.bf16.msra.mxu3 %v5091_v50  ;;  %v5304_v50 = vld [vmem:[%s10759_s2 + $0x6b8] sm:$0xf0] }
 0x127   :  { %2959 = vmatpush.bf16.msrb.mxu0 %v5179_v53  ;;  %2924 = vmatmul.bf16.vlgmr.msra.gmra.mxu1 %v7886_v12  ;;  %v6827_v12 = vld [vmem:[%s10759_s2 + $0x754] sm:$0xf]  ;;  %v5307_v23 = vor.u32 %v6807_v49, %v5304_v50  ;;  %v5528_v50 = vld [vmem:[%s10759_s2 + $0x878] sm:$0xf0] }
 0x128   :  { %2968 = vmatpush.bf16.msrb.mxu1 %v5275_v56  ;;  %2937 = vmatmul.bf16.vlgmr.msra.gmra.mxu2 %v7890_v17  ;;  %v5323_v17 = vor.u32 %v6811_v11, %v5320_v6  ;;  %v5387_v30 = vor.u32 %v6827_v12, %v5384_v7  ;;  %v6823_v53 = vld [vmem:[%s10759_s2 + $0x734] sm:$0xf]  ;;  %v5368_v56 = vld [vmem:[%s10759_s2 + $0x738] sm:$0xf0] }
 0x129   :  { %2981 = vmatpush.bf16.msrb.mxu2 %v5339_v58  ;;  %2950 = vmatmul.bf16.vlgmr.msra.gmra.mxu3 %v7888_v15  ;;  %v5152_v15 = vld [vmem:[%s10759_s2 + $0x588] sm:$0xf0]  ;;  %v6845_v58 = vld [vmem:[%s10759_s2 + $0x7e4] sm:$0xf]  ;;  %v5371_v61 = vor.u32 %v6823_v53, %v5368_v56  ;;  %v6787_v6 = vld [vmem:[%s10759_s2 + $0x614] sm:$0xf] }
 0x12a   :  { %2994 = vmatpush.bf16.msrb.mxu3 %v5403_v60  ;;  %v5155_v41 = vor.u32 %v6769_v16, %v5152_v15  ;;  %v6789_v60 = vld [vmem:[%s10759_s2 + $0x624] sm:$0xf]  ;;  %v5459_v63 = vor.u32 %v6845_v58, %v5456_v35  ;;  %v5224_v12 = vld [vmem:[%s10759_s2 + $0x618] sm:$0xf0]  ;;  %v6803_v16 = vld [vmem:[%s10759_s2 + $0x694] sm:$0xf]  ;;  %v2653_v15 = vadd.f32 %v9072_v21, %v8932_v27  ;;  %v5283_v35 = vor.u32 %v6801_v36, %v5280_v40 }
 0x12b   :  { %2960 = vmatpush.bf16.msrb.mxu0 %v5171_v13  ;;  %v9319_v62 = vpop.f32.mrf.mxu2  ;;  %v5296_v13 = vld [vmem:[%s10759_s2 + $0x6a8] sm:$0xf0]  ;;  %v5235_v11 = vor.u32 %v6789_v60, %v5232_v26  ;;  %v5227_v28 = vor.u32 %v6787_v6, %v5224_v12  ;;  %v6785_v27 = vld [vmem:[%s10759_s2 + $0x604] sm:$0xf]  ;;  %v5592_v53 = vld [vmem:[%s10759_s2 + $0x8f8] sm:$0xf0] }
 0x12c   :  { %2969 = vmatpush.bf16.msrb.mxu1 %v5267_v1  ;;  %v6821_v1 = vld [vmem:[%s10759_s2 + $0x724] sm:$0xf]  ;;  %v2719_v10 = vpop.f32.mrf.mxu1  ;;  %v5216_v21 = vld [vmem:[%s10759_s2 + $0x608] sm:$0xf0]  ;;  %v2666_v45 = vadd.f32 %v9083_v34, %v2653_v15  ;;  %v6879_v34 = vld [vmem:[%s10759_s2 + $0x8f4] sm:$0xf] }
 0x12d   :  { %2982 = vmatpush.bf16.msrb.mxu2 %v5331_v14  ;;  %v9331_v14 = vpop.f32.mrf.mxu3  ;;  %v5363_v7 = vor.u32 %v6821_v1, %v5360_v2  ;;  %v5219_v58 = vor.u32 %v6785_v27, %v5216_v21  ;;  %v5520_v2 = vld [vmem:[%s10759_s2 + $0x868] sm:$0xf0]  ;;  %v6893_v10 = vld [vmem:[%s10759_s2 + $0x964] sm:$0xf]  ;;  %v5576_v15 = vld [vmem:[%s10759_s2 + $0x8d8] sm:$0xf0] }
 0x12e   :  { %2995 = vmatpush.bf16.msrb.mxu3 %v5395_v5  ;;  %v2706_v5 = vpop.f32.mrf.mxu0  ;;  %v2679_v56 = vadd.f32 %v9115_v57, %v2666_v45  ;;  %v6837_v57 = vld [vmem:[%s10759_s2 + $0x7a4] sm:$0xf]  ;;  %v5504_v21 = vld [vmem:[%s10759_s2 + $0x848] sm:$0xf0]  ;;  %v5720_v45 = vld [vmem:[%s10759_s2 + $0x9f8] sm:$0xf0] }
 0x12f   :  { %2961 = vmatpush.bf16.msrb.mxu0 %v5163_v8  ;;  %v5451_v8 = vor.u32 %v6843_v3, %v5448_v4  ;;  %v6877_v3 = vld [vmem:[%s10759_s2 + $0x8e4] sm:$0xf]  ;;  %v5584_v4 = vld [vmem:[%s10759_s2 + $0x8e8] sm:$0xf0] }
 0x130   :  { %2970 = vmatpush.bf16.msrb.mxu1 %v5259_v19  ;;  %v5288_v19 = vld [vmem:[%s10759_s2 + $0x698] sm:$0xf0]  ;;  %v2692_v5 = vadd.f32 %v9127_v24, %v2679_v56  ;;  %v6835_v24 = vld [vmem:[%s10759_s2 + $0x794] sm:$0xf]  ;;  %v6857_v27 = vld [vmem:[%s10759_s2 + $0x844] sm:$0xf] }
 0x131   :  { %2983 = vmatpush.bf16.msrb.mxu2 %v5323_v17  ;;  %v6819_v17 = vld [vmem:[%s10759_s2 + $0x714] sm:$0xf]  ;;  %v5291_v31 = vor.u32 %v6803_v16, %v5288_v19  ;;  %v5512_v19 = vld [vmem:[%s10759_s2 + $0x858] sm:$0xf0] }
 0x132   :  { %2996 = vmatpush.bf16.msrb.mxu3 %v5387_v30  ;;  %v5440_v30 = vld [vmem:[%s10759_s2 + $0x7c8] sm:$0xf0]  ;;  %v5355_v38 = vor.u32 %v6819_v17, %v5352_v20  ;;  %v2705_v6 = vadd.f32 %v9276_v37, %v2692_v5  ;;  %v6859_v16 = vld [vmem:[%s10759_s2 + $0x854] sm:$0xf]  ;;  %v5640_v20 = vld [vmem:[%s10759_s2 + $0x958] sm:$0xf0] }
 0x133   :  { %2962 = vmatpush.bf16.msrb.mxu0 %v5155_v41  ;;  %v5443_v39 = vor.u32 %v6841_v25, %v5440_v30  ;;  %v6817_v41 = vld [vmem:[%s10759_s2 + $0x704] sm:$0xf]  ;;  %v6875_v17 = vld [vmem:[%s10759_s2 + $0x8d4] sm:$0xf] }
 0x134   :  { %2971 = vmatpush.bf16.msrb.mxu1 %v5251_v43  ;;  %v5344_v43 = vld [vmem:[%s10759_s2 + $0x708] sm:$0xf0]  ;;  %v6833_v30 = vld [vmem:[%s10759_s2 + $0x784] sm:$0xf]  ;;  %v6871_v56 = vld [vmem:[%s10759_s2 + $0x8b4] sm:$0xf] }
 0x135   :  { %2984 = vmatpush.bf16.msrb.mxu2 %v5315_v44  ;;  %v2732_v44 = vpop.f32.mrf.mxu2  ;;  %v2745_v49 = vpop.f32.mrf.mxu3  ;;  %v5347_v60 = vor.u32 %v6817_v41, %v5344_v43  ;;  %v5632_v43 = vld [vmem:[%s10759_s2 + $0x948] sm:$0xf0]  ;;  %v6885_v5 = vld [vmem:[%s10759_s2 + $0x924] sm:$0xf] }
 0x136   :  { %2997 = vmatpush.bf16.msrb.mxu3 %v5379_v47  ;;  %2963 = vmatmul.bf16.vlgmr.msrb.gmra.mxu0 %v7892_v18  ;;  %v5299_v18 = vor.u32 %v6805_v0, %v5296_v13  ;;  %v5432_v47 = vld [vmem:[%s10759_s2 + $0x7b8] sm:$0xf0]  ;;  %v5424_v0 = vld [vmem:[%s10759_s2 + $0x7a8] sm:$0xf0]  ;;  %v6861_v13 = vld [vmem:[%s10759_s2 + $0x864] sm:$0xf] }
 0x137   :  { %3007 = vmatpush.bf16.msra.mxu0 %v5467_v48  ;;  %v6863_v48 = vld [vmem:[%s10759_s2 + $0x874] sm:$0xf]  ;;  %v5435_v26 = vor.u32 %v6839_v46, %v5432_v47  ;;  %v5523_v12 = vor.u32 %v6861_v13, %v5520_v2 }
 0x138   :  { %2972 = vmatpush.bf16.msrb.mxu1 %v5243_v59  ;;  %v6895_v59 = vld [vmem:[%s10759_s2 + $0x974] sm:$0xf] }
 0x139   :  { %2985 = vmatpush.bf16.msrb.mxu2 %v5307_v23  ;;  %v5656_v23 = vld [vmem:[%s10759_s2 + $0x978] sm:$0xf0]  ;;  %v6911_v44 = vld [vmem:[%s10759_s2 + $0x9f4] sm:$0xf] }
 0x13a   :  { %2998 = vmatpush.bf16.msrb.mxu3 %v5371_v61  ;;  %v5531_v61 = vor.u32 %v6863_v48, %v5528_v50  ;;  %v5659_v1 = vor.u32 %v6895_v59, %v5656_v23  ;;  %v5507_v48 = vor.u32 %v6857_v27, %v5504_v21  ;;  %v6855_v49 = vld [vmem:[%s10759_s2 + $0x834] sm:$0xf]  ;;  %v5496_v50 = vld [vmem:[%s10759_s2 + $0x838] sm:$0xf0]  ;;  %v6849_v27 = vld [vmem:[%s10759_s2 + $0x804] sm:$0xf] }
 0x13b   :  { %3008 = vmatpush.bf16.msra.mxu0 %v5459_v63  ;;  %v5595_v63 = vor.u32 %v6879_v34, %v5592_v53  ;;  %v5723_v53 = vor.u32 %v6911_v44, %v5720_v45  ;;  %v5624_v23 = vld [vmem:[%s10759_s2 + $0x938] sm:$0xf0]  ;;  %v5472_v21 = vld [vmem:[%s10759_s2 + $0x808] sm:$0xf0]  ;;  %v6903_v45 = vld [vmem:[%s10759_s2 + $0x9b4] sm:$0xf] }
 0x13c   :  { %2973 = vmatpush.bf16.msrb.mxu1 %v5235_v11  ;;  %v5648_v11 = vld [vmem:[%s10759_s2 + $0x968] sm:$0xf0] }
 0x13d   :  { %2986 = vmatpush.bf16.msrb.mxu2 %v5299_v18  ;;  %v5427_v18 = vor.u32 %v6837_v57, %v5424_v0  ;;  %v5651_v37 = vor.u32 %v6893_v10, %v5648_v11  ;;  %v5488_v0 = vld [vmem:[%s10759_s2 + $0x828] sm:$0xf0] }
 0x13e   :  { %2999 = vmatpush.bf16.msrb.mxu3 %v5363_v7  ;;  %v5587_v7 = vor.u32 %v6877_v3, %v5584_v4  ;;  %v6869_v3 = vld [vmem:[%s10759_s2 + $0x8a4] sm:$0xf]  ;;  %v5552_v4 = vld [vmem:[%s10759_s2 + $0x8a8] sm:$0xf0] }
 0x13f   :  { %3009 = vmatpush.bf16.msra.mxu0 %v5451_v8  ;;  %v5416_v8 = vld [vmem:[%s10759_s2 + $0x798] sm:$0xf0] }
 0x140   :  { %2974 = vmatpush.bf16.msrb.mxu1 %v5227_v28  ;;  %v5419_v25 = vor.u32 %v6835_v24, %v5416_v8  ;;  %v2718_v28 = vadd.f32 %v9287_v42, %v2705_v6  ;;  %v6873_v42 = vld [vmem:[%s10759_s2 + $0x8c4] sm:$0xf]  ;;  %v6907_v6 = vld [vmem:[%s10759_s2 + $0x9d4] sm:$0xf] }
 0x141   :  { %2987 = vmatpush.bf16.msrb.mxu2 %v5291_v31  ;;  %v5408_v31 = vld [vmem:[%s10759_s2 + $0x788] sm:$0xf0] }
 0x142   :  { %3000 = vmatpush.bf16.msrb.mxu3 %v5355_v38  ;;  %v5568_v38 = vld [vmem:[%s10759_s2 + $0x8c8] sm:$0xf0]  ;;  %v2731_v40 = vadd.f32 %v9319_v62, %v2718_v28  ;;  %v5411_v46 = vor.u32 %v6833_v30, %v5408_v31  ;;  %v5608_v30 = vld [vmem:[%s10759_s2 + $0x918] sm:$0xf0]  ;;  %v6905_v28 = vld [vmem:[%s10759_s2 + $0x9c4] sm:$0xf] }
 0x143   :  { %3010 = vmatpush.bf16.msra.mxu0 %v5443_v39  ;;  %v6889_v39 = vld [vmem:[%s10759_s2 + $0x944] sm:$0xf]  ;;  %v2756_v41 = vpop.f32.mrf.mxu0  ;;  %v5571_v62 = vor.u32 %v6873_v42, %v5568_v38 }
 0x144   :  { %2975 = vmatpush.bf16.msrb.mxu1 %v5219_v58  ;;  %v2769_v47 = vpop.f32.mrf.mxu1  ;;  %v5635_v34 = vor.u32 %v6889_v39, %v5632_v43  ;;  %v5560_v58 = vld [vmem:[%s10759_s2 + $0x8b8] sm:$0xf0]  ;;  %v2744_v59 = vadd.f32 %v9331_v14, %v2731_v40  ;;  %v6853_v14 = vld [vmem:[%s10759_s2 + $0x824] sm:$0xf]  ;;  %v5536_v39 = vld [vmem:[%s10759_s2 + $0x888] sm:$0xf0] }
 0x145   :  { %2988 = vmatpush.bf16.msrb.mxu2 %v5283_v35  ;;  %v6887_v35 = vld [vmem:[%s10759_s2 + $0x934] sm:$0xf]  ;;  %v5563_v57 = vor.u32 %v6871_v56, %v5560_v58  ;;  %v5491_v8 = vor.u32 %v6853_v14, %v5488_v0  ;;  %v6881_v40 = vld [vmem:[%s10759_s2 + $0x904] sm:$0xf]  ;;  %v5475_v56 = vor.u32 %v6849_v27, %v5472_v21  ;;  %v5888_v21 = vld [vmem:[%s10759_s2 + $0xb48] sm:$0xf0] }
 0x146   :  { %3001 = vmatpush.bf16.msrb.mxu3 %v5347_v60  ;;  %v6909_v60 = vld [vmem:[%s10759_s2 + $0x9e4] sm:$0xf]  ;;  %v5627_v13 = vor.u32 %v6887_v35, %v5624_v23  ;;  %v6959_v35 = vld [vmem:[%s10759_s2 + $0xb74] sm:$0xf] }
 0x147   :  { %3011 = vmatpush.bf16.msra.mxu0 %v5435_v26  ;;  %2976 = vmatmul.bf16.vlgmr.msrb.gmra.mxu1 %v8060_v51  ;;  %v6891_v51 = vld [vmem:[%s10759_s2 + $0x954] sm:$0xf]  ;;  %v5712_v26 = vld [vmem:[%s10759_s2 + $0x9e8] sm:$0xf0]  ;;  %v6925_v0 = vld [vmem:[%s10759_s2 + $0xa64] sm:$0xf] }
 0x148   :  { %3020 = vmatpush.bf16.msra.mxu1 %v5531_v61  ;;  %2989 = vmatmul.bf16.vlgmr.msrb.gmra.mxu2 %v8064_v54  ;;  %v5515_v54 = vor.u32 %v6859_v16, %v5512_v19  ;;  %v5643_v36 = vor.u32 %v6891_v51, %v5640_v20  ;;  %v2757_v61 = vadd.f32 %v2756_v41, %v2744_v59  ;;  %v6851_v16 = vld [vmem:[%s10759_s2 + $0x814] sm:$0xf]  ;;  %v5544_v51 = vld [vmem:[%s10759_s2 + $0x898] sm:$0xf0]  ;;  %v5600_v41 = vld [vmem:[%s10759_s2 + $0x908] sm:$0xf0] }
 0x149   :  { %3033 = vmatpush.bf16.msra.mxu2 %v5595_v63  ;;  %3002 = vmatmul.bf16.vlgmr.msrb.gmra.mxu3 %v8062_v52  ;;  %v5579_v52 = vor.u32 %v6875_v17, %v5576_v15  ;;  %v5499_v63 = vor.u32 %v6855_v49, %v5496_v50  ;;  %v5715_v2 = vor.u32 %v6909_v60, %v5712_v26  ;;  %v6867_v15 = vld [vmem:[%s10759_s2 + $0x894] sm:$0xf]  ;;  %v5784_v49 = vld [vmem:[%s10759_s2 + $0xa78] sm:$0xf0]  ;;  %v6901_v26 = vld [vmem:[%s10759_s2 + $0x9a4] sm:$0xf] }
 0x14a   :  { %3046 = vmatpush.bf16.msra.mxu3 %v5659_v1  ;;  %v2770_v24 = vadd.f32 %v2769_v47, %v2757_v61  ;;  %v6883_v20 = vld [vmem:[%s10759_s2 + $0x914] sm:$0xf]  ;;  %v5547_v31 = vor.u32 %v6867_v15, %v5544_v51  ;;  %v5912_v59 = vld [vmem:[%s10759_s2 + $0xb78] sm:$0xf0]  ;;  %v5603_v23 = vor.u32 %v6881_v40, %v5600_v41  ;;  %v5680_v61 = vld [vmem:[%s10759_s2 + $0x9a8] sm:$0xf0] }
 0x14b   :  { %3012 = vmatpush.bf16.msra.mxu0 %v5427_v18  ;;  %v2782_v1 = vpop.f32.mrf.mxu2  ;;  %v2758_v10 = vpop.f32.mrf.mxu0  ;;  %v5616_v18 = vld [vmem:[%s10759_s2 + $0x928] sm:$0xf0]  ;;  %v5611_v42 = vor.u32 %v6883_v20, %v5608_v30  ;;  %v6927_v47 = vld [vmem:[%s10759_s2 + $0xa74] sm:$0xf]  ;;  %v6897_v15 = vld [vmem:[%s10759_s2 + $0x984] sm:$0xf] }
 0x14c   :  { %3021 = vmatpush.bf16.msra.mxu1 %v5523_v12  ;;  %v2795_v11 = vpop.f32.mrf.mxu3  ;;  %v5704_v12 = vld [vmem:[%s10759_s2 + $0x9d8] sm:$0xf0]  ;;  %v5619_v19 = vor.u32 %v6885_v5, %v5616_v18  ;;  %v6943_v50 = vld [vmem:[%s10759_s2 + $0xaf4] sm:$0xf]  ;;  %v5904_v5 = vld [vmem:[%s10759_s2 + $0xb68] sm:$0xf0]  ;;  %v5683_v10 = vor.u32 %v6901_v26, %v5680_v61 }
 0x14d   :  { %3034 = vmatpush.bf16.msra.mxu2 %v5587_v7  ;;  %v2771_v7 = vpop.f32.mrf.mxu1  ;;  %v5707_v17 = vor.u32 %v6907_v6, %v5704_v12  ;;  %v6899_v6 = vld [vmem:[%s10759_s2 + $0x994] sm:$0xf]  ;;  %v5672_v12 = vld [vmem:[%s10759_s2 + $0x998] sm:$0xf0]  ;;  %v6921_v20 = vld [vmem:[%s10759_s2 + $0xa44] sm:$0xf] }
 0x14e   :  { %3047 = vmatpush.bf16.msra.mxu3 %v5651_v37  ;;  %v5480_v37 = vld [vmem:[%s10759_s2 + $0x818] sm:$0xf0]  ;;  %v6923_v7 = vld [vmem:[%s10759_s2 + $0xa54] sm:$0xf]  ;;  %v6937_v30 = vld [vmem:[%s10759_s2 + $0xac4] sm:$0xf] }
 0x14f   :  { %3013 = vmatpush.bf16.msra.mxu0 %v5419_v25  ;;  %v2783_v25 = vadd.f32 %v2782_v1, %v2770_v24  ;;  %v5915_v1 = vor.u32 %v6959_v35, %v5912_v59  ;;  %v6917_v35 = vld [vmem:[%s10759_s2 + $0xa24] sm:$0xf]  ;;  %v5744_v59 = vld [vmem:[%s10759_s2 + $0xa28] sm:$0xf0] }
 0x150   :  { %3022 = vmatpush.bf16.msra.mxu1 %v5515_v54  ;;  %v5696_v54 = vld [vmem:[%s10759_s2 + $0x9c8] sm:$0xf0]  ;;  %v6933_v61 = vld [vmem:[%s10759_s2 + $0xaa4] sm:$0xf] }
 0x151   :  { %3035 = vmatpush.bf16.msra.mxu2 %v5579_v52  ;;  %v5483_v52 = vor.u32 %v6851_v16, %v5480_v37  ;;  %v5699_v38 = vor.u32 %v6905_v28, %v5696_v54  ;;  %v2796_v44 = vadd.f32 %v2795_v11, %v2783_v25  ;;  %v5832_v16 = vld [vmem:[%s10759_s2 + $0xad8] sm:$0xf0]  ;;  %v5760_v25 = vld [vmem:[%s10759_s2 + $0xa48] sm:$0xf0] }
 0x152   :  { %3048 = vmatpush.bf16.msra.mxu3 %v5643_v36  ;;  %v6865_v36 = vld [vmem:[%s10759_s2 + $0x884] sm:$0xf]  ;;  %v5824_v54 = vld [vmem:[%s10759_s2 + $0xac8] sm:$0xf0]  ;;  %v5763_v40 = vor.u32 %v6921_v20, %v5760_v25 }
 0x153   :  { %3014 = vmatpush.bf16.msra.mxu0 %v5411_v46  ;;  %v2784_v43 = vpop.f32.mrf.mxu2  ;;  %v5688_v46 = vld [vmem:[%s10759_s2 + $0x9b8] sm:$0xf0]  ;;  %v5539_v58 = vor.u32 %v6865_v36, %v5536_v39  ;;  %v6975_v36 = vld [vmem:[%s10759_s2 + $0xbf4] sm:$0xf]  ;;  %v5827_v41 = vor.u32 %v6937_v30, %v5824_v54  ;;  %v6945_v54 = vld [vmem:[%s10759_s2 + $0xb04] sm:$0xf] }
 0x154   :  { %3023 = vmatpush.bf16.msra.mxu1 %v5507_v48  ;;  %v2797_v48 = vpop.f32.mrf.mxu3  ;;  %v5691_v60 = vor.u32 %v6903_v45, %v5688_v46  ;;  %v6919_v43 = vld [vmem:[%s10759_s2 + $0xa34] sm:$0xf] }
 0x155   :  { %3036 = vmatpush.bf16.msra.mxu2 %v5571_v62  ;;  %v2808_v62 = vpop.f32.mrf.mxu0  ;;  %v5816_v48 = vld [vmem:[%s10759_s2 + $0xab8] sm:$0xf0] }
 0x156   :  { %3049 = vmatpush.bf16.msra.mxu3 %v5635_v34  ;;  %3015 = vmatmul.bf16.vlgmr.msra.gmra.mxu0 %v8066_v55  ;;  %v5555_v55 = vor.u32 %v6869_v3, %v5552_v4  ;;  %v5848_v34 = vld [vmem:[%s10759_s2 + $0xaf8] sm:$0xf0]  ;;  %v5840_v3 = vld [vmem:[%s10759_s2 + $0xae8] sm:$0xf0]  ;;  %v6957_v4 = vld [vmem:[%s10759_s2 + $0xb64] sm:$0xf] }
 0x157   :  { %3059 = vmatpush.bf16.msrb.mxu0 %v5723_v53  ;;  %v2809_v53 = vadd.f32 %v2808_v62, %v2796_v44  ;;  %v5851_v14 = vor.u32 %v6943_v50, %v5848_v34  ;;  %v5907_v24 = vor.u32 %v6957_v4, %v5904_v5  ;;  %v5752_v44 = vld [vmem:[%s10759_s2 + $0xa38] sm:$0xf0]  ;;  %v6951_v62 = vld [vmem:[%s10759_s2 + $0xb34] sm:$0xf]  ;;  %v6973_v34 = vld [vmem:[%s10759_s2 + $0xbe4] sm:$0xf] }
 0x158   :  { %3024 = vmatpush.bf16.msra.mxu1 %v5499_v63  ;;  %v5880_v50 = vld [vmem:[%s10759_s2 + $0xb38] sm:$0xf0] }
 0x159   :  { %3037 = vmatpush.bf16.msra.mxu2 %v5563_v57  ;;  %v9619_v63 = vmax.f32 %v2809_v53, 0.0  ;;  %v5787_v57 = vor.u32 %v6927_v47, %v5784_v49  ;;  %v6935_v47 = vld [vmem:[%s10759_s2 + $0xab4] sm:$0xf]  ;;  %v5968_v53 = vld [vmem:[%s10759_s2 + $0xbe8] sm:$0xf0] }
 0x15a   :  { %3050 = vmatpush.bf16.msra.mxu3 %v5627_v13  ;;  %v5776_v13 = vld [vmem:[%s10759_s2 + $0xa68] sm:$0xf0]  ;;  %v5971_v26 = vor.u32 %v6973_v34, %v5968_v53 }
 0x15b   :  { %3060 = vmatpush.bf16.msrb.mxu0 %v5715_v2  ;;  %v6941_v2 = vld [vmem:[%s10759_s2 + $0xae4] sm:$0xf]  ;;  %3146 = vst.sshfl [vmem:[#allocation1] sm:$0xff pattern:$0x73625140] %v9619_v63  ;;  %v5779_v11 = vor.u32 %v6925_v0, %v5776_v13 }
 0x15c   :  { %3025 = vmatpush.bf16.msra.mxu1 %v5491_v8  ;;  %v5843_v18 = vor.u32 %v6941_v2, %v5840_v3  ;;  %v5768_v8 = vld [vmem:[%s10759_s2 + $0xa58] sm:$0xf0]  ;;  %v6971_v2 = vld [vmem:[%s10759_s2 + $0xbd4] sm:$0xf]  ;;  %v6000_v34 = vld [vmem:[%s10759_s2 + $0xc28] sm:$0xf0] }
 0x15d   :  { %3038 = vmatpush.bf16.msra.mxu2 %v5555_v55  ;;  %v6939_v55 = vld [vmem:[%s10759_s2 + $0xad4] sm:$0xf]  ;;  %v2810_v37 = vpop.f32.mrf.mxu0  ;;  %v5960_v3 = vld [vmem:[%s10759_s2 + $0xbd8] sm:$0xf0] }
 0x15e   :  { %3051 = vmatpush.bf16.msra.mxu3 %v5619_v19  ;;  %v5896_v19 = vld [vmem:[%s10759_s2 + $0xb58] sm:$0xf0]  ;;  %v5835_v51 = vor.u32 %v6939_v55, %v5832_v16  ;;  %v6969_v16 = vld [vmem:[%s10759_s2 + $0xbc4] sm:$0xf]  ;;  %v5952_v37 = vld [vmem:[%s10759_s2 + $0xbc8] sm:$0xf0] }
 0x15f   :  { %3061 = vmatpush.bf16.msrb.mxu0 %v5707_v17  ;;  %v5675_v17 = vor.u32 %v6899_v6, %v5672_v12  ;;  %v5963_v12 = vor.u32 %v6971_v2, %v5960_v3  ;;  %v5864_v55 = vld [vmem:[%s10759_s2 + $0xb18] sm:$0xf0]  ;;  %v5955_v30 = vor.u32 %v6969_v16, %v5952_v37  ;;  %v6040_v16 = vld [vmem:[%s10762_s5 + $0x30] sm:$0xf] }
 0x160   :  { %3026 = vmatpush.bf16.msra.mxu1 %v5483_v52  ;;  %v6953_v52 = vld [vmem:[%s10759_s2 + $0xb44] sm:$0xf] }
 0x161   :  { %3039 = vmatpush.bf16.msra.mxu2 %v5547_v31  ;;  %v7137_v31 = vld [vmem:[%s10760_s3] sm:$0x3]  ;;  %v5891_v45 = vor.u32 %v6953_v52, %v5888_v21  ;;  %v5856_v52 = vld [vmem:[%s10759_s2 + $0xb08] sm:$0xf0]  ;;  %v5944_v21 = vld [vmem:[%s10759_s2 + $0xbb8] sm:$0xf0] }
 0x162   :  { %3052 = vmatpush.bf16.msra.mxu3 %v5611_v42  ;;  %v457_v27 = vperm.slane %v7137_v31, 1  ;;  %v5976_v42 = vld [vmem:[%s10759_s2 + $0xbf8] sm:$0xf0]  ;;  %s10779_s3 = sld [smem:[#allocation13_spill]] }
 0x163   :  { %3062 = vmatpush.bf16.msrb.mxu0 %v5699_v38  ;;  %v5979_v46 = vor.u32 %v6975_v36, %v5976_v42  ;;  %v6072_v36 = vld [vmem:[%s10762_s5 + $0x70] sm:$0xf]  ;;  %v7032_v42 = vld [vmem:[%s10762_s5 + $0x74] sm:$0xf0] }
 0x164   :  { %3027 = vmatpush.bf16.msra.mxu1 %v5475_v56  ;;  %v2821_v39 = vpop.f32.mrf.mxu1  ;;  %v5755_v56 = vor.u32 %v6919_v43, %v5752_v44  ;;  %v5859_v43 = vor.u32 %v6945_v54, %v5856_v52  ;;  %v7027_v54 = vld [vmem:[%s10762_s5 + $0x54] sm:$0xf]  ;;  %v6058_v52 = vld [vmem:[%s10762_s5 + $0x58] sm:$0xf0] }
 0x165   :  { %3040 = vmatpush.bf16.msra.mxu2 %v5539_v58  ;;  %v2822_v49 = vadd.f32 %v2821_v39, %v457_v27  ;;  %v5819_v58 = vor.u32 %v6935_v47, %v5816_v48  ;;  %v6967_v27 = vld [vmem:[%s10759_s2 + $0xbb4] sm:$0xf]  ;;  %v6008_v39 = vld [vmem:[%s10759_s2 + $0xc38] sm:$0xf0]  ;;  %v6965_v47 = vld [vmem:[%s10759_s2 + $0xba4] sm:$0xf] }
 0x166   :  { %3053 = vmatpush.bf16.msra.mxu3 %v5603_v23  ;;  %v5947_v44 = vor.u32 %v6967_v27, %v5944_v21  ;;  %v5936_v48 = vld [vmem:[%s10759_s2 + $0xba8] sm:$0xf0] }
 0x167   :  { %3063 = vmatpush.bf16.msrb.mxu0 %v5691_v60  ;;  %3028 = vmatmul.bf16.vlgmr.msra.gmra.mxu1 %v8390_v9  ;;  %v6955_v9 = vld [vmem:[%s10759_s2 + $0xb54] sm:$0xf]  ;;  %v5883_v60 = vor.u32 %v6951_v62, %v5880_v50  ;;  %v6064_v62 = vld [vmem:[%s10762_s5 + $0x60] sm:$0xf]  ;;  %v6981_v50 = vld [vmem:[%s10759_s2 + $0xc24] sm:$0xf] }
 0x168   :  { %3072 = vmatpush.bf16.msrb.mxu1 %v5787_v57  ;;  %3041 = vmatmul.bf16.vlgmr.msra.gmra.mxu2 %v8418_v32  ;;  %v5664_v32 = vld [vmem:[%s10759_s2 + $0x988] sm:$0xf0]  ;;  %v5899_v28 = vor.u32 %v6955_v9, %v5896_v19 }
 0x169   :  { %3085 = vmatpush.bf16.msrb.mxu2 %v5851_v14  ;;  %3054 = vmatmul.bf16.vlgmr.msra.gmra.mxu3 %v8401_v22  ;;  %v5771_v22 = vor.u32 %v6923_v7, %v5768_v8  ;;  %v5667_v38 = vor.u32 %v6897_v15, %v5664_v32  ;;  %v5808_v57 = vld [vmem:[%s10759_s2 + $0xaa8] sm:$0xf0]  ;;  %v6949_v14 = vld [vmem:[%s10759_s2 + $0xb24] sm:$0xf]  ;;  %v6931_v7 = vld [vmem:[%s10759_s2 + $0xa94] sm:$0xf] }
 0x16a   :  { %3098 = vmatpush.bf16.msrb.mxu3 %v5915_v1  ;;  %v5872_v1 = vld [vmem:[%s10759_s2 + $0xb28] sm:$0xf0]  ;;  %v6947_v8 = vld [vmem:[%s10759_s2 + $0xb14] sm:$0xf]  ;;  %v6913_v15 = vld [vmem:[%s10759_s2 + $0xa04] sm:$0xf] }
 0x16b   :  { %3064 = vmatpush.bf16.msrb.mxu0 %v5683_v10  ;;  %v2834_v23 = vpop.f32.mrf.mxu2  ;;  %v5747_v10 = vor.u32 %v6917_v35, %v5744_v59  ;;  %v5875_v6 = vor.u32 %v6949_v14, %v5872_v1  ;;  %v5728_v32 = vld [vmem:[%s10759_s2 + $0xa08] sm:$0xf0]  ;;  %v5867_v25 = vor.u32 %v6947_v8, %v5864_v55  ;;  %v6003_v35 = vor.u32 %v6981_v50, %v6000_v34  ;;  %v6963_v59 = vld [vmem:[%s10759_s2 + $0xb94] sm:$0xf]  ;;  %v3822_v34 = vld [vmem:[%s10779_s3] sm:$0x3] }
 0x16c   :  { %3073 = vmatpush.bf16.msrb.mxu1 %v5779_v11  ;;  %v2835_v0 = vadd.f32 %v2834_v23, %v2822_v49  ;;  %v2847_v13 = vpop.f32.mrf.mxu3  ;;  %v2823_v5 = vpop.f32.mrf.mxu1  ;;  %v5811_v11 = vor.u32 %v6933_v61, %v5808_v57  ;;  %v7030_v49 = vld [vmem:[%s10762_s5 + $0x64] sm:$0xf0]  ;;  %v5928_v23 = vld [vmem:[%s10759_s2 + $0xb98] sm:$0xf0]  ;;  %v7028_v57 = vld [vmem:[%s10762_s5 + $0x54] sm:$0xf0] }
 0x16d   :  { %3086 = vmatpush.bf16.msrb.mxu2 %v5843_v18  ;;  %v5736_v18 = vld [vmem:[%s10759_s2 + $0xa18] sm:$0xf0]  ;;  %v7139_v61 = vld.sshfl [vmem:[#allocation1 + $0x28] sm:$0xff pattern:$0x73625140]  ;;  %v5931_v1 = vor.u32 %v6963_v59, %v5928_v23  ;;  %v9933_v23 = vpack.c.bf16 %v9619_v63, %v9619_v63 }
 0x16e   :  { %3099 = vmatpush.bf16.msrb.mxu3 %v5907_v24  ;;  %v2848_v4 = vadd.f32 %v2847_v13, %v2835_v0  ;;  %v5800_v24 = vld [vmem:[%s10759_s2 + $0xa98] sm:$0xf0]  ;;  %v6979_v14 = vld [vmem:[%s10759_s2 + $0xc14] sm:$0xf]  ;;  %v5920_v5 = vld [vmem:[%s10759_s2 + $0xb88] sm:$0xf0] }
 0x16f   :  { %3065 = vmatpush.bf16.msrb.mxu0 %v5675_v17  ;;  %v5803_v17 = vor.u32 %v6931_v7, %v5800_v24  ;;  %v5992_v0 = vld [vmem:[%s10759_s2 + $0xc18] sm:$0xf0]  ;;  %v7140_v13 = vld.sshfl [vmem:[#allocation1 + $0x30] sm:$0xff pattern:$0x73625140] }
 0x170   :  { %3074 = vmatpush.bf16.msrb.mxu1 %v5771_v22  ;;  %v6929_v22 = vld [vmem:[%s10759_s2 + $0xa84] sm:$0xf]  ;;  %v5995_v3 = vor.u32 %v6979_v14, %v5992_v0  ;;  %v6998_v14 = vld [vmem:[%s10761_s4 + $0x64] sm:$0xf0] }
 0x171   :  { %3087 = vmatpush.bf16.msrb.mxu2 %v5835_v51 }
 0x172   :  { %3100 = vmatpush.bf16.msrb.mxu3 %v5899_v28  ;;  %v5792_v28 = vld [vmem:[%s10759_s2 + $0xa88] sm:$0xf0] }
 0x173   :  { %3066 = vmatpush.bf16.msrb.mxu0 %v5667_v38  ;;  %v2860_v9 = vpop.f32.mrf.mxu0  ;;  %v2836_v20 = vpop.f32.mrf.mxu2  ;;  %v6983_v38 = vld [vmem:[%s10759_s2 + $0xc34] sm:$0xf] }
 0x174   :  { %3075 = vmatpush.bf16.msrb.mxu1 %v5763_v40  ;;  %v9782_v51 = vadd.f32 %v2860_v9, %v2848_v4  ;;  %v2849_v31 = vpop.f32.mrf.mxu3  ;;  %v5731_v40 = vor.u32 %v6913_v15, %v5728_v32  ;;  %v6961_v4 = vld [vmem:[%s10759_s2 + $0xb84] sm:$0xf]  ;;  %v6066_v15 = vld [vmem:[%s10762_s5 + $0x68] sm:$0xf0] }
 0x175   :  { %3088 = vmatpush.bf16.msrb.mxu2 %v5827_v41  ;;  %v5795_v41 = vor.u32 %v6929_v22, %v5792_v28  ;;  %v5923_v7 = vor.u32 %v6961_v4, %v5920_v5  ;;  %v7141_v31 = vld.sshfl [vmem:[#allocation1 + $0x38] sm:$0xff pattern:$0x73625140]  ;;  %v6184_v5 = vld [vmem:[%s10761_s4 + $0x50] sm:$0xf] }
 0x176   :  { %3101 = vmatpush.bf16.msrb.mxu3 %v5891_v45  ;;  %3067 = vmatmul.bf16.vlgmr.msrb.gmra.mxu0 %v8420_v33  ;;  %v6915_v33 = vld [vmem:[%s10759_s2 + $0xa14] sm:$0xf]  ;;  %v6073_v45 = vor.u32 %v7032_v42, %v6072_v36  ;;  %v6061_v42 = vor.u32 %v7027_v54, %v6058_v52  ;;  %v6026_v4 = vld [vmem:[%s10762_s5 + $0x18] sm:$0xf0] }
 0x177   :  { %3111 = vmatpush.bf16.msra.mxu0 %v5979_v46  ;;  %v5739_v19 = vor.u32 %v6915_v33, %v5736_v18  ;;  %v6011_v46 = vor.u32 %v6983_v38, %v6008_v39  ;;  %v7031_v33 = vld [vmem:[%s10762_s5 + $0x74] sm:$0xf]  ;;  %v6074_v18 = vld [vmem:[%s10762_s5 + $0x78] sm:$0xf0]  ;;  %v6024_v38 = vld [vmem:[%s10762_s5 + $0x10] sm:$0xf] }
 0x178   :  { %3076 = vmatpush.bf16.msrb.mxu1 %v5755_v56  ;;  %v5939_v56 = vor.u32 %v6965_v47, %v5936_v48  ;;  %v6077_v55 = vor.u32 %v7031_v33, %v6074_v18  ;;  %v7020_v39 = vld [vmem:[%s10762_s5 + $0x14] sm:$0xf0]  ;;  %v7018_v47 = vld [vmem:[%s10762_s5 + $0x4] sm:$0xf0]  ;;  %v7023_v48 = vld [vmem:[%s10762_s5 + $0x34] sm:$0xf] }
 0x179   :  { %3089 = vmatpush.bf16.msrb.mxu2 %v5819_v58  ;;  %v6065_v58 = vor.u32 %v7030_v49, %v6064_v62  ;;  %v6042_v49 = vld [vmem:[%s10762_s5 + $0x38] sm:$0xf0]  ;;  %v7017_v18 = vld [vmem:[%s10762_s5 + $0x4] sm:$0xf] }
 0x17a   :  { %3102 = vmatpush.bf16.msrb.mxu3 %v5883_v60  ;;  %v6056_v60 = vld [vmem:[%s10762_s5 + $0x50] sm:$0xf]  ;;  %v6045_v59 = vor.u32 %v7023_v48, %v6042_v49  ;;  %v6186_v54 = vld [vmem:[%s10761_s4 + $0x58] sm:$0xf0]  ;;  %v6986_v48 = vld [vmem:[%s10761_s4 + $0x4] sm:$0xf0] }
 0x17b   :  { %3112 = vmatpush.bf16.msra.mxu0 %v5971_v26  ;;  %v2862_v53 = vpop.f32.mrf.mxu0  ;;  %v7138_v26 = vld.sshfl [vmem:[#allocation1 + $0x20] sm:$0xff pattern:$0x73625140]  ;;  %v6057_v2 = vor.u32 %v7028_v57, %v6056_v60  ;;  %v6170_v49 = vld [vmem:[%s10761_s4 + $0x38] sm:$0xf0] }
 0x17c   :  { %3077 = vmatpush.bf16.msrb.mxu1 %v5747_v10  ;;  %v6048_v10 = vld [vmem:[%s10762_s5 + $0x40] sm:$0xf]  ;;  %v6200_v53 = vld [vmem:[%s10761_s4 + $0x70] sm:$0xf] }
 0x17d   :  { %3090 = vmatpush.bf16.msrb.mxu2 %v5811_v11  ;;  %v7026_v11 = vld [vmem:[%s10762_s5 + $0x44] sm:$0xf0]  ;;  %v6192_v57 = vld [vmem:[%s10761_s4 + $0x60] sm:$0xf] }
 0x17e   :  { %3103 = vmatpush.bf16.msrb.mxu3 %v5875_v6  ;;  %v6977_v6 = vld [vmem:[%s10759_s2 + $0xc04] sm:$0xf]  ;;  %v6049_v8 = vor.u32 %v7026_v11, %v6048_v10  ;;  %v6996_v10 = vld [vmem:[%s10761_s4 + $0x54] sm:$0xf0] }
 0x17f   :  { %3113 = vmatpush.bf16.msra.mxu0 %v5963_v12  ;;  %v5984_v12 = vld [vmem:[%s10759_s2 + $0xc08] sm:$0xf0]  ;;  %v6185_v33 = vor.u32 %v6996_v10, %v6184_v5  ;;  %v7045_v5 = vld [vmem:[%s10762_s5 + $0xe4] sm:$0xf] }
 0x180   :  { %3078 = vmatpush.bf16.msrb.mxu1 %v5739_v19  ;;  %v5987_v9 = vor.u32 %v6977_v6, %v5984_v12  ;;  %v7024_v19 = vld [vmem:[%s10762_s5 + $0x34] sm:$0xf0]  ;;  %v6018_v6 = vld [vmem:[%s10762_s5 + $0x8] sm:$0xf0]  ;;  %v6176_v12 = vld [vmem:[%s10761_s4 + $0x40] sm:$0xf] }
 0x181   :  { %3091 = vmatpush.bf16.msrb.mxu2 %v5803_v17  ;;  %v7029_v17 = vld [vmem:[%s10762_s5 + $0x64] sm:$0xf]  ;;  %v6041_v32 = vor.u32 %v7024_v19, %v6040_v16  ;;  %v6021_v16 = vor.u32 %v7017_v18, %v6018_v6  ;;  %v6130_v10 = vld [vmem:[%s10762_s5 + $0xe8] sm:$0xf0]  ;;  %v6136_v6 = vld [vmem:[%s10762_s5 + $0xf0] sm:$0xf] }
 0x182   :  { %3104 = vmatpush.bf16.msrb.mxu3 %v5867_v25  ;;  %v6069_v22 = vor.u32 %v7029_v17, %v6066_v15  ;;  %v6168_v17 = vld [vmem:[%s10761_s4 + $0x30] sm:$0xf]  ;;  %v6992_v15 = vld [vmem:[%s10761_s4 + $0x34] sm:$0xf0] }
 0x183   :  { %3114 = vmatpush.bf16.msra.mxu0 %v5955_v30  ;;  %v7022_v30 = vld [vmem:[%s10762_s5 + $0x24] sm:$0xf0] }
 0x184   :  { %3079 = vmatpush.bf16.msrb.mxu1 %v5731_v40  ;;  %v2873_v24 = vpop.f32.mrf.mxu1  ;;  %v7025_v40 = vld [vmem:[%s10762_s5 + $0x44] sm:$0xf] }
 0x185   :  { %3092 = vmatpush.bf16.msrb.mxu2 %v5795_v41  ;;  %v2874_v37 = vadd.f32 %v2873_v24, %v9782_v51  ;;  %v6032_v51 = vld [vmem:[%s10762_s5 + $0x20] sm:$0xf]  ;;  %v6050_v41 = vld [vmem:[%s10762_s5 + $0x48] sm:$0xf0]  ;;  %v6999_v24 = vld [vmem:[%s10761_s4 + $0x74] sm:$0xf] }
 0x186   :  { %3105 = vmatpush.bf16.msrb.mxu3 %v5859_v43  ;;  %v6033_v36 = vor.u32 %v7022_v30, %v6032_v51  ;;  %v6990_v30 = vld [vmem:[%s10761_s4 + $0x24] sm:$0xf0] }
 0x187   :  { %3115 = vmatpush.bf16.msra.mxu0 %v5947_v44  ;;  %3080 = vmatmul.bf16.vlgmr.msrb.gmra.mxu1 %v7138_v26  ;;  %v7021_v26 = vld [vmem:[%s10762_s5 + $0x24] sm:$0xf] }
 0x188   :  { %3128 = vmatpush.bf16.msra.mxu1 %v6011_v46  ;;  %3093 = vmatmul.bf16.vlgmr.msrb.gmra.mxu2 %v7139_v61  ;;  %v6053_v46 = vor.u32 %v7025_v40, %v6050_v41  ;;  %v6034_v61 = vld [vmem:[%s10762_s5 + $0x28] sm:$0xf0]  ;;  %v6988_v40 = vld [vmem:[%s10761_s4 + $0x14] sm:$0xf0]  ;;  %v6993_v41 = vld [vmem:[%s10761_s4 + $0x44] sm:$0xf] }
 0x189   :  { %3384 = vmatpush.bf16.msra.mxu2 %v6073_v45  ;;  %3106 = vmatmul.bf16.vlgmr.msrb.gmra.mxu3 %v7140_v13  ;;  %v6025_v45 = vor.u32 %v7020_v39, %v6024_v38  ;;  %v6037_v13 = vor.u32 %v7021_v26, %v6034_v61  ;;  %v6152_v38 = vld [vmem:[%s10761_s4 + $0x10] sm:$0xf]  ;;  %v6987_v26 = vld [vmem:[%s10761_s4 + $0x14] sm:$0xf]  ;;  %v6154_v61 = vld [vmem:[%s10761_s4 + $0x18] sm:$0xf0] }
 0x18b   :  { %3116 = vmatpush.bf16.msra.mxu0 %v5939_v56  ;;  %v2886_v20 = vpop.f32.mrf.mxu2  ;;  %v7000_v56 = vld [vmem:[%s10761_s4 + $0x74] sm:$0xf0] }
 0x18c   :  { %3129 = vmatpush.bf16.msra.mxu1 %v6003_v35  ;;  %v2887_v25 = vadd.f32 %v2886_v20, %v2874_v37  ;;  %v2899_v28 = vpop.f32.mrf.mxu3  ;;  %v2875_v21 = vpop.f32.mrf.mxu1  ;;  %v6201_v60 = vor.u32 %v7000_v56, %v6200_v53  ;;  %v6169_v20 = vor.u32 %v6992_v15, %v6168_v17  ;;  %v6114_v15 = vld [vmem:[%s10762_s5 + $0xc8] sm:$0xf0] }
 0x18d   :  { %3385 = vmatpush.bf16.msra.mxu2 %v6065_v58  ;;  %v7244_v58 = vmov 0  }
 0x18e   :  { %v2900_v27 = vadd.f32 %v2899_v28, %v2887_v25  ;;  %7135 = vset.pattern.permute.xlu0 %v7244_v58  ;;  %v6160_v25 = vld [vmem:[%s10761_s4 + $0x20] sm:$0xf]  ;;  %v6995_v28 = vld [vmem:[%s10761_s4 + $0x54] sm:$0xf]  ;;  %v6989_v58 = vld [vmem:[%s10761_s4 + $0x24] sm:$0xf] }
 0x18f   :  { %3117 = vmatpush.bf16.msra.mxu0 %v5931_v1  ;;  %3824 = vperm.xlu0 %7135, %v3822_v34   ;;  %v3220_v1 = vrot.slane %v9933_v23, 1 }
 0x190   :  { %3130 = vmatpush.bf16.msra.mxu1 %v5995_v3  ;;  %v7019_v3 = vld [vmem:[%s10762_s5 + $0x14] sm:$0xf] }
 0x191   :  { %3386 = vmatpush.bf16.msra.mxu2 %v6057_v2  ;;  %v6193_v2 = vor.u32 %v6998_v14, %v6192_v57  ;;  %v6029_v11 = vor.u32 %v7019_v3, %v6026_v4  ;;  %v6157_v57 = vor.u32 %v6987_v26, %v6154_v61  ;;  %v6985_v14 = vld [vmem:[%s10761_s4 + $0x4] sm:$0xf] }
 0x193   :  { %3118 = vmatpush.bf16.msra.mxu0 %v5923_v7  ;;  %v2912_v43 = vpop.f32.mrf.mxu0  ;;  %v2888_v62 = vpop.f32.mrf.mxu2  ;;  %v6994_v7 = vld [vmem:[%s10761_s4 + $0x44] sm:$0xf0] }
 0x194   :  { %3131 = vmatpush.bf16.msra.mxu1 %v5987_v9  ;;  %v2913_v44 = vadd.f32 %v2912_v43, %v2900_v27  ;;  %v2901_v50 = vpop.f32.mrf.mxu3  ;;  %v6177_v9 = vor.u32 %v6994_v7, %v6176_v12  ;;  %v6178_v43 = vld [vmem:[%s10761_s4 + $0x48] sm:$0xf0]  ;;  %v6991_v62 = vld [vmem:[%s10761_s4 + $0x34] sm:$0xf]  ;;  %v7048_v12 = vld [vmem:[%s10762_s5 + $0xf4] sm:$0xf0] }
 0x195   :  { %3387 = vmatpush.bf16.msra.mxu2 %v6049_v8  ;;  %v6202_v8 = vld [vmem:[%s10761_s4 + $0x78] sm:$0xf0]  ;;  %v6173_v56 = vor.u32 %v6991_v62, %v6170_v49  ;;  %v7043_v7 = vld [vmem:[%s10762_s5 + $0xd4] sm:$0xf]  ;;  %v7038_v62 = vld [vmem:[%s10762_s5 + $0xa4] sm:$0xf0] }
 0x196   :  { %3119 = vmatmul.bf16.vlgmr.msra.gmra.mxu0 %v7141_v31  ;;  %v6205_v19 = vor.u32 %v6999_v24, %v6202_v8  ;;  %v6137_v8 = vor.u32 %v7048_v12, %v6136_v6  ;;  %v7033_v49 = vld [vmem:[%s10762_s5 + $0x84] sm:$0xf] }
 0x197   :  { %3410 = vmatpush.bf16.msrb.mxu0 %v6077_v55  ;;  %6013 = vmatmul.msk.bf16.vlgmr.msra.gmra.mxu1 %vm2484_vm0, %v8729_v29  ;;  %v6016_v29 = vld [vmem:[%s10762_s5] sm:$0xf] }
 0x198   :  { %v6017_v35 = vor.u32 %v7018_v47, %v6016_v29  ;;  %v6144_v29 = vld [vmem:[%s10761_s4] sm:$0xf]  ;;  %3397 = vmatpush.bf16.msra.mxu3 %v6137_v8 }
 0x199   :  { %3388 = vmatpush.bf16.msra.mxu2 %v6041_v32  ;;  %v6997_v32 = vld [vmem:[%s10761_s4 + $0x64] sm:$0xf]  ;;  %v6145_v53 = vor.u32 %v6986_v48, %v6144_v29  ;;  %v6096_v48 = vld [vmem:[%s10762_s5 + $0xa0] sm:$0xf] }
 0x19b   :  { %3411 = vmatpush.bf16.msrb.mxu0 %v6069_v22  ;;  %v2914_v0 = vpop.f32.mrf.mxu0  ;;  %v6194_v22 = vld [vmem:[%s10761_s4 + $0x68] sm:$0xf0] }
 0x19c   :  { %v6197_v51 = vor.u32 %v6997_v32, %v6194_v22  ;;  %v6146_v0 = vld [vmem:[%s10761_s4 + $0x8] sm:$0xf0]  ;;  %v6120_v32 = vld [vmem:[%s10762_s5 + $0xd0] sm:$0xf]  ;;  %v7044_v22 = vld [vmem:[%s10762_s5 + $0xd4] sm:$0xf0] }
 0x19d   :  { %3389 = vmatpush.bf16.msra.mxu2 %v6033_v36  ;;  %v6161_v36 = vor.u32 %v6990_v30, %v6160_v25  ;;  %v7039_v25 = vld [vmem:[%s10762_s5 + $0xb4] sm:$0xf]  ;;  %v6106_v30 = vld [vmem:[%s10762_s5 + $0xb8] sm:$0xf0] }
 0x19f   :  { %3412 = vmatpush.bf16.msrb.mxu0 %v6061_v42  ;;  %v6189_v42 = vor.u32 %v6995_v28, %v6186_v54  ;;  %v6121_v28 = vor.u32 %v7044_v22, %v6120_v32  ;;  %v6248_v32 = vld [vmem:[%s10761_s4 + $0xd0] sm:$0xf]  ;;  %v7012_v22 = vld [vmem:[%s10761_s4 + $0xd4] sm:$0xf0] }
 0x1a1   :  { %3390 = vmatpush.bf16.msra.mxu2 %v6025_v45  ;;  %v6153_v45 = vor.u32 %v6988_v40, %v6152_v38  ;;  %v6104_v40 = vld [vmem:[%s10762_s5 + $0xb0] sm:$0xf] }
 0x1a3   :  { %3413 = vmatpush.bf16.msrb.mxu0 %v6053_v46  ;;  %v6181_v46 = vor.u32 %v6993_v41, %v6178_v43  ;;  %v7040_v41 = vld [vmem:[%s10762_s5 + $0xb4] sm:$0xf0]  ;;  %v7035_v43 = vld [vmem:[%s10762_s5 + $0x94] sm:$0xf] }
 0x1a4   :  { %v2925_v55 = vpop.f32.mrf.mxu1 }
 0x1a5   :  { %3391 = vmatpush.bf16.msra.mxu2 %v6017_v35  ;;  %v2926_v37 = vadd.f32 %v2925_v55, %v2913_v44  ;;  %v6162_v35 = vld [vmem:[%s10761_s4 + $0x28] sm:$0xf0]  ;;  %v6122_v55 = vld [vmem:[%s10762_s5 + $0xd8] sm:$0xf0] }
 0x1a7   :  { %3414 = vmatpush.bf16.msrb.mxu0 %v6045_v59  ;;  %v6165_v59 = vor.u32 %v6989_v58, %v6162_v35 }
 0x1a8   :  { %3392 = vmatmul.bf16.vlgmr.msra.gmra.mxu2 %v3220_v1 }
 0x1a9   :  { %3596 = vmatpush.bf16.msrb.mxu2 %v6201_v60 }
 0x1ab   :  { %3415 = vmatpush.bf16.msrb.mxu0 %v6037_v13  ;;  %v2938_v52 = vpop.f32.mrf.mxu2  ;;  %v6149_v13 = vor.u32 %v6985_v14, %v6146_v0  ;;  %v6258_v14 = vld [vmem:[%s10761_s4 + $0xe8] sm:$0xf0] }
 0x1ac   :  { %v2951_v31 = vpop.f32.mrf.mxu3  ;;  %v2939_v27 = vadd.f32 %v2938_v52, %v2926_v37  ;;  %v2927_v21 = vpop.f32.mrf.mxu1  ;;  %v6128_v37 = vld [vmem:[%s10762_s5 + $0xe0] sm:$0xf] }
 0x1ad   :  { %3597 = vmatpush.bf16.msrb.mxu2 %v6193_v2  ;;  %v6138_v2 = vld [vmem:[%s10762_s5 + $0xf8] sm:$0xf0]  ;;  %v7042_v21 = vld [vmem:[%s10762_s5 + $0xc4] sm:$0xf0] }
 0x1ae   :  { %v2952_v39 = vadd.f32 %v2951_v31, %v2939_v27  ;;  %v6109_v31 = vor.u32 %v7039_v25, %v6106_v30  ;;  %v6112_v27 = vld [vmem:[%s10762_s5 + $0xc0] sm:$0xf] }
 0x1af   :  { %3416 = vmatpush.bf16.msrb.mxu0 %v6029_v11  ;;  %v6133_v11 = vor.u32 %v7045_v5, %v6130_v10  ;;  %v6113_v38 = vor.u32 %v7042_v21, %v6112_v27  ;;  %v7016_v5 = vld [vmem:[%s10761_s4 + $0xf4] sm:$0xf0]  ;;  %v7011_v10 = vld [vmem:[%s10761_s4 + $0xd4] sm:$0xf]  ;;  %v6240_v21 = vld [vmem:[%s10761_s4 + $0xc0] sm:$0xf] }
 0x1b1   :  { %3598 = vmatpush.bf16.msrb.mxu2 %v6185_v33 }
 0x1b3   :  { %3417 = vmatpush.bf16.msrb.mxu0 %v6021_v16  ;;  %v2964_v44 = vpop.f32.mrf.mxu0  ;;  %v2940_v50 = vpop.f32.mrf.mxu2  ;;  %v6125_v16 = vor.u32 %v7043_v7, %v6122_v55  ;;  %v6250_v7 = vld [vmem:[%s10761_s4 + $0xd8] sm:$0xf0]  ;;  %v6256_v55 = vld [vmem:[%s10761_s4 + $0xe0] sm:$0xf] }
 0x1b4   :  { %v10017_v47 = vadd.f32 %v2964_v44, %v2952_v39  ;;  %v2953_v34 = vpop.f32.mrf.mxu3  ;;  %v6090_v44 = vld [vmem:[%s10762_s5 + $0x98] sm:$0xf0]  ;;  %v6097_v50 = vor.u32 %v7038_v62, %v6096_v48  ;;  %v6253_v8 = vor.u32 %v7011_v10, %v6250_v7  ;;  %v7001_v62 = vld [vmem:[%s10761_s4 + $0x84] sm:$0xf] }
 0x1b5   :  { %3599 = vmatpush.bf16.msrb.mxu2 %v6177_v9  ;;  %v7046_v9 = vld [vmem:[%s10762_s5 + $0xe4] sm:$0xf0]  ;;  %v6093_v29 = vor.u32 %v7035_v43, %v6090_v44  ;;  %v6082_v34 = vld [vmem:[%s10762_s5 + $0x88] sm:$0xf0]  ;;  %v7003_v43 = vld [vmem:[%s10761_s4 + $0x94] sm:$0xf] }
 0x1b6   :  { %3418 = vmatmul.bf16.vlgmr.msrb.gmra.mxu0 %v3220_v1  ;;  %v7047_v1 = vld [vmem:[%s10762_s5 + $0xf4] sm:$0xf]  ;;  %v6129_v17 = vor.u32 %v7046_v9, %v6128_v37  ;;  %v6085_v58 = vor.u32 %v7033_v49, %v6082_v34  ;;  %v7009_v37 = vld [vmem:[%s10761_s4 + $0xc4] sm:$0xf]  ;;  %v6210_v49 = vld [vmem:[%s10761_s4 + $0x88] sm:$0xf0] }
 0x1b7   :  { %3622 = vmatpush.bf16.msra.mxu0 %v6205_v19  ;;  %v6141_v4 = vor.u32 %v7047_v1, %v6138_v2  ;;  %v7041_v19 = vld [vmem:[%s10762_s5 + $0xc4] sm:$0xf]  ;;  %v7034_v1 = vld [vmem:[%s10762_s5 + $0x84] sm:$0xf0] }
 0x1b8   :  { %3398 = vmatpush.bf16.msra.mxu3 %v6129_v17 }
 0x1b9   :  { %3600 = vmatpush.bf16.msrb.mxu2 %v6169_v20  ;;  %3423 = vmatpush.bf16.msrb.mxu1 %v6141_v4  ;;  %v6264_v4 = vld [vmem:[%s10761_s4 + $0xf0] sm:$0xf] }
 0x1ba   :  { %v6265_v12 = vor.u32 %v7016_v5, %v6264_v4 }
 0x1bb   :  { %3623 = vmatpush.bf16.msra.mxu0 %v6197_v51  ;;  %v2966_v60 = vpop.f32.mrf.mxu0  ;;  %v6117_v51 = vor.u32 %v7041_v19, %v6114_v15  ;;  %v6242_v19 = vld [vmem:[%s10761_s4 + $0xc8] sm:$0xf0] }
 0x1bc   :  { %3399 = vmatpush.bf16.msra.mxu3 %v6121_v28  ;;  %v7036_v60 = vld [vmem:[%s10762_s5 + $0x94] sm:$0xf0]  ;;  %v6245_v17 = vor.u32 %v7009_v37, %v6242_v19  ;;  %v6249_v28 = vor.u32 %v7012_v22, %v6248_v32 }
 0x1bd   :  { %3601 = vmatpush.bf16.msrb.mxu2 %v6161_v36  ;;  %3424 = vmatpush.bf16.msrb.mxu1 %v6133_v11  ;;  %v7037_v36 = vld [vmem:[%s10762_s5 + $0xa4] sm:$0xf] }
 0x1bf   :  { %3624 = vmatpush.bf16.msra.mxu0 %v6189_v42  ;;  %v6098_v42 = vld [vmem:[%s10762_s5 + $0xa8] sm:$0xf0] }
 0x1c0   :  { %v6101_v39 = vor.u32 %v7037_v36, %v6098_v42  ;;  %3400 = vmatpush.bf16.msra.mxu3 %v6113_v38  ;;  %v7010_v36 = vld [vmem:[%s10761_s4 + $0xc4] sm:$0xf0]  ;;  %v7005_v42 = vld [vmem:[%s10761_s4 + $0xa4] sm:$0xf] }
 0x1c1   :  { %3602 = vmatpush.bf16.msrb.mxu2 %v6153_v45  ;;  %3425 = vmatpush.bf16.msrb.mxu1 %v6125_v16  ;;  %v7014_v16 = vld [vmem:[%s10761_s4 + $0xe4] sm:$0xf0]  ;;  %v6241_v38 = vor.u32 %v7010_v36, %v6240_v21 }
 0x1c2   :  { %v6257_v9 = vor.u32 %v7014_v16, %v6256_v55  ;;  %v3862_v16 = vld [vmem:[%s10767_s10] sm:$0xf] }
 0x1c3   :  { %3625 = vmatpush.bf16.msra.mxu0 %v6181_v46  ;;  %v6105_v46 = vor.u32 %v7040_v41, %v6104_v40  ;;  %v6232_v40 = vld [vmem:[%s10761_s4 + $0xb0] sm:$0xf]  ;;  %v7008_v41 = vld [vmem:[%s10761_s4 + $0xb4] sm:$0xf0] }
 0x1c4   :  { %v10053_v3 = vpop.f32.mrf.mxu1  ;;  %v6233_v44 = vor.u32 %v7008_v41, %v6232_v40  ;;  %v6459_v40 = vld [vmem:[%s10766_s9 + $0xf0] sm:$0xf]  ;;  %v7096_v41 = vld [vmem:[%s10766_s9 + $0xf4] sm:$0xf0] }
 0x1c5   :  { %3603 = vmatpush.bf16.msrb.mxu2 %v6145_v53  ;;  %3426 = vmatpush.bf16.msrb.mxu1 %v6117_v51  ;;  %v7015_v53 = vld [vmem:[%s10761_s4 + $0xf4] sm:$0xf] }
 0x1c6   :  { %3401 = vmatpush.bf16.msra.mxu3 %v6105_v46  ;;  %v7007_v51 = vld [vmem:[%s10761_s4 + $0xb4] sm:$0xf]  ;;  %v7006_v46 = vld [vmem:[%s10761_s4 + $0xa4] sm:$0xf0] }
 0x1c7   :  { %3626 = vmatpush.bf16.msra.mxu0 %v6173_v56  ;;  %v6266_v56 = vld [vmem:[%s10761_s4 + $0xf8] sm:$0xf0] }
 0x1c8   :  { %3604 = vmatmul.bf16.vlgmr.msrb.gmra.mxu2 %v9933_v23  ;;  %v6269_v35 = vor.u32 %v7015_v53, %v6266_v56  ;;  %v6213_v53 = vor.u32 %v7001_v62, %v6210_v49  ;;  %v6363_v49 = vld [vmem:[%s10766_s9 + $0x30] sm:$0xf] }
 0x1c9   :  { %3427 = vmatpush.bf16.msrb.mxu1 %v6109_v31 }
 0x1ca   :  { %3402 = vmatpush.bf16.msra.mxu3 %v6097_v50 }
 0x1cb   :  { %3627 = vmatpush.bf16.msra.mxu0 %v6165_v59  ;;  %v10062_v33 = vpop.f32.mrf.mxu2  ;;  %v6088_v59 = vld [vmem:[%s10762_s5 + $0x90] sm:$0xf] }
 0x1cc   :  { %v10064_v18 = vpop.f32.mrf.mxu3  ;;  %v2979_v24 = vpop.f32.mrf.mxu1  ;;  %v6089_v61 = vor.u32 %v7036_v60, %v6088_v59 }
 0x1cd   :  { %3428 = vmatpush.bf16.msrb.mxu1 %v6101_v39 }
 0x1ce   :  { %3403 = vmatpush.bf16.msra.mxu3 %v6089_v61 }
 0x1cf   :  { %3628 = vmatpush.bf16.msra.mxu0 %v6157_v57  ;;  %v7013_v57 = vld [vmem:[%s10761_s4 + $0xe4] sm:$0xf] }
 0x1d0   :  { %v6261_v0 = vor.u32 %v7013_v57, %v6258_v14  ;;  %v7002_v57 = vld [vmem:[%s10761_s4 + $0x84] sm:$0xf0] }
 0x1d1   :  { %3429 = vmatpush.bf16.msrb.mxu1 %v6093_v29 }
 0x1d3   :  { %3629 = vmatpush.bf16.msra.mxu0 %v6149_v13  ;;  %v10096_v20 = vpop.f32.mrf.mxu0  ;;  %v2992_v54 = vpop.f32.mrf.mxu2  ;;  %v6080_v13 = vld [vmem:[%s10762_s5 + $0x80] sm:$0xf] }
 0x1d4   :  { %v3005_v52 = vpop.f32.mrf.mxu3  ;;  %v6081_v2 = vor.u32 %v7034_v1, %v6080_v13  ;;  %v6234_v54 = vld [vmem:[%s10761_s4 + $0xb8] sm:$0xf0] }
 0x1d5   :  { %3430 = vmatpush.bf16.msrb.mxu1 %v6085_v58  ;;  %v2978_v52 = vadd.f32 %v10053_v3, %v10017_v47  ;;  %v6237_v31 = vor.u32 %v7007_v51, %v6234_v54  ;;  %v6226_v47 = vld [vmem:[%s10761_s4 + $0xa8] sm:$0xf0] }
 0x1d6   :  { %3630 = vmatmul.bf16.vlgmr.msra.gmra.mxu0 %v9933_v23  ;;  %3404 = vmatpush.bf16.msra.mxu3 %v6081_v2  ;;  %v6229_v3 = vor.u32 %v7005_v42, %v6226_v47 }
 0x1d7   :  { %v2991_v27 = vadd.f32 %v10062_v33, %v2978_v52 }
 0x1d9   :  { %3635 = vmatpush.bf16.msra.mxu1 %v6269_v35  ;;  %v3004_v39 = vadd.f32 %v10064_v18, %v2991_v27  ;;  %v6224_v18 = vld [vmem:[%s10761_s4 + $0xa0] sm:$0xf]  ;;  %v7004_v35 = vld [vmem:[%s10761_s4 + $0x94] sm:$0xf0] }
 0x1da   :  { %3609 = vmatpush.bf16.msrb.mxu3 %v6265_v12  ;;  %v6225_v50 = vor.u32 %v7006_v46, %v6224_v18  ;;  %v7074_v18 = vld [vmem:[%s10766_s9 + $0x44] sm:$0xf0]  ;;  %v6460_v46 = vor.u32 %v7096_v41, %v6459_v40  ;;  %v7079_v40 = vld [vmem:[%s10766_s9 + $0x74] sm:$0xf]  ;;  %v6397_v41 = vld [vmem:[%s10766_s9 + $0x78] sm:$0xf0] }
 0x1db   :  { %v3018_v45 = vpop.f32.mrf.mxu0  ;;  %v3017_v29 = vadd.f32 %v10096_v20, %v3004_v39  ;;  %v6216_v20 = vld [vmem:[%s10761_s4 + $0x90] sm:$0xf]  ;;  %v7076_v39 = vld [vmem:[%s10766_s9 + $0x54] sm:$0xf0] }
 0x1dc   :  { %v6218_v45 = vld [vmem:[%s10761_s4 + $0x98] sm:$0xf0]  ;;  %v6217_v59 = vor.u32 %v7004_v35, %v6216_v20 }
 0x1dd   :  { %3636 = vmatpush.bf16.msra.mxu1 %v6261_v0  ;;  %v6221_v48 = vor.u32 %v7003_v43, %v6218_v45  ;;  %v6371_v45 = vld [vmem:[%s10766_s9 + $0x40] sm:$0xf] }
 0x1de   :  { %3610 = vmatpush.bf16.msrb.mxu3 %v6257_v9  ;;  %v6372_v62 = vor.u32 %v7074_v18, %v6371_v45  ;;  %v7058_v45 = vld [vmem:[%s10764_s7 + $0x48] sm:$0xff]  ;;  %v7077_v18 = vld [vmem:[%s10766_s9 + $0x64] sm:$0xf] }
 0x1e1   :  { %3637 = vmatpush.bf16.msra.mxu1 %v6253_v8 }
 0x1e2   :  { %3611 = vmatpush.bf16.msrb.mxu3 %v6249_v28  ;;  %v7245_v28 = vmov 0.0  }
 0x1e4   :  { %v10152_v26 = vpop.f32.mrf.mxu1 }
 0x1e5   :  { %3638 = vmatpush.bf16.msra.mxu1 %v6245_v17  ;;  %v3030_v34 = vadd.f32 %v10152_v26, %v3017_v29  ;;  %v6208_v26 = vld [vmem:[%s10761_s4 + $0x80] sm:$0xf] }
 0x1e6   :  { %3612 = vmatpush.bf16.msrb.mxu3 %v6241_v38  ;;  %v6209_v14 = vor.u32 %v7002_v57, %v6208_v26  ;;  %v6451_v29 = vld [vmem:[%s10766_s9 + $0xe0] sm:$0xf]  ;;  %v7090_v57 = vld [vmem:[%s10766_s9 + $0xc4] sm:$0xf0] }
 0x1e7   :  { %v6435_v26 = vld [vmem:[%s10766_s9 + $0xc0] sm:$0xf] }
 0x1e9   :  { %3639 = vmatpush.bf16.msra.mxu1 %v6237_v31  ;;  %v7078_v31 = vld [vmem:[%s10766_s9 + $0x64] sm:$0xf0] }
 0x1ea   :  { %3613 = vmatpush.bf16.msrb.mxu3 %v6233_v44 }
 0x1eb   :  { %v3042_v11 = vpop.f32.mrf.mxu2 }
 0x1ec   :  { %v3055_v6 = vpop.f32.mrf.mxu3  ;;  %v3031_v24 = vpop.f32.mrf.mxu1  ;;  %v3043_v56 = vadd.f32 %v3042_v11, %v3030_v34 }
 0x1ed   :  { %3640 = vmatpush.bf16.msra.mxu1 %v6229_v3  ;;  %v3820_v24 = vlaneseq }
 0x1ee   :  { %3614 = vmatpush.bf16.msrb.mxu3 %v6225_v50  ;;  %v3056_v60 = vadd.f32 %v3055_v6, %v3043_v56  ;;  %v7072_v50 = vld [vmem:[%s10766_s9 + $0x34] sm:$0xf0]  ;;  %v6443_v56 = vld [vmem:[%s10766_s9 + $0xd0] sm:$0xf] }
 0x1ef   :  { %v3821_v37 = vand.u32 127, %v3820_v24  ;;  %v6364_v35 = vor.u32 %v7072_v50, %v6363_v49  ;;  %v6339_v24 = vld [vmem:[%s10766_s9] sm:$0xf]  ;;  %v6461_v49 = vld [vmem:[%s10766_s9 + $0xf8] sm:$0xf0] }
 0x1f1   :  { %3641 = vmatpush.bf16.msra.mxu1 %v6221_v48  ;;  %v7094_v48 = vld [vmem:[%s10766_s9 + $0xe4] sm:$0xf0] }
 0x1f2   :  { %3615 = vmatpush.bf16.msrb.mxu3 %v6217_v59  ;;  %v6355_v59 = vld [vmem:[%s10766_s9 + $0x20] sm:$0xf] }
 0x1f3   :  { %v3068_v15 = vpop.f32.mrf.mxu0  ;;  %v3044_v25 = vpop.f32.mrf.mxu2 }
 0x1f4   :  { %v3057_v30 = vpop.f32.mrf.mxu3  ;;  %v3069_v61 = vadd.f32 %v3068_v15, %v3056_v60  ;;  %v6395_v25 = vld [vmem:[%s10766_s9 + $0x70] sm:$0xf]  ;;  %v7070_v60 = vld [vmem:[%s10766_s9 + $0x24] sm:$0xf0] }
 0x1f5   :  { %3642 = vmatpush.bf16.msra.mxu1 %v6213_v53  ;;  %v7080_v30 = vld [vmem:[%s10766_s9 + $0x74] sm:$0xf0]  ;;  %v6452_v53 = vor.u32 %v7094_v48, %v6451_v29  ;;  %v7057_v48 = vld [vmem:[%s10764_s7 + $0x40] sm:$0xff] }
 0x1f6   :  { %3616 = vmatpush.bf16.msrb.mxu3 %v6209_v14  ;;  %v6396_v52 = vor.u32 %v7080_v30, %v6395_v25  ;;  %v7056_v14 = vld [vmem:[%s10764_s7 + $0x38] sm:$0xff]  ;;  %v6411_v25 = vld [vmem:[%s10766_s9 + $0x90] sm:$0xf] }
 0x1f7   :  { %3792 = vmatpush.bf16.msra.mxu2 %v7056_v14  ;;  %v7084_v30 = vld [vmem:[%s10766_s9 + $0x94] sm:$0xf0]  ;;  %v6445_v14 = vld [vmem:[%s10766_s9 + $0xd8] sm:$0xf0] }
 0x1fb   :  { %v3070_v33 = vpop.f32.mrf.mxu0 }
 0x1fc   :  { %v6379_v33 = vld [vmem:[%s10766_s9 + $0x50] sm:$0xf] }
 0x1fd   :  { %v6380_v44 = vor.u32 %v7076_v39, %v6379_v33  ;;  %v7059_v33 = vld [vmem:[%s10764_s7 + $0x50] sm:$0xff]  ;;  %v7049_v39 = vld [vmem:[%s10764_s7] sm:$0xff] }
 0x201   :  { %v3825_v15 = vpop.permute.xlu0 %3824 }
 0x202   :  { %vm3826_vm2 = vcmp.eq.s32.totalorder %v3821_v37, %v3825_v15  ;;  %v7062_v37 = vld [vmem:[%s10764_s7 + $0x68] sm:$0xff] }
 0x203   :  { %v6334_v54 = vsel %vm3826_vm2, 1.0, %v7245_v28  ;;  %v7052_v28 = vld [vmem:[%s10764_s7 + $0x18] sm:$0xff] }
 0x204   :  { %v3081_v58 = vpop.f32.mrf.mxu1  ;;  %v10278_v47 = vpack.c.bf16 %v6334_v54, %v6334_v54  ;;  %v6412_v54 = vor.u32 %v7084_v30, %v6411_v25  ;;  %v7110_v30 = vld [vmem:[%s10769_s12 + $0x64] sm:$0xf0] }
 0x205   :  { %v3082_v0 = vadd.f32 %v3081_v58, %v3069_v61  ;;  %v7092_v58 = vld [vmem:[%s10766_s9 + $0xd4] sm:$0xf0] }
 0x206   :  { %v6444_v61 = vor.u32 %v7092_v58, %v6443_v56  ;;  %v6381_v56 = vld [vmem:[%s10766_s9 + $0x58] sm:$0xf0] }
 0x20b   :  { %v3094_v13 = vpop.f32.mrf.mxu2 }
 0x20c   :  { %v3107_v1 = vpop.f32.mrf.mxu3  ;;  %v3095_v2 = vadd.f32 %v3094_v13, %v3082_v0  ;;  %v3083_v4 = vpop.f32.mrf.mxu1  ;;  %v7064_v0 = vld [vmem:[%s10764_s7 + $0x78] sm:$0xff]  ;;  %v6356_v13 = vor.u32 %v7070_v60, %v6355_v59  ;;  %v7073_v60 = vld [vmem:[%s10766_s9 + $0x44] sm:$0xf] }
 0x20d   :  { %v7055_v4 = vld [vmem:[%s10764_s7 + $0x30] sm:$0xff] }
 0x20e   :  { %v3108_v5 = vadd.f32 %v3107_v1, %v3095_v2  ;;  %v6347_v1 = vld [vmem:[%s10766_s9 + $0x10] sm:$0xf]  ;;  %v7068_v2 = vld [vmem:[%s10766_s9 + $0x14] sm:$0xf0]  ;;  %3793 = vmatpush.bf16.msra.mxu2 %v7055_v4  ;;  %v7089_v4 = vld [vmem:[%s10766_s9 + $0xc4] sm:$0xf] }
 0x213   :  { %v3120_v10 = vpop.f32.mrf.mxu0  ;;  %v3096_v6 = vpop.f32.mrf.mxu2 }
 0x214   :  { %v3121_v11 = vadd.f32 %v3120_v10, %v3108_v5  ;;  %v3109_v12 = vpop.f32.mrf.mxu3  ;;  %v3133_v7 = vpop.f32.mrf.mxu1  ;;  %v7063_v5 = vld [vmem:[%s10764_s7 + $0x70] sm:$0xff] }
 0x215   :  { %v6427_v6 = vld [vmem:[%s10766_s9 + $0xb0] sm:$0xf]  ;;  %v7088_v12 = vld [vmem:[%s10766_s9 + $0xb4] sm:$0xf0] }
 0x216   :  { %v3134_v8 = vadd.f32 %v3133_v7, %v3121_v11  ;;  %v6436_v11 = vor.u32 %v7090_v57, %v6435_v26  ;;  %v6348_v7 = vor.u32 %v7068_v2, %v6347_v1  ;;  %v7091_v57 = vld [vmem:[%s10766_s9 + $0xd4] sm:$0xf]  ;;  %v6365_v1 = vld [vmem:[%s10766_s9 + $0x38] sm:$0xf0] }
 0x218   :  { %v3138_v55 = vmax.f32 %v3134_v8, 0.0  ;;  %v7066_v8 = vld [vmem:[%s10766_s9 + $0x4] sm:$0xf0] }
 0x219   :  { %v6340_v15 = vor.u32 %v7066_v8, %v6339_v24  ;;  %v6429_v24 = vld [vmem:[%s10766_s9 + $0xb8] sm:$0xf0]  ;;  %v6523_v8 = vld [vmem:[%s10769_s12 + $0x70] sm:$0xf] }
 0x21a   :  { %v3141_v9 = vrot.slane %v3138_v55, 6  ;;  %3147 = vst.sshfl [vmem:[#allocation1 + $0x8] sm:$0xff pattern:$0x73625140] %v3138_v55  ;;  %v10259_v19 = vpack.c.bf16 %v3138_v55, %v3138_v55  ;;  %v7054_v55 = vld [vmem:[%s10764_s7 + $0x28] sm:$0xff] }
 0x21b   :  { %v3122_v17 = vpop.f32.mrf.mxu0  ;;  %3864 = vst [vmem:[#allocation1] ss:$4 sm:$0xff] %v3862_v16  ;;  %v6428_v16 = vor.u32 %v7088_v12, %v6427_v6  ;;  %3794 = vmatpush.bf16.msra.mxu2 %v7054_v55  ;;  %v6357_v6 = vld [vmem:[%s10766_s9 + $0x28] sm:$0xf0] }
 0x21c   :  { %v3221_v32 = vrot.slane %v10259_v19, 1  ;;  %v3143_v22 = vsel %vm3142_vm1, %v9619_v63, %v3141_v9  ;;  %v3135_v51 = vpop.f32.mrf.mxu1  ;;  %v6387_v63 = vld [vmem:[%s10766_s9 + $0x60] sm:$0xf]  ;;  %v7086_v17 = vld [vmem:[%s10766_s9 + $0xa4] sm:$0xf0] }
 0x21d   :  { %3145 = vst [vmem:[#allocation2] sm:$0xf] %v3143_v22  ;;  %v6388_v3 = vor.u32 %v7078_v31, %v6387_v63  ;;  %v6419_v9 = vld [vmem:[%s10766_s9 + $0xa0] sm:$0xf]  ;;  %v7082_v31 = vld [vmem:[%s10766_s9 + $0x84] sm:$0xf0] }
 0x21e   :  { %3405 = vmatmul.bf16.vlgmr.msra.gmra.mxu3 %v3221_v32  ;;  %3431 = vmatmul.bf16.vlgmr.msrb.gmra.mxu1 %v3221_v32  ;;  %v7053_v32 = vld [vmem:[%s10764_s7 + $0x20] sm:$0xff]  ;;  %v6420_v22 = vor.u32 %v7086_v17, %v6419_v9  ;;  %v6349_v9 = vld [vmem:[%s10766_s9 + $0x18] sm:$0xf0]  ;;  %4391 = dma.vmem_to_hbm [thread:$0]  %s4387_s26, 64, %s4389_s24, [#allocation3]  }
 0x21f   :  { %3805 = vmatpush.bf16.msra.mxu3 %v7064_v0  ;;  %v7061_v51 = vld [vmem:[%s10764_s7 + $0x60] sm:$0xff]  ;;  %3795 = vmatpush.bf16.msra.mxu2 %v7053_v32  ;;  %v6448_v0 = vor.u32 %v7091_v57, %v6445_v14  ;;  %v7100_v57 = vld [vmem:[%s10769_s12 + $0x14] sm:$0xf0] }
 0x220   :  { %v6403_v63 = vld [vmem:[%s10766_s9 + $0x80] sm:$0xf]  ;;  %v7085_v32 = vld [vmem:[%s10766_s9 + $0xa4] sm:$0xf] }
 0x221   :  { %v3149_v27 = vld [vmem:[#allocation1 + $0x1] ss:$4 sm:$0xff] }
 0x222   :  { %v3865_v21 = vld.sshfl [vmem:[#allocation1] sm:$0xff pattern:$0x73625140]  ;;  %v3866_v36 = vld.sshfl [vmem:[#allocation1 + $0x8] sm:$0xff pattern:$0x73625140] }
 0x223   :  { %v3871_v42 = vsel %vm3142_vm1, %v3865_v21, 0  ;;  %v3873_v38 = vsel %vm3142_vm1, %v3866_v36, 0  ;;  %3151 = vst [vmem:[#allocation4] sm:$0xf] %v3149_v27  ;;  %3806 = vmatpush.bf16.msra.mxu3 %v7063_v5  ;;  %3796 = vmatpush.bf16.msra.mxu2 %v7052_v28  ;;  %v7051_v21 = vld [vmem:[%s10764_s7 + $0x10] sm:$0xff]  ;;  %v6404_v36 = vor.u32 %v7082_v31, %v6403_v63 }
 0x224   :  { %3882 = vmatpush.bf16.msrb.mxu0 %v3871_v42  ;;  %3895 = vmatpush.bf16.msrb.mxu1 %v3873_v38  ;;  %v7050_v42 = vld [vmem:[%s10764_s7 + $0x8] sm:$0xff]  ;;  %v7065_v28 = vld [vmem:[%s10766_s9 + $0x4] sm:$0xf] }
 0x225   :  { %v6437_v5 = vld [vmem:[%s10766_s9 + $0xc8] sm:$0xf0] }
 0x227   :  { %6335 = vmatmul.msk.bf16.vlgmr.msrb.gmra.mxu0 %vm3867_vm3, %v10278_v47  ;;  %3807 = vmatpush.bf16.msra.mxu3 %v7062_v37  ;;  %v7067_v37 = vld [vmem:[%s10766_s9 + $0x14] sm:$0xf] }
 0x228   :  { %4061 = vmatpush.bf16.msra.mxu0 %v6396_v52  ;;  %v7060_v52 = vld [vmem:[%s10764_s7 + $0x58] sm:$0xff]  ;;  %3797 = vmatpush.bf16.msra.mxu2 %v7051_v21  ;;  %v7083_v21 = vld [vmem:[%s10766_s9 + $0x94] sm:$0xf]  ;;  %s4399_s7 = sshll.u32 %s10772_s15, 4  ;;  %s4410_s15 = sshll.u32 %s10773_s16, 4  ;;  %s4400_s7 = int_to_ptr.hbm [resolvable:$true] %s4399_s7  ;;  %s4411_s15 = int_to_ptr.hbm [resolvable:$true] %s4410_s15 }
 0x229   :  { %4402 = dma.vmem_to_hbm [thread:$0]  %s4398_s22, 64, %s4400_s7, [#allocation5]  }
 0x22a   :  { %s4421_s16 = sshll.u32 %s10774_s17, 4  ;;  %s4422_s16 = int_to_ptr.hbm [resolvable:$true] %s4421_s16 }
 0x22b   :  { %v10294_v43 = vpop.f32.mrf.mxu2  ;;  %3808 = vmatpush.bf16.msra.mxu3 %v7061_v51  ;;  %v6515_v51 = vld [vmem:[%s10769_s12 + $0x60] sm:$0xf] }
 0x22c   :  { %4062 = vmatpush.bf16.msra.mxu0 %v6388_v3  ;;  %3798 = vmatpush.bf16.msra.mxu2 %v7050_v42  ;;  %v6507_v42 = vld [vmem:[%s10769_s12 + $0x50] sm:$0xf] }
 0x22e   :  { %3617 = vmatmul.bf16.vlgmr.msrb.gmra.mxu3 %v10259_v19  ;;  %3643 = vmatmul.bf16.vlgmr.msra.gmra.mxu1 %v10259_v19 }
 0x22f   :  { %4074 = vmatpush.bf16.msra.mxu1 %v6460_v46  ;;  %3809 = vmatpush.bf16.msra.mxu3 %v7060_v52  ;;  %v6389_v46 = vld [vmem:[%s10766_s9 + $0x68] sm:$0xf0]  ;;  %v6516_v52 = vor.u32 %v7110_v30, %v6515_v51  ;;  %v6509_v30 = vld [vmem:[%s10769_s12 + $0x58] sm:$0xf0] }
 0x230   :  { %4063 = vmatpush.bf16.msra.mxu0 %v6380_v44  ;;  %v6400_v44 = vor.u32 %v7079_v40, %v6397_v41  ;;  %3799 = vmatpush.bf16.msra.mxu2 %v7049_v39  ;;  %v6392_v29 = vor.u32 %v7077_v18, %v6389_v46  ;;  %v7081_v39 = vld [vmem:[%s10766_s9 + $0x84] sm:$0xf]  ;;  %v6405_v40 = vld [vmem:[%s10766_s9 + $0x88] sm:$0xf0]  ;;  %v6499_v41 = vld [vmem:[%s10769_s12 + $0x40] sm:$0xf] }
 0x233   :  { %v10316_v34 = vpop.f32.mrf.mxu0  ;;  %v3395_v20 = vpop.f32.mrf.mxu2  ;;  %4075 = vmatpush.bf16.msra.mxu1 %v6452_v53  ;;  %3810 = vmatpush.bf16.msra.mxu3 %v7059_v33  ;;  %v7075_v53 = vld [vmem:[%s10766_s9 + $0x54] sm:$0xf] }
 0x234   :  { %4064 = vmatpush.bf16.msra.mxu0 %v6372_v62  ;;  %4087 = vmatpush.bf16.msrb.mxu2 %v6400_v44  ;;  %v7095_v62 = vld [vmem:[%s10766_s9 + $0xf4] sm:$0xf]  ;;  %v6384_v58 = vor.u32 %v7075_v53, %v6381_v56  ;;  %v7093_v20 = vld [vmem:[%s10766_s9 + $0xe4] sm:$0xf]  ;;  %v6408_v44 = vor.u32 %v7081_v39, %v6405_v40  ;;  %v3648_v56 = vld [vmem:[%s10763_s6] sm:$0x3] }
 0x235   :  { %v6464_v50 = vor.u32 %v7095_v62, %v6461_v49  ;;  %v7104_v62 = vld [vmem:[%s10769_s12 + $0x34] sm:$0xf0] }
 0x237   :  { %4076 = vmatpush.bf16.msra.mxu1 %v6444_v61  ;;  %3811 = vmatpush.bf16.msra.mxu3 %v7058_v45  ;;  %v6373_v61 = vld [vmem:[%s10766_s9 + $0x48] sm:$0xf0]  ;;  %v7106_v45 = vld [vmem:[%s10769_s12 + $0x44] sm:$0xf0] }
 0x238   :  { %4065 = vmatpush.bf16.msra.mxu0 %v6364_v35  ;;  %4088 = vmatpush.bf16.msrb.mxu2 %v6392_v29  ;;  %v6453_v35 = vld [vmem:[%s10766_s9 + $0xe8] sm:$0xf0]  ;;  %v6376_v26 = vor.u32 %v7073_v60, %v6373_v61  ;;  %v6500_v46 = vor.u32 %v7106_v45, %v6499_v41  ;;  %v3651_v61 = vperm.slane %v3648_v56, 1 }
 0x239   :  { %v6456_v59 = vor.u32 %v7093_v20, %v6453_v35  ;;  %v7102_v20 = vld [vmem:[%s10769_s12 + $0x24] sm:$0xf0] }
 0x23b   :  { %v3421_v10 = vpop.f32.mrf.mxu0  ;;  %4077 = vmatpush.bf16.msra.mxu1 %v6436_v11  ;;  %3812 = vmatpush.bf16.msra.mxu3 %v7057_v48  ;;  %v7069_v11 = vld [vmem:[%s10766_s9 + $0x24] sm:$0xf]  ;;  %v6491_v48 = vld [vmem:[%s10769_s12 + $0x30] sm:$0xf] }
 0x23c   :  { %4066 = vmatpush.bf16.msra.mxu0 %v6356_v13  ;;  %4089 = vmatpush.bf16.msrb.mxu2 %v6384_v58  ;;  %v7071_v13 = vld [vmem:[%s10766_s9 + $0x34] sm:$0xf]  ;;  %v6440_v10 = vor.u32 %v7089_v4, %v6437_v5  ;;  %v6360_v12 = vor.u32 %v7069_v11, %v6357_v6  ;;  %v6483_v58 = vld [vmem:[%s10769_s12 + $0x20] sm:$0xf]  ;;  %v7098_v4 = vld [vmem:[%s10769_s12 + $0x4] sm:$0xf0] }
 0x23d   :  { %v6368_v2 = vor.u32 %v7071_v13, %v6365_v1  ;;  %v6484_v35 = vor.u32 %v7102_v20, %v6483_v58  ;;  %v3650_v11 = vperm.slane %v3648_v56, 0  ;;  %v6587_v20 = vld [vmem:[%s10769_s12 + $0xf0] sm:$0xf] }
 0x23e   :  { %6336 = vmatmul.msk.bf16.vlgmr.msrb.gmra.mxu1 %vm3867_vm3, %v10278_v47 }
 0x23f   :  { %4078 = vmatpush.bf16.msra.mxu1 %v6428_v16  ;;  %4100 = vmatpush.bf16.msrb.mxu3 %v6464_v50  ;;  %v7112_v16 = vld [vmem:[%s10769_s12 + $0x74] sm:$0xf0]  ;;  %v6492_v50 = vor.u32 %v7104_v62, %v6491_v48 }
 0x240   :  { %4067 = vmatpush.bf16.msra.mxu0 %v6348_v7  ;;  %4090 = vmatpush.bf16.msrb.mxu2 %v6376_v26  ;;  %v7087_v7 = vld [vmem:[%s10766_s9 + $0xb4] sm:$0xf]  ;;  %v6524_v17 = vor.u32 %v7112_v16, %v6523_v8  ;;  %v6525_v16 = vld [vmem:[%s10769_s12 + $0x78] sm:$0xf0] }
 0x241   :  { %v6432_v55 = vor.u32 %v7087_v7, %v6429_v24 }
 0x243   :  { %4079 = vmatpush.bf16.msra.mxu1 %v6420_v22  ;;  %4101 = vmatpush.bf16.msrb.mxu3 %v6456_v59  ;;  %v6421_v22 = vld [vmem:[%s10766_s9 + $0xa8] sm:$0xf0] }
 0x244   :  { %4068 = vmatpush.bf16.msra.mxu0 %v6340_v15  ;;  %4091 = vmatpush.bf16.msrb.mxu2 %v6368_v2  ;;  %v6352_v15 = vor.u32 %v7067_v37, %v6349_v9  ;;  %v6424_v25 = vor.u32 %v7085_v32, %v6421_v22 }
 0x247   :  { %4069 = vmatmul.bf16.vlgmr.msra.gmra.mxu0 %v9933_v23  ;;  %4080 = vmatpush.bf16.msra.mxu1 %v6412_v54  ;;  %v6341_v54 = vld [vmem:[%s10766_s9 + $0x8] sm:$0xf0] }
 0x248   :  { %4102 = vmatpush.bf16.msrb.mxu3 %v6448_v0  ;;  %4092 = vmatpush.bf16.msrb.mxu2 %v6360_v12  ;;  %v6344_v63 = vor.u32 %v7065_v28, %v6341_v54  ;;  %v7105_v54 = vld [vmem:[%s10769_s12 + $0x44] sm:$0xf] }
 0x249   :  { %4323 = vmatpush.bf16.msrb.mxu0 %v6524_v17  ;;  %v7109_v17 = vld [vmem:[%s10769_s12 + $0x64] sm:$0xf] }
 0x24b   :  { %v10405_v27 = vpop.f32.mrf.mxu2  ;;  %4081 = vmatpush.bf16.msra.mxu1 %v6404_v36  ;;  %v6413_v36 = vld [vmem:[%s10766_s9 + $0x98] sm:$0xf0] }
 0x24c   :  { %4103 = vmatpush.bf16.msrb.mxu3 %v6440_v10  ;;  %4093 = vmatpush.bf16.msrb.mxu2 %v6352_v15  ;;  %v6517_v15 = vld [vmem:[%s10769_s12 + $0x68] sm:$0xf0] }
 0x24d   :  { %4324 = vmatpush.bf16.msrb.mxu0 %v6516_v52  ;;  %v6520_v51 = vor.u32 %v7109_v17, %v6517_v15  ;;  %v6501_v52 = vld [vmem:[%s10769_s12 + $0x48] sm:$0xf0]  ;;  %v6547_v15 = vld [vmem:[%s10769_s12 + $0xa0] sm:$0xf] }
 0x24e   :  { %4082 = vmatmul.bf16.vlgmr.msra.gmra.mxu1 %v10259_v19 }
 0x250   :  { %4104 = vmatpush.bf16.msrb.mxu3 %v6432_v55  ;;  %4094 = vmatpush.bf16.msrb.mxu2 %v6344_v63  ;;  %v7111_v55 = vld [vmem:[%s10769_s12 + $0x74] sm:$0xf] }
 0x251   :  { %v6528_v9 = vor.u32 %v7111_v55, %v6525_v16  ;;  %v6555_v55 = vld [vmem:[%s10769_s12 + $0xb0] sm:$0xf]  ;;  %v7120_v16 = vld [vmem:[%s10769_s12 + $0xb4] sm:$0xf0] }
 0x253   :  { %v10413_v38 = vpop.f32.mrf.mxu0  ;;  %v3607_v47 = vpop.f32.mrf.mxu2 }
 0x254   :  { %4105 = vmatpush.bf16.msrb.mxu3 %v6424_v25  ;;  %v6416_v47 = vor.u32 %v7083_v21, %v6413_v36  ;;  %v7107_v25 = vld [vmem:[%s10769_s12 + $0x54] sm:$0xf]  ;;  %v6504_v21 = vor.u32 %v7105_v54, %v6501_v52  ;;  %v6539_v54 = vld [vmem:[%s10769_s12 + $0x90] sm:$0xf]  ;;  %v7116_v52 = vld [vmem:[%s10769_s12 + $0x94] sm:$0xf0] }
 0x255   :  { %v6512_v28 = vor.u32 %v7107_v25, %v6509_v30  ;;  %v7103_v36 = vld [vmem:[%s10769_s12 + $0x34] sm:$0xf]  ;;  %v6549_v30 = vld [vmem:[%s10769_s12 + $0xa8] sm:$0xf0] }
 0x258   :  { %4106 = vmatpush.bf16.msrb.mxu3 %v6416_v47  ;;  %v10617_v47 = vld [vmem:[%s10768_s11] sm:$0x3] }
 0x259   :  { %v4115_v41 = vperm.slane %v10617_v47, 0 }
 0x25b   :  { %v3633_v3 = vpop.f32.mrf.mxu0 }
 0x25c   :  { %v7108_v3 = vld [vmem:[%s10769_s12 + $0x54] sm:$0xf0]  ;;  %4107 = vmatpush.bf16.msrb.mxu3 %v6408_v44 }
 0x25d   :  { %v6508_v33 = vor.u32 %v7108_v3, %v6507_v42  ;;  %v6493_v42 = vld [vmem:[%s10769_s12 + $0x38] sm:$0xf0] }
 0x25e   :  { %v6496_v3 = vor.u32 %v7103_v36, %v6493_v42  ;;  %v6531_v42 = vld [vmem:[%s10769_s12 + $0x80] sm:$0xf] }
 0x25f   :  { %4325 = vmatpush.bf16.msrb.mxu0 %v6508_v33  ;;  %v7101_v33 = vld [vmem:[%s10769_s12 + $0x24] sm:$0xf] }
 0x263   :  { %4326 = vmatpush.bf16.msrb.mxu0 %v6500_v46  ;;  %v7099_v46 = vld [vmem:[%s10769_s12 + $0x14] sm:$0xf] }
 0x267   :  { %4327 = vmatpush.bf16.msrb.mxu0 %v6492_v50  ;;  %v6469_v50 = vld [vmem:[%s10769_s12 + $0x8] sm:$0xf0] }
 0x26b   :  { %4328 = vmatpush.bf16.msrb.mxu0 %v6484_v35  ;;  %v7128_v35 = vld [vmem:[%s10769_s12 + $0xf4] sm:$0xf0] }
 0x29b   :  { %v3432_v31 = vpop.f32.mrf.mxu1 }
 0x29c   :  { %v3433_v53 = vadd.f32 %v3432_v31, %v10316_v34  ;;  %v6475_v34 = vld [vmem:[%s10769_s12 + $0x10] sm:$0xf] }
 0x29d   :  { %v6476_v1 = vor.u32 %v7100_v57, %v6475_v34  ;;  %v6579_v34 = vld [vmem:[%s10769_s12 + $0xe0] sm:$0xf]  ;;  %v7126_v57 = vld [vmem:[%s10769_s12 + $0xe4] sm:$0xf0] }
 0x29e   :  { %v3632_v60 = vadd.f32 %v10413_v38, %v3433_v53  ;;  %v6467_v38 = vld [vmem:[%s10769_s12] sm:$0xf] }
 0x29f   :  { %4329 = vmatpush.bf16.msrb.mxu0 %v6476_v1  ;;  %v6468_v6 = vor.u32 %v7098_v4, %v6467_v38  ;;  %v7124_v38 = vld [vmem:[%s10769_s12 + $0xd4] sm:$0xf0]  ;;  %v7123_v4 = vld [vmem:[%s10769_s12 + $0xd4] sm:$0xf] }
 0x2a1   :  { %v3406_v18 = vpop.f32.mrf.mxu3 }
 0x2a2   :  { %v3407_v14 = vadd.f32 %v3406_v18, %v10294_v43 }
 0x2a3   :  { %v3434_v29 = vpop.f32.mrf.mxu1  ;;  %4330 = vmatpush.bf16.msrb.mxu0 %v6468_v6  ;;  %v6563_v6 = vld [vmem:[%s10769_s12 + $0xc0] sm:$0xf] }
 0x2a4   :  { %v10554_v49 = vpop.f32.mrf.mxu0  ;;  %v3606_v10 = vadd.f32 %v10405_v27, %v3407_v14  ;;  %v6477_v29 = vld [vmem:[%s10769_s12 + $0x18] sm:$0xf0]  ;;  %v7125_v14 = vld [vmem:[%s10769_s12 + $0xe4] sm:$0xf] }
 0x2a5   :  { %v6480_v62 = vor.u32 %v7099_v46, %v6477_v29 }
 0x2a9   :  { %v3408_v59 = vpop.f32.mrf.mxu3 }
 0x2aa   :  { %v7127_v59 = vld [vmem:[%s10769_s12 + $0xf4] sm:$0xf] }
 0x2ab   :  { %v3644_v26 = vpop.f32.mrf.mxu1 }
 0x2ac   :  { %v3645_v0 = vadd.f32 %v3644_v26, %v3632_v60  ;;  %v3886_v13 = vpop.f32.mrf.mxu0  ;;  %v6588_v60 = vor.u32 %v7128_v35, %v6587_v20 }
 0x2ad   :  { %v6581_v13 = vld [vmem:[%s10769_s12 + $0xe8] sm:$0xf0] }
 0x2ae   :  { %v3655_v2 = vadd.f32 %v3651_v61, %v3645_v0  ;;  %v6589_v61 = vld [vmem:[%s10769_s12 + $0xf8] sm:$0xf0]  ;;  %4336 = vmatpush.bf16.msrb.mxu1 %v6588_v60  ;;  %v6580_v0 = vor.u32 %v7126_v57, %v6579_v34  ;;  %v6584_v1 = vor.u32 %v7125_v14, %v6581_v13 }
 0x2af   :  { %v6592_v26 = vor.u32 %v7127_v59, %v6589_v61 }
 0x2b0   :  { %v3657_v5 = vmax.f32 %v3655_v2, 0.0  ;;  %v6571_v2 = vld [vmem:[%s10769_s12 + $0xd0] sm:$0xf] }
 0x2b1   :  { %v3618_v12 = vpop.f32.mrf.mxu3 }
 0x2b2   :  { %v3659_v43 = vpack.c.bf16 %v3657_v5, %v3657_v5  ;;  %v3619_v7 = vadd.f32 %v3618_v12, %v3606_v10  ;;  %4337 = vmatpush.bf16.msrb.mxu1 %v6580_v0  ;;  %v6572_v5 = vor.u32 %v7124_v38, %v6571_v2  ;;  %v6573_v10 = vld [vmem:[%s10769_s12 + $0xd8] sm:$0xf0]  ;;  %v7122_v12 = vld [vmem:[%s10769_s12 + $0xc4] sm:$0xf0] }
 0x2b3   :  { %v3646_v24 = vpop.f32.mrf.mxu1 }
 0x2b4   :  { %v3654_v8 = vadd.f32 %v3650_v11, %v3619_v7  ;;  %3813 = vmatmul.bf16.vlgmr.msra.gmra.mxu3 %v3659_v43  ;;  %v6576_v11 = vor.u32 %v7123_v4, %v6573_v10  ;;  %v7121_v43 = vld [vmem:[%s10769_s12 + $0xc4] sm:$0xf]  ;;  %v6564_v7 = vor.u32 %v7122_v12, %v6563_v6  ;;  %v6565_v24 = vld [vmem:[%s10769_s12 + $0xc8] sm:$0xf0] }
 0x2b5   :  { %4362 = vmatpush.bf16.msra.mxu3 %v6592_v26 }
 0x2b6   :  { %v3656_v37 = vmax.f32 %v3654_v8, 0.0  ;;  %4338 = vmatpush.bf16.msrb.mxu1 %v6572_v5  ;;  %v6568_v8 = vor.u32 %v7121_v43, %v6565_v24 }
 0x2b8   :  { %v3658_v27 = vpack.c.bf16 %v3656_v37, %v3656_v37  ;;  %v7119_v37 = vld [vmem:[%s10769_s12 + $0xb4] sm:$0xf] }
 0x2b9   :  { %v3620_v32 = vpop.f32.mrf.mxu3  ;;  %4363 = vmatpush.bf16.msra.mxu3 %v6584_v1 }
 0x2ba   :  { %3800 = vmatmul.bf16.vlgmr.msra.gmra.mxu2 %v3658_v27  ;;  %4339 = vmatpush.bf16.msrb.mxu1 %v6564_v7  ;;  %v6557_v27 = vld [vmem:[%s10769_s12 + $0xb8] sm:$0xf0]  ;;  %v7118_v32 = vld [vmem:[%s10769_s12 + $0xa4] sm:$0xf0] }
 0x2bb   :  { %v10593_v22 = vpop.f32.mrf.mxu1  ;;  %4349 = vmatpush.bf16.msra.mxu2 %v6528_v9  ;;  %v6556_v9 = vor.u32 %v7120_v16, %v6555_v55  ;;  %v6560_v17 = vor.u32 %v7119_v37, %v6557_v27  ;;  %v6548_v25 = vor.u32 %v7118_v32, %v6547_v15 }
 0x2bd   :  { %4364 = vmatpush.bf16.msra.mxu3 %v6576_v11 }
 0x2be   :  { %4340 = vmatpush.bf16.msrb.mxu1 %v6556_v9 }
 0x2bf   :  { %4350 = vmatpush.bf16.msra.mxu2 %v6520_v51  ;;  %v7117_v51 = vld [vmem:[%s10769_s12 + $0xa4] sm:$0xf] }
 0x2c1   :  { %4365 = vmatpush.bf16.msra.mxu3 %v6568_v8 }
 0x2c2   :  { %4341 = vmatpush.bf16.msrb.mxu1 %v6548_v25 }
 0x2c3   :  { %v3899_v31 = vpop.f32.mrf.mxu1  ;;  %4351 = vmatpush.bf16.msra.mxu2 %v6512_v28  ;;  %v6552_v28 = vor.u32 %v7117_v51, %v6549_v30 }
 0x2c4   :  { %v4070_v63 = vpop.f32.mrf.mxu0  ;;  %4108 = vmatmul.bf16.vlgmr.msrb.gmra.mxu3 %v10259_v19  ;;  %v6485_v19 = vld [vmem:[%s10769_s12 + $0x28] sm:$0xf0]  ;;  %v6540_v31 = vor.u32 %v7116_v52, %v6539_v54 }
 0x2c5   :  { %v4071_v40 = vadd.f32 %v4070_v63, %v10554_v49  ;;  %v6488_v45 = vor.u32 %v7101_v33, %v6485_v19  ;;  %4366 = vmatpush.bf16.msra.mxu3 %v6560_v17  ;;  %v7115_v63 = vld [vmem:[%s10769_s12 + $0x94] sm:$0xf]  ;;  %v7113_v33 = vld [vmem:[%s10769_s12 + $0x84] sm:$0xf] }
 0x2c6   :  { %4342 = vmatpush.bf16.msrb.mxu1 %v6540_v31 }
 0x2c7   :  { %4352 = vmatpush.bf16.msra.mxu2 %v6504_v21  ;;  %v6541_v21 = vld [vmem:[%s10769_s12 + $0x98] sm:$0xf0] }
 0x2c8   :  { %v6544_v36 = vor.u32 %v7115_v63, %v6541_v21 }
 0x2c9   :  { %4367 = vmatpush.bf16.msra.mxu3 %v6552_v28 }
 0x2ca   :  { %4095 = vmatmul.bf16.vlgmr.msrb.gmra.mxu2 %v9933_v23  ;;  %v7097_v23 = vld [vmem:[%s10769_s12 + $0x4] sm:$0xf] }
 0x2cb   :  { %v4083_v44 = vpop.f32.mrf.mxu1  ;;  %4353 = vmatpush.bf16.msra.mxu2 %v6496_v3  ;;  %v6472_v58 = vor.u32 %v7097_v23, %v6469_v50  ;;  %v7114_v3 = vld [vmem:[%s10769_s12 + $0x84] sm:$0xf0]  ;;  %v4116_v50 = vperm.slane %v10617_v47, 1  ;;  %v4157_v47 = vld [vmem:[%s10770_s13] sm:$0x3] }
 0x2cc   :  { %v4072_v39 = vpop.f32.mrf.mxu0  ;;  %v4084_v18 = vadd.f32 %v4083_v44, %v4071_v40  ;;  %v6532_v19 = vor.u32 %v7114_v3, %v6531_v42  ;;  %v7136_v44 = vld [vmem:[%s10765_s8] ss:$0 sm:$0xff]  ;;  %v4160_v57 = vperm.slane %v4157_v47, 1  ;;  %v4159_v14 = vperm.slane %v4157_v47, 0 }
 0x2cd   :  { %4368 = vmatpush.bf16.msra.mxu3 %v6544_v36  ;;  %v6533_v39 = vld [vmem:[%s10769_s12 + $0x88] sm:$0xf0] }
 0x2ce   :  { %v4119_v48 = vadd.f32 %v4115_v41, %v4084_v18  ;;  %v6536_v40 = vor.u32 %v7113_v33, %v6533_v39  ;;  %4343 = vmatpush.bf16.msrb.mxu1 %v6532_v19 }
 0x2cf   :  { %4354 = vmatpush.bf16.msra.mxu2 %v6488_v45 }
 0x2d0   :  { %v4121_v49 = vmax.f32 %v4119_v48, 0.0 }
 0x2d1   :  { %4369 = vmatpush.bf16.msra.mxu3 %v6536_v40 }
 0x2d2   :  { %v4123_v53 = vpack.c.bf16 %v4121_v49, %v4121_v49 }
 0x2d3   :  { %v4085_v56 = vpop.f32.mrf.mxu1  ;;  %4355 = vmatpush.bf16.msra.mxu2 %v6480_v62 }
 0x2d4   :  { %4331 = vmatmul.bf16.vlgmr.msrb.gmra.mxu0 %v4123_v53 }
 0x2d7   :  { %4356 = vmatpush.bf16.msra.mxu2 %v6472_v58 }
 0x2da   :  { %4357 = vmatmul.bf16.vlgmr.msra.gmra.mxu2 %v4123_v53 }
 0x337   :  { %v3814_v41 = vpop.f32.mrf.mxu3 }
 0x33d   :  { %v3801_v45 = vpop.f32.mrf.mxu2 }
 0x33e   :  { %v3802_v18 = vadd.f32 %v7136_v44, %v3801_v45 }
 0x33f   :  { %v3816_v46 = vpop.f32.mrf.mxu3 }
 0x340   :  { %v3815_v29 = vadd.f32 %v3814_v41, %v3802_v18 }
 0x342   :  { %3819 = vst.msk [vmem:[#allocation6] sm:$0x3] %vm3818_vm4, %v3815_v29 }
 0x343   :  { %4413 = dma.vmem_to_hbm [thread:$0]  %s4409_s27, 32, %s4411_s15, [#allocation5]  }
 0x345   :  { %v3803_v48 = vpop.f32.mrf.mxu2 }
 0x347   :  { %v4109_v62 = vpop.f32.mrf.mxu3 }
 0x34d   :  { %v4096_v49 = vpop.f32.mrf.mxu2 }
 0x34e   :  { %v4097_v23 = vadd.f32 %v4096_v49, %v10593_v22 }
 0x34f   :  { %v4111_v53 = vpop.f32.mrf.mxu3 }
 0x350   :  { %v4110_v56 = vadd.f32 %v4109_v62, %v4097_v23 }
 0x351   :  { %v4332_v58 = vpop.f32.mrf.mxu0 }
 0x352   :  { %v4120_v20 = vadd.f32 %v4116_v50, %v4110_v56  ;;  %v4333_v1 = vadd.f32 %v4332_v58, %v4159_v14 }
 0x354   :  { %v4122_v35 = vmax.f32 %v4120_v20, 0.0 }
 0x355   :  { %v4098_v59 = vpop.f32.mrf.mxu2 }
 0x356   :  { %v4124_v60 = vpack.c.bf16 %v4122_v35, %v4122_v35 }
 0x358   :  { %4344 = vmatmul.bf16.vlgmr.msrb.gmra.mxu1 %v4124_v60  ;;  %4370 = vmatmul.bf16.vlgmr.msra.gmra.mxu3 %v4124_v60 }
 0x359   :  { %v4334_v61 = vpop.f32.mrf.mxu0 }
 0x35d   :  { %v4358_v26 = vpop.f32.mrf.mxu2 }
 0x35e   :  { %v4359_v0 = vadd.f32 %v4358_v26, %v4160_v57 }
 0x365   :  { %v4360_v22 = vpop.f32.mrf.mxu2 }
 0x3d5   :  { %v4345_v34 = vpop.f32.mrf.mxu1 }
 0x3d6   :  { %v4346_v4 = vadd.f32 %v4345_v34, %v4333_v1 }
 0x3db   :  { %v4371_v13 = vpop.f32.mrf.mxu3 }
 0x3dc   :  { %v4372_v2 = vadd.f32 %v4371_v13, %v4359_v0 }
 0x3dd   :  { %v4347_v38 = vpop.f32.mrf.mxu1 }
 0x3de   :  { %v4377_v5 = vrot.slane %v4372_v2, 6 }
 0x3e0   :  { %v4378_v10 = vsel %vm3142_vm1, %v4346_v4, %v4377_v5 }
 0x3e1   :  { %4380 = vst [vmem:[#allocation7] sm:$0xf] %v4378_v10 }
 0x3e2   :  { %4424 = dma.vmem_to_hbm [thread:$0]  %s4420_s28, 64, %s4422_s16, [#allocation8]  }
 0x3e3   :  { %v4373_v11 = vpop.f32.mrf.mxu3 }
 0x3e4   :  { %7238 = dma.done.wait [#allocation3], 64  }
 0x3e5   :  { %7239 = vsyncadd [#allocation3], 4294967232 }
 0x3e6   :  { %7240 = dma.done.wait [#allocation5], 96  }
 0x3e7   :  { %7241 = vsyncadd [#allocation5], 4294967200 }
 0x3e8   :  { %7242 = dma.done.wait [#allocation8], 64  }
 0x3e9   :  { %7243 = vsyncadd [#allocation8], 4294967232 }
 0x3ea   :  { %4441 = vsyncpa [#allocation3], 1 }
 0x3eb   :  { %4442 = vsyncpa [#allocation5], 1 }
 0x3ec   :  { %4443 = vsyncpa [#allocation8], 1 }

</bundles_post_ra>
